<compile_context>
chip_gen: v5e
topology: v5e:2x2
jax: 0.10.0
libtpu: 0.0.40
codegen_flags: <defaults>
</compile_context>

<pallas_src>
import functools

import jax
import jax.numpy as jnp
from jax.experimental import pallas as pl
from jax.experimental.pallas import tpu as pltpu


# ----------------------------------------------------------------------------
# Pallas kernels
# ----------------------------------------------------------------------------
def _mm_bias_act_kernel(a_ref, b_ref, bias_ref, o_ref, *, act):
    """One M-tile of  O = act(A @ B + bias).  bf16 operands, f32 accumulate."""
    acc = jnp.dot(a_ref[...], b_ref[...], preferred_element_type=jnp.float32)
    acc = acc + bias_ref[...]                       # bias (1, N) broadcasts
    if act == "relu":
        acc = jnp.maximum(acc, 0.0)
    elif act == "sigmoid":
        # exp + approx reciprocal both run on the EUP (own bundle slot);
        # clip keeps the approx result exactly inside [0, 1].
        x = jnp.maximum(acc, -30.0)                 # avoid exp overflow
        acc = pl.reciprocal(1.0 + jnp.exp(-x), approx=True)
        acc = jnp.clip(acc, 0.0, 1.0)
    o_ref[...] = acc.astype(o_ref.dtype)


def _pick_tm(m):
    """Tile M so large layers get grid >= 2 (both v7x TCs); small stay 1-tile."""
    m8 = ((m + 7) // 8) * 8
    if m8 >= 512:
        tm = ((m8 // 2 + 7) // 8) * 8
        return min(512, tm)
    return m8


def matmul_bias_act(a, b, bias, act="none", out_dtype=jnp.bfloat16):
    """act(a @ b + bias): a (M,K), b (K,N) -> bf16 MXU inputs, f32 accumulate."""
    a = a.astype(jnp.bfloat16)
    b = b.astype(jnp.bfloat16)
    M, K = a.shape
    _, N = b.shape
    TM = _pick_tm(M)
    M_pad = ((M + TM - 1) // TM) * TM
    a_p = jnp.pad(a, ((0, M_pad - M), (0, 0)))
    bias2 = bias.reshape(1, N).astype(jnp.float32)

    out = pl.pallas_call(
        functools.partial(_mm_bias_act_kernel, act=act),
        out_shape=jax.ShapeDtypeStruct((M_pad, N), out_dtype),
        grid=(M_pad // TM,),
        in_specs=[
            pl.BlockSpec((TM, K), lambda i: (i, 0)),
            pl.BlockSpec((K, N), lambda i: (0, 0)),    # weight stays resident
            pl.BlockSpec((1, N), lambda i: (0, 0)),
        ],
        out_specs=pl.BlockSpec((TM, N), lambda i: (i, 0)),
        compiler_params=pltpu.CompilerParams(
            dimension_semantics=("parallel",)),
    )(a_p, b, bias2)
    return out[:M]


def _mid_kernel(p6_ref, w6_ref, b6_ref, wmu_ref, bmu_ref, wlv_ref, blv_ref,
                eps_ref, wfc_ref, bfc_ref, wd1_ref, bd1_ref,
                mu_ref, lv_ref, h1_ref):
    """Fused encConv6 + encFC + reparameterize + decFC + decConv1 (tiny data)."""
    f32 = jnp.float32
    feat = jnp.dot(p6_ref[...], w6_ref[...], preferred_element_type=f32) + b6_ref[...]
    feat = jnp.maximum(feat, 0.0).astype(jnp.bfloat16)            # encConv6+relu
    mu = jnp.dot(feat, wmu_ref[...], preferred_element_type=f32) + bmu_ref[...]
    lv = jnp.dot(feat, wlv_ref[...], preferred_element_type=f32) + blv_ref[...]
    z = mu + jnp.exp(lv * 0.5) * eps_ref[...]                     # reparameterize
    h = jnp.dot(z.astype(jnp.bfloat16), wfc_ref[...],
                preferred_element_type=f32) + bfc_ref[...]
    h = jnp.maximum(h, 0.0).astype(jnp.bfloat16)                  # decFC + relu
    h1 = jnp.dot(h, wd1_ref[...], preferred_element_type=f32) + bd1_ref[...]
    h1 = jnp.maximum(h1, 0.0)                                     # decConv1+relu
    mu_ref[...] = mu
    lv_ref[...] = lv
    h1_ref[...] = h1.astype(h1_ref.dtype)


def mid_block(patch6, eps, pp, z_dim, batch):
    mb = max(8, ((batch + 7) // 8) * 8)
    p6 = jnp.pad(patch6.astype(jnp.bfloat16), ((0, mb - batch), (0, 0)))
    ep = jnp.pad(eps.astype(jnp.float32), ((0, mb - batch), (0, 0)))
    mu, lv, h1 = pl.pallas_call(
        _mid_kernel,
        out_shape=(jax.ShapeDtypeStruct((mb, z_dim), jnp.float32),
                   jax.ShapeDtypeStruct((mb, z_dim), jnp.float32),
                   jax.ShapeDtypeStruct((mb, 16 * 64), jnp.bfloat16)),
    )(p6, pp["encConv6_w"], pp["encConv6_b"].reshape(1, -1),
      pp["Wmu"], pp["bmu"], pp["Wlv"], pp["blv"], ep,
      pp["Wdfc"], pp["bdfc"], pp["Wd1"], pp["bd1"])
    return mu[:batch], lv[:batch], h1[:batch]


# ----------------------------------------------------------------------------
# im2col glue (plain JAX: padding / strided slicing / reshapes only)
# ----------------------------------------------------------------------------
# TODO(synk): patch matrices are still materialized in HBM (bf16 halves the
# traffic); a further step would be in-kernel patch extraction via manual DMA.
def _im2col(x_nhwc, kh, kw, stride, pad):
    B, H, W, C = x_nhwc.shape
    xp = jnp.pad(x_nhwc, ((0, 0), (pad, pad), (pad, pad), (0, 0)))
    OH = (H + 2 * pad - kh) // stride + 1
    OW = (W + 2 * pad - kw) // stride + 1
    cols = []
    for i in range(kh):
        for j in range(kw):
            cols.append(
                xp[:, i:i + stride * (OH - 1) + 1:stride,
                      j:j + stride * (OW - 1) + 1:stride, :])
    # K-axis order: (kh, kw, Cin) -- must match the weight packing below.
    patches = jnp.stack(cols, axis=3)                 # (B, OH, OW, kh*kw, C)
    return patches.reshape(B * OH * OW, kh * kw * C), OH, OW


def conv2d(x_nhwc, w2, bias, kh, kw, stride, pad, act):
    """nn.Conv2d forward (NHWC) via im2col + fused Pallas matmul."""
    B = x_nhwc.shape[0]
    Cout = w2.shape[1]
    patches, OH, OW = _im2col(x_nhwc, kh, kw, stride, pad)
    out = matmul_bias_act(patches, w2, bias, act=act, out_dtype=jnp.bfloat16)
    return out.reshape(B, OH, OW, Cout)


def conv_transpose2x_subpixel(x_nhwc, w_sub, bias4, act, out_dtype=jnp.bfloat16):
    """nn.ConvTranspose2d(k=4, s=2, p=1) via sub-pixel decomposition.

    One stride-1 3x3 im2col matmul with the 4 output phases stacked along N
    (N = 4*Cout), then depth-to-space interleave.  No zero-dilated input.
    """
    B, H, W, Cin = x_nhwc.shape
    Cout = w_sub.shape[1] // 4
    patches, _, _ = _im2col(x_nhwc, 3, 3, 1, 1)        # (B*H*W, 9*Cin)
    out = matmul_bias_act(patches, w_sub, bias4, act=act, out_dtype=out_dtype)
    out = out.reshape(B, H, W, 2, 2, Cout)             # (b,i,j,r,c,cout)
    out = jnp.transpose(out, (0, 1, 3, 2, 4, 5)).reshape(B, 2 * H, 2 * W, Cout)
    return out


# ----------------------------------------------------------------------------
# Parameter construction + one-time (outside jit) weight preparation
# ----------------------------------------------------------------------------
def _uniform(key, shape, fan_in):
    bound = 1.0 / float(fan_in) ** 0.5
    return jax.random.uniform(key, shape, jnp.float32, -bound, bound)


def init_params(key, num_color_channels=1, z_dim=32):
    names_shapes = [
        ("encConv1", (64, num_color_channels, 4, 4)),
        ("encConv2", (32, 64, 4, 4)),
        ("encConv3", (32, 32, 4, 4)),
        ("encConv4", (64, 32, 3, 3)),
        ("encConv5", (64, 64, 4, 4)),
        ("encConv6", (256, 64, 4, 4)),
        ("encFC",    (z_dim * 2, 256)),          # Linear: (out, in)
        ("decFC",    (256, z_dim)),
        ("decConv1", (256, 64, 4, 4)),           # ConvTranspose: (in, out, kh, kw)
        ("decConv2", (64, 64, 4, 4)),
        ("decConv3", (64, 32, 4, 4)),
        ("decConv4", (32, 32, 4, 4)),
        ("decConv5", (32, num_color_channels, 4, 4)),
    ]
    params = {}
    keys = jax.random.split(key, 2 * len(names_shapes))
    for idx, (name, shape) in enumerate(names_shapes):
        if name.startswith("encFC") or name.startswith("decFC"):
            fan_in, bias_n = shape[1], shape[0]
        elif name.startswith("dec"):             # ConvTranspose2d (in,out,kh,kw)
            fan_in, bias_n = shape[0] * shape[2] * shape[3], shape[1]
        else:                                    # Conv2d (out,in,kh,kw)
            fan_in, bias_n = shape[1] * shape[2] * shape[3], shape[0]
        params[name + "_w"] = _uniform(keys[2 * idx], shape, fan_in)
        params[name + "_b"] = _uniform(keys[2 * idx + 1], (bias_n,), fan_in)
    return params


# Sub-pixel phase->kernel-tap mapping for k=4, stride=2, pad=1 (per axis):
# (phase r, input offset di) -> kernel index kh.
_KMAP = {(0, -1): 3, (0, 0): 1, (1, 0): 2, (1, 1): 0}


def _subpixel_weight(w_t):
    """(Cin, Cout, 4, 4) ConvTranspose weight -> (9*Cin, 4*Cout) phase matrix."""
    Cin, Cout, _, _ = w_t.shape
    w_sub = jnp.zeros((3, 3, Cin, 2, 2, Cout), w_t.dtype)
    for r in (0, 1):
        for c in (0, 1):
            for di in (-1, 0, 1):
                kh = _KMAP.get((r, di))
                if kh is None:
                    continue
                for dj in (-1, 0, 1):
                    kw = _KMAP.get((c, dj))
                    if kw is None:
                        continue
                    w_sub = w_sub.at[di + 1, dj + 1, :, r, c, :].set(w_t[:, :, kh, kw])
    return w_sub.reshape(9 * Cin, 4 * Cout)


def prepare_params(params, z_dim=32):
    """One-time weight munging (transpose/reshape/phase-pack, bf16 cast)."""
    f32, bf16 = jnp.float32, jnp.bfloat16
    pp = {}

    for name in ("encConv1", "encConv2", "encConv3", "encConv4",
                 "encConv5", "encConv6"):
        w = params[name + "_w"]                        # (Cout, Cin, kh, kw)
        Cout, Cin, kh, kw = w.shape
        pp[name + "_w"] = (jnp.transpose(w, (2, 3, 1, 0))
                           .reshape(kh * kw * Cin, Cout).astype(bf16))
        pp[name + "_b"] = params[name + "_b"].astype(f32)

    wfc, bfc = params["encFC_w"], params["encFC_b"]    # (2z,256),(2z,)
    pp["Wmu"] = wfc[:z_dim].T.astype(bf16)             # (256, z)
    pp["Wlv"] = wfc[z_dim:].T.astype(bf16)
    pp["bmu"] = bfc[:z_dim].astype(f32).reshape(1, z_dim)
    pp["blv"] = bfc[z_dim:].astype(f32).reshape(1, z_dim)

    pp["Wdfc"] = params["decFC_w"].T.astype(bf16)      # (z, 256)
    pp["bdfc"] = params["decFC_b"].astype(f32).reshape(1, 256)

    # decConv1 (1x1 -> 4x4, stride 1, pad 0) is a pure linear layer.
    w1 = params["decConv1_w"]                          # (256, 64, 4, 4)
    pp["Wd1"] = jnp.transpose(w1, (0, 2, 3, 1)).reshape(256, 16 * 64).astype(bf16)
    pp["bd1"] = jnp.tile(params["decConv1_b"], 16).astype(f32).reshape(1, 16 * 64)

    for name in ("decConv2", "decConv3", "decConv4", "decConv5"):
        w = params[name + "_w"]                        # (Cin, Cout, 4, 4)
        pp[name + "_w"] = _subpixel_weight(w).astype(bf16)
        pp[name + "_b"] = jnp.tile(params[name + "_b"], 4).astype(f32)
    return pp


# ----------------------------------------------------------------------------
# Forward pass (mirrors BetaVAE64.forward)
# ----------------------------------------------------------------------------
def beta_vae64_forward(x_nchw, pp, eps, z_dim):
    B = x_nchw.shape[0]
    x = jnp.transpose(x_nchw, (0, 2, 3, 1)).astype(jnp.bfloat16)  # NCHW -> NHWC

    # --- encoder (conv stack) ---
    x = conv2d(x, pp["encConv1_w"], pp["encConv1_b"], 4, 4, 2, 1, "relu")
    x = conv2d(x, pp["encConv2_w"], pp["encConv2_b"], 4, 4, 2, 1, "relu")
    x = conv2d(x, pp["encConv3_w"], pp["encConv3_b"], 4, 4, 2, 1, "relu")
    x = conv2d(x, pp["encConv4_w"], pp["encConv4_b"], 3, 3, 2, 1, "relu")
    x = conv2d(x, pp["encConv5_w"], pp["encConv5_b"], 4, 4, 2, 1, "relu")

    # --- fused middle: encConv6 + encFC + reparameterize + decFC + decConv1 ---
    patch6, _, _ = _im2col(x, 4, 4, 2, 1)              # (B, 1024), 1x1 output
    mu, log_var, h1 = mid_block(patch6, eps, pp, z_dim, B)

    # --- decoder (sub-pixel transposed convs) ---
    y = h1.reshape(B, 4, 4, 64)
    y = conv_transpose2x_subpixel(y, pp["decConv2_w"], pp["decConv2_b"], "relu")
    y = conv_transpose2x_subpixel(y, pp["decConv3_w"], pp["decConv3_b"], "relu")
    y = conv_transpose2x_subpixel(y, pp["decConv4_w"], pp["decConv4_b"], "relu")
    y = conv_transpose2x_subpixel(y, pp["decConv5_w"], pp["decConv5_b"],
                                  "sigmoid", out_dtype=jnp.float32)

    out = jnp.transpose(y, (0, 3, 1, 2)).reshape(x_nchw.shape)    # back to NCHW
    return out, mu, log_var


# ----------------------------------------------------------------------------
if __name__ == "__main__":
    # The architecture hard-requires 64x64 spatial input (down to 1x1 in the
    # encoder).  Keep batch/channels/z_dim small.
    B, C, H, W = 2, 1, 64, 64
    Z_DIM = 32

    root = jax.random.PRNGKey(0)
    k_params, k_x, k_eps = jax.random.split(root, 3)

    params = init_params(k_params, num_color_channels=C, z_dim=Z_DIM)
    pp = prepare_params(params, z_dim=Z_DIM)           # weight munging, once
    x = jax.random.uniform(k_x, (B, C, H, W), jnp.float32)        # image in [0,1)
    # TODO(synk): PyTorch draws eps inside forward via .normal_(); here eps is a
    # deterministic externally supplied standard-normal sample.
    eps = jax.random.normal(k_eps, (B, Z_DIM), jnp.float32)

    fwd = jax.jit(functools.partial(beta_vae64_forward, z_dim=Z_DIM))
    out, mu, log_var = fwd(x, pp, eps)
    jax.block_until_ready((out, mu, log_var))

    assert out.shape == (B, C, H, W)
    assert mu.shape == (B, Z_DIM) and log_var.shape == (B, Z_DIM)
    assert bool(jnp.all(jnp.isfinite(out)))
    assert bool(jnp.all((out >= 0.0) & (out <= 1.0)))
    print("KERNEL_OK")
</pallas_src>

<mosaic_0001>
module attributes {stable_mosaic.version = 11 : i64} {
  func.func @_mm_bias_act_kernel(%arg0: i32, %arg1: memref<512x16xbf16, #tpu.memory_space<vmem>>, %arg2: memref<16x64xbf16, #tpu.memory_space<vmem>>, %arg3: memref<1x64xf32, #tpu.memory_space<vmem>>, %arg4: memref<512x64xbf16, #tpu.memory_space<vmem>>) attributes {dimension_semantics = [#tpu.dimension_semantics<parallel>], iteration_bounds = array<i64: 4>, scalar_prefetch = 0 : i64, scratch_operands = 0 : i64, tpu.core_type = #tpu.core_type<tc>, window_params = [{transform_indices = @transform_0, window_bounds = array<i64: 512, 16>}, {pipeline_mode = #tpu.pipeline_mode<synchronous>, transform_indices = @transform_1, window_bounds = array<i64: 16, 64>}, {pipeline_mode = #tpu.pipeline_mode<synchronous>, transform_indices = @transform_2, window_bounds = array<i64: 1, 64>}, {transform_indices = @transform_3, window_bounds = array<i64: 512, 64>}]} {
    %c0 = arith.constant 0 : index
    %c0_0 = arith.constant 0 : index
    %0 = vector.load %arg1[%c0, %c0_0] : memref<512x16xbf16, #tpu.memory_space<vmem>>, vector<512x16xbf16>
    %c0_1 = arith.constant 0 : index
    %c0_2 = arith.constant 0 : index
    %1 = vector.load %arg2[%c0_1, %c0_2] : memref<16x64xbf16, #tpu.memory_space<vmem>>, vector<16x64xbf16>
    %cst = arith.constant dense<0.000000e+00> : vector<512x64xf32>
    %2 = tpu.matmul %0, %1, %cst {dimension_numbers = #tpu.dot_dimension_numbers<[1], [0], [0], [1], [0, 0, 1, 1], [], []>} : vector<512x16xbf16>, vector<16x64xbf16>, vector<512x64xf32> -> vector<512x64xf32>
    %c0_3 = arith.constant 0 : index
    %c0_4 = arith.constant 0 : index
    %3 = vector.load %arg3[%c0_3, %c0_4] : memref<1x64xf32, #tpu.memory_space<vmem>>, vector<1x64xf32>
    %4 = vector.broadcast %3 : vector<1x64xf32> to vector<512x64xf32>
    %5 = arith.addf %2, %4 : vector<512x64xf32>
    %cst_5 = arith.constant 0.000000e+00 : f32
    %6 = vector.broadcast %cst_5 : f32 to vector<512x64xf32>
    %7 = arith.maximumf %5, %6 : vector<512x64xf32>
    %8 = arith.truncf %7 : vector<512x64xf32> to vector<512x64xbf16>
    %c0_6 = arith.constant 0 : index
    %c0_7 = arith.constant 0 : index
    %9 = vector.load %arg4[%c0_6, %c0_7] : memref<512x64xbf16, #tpu.memory_space<vmem>>, vector<512x64xbf16>
    tpu.vector_store %arg4[%c0_6, %c0_7], %8 {strides = array<i32>} : memref<512x64xbf16, #tpu.memory_space<vmem>>, vector<512x64xbf16>,
    return
  }
  func.func @transform_0(%arg0: i32) -> (i32, i32) {
    %c0_i32 = arith.constant 0 : i32
    %c0_i32_0 = arith.constant 0 : i32
    return %arg0, %c0_i32 : i32, i32
  }
  func.func @transform_1(%arg0: i32) -> (i32, i32) {
    %c0_i32 = arith.constant 0 : i32
    %c0_i32_0 = arith.constant 0 : i32
    %c0_i32_1 = arith.constant 0 : i32
    return %c0_i32, %c0_i32_0 : i32, i32
  }
  func.func @transform_2(%arg0: i32) -> (i32, i32) {
    %c0_i32 = arith.constant 0 : i32
    %c0_i32_0 = arith.constant 0 : i32
    %c0_i32_1 = arith.constant 0 : i32
    return %c0_i32, %c0_i32_0 : i32, i32
  }
  func.func @transform_3(%arg0: i32) -> (i32, i32) {
    %c0_i32 = arith.constant 0 : i32
    %c0_i32_0 = arith.constant 0 : i32
    return %arg0, %c0_i32 : i32, i32
  }
}

module attributes {stable_mosaic.version = 11 : i64} {
  func.func @_mm_bias_act_kernel(%arg0: i32, %arg1: memref<256x1024xbf16, #tpu.memory_space<vmem>>, %arg2: memref<1024x32xbf16, #tpu.memory_space<vmem>>, %arg3: memref<1x32xf32, #tpu.memory_space<vmem>>, %arg4: memref<256x32xbf16, #tpu.memory_space<vmem>>) attributes {dimension_semantics = [#tpu.dimension_semantics<parallel>], iteration_bounds = array<i64: 2>, scalar_prefetch = 0 : i64, scratch_operands = 0 : i64, tpu.core_type = #tpu.core_type<tc>, window_params = [{transform_indices = @transform_0, window_bounds = array<i64: 256, 1024>}, {pipeline_mode = #tpu.pipeline_mode<synchronous>, transform_indices = @transform_1, window_bounds = array<i64: 1024, 32>}, {pipeline_mode = #tpu.pipeline_mode<synchronous>, transform_indices = @transform_2, window_bounds = array<i64: 1, 32>}, {transform_indices = @transform_3, window_bounds = array<i64: 256, 32>}]} {
    %c0 = arith.constant 0 : index
    %c0_0 = arith.constant 0 : index
    %0 = vector.load %arg1[%c0, %c0_0] : memref<256x1024xbf16, #tpu.memory_space<vmem>>, vector<256x1024xbf16>
    %c0_1 = arith.constant 0 : index
    %c0_2 = arith.constant 0 : index
    %1 = vector.load %arg2[%c0_1, %c0_2] : memref<1024x32xbf16, #tpu.memory_space<vmem>>, vector<1024x32xbf16>
    %cst = arith.constant dense<0.000000e+00> : vector<256x32xf32>
    %2 = tpu.matmul %0, %1, %cst {dimension_numbers = #tpu.dot_dimension_numbers<[1], [0], [0], [1], [0, 0, 1, 1], [], []>} : vector<256x1024xbf16>, vector<1024x32xbf16>, vector<256x32xf32> -> vector<256x32xf32>
    %c0_3 = arith.constant 0 : index
    %c0_4 = arith.constant 0 : index
    %3 = vector.load %arg3[%c0_3, %c0_4] : memref<1x32xf32, #tpu.memory_space<vmem>>, vector<1x32xf32>
    %4 = vector.broadcast %3 : vector<1x32xf32> to vector<256x32xf32>
    %5 = arith.addf %2, %4 : vector<256x32xf32>
    %cst_5 = arith.constant 0.000000e+00 : f32
    %6 = vector.broadcast %cst_5 : f32 to vector<256x32xf32>
    %7 = arith.maximumf %5, %6 : vector<256x32xf32>
    %8 = arith.truncf %7 : vector<256x32xf32> to vector<256x32xbf16>
    %c0_6 = arith.constant 0 : index
    %c0_7 = arith.constant 0 : index
    %9 = vector.load %arg4[%c0_6, %c0_7] : memref<256x32xbf16, #tpu.memory_space<vmem>>, vector<256x32xbf16>
    tpu.vector_store %arg4[%c0_6, %c0_7], %8 {strides = array<i32>} : memref<256x32xbf16, #tpu.memory_space<vmem>>, vector<256x32xbf16>,
    return
  }
  func.func @transform_0(%arg0: i32) -> (i32, i32) {
    %c0_i32 = arith.constant 0 : i32
    %c0_i32_0 = arith.constant 0 : i32
    return %arg0, %c0_i32 : i32, i32
  }
  func.func @transform_1(%arg0: i32) -> (i32, i32) {
    %c0_i32 = arith.constant 0 : i32
    %c0_i32_0 = arith.constant 0 : i32
    %c0_i32_1 = arith.constant 0 : i32
    return %c0_i32, %c0_i32_0 : i32, i32
  }
  func.func @transform_2(%arg0: i32) -> (i32, i32) {
    %c0_i32 = arith.constant 0 : i32
    %c0_i32_0 = arith.constant 0 : i32
    %c0_i32_1 = arith.constant 0 : i32
    return %c0_i32, %c0_i32_0 : i32, i32
  }
  func.func @transform_3(%arg0: i32) -> (i32, i32) {
    %c0_i32 = arith.constant 0 : i32
    %c0_i32_0 = arith.constant 0 : i32
    return %arg0, %c0_i32 : i32, i32
  }
}

module attributes {stable_mosaic.version = 11 : i64} {
  func.func @_mm_bias_act_kernel(%arg0: i32, %arg1: memref<128x512xbf16, #tpu.memory_space<vmem>>, %arg2: memref<512x32xbf16, #tpu.memory_space<vmem>>, %arg3: memref<1x32xf32, #tpu.memory_space<vmem>>, %arg4: memref<128x32xbf16, #tpu.memory_space<vmem>>) attributes {dimension_semantics = [#tpu.dimension_semantics<parallel>], iteration_bounds = array<i64: 1>, scalar_prefetch = 0 : i64, scratch_operands = 0 : i64, tpu.core_type = #tpu.core_type<tc>, window_params = [{transform_indices = @transform_0, window_bounds = array<i64: 128, 512>}, {pipeline_mode = #tpu.pipeline_mode<synchronous>, transform_indices = @transform_1, window_bounds = array<i64: 512, 32>}, {pipeline_mode = #tpu.pipeline_mode<synchronous>, transform_indices = @transform_2, window_bounds = array<i64: 1, 32>}, {transform_indices = @transform_3, window_bounds = array<i64: 128, 32>}]} {
    %c0 = arith.constant 0 : index
    %c0_0 = arith.constant 0 : index
    %0 = vector.load %arg1[%c0, %c0_0] : memref<128x512xbf16, #tpu.memory_space<vmem>>, vector<128x512xbf16>
    %c0_1 = arith.constant 0 : index
    %c0_2 = arith.constant 0 : index
    %1 = vector.load %arg2[%c0_1, %c0_2] : memref<512x32xbf16, #tpu.memory_space<vmem>>, vector<512x32xbf16>
    %cst = arith.constant dense<0.000000e+00> : vector<128x32xf32>
    %2 = tpu.matmul %0, %1, %cst {dimension_numbers = #tpu.dot_dimension_numbers<[1], [0], [0], [1], [0, 0, 1, 1], [], []>} : vector<128x512xbf16>, vector<512x32xbf16>, vector<128x32xf32> -> vector<128x32xf32>
    %c0_3 = arith.constant 0 : index
    %c0_4 = arith.constant 0 : index
    %3 = vector.load %arg3[%c0_3, %c0_4] : memref<1x32xf32, #tpu.memory_space<vmem>>, vector<1x32xf32>
    %4 = vector.broadcast %3 : vector<1x32xf32> to vector<128x32xf32>
    %5 = arith.addf %2, %4 : vector<128x32xf32>
    %cst_5 = arith.constant 0.000000e+00 : f32
    %6 = vector.broadcast %cst_5 : f32 to vector<128x32xf32>
    %7 = arith.maximumf %5, %6 : vector<128x32xf32>
    %8 = arith.truncf %7 : vector<128x32xf32> to vector<128x32xbf16>
    %c0_6 = arith.constant 0 : index
    %c0_7 = arith.constant 0 : index
    %9 = vector.load %arg4[%c0_6, %c0_7] : memref<128x32xbf16, #tpu.memory_space<vmem>>, vector<128x32xbf16>
    tpu.vector_store %arg4[%c0_6, %c0_7], %8 {strides = array<i32>} : memref<128x32xbf16, #tpu.memory_space<vmem>>, vector<128x32xbf16>,
    return
  }
  func.func @transform_0(%arg0: i32) -> (i32, i32) {
    %c0_i32 = arith.constant 0 : i32
    %c0_i32_0 = arith.constant 0 : i32
    return %arg0, %c0_i32 : i32, i32
  }
  func.func @transform_1(%arg0: i32) -> (i32, i32) {
    %c0_i32 = arith.constant 0 : i32
    %c0_i32_0 = arith.constant 0 : i32
    %c0_i32_1 = arith.constant 0 : i32
    return %c0_i32, %c0_i32_0 : i32, i32
  }
  func.func @transform_2(%arg0: i32) -> (i32, i32) {
    %c0_i32 = arith.constant 0 : i32
    %c0_i32_0 = arith.constant 0 : i32
    %c0_i32_1 = arith.constant 0 : i32
    return %c0_i32, %c0_i32_0 : i32, i32
  }
  func.func @transform_3(%arg0: i32) -> (i32, i32) {
    %c0_i32 = arith.constant 0 : i32
    %c0_i32_0 = arith.constant 0 : i32
    return %arg0, %c0_i32 : i32, i32
  }
}

module attributes {stable_mosaic.version = 11 : i64} {
  func.func @_mm_bias_act_kernel(%arg0: i32, %arg1: memref<32x288xbf16, #tpu.memory_space<vmem>>, %arg2: memref<288x64xbf16, #tpu.memory_space<vmem>>, %arg3: memref<1x64xf32, #tpu.memory_space<vmem>>, %arg4: memref<32x64xbf16, #tpu.memory_space<vmem>>) attributes {dimension_semantics = [#tpu.dimension_semantics<parallel>], iteration_bounds = array<i64: 1>, scalar_prefetch = 0 : i64, scratch_operands = 0 : i64, tpu.core_type = #tpu.core_type<tc>, window_params = [{transform_indices = @transform_0, window_bounds = array<i64: 32, 288>}, {pipeline_mode = #tpu.pipeline_mode<synchronous>, transform_indices = @transform_1, window_bounds = array<i64: 288, 64>}, {pipeline_mode = #tpu.pipeline_mode<synchronous>, transform_indices = @transform_2, window_bounds = array<i64: 1, 64>}, {transform_indices = @transform_3, window_bounds = array<i64: 32, 64>}]} {
    %c0 = arith.constant 0 : index
    %c0_0 = arith.constant 0 : index
    %0 = vector.load %arg1[%c0, %c0_0] : memref<32x288xbf16, #tpu.memory_space<vmem>>, vector<32x288xbf16>
    %c0_1 = arith.constant 0 : index
    %c0_2 = arith.constant 0 : index
    %1 = vector.load %arg2[%c0_1, %c0_2] : memref<288x64xbf16, #tpu.memory_space<vmem>>, vector<288x64xbf16>
    %cst = arith.constant dense<0.000000e+00> : vector<32x64xf32>
    %2 = tpu.matmul %0, %1, %cst {dimension_numbers = #tpu.dot_dimension_numbers<[1], [0], [0], [1], [0, 0, 1, 1], [], []>} : vector<32x288xbf16>, vector<288x64xbf16>, vector<32x64xf32> -> vector<32x64xf32>
    %c0_3 = arith.constant 0 : index
    %c0_4 = arith.constant 0 : index
    %3 = vector.load %arg3[%c0_3, %c0_4] : memref<1x64xf32, #tpu.memory_space<vmem>>, vector<1x64xf32>
    %4 = vector.broadcast %3 : vector<1x64xf32> to vector<32x64xf32>
    %5 = arith.addf %2, %4 : vector<32x64xf32>
    %cst_5 = arith.constant 0.000000e+00 : f32
    %6 = vector.broadcast %cst_5 : f32 to vector<32x64xf32>
    %7 = arith.maximumf %5, %6 : vector<32x64xf32>
    %8 = arith.truncf %7 : vector<32x64xf32> to vector<32x64xbf16>
    %c0_6 = arith.constant 0 : index
    %c0_7 = arith.constant 0 : index
    %9 = vector.load %arg4[%c0_6, %c0_7] : memref<32x64xbf16, #tpu.memory_space<vmem>>, vector<32x64xbf16>
    tpu.vector_store %arg4[%c0_6, %c0_7], %8 {strides = array<i32>} : memref<32x64xbf16, #tpu.memory_space<vmem>>, vector<32x64xbf16>,
    return
  }
  func.func @transform_0(%arg0: i32) -> (i32, i32) {
    %c0_i32 = arith.constant 0 : i32
    %c0_i32_0 = arith.constant 0 : i32
    return %arg0, %c0_i32 : i32, i32
  }
  func.func @transform_1(%arg0: i32) -> (i32, i32) {
    %c0_i32 = arith.constant 0 : i32
    %c0_i32_0 = arith.constant 0 : i32
    %c0_i32_1 = arith.constant 0 : i32
    return %c0_i32, %c0_i32_0 : i32, i32
  }
  func.func @transform_2(%arg0: i32) -> (i32, i32) {
    %c0_i32 = arith.constant 0 : i32
    %c0_i32_0 = arith.constant 0 : i32
    %c0_i32_1 = arith.constant 0 : i32
    return %c0_i32, %c0_i32_0 : i32, i32
  }
  func.func @transform_3(%arg0: i32) -> (i32, i32) {
    %c0_i32 = arith.constant 0 : i32
    %c0_i32_0 = arith.constant 0 : i32
    return %arg0, %c0_i32 : i32, i32
  }
}

module attributes {stable_mosaic.version = 11 : i64} {
  func.func @_mm_bias_act_kernel(%arg0: i32, %arg1: memref<8x1024xbf16, #tpu.memory_space<vmem>>, %arg2: memref<1024x64xbf16, #tpu.memory_space<vmem>>, %arg3: memref<1x64xf32, #tpu.memory_space<vmem>>, %arg4: memref<8x64xbf16, #tpu.memory_space<vmem>>) attributes {dimension_semantics = [#tpu.dimension_semantics<parallel>], iteration_bounds = array<i64: 1>, scalar_prefetch = 0 : i64, scratch_operands = 0 : i64, tpu.core_type = #tpu.core_type<tc>, window_params = [{transform_indices = @transform_0, window_bounds = array<i64: 8, 1024>}, {pipeline_mode = #tpu.pipeline_mode<synchronous>, transform_indices = @transform_1, window_bounds = array<i64: 1024, 64>}, {pipeline_mode = #tpu.pipeline_mode<synchronous>, transform_indices = @transform_2, window_bounds = array<i64: 1, 64>}, {transform_indices = @transform_3, window_bounds = array<i64: 8, 64>}]} {
    %c0 = arith.constant 0 : index
    %c0_0 = arith.constant 0 : index
    %0 = vector.load %arg1[%c0, %c0_0] : memref<8x1024xbf16, #tpu.memory_space<vmem>>, vector<8x1024xbf16>
    %c0_1 = arith.constant 0 : index
    %c0_2 = arith.constant 0 : index
    %1 = vector.load %arg2[%c0_1, %c0_2] : memref<1024x64xbf16, #tpu.memory_space<vmem>>, vector<1024x64xbf16>
    %cst = arith.constant dense<0.000000e+00> : vector<8x64xf32>
    %2 = tpu.matmul %0, %1, %cst {dimension_numbers = #tpu.dot_dimension_numbers<[1], [0], [0], [1], [0, 0, 1, 1], [], []>} : vector<8x1024xbf16>, vector<1024x64xbf16>, vector<8x64xf32> -> vector<8x64xf32>
    %c0_3 = arith.constant 0 : index
    %c0_4 = arith.constant 0 : index
    %3 = vector.load %arg3[%c0_3, %c0_4] : memref<1x64xf32, #tpu.memory_space<vmem>>, vector<1x64xf32>
    %4 = vector.broadcast %3 : vector<1x64xf32> to vector<8x64xf32>
    %5 = arith.addf %2, %4 : vector<8x64xf32>
    %cst_5 = arith.constant 0.000000e+00 : f32
    %6 = vector.broadcast %cst_5 : f32 to vector<8x64xf32>
    %7 = arith.maximumf %5, %6 : vector<8x64xf32>
    %8 = arith.truncf %7 : vector<8x64xf32> to vector<8x64xbf16>
    %c0_6 = arith.constant 0 : index
    %c0_7 = arith.constant 0 : index
    %9 = vector.load %arg4[%c0_6, %c0_7] : memref<8x64xbf16, #tpu.memory_space<vmem>>, vector<8x64xbf16>
    tpu.vector_store %arg4[%c0_6, %c0_7], %8 {strides = array<i32>} : memref<8x64xbf16, #tpu.memory_space<vmem>>, vector<8x64xbf16>,
    return
  }
  func.func @transform_0(%arg0: i32) -> (i32, i32) {
    %c0_i32 = arith.constant 0 : i32
    %c0_i32_0 = arith.constant 0 : i32
    return %arg0, %c0_i32 : i32, i32
  }
  func.func @transform_1(%arg0: i32) -> (i32, i32) {
    %c0_i32 = arith.constant 0 : i32
    %c0_i32_0 = arith.constant 0 : i32
    %c0_i32_1 = arith.constant 0 : i32
    return %c0_i32, %c0_i32_0 : i32, i32
  }
  func.func @transform_2(%arg0: i32) -> (i32, i32) {
    %c0_i32 = arith.constant 0 : i32
    %c0_i32_0 = arith.constant 0 : i32
    %c0_i32_1 = arith.constant 0 : i32
    return %c0_i32, %c0_i32_0 : i32, i32
  }
  func.func @transform_3(%arg0: i32) -> (i32, i32) {
    %c0_i32 = arith.constant 0 : i32
    %c0_i32_0 = arith.constant 0 : i32
    return %arg0, %c0_i32 : i32, i32
  }
}

module attributes {stable_mosaic.version = 11 : i64} {
  func.func @_mid_kernel(%arg0: memref<8x1024xbf16, #tpu.memory_space<vmem>>, %arg1: memref<1024x256xbf16, #tpu.memory_space<vmem>>, %arg2: memref<1x256xf32, #tpu.memory_space<vmem>>, %arg3: memref<256x32xbf16, #tpu.memory_space<vmem>>, %arg4: memref<1x32xf32, #tpu.memory_space<vmem>>, %arg5: memref<256x32xbf16, #tpu.memory_space<vmem>>, %arg6: memref<1x32xf32, #tpu.memory_space<vmem>>, %arg7: memref<8x32xf32, #tpu.memory_space<vmem>>, %arg8: memref<32x256xbf16, #tpu.memory_space<vmem>>, %arg9: memref<1x256xf32, #tpu.memory_space<vmem>>, %arg10: memref<256x1024xbf16, #tpu.memory_space<vmem>>, %arg11: memref<1x1024xf32, #tpu.memory_space<vmem>>, %arg12: memref<8x32xf32, #tpu.memory_space<vmem>>, %arg13: memref<8x32xf32, #tpu.memory_space<vmem>>, %arg14: memref<8x1024xbf16, #tpu.memory_space<vmem>>) attributes {dimension_semantics = [], scalar_prefetch = 0 : i64, scratch_operands = 0 : i64, tpu.core_type = #tpu.core_type<tc>} {
    %c0 = arith.constant 0 : index
    %c0_0 = arith.constant 0 : index
    %0 = vector.load %arg0[%c0, %c0_0] : memref<8x1024xbf16, #tpu.memory_space<vmem>>, vector<8x1024xbf16>
    %c0_1 = arith.constant 0 : index
    %c0_2 = arith.constant 0 : index
    %1 = vector.load %arg1[%c0_1, %c0_2] : memref<1024x256xbf16, #tpu.memory_space<vmem>>, vector<1024x256xbf16>
    %cst = arith.constant dense<0.000000e+00> : vector<8x256xf32>
    %2 = tpu.matmul %0, %1, %cst {dimension_numbers = #tpu.dot_dimension_numbers<[1], [0], [0], [1], [0, 0, 1, 1], [], []>} : vector<8x1024xbf16>, vector<1024x256xbf16>, vector<8x256xf32> -> vector<8x256xf32>
    %c0_3 = arith.constant 0 : index
    %c0_4 = arith.constant 0 : index
    %3 = vector.load %arg2[%c0_3, %c0_4] : memref<1x256xf32, #tpu.memory_space<vmem>>, vector<1x256xf32>
    %4 = vector.broadcast %3 : vector<1x256xf32> to vector<8x256xf32>
    %5 = arith.addf %2, %4 : vector<8x256xf32>
    %cst_5 = arith.constant 0.000000e+00 : f32
    %6 = vector.broadcast %cst_5 : f32 to vector<8x256xf32>
    %7 = arith.maximumf %5, %6 : vector<8x256xf32>
    %8 = arith.truncf %7 : vector<8x256xf32> to vector<8x256xbf16>
    %c0_6 = arith.constant 0 : index
    %c0_7 = arith.constant 0 : index
    %9 = vector.load %arg3[%c0_6, %c0_7] : memref<256x32xbf16, #tpu.memory_space<vmem>>, vector<256x32xbf16>
    %cst_8 = arith.constant dense<0.000000e+00> : vector<8x32xf32>
    %10 = tpu.matmul %8, %9, %cst_8 {dimension_numbers = #tpu.dot_dimension_numbers<[1], [0], [0], [1], [0, 0, 1, 1], [], []>} : vector<8x256xbf16>, vector<256x32xbf16>, vector<8x32xf32> -> vector<8x32xf32>
    %c0_9 = arith.constant 0 : index
    %c0_10 = arith.constant 0 : index
    %11 = vector.load %arg4[%c0_9, %c0_10] : memref<1x32xf32, #tpu.memory_space<vmem>>, vector<1x32xf32>
    %12 = vector.broadcast %11 : vector<1x32xf32> to vector<8x32xf32>
    %13 = arith.addf %10, %12 : vector<8x32xf32>
    %c0_11 = arith.constant 0 : index
    %c0_12 = arith.constant 0 : index
    %14 = vector.load %arg5[%c0_11, %c0_12] : memref<256x32xbf16, #tpu.memory_space<vmem>>, vector<256x32xbf16>
    %cst_13 = arith.constant dense<0.000000e+00> : vector<8x32xf32>
    %15 = tpu.matmul %8, %14, %cst_13 {dimension_numbers = #tpu.dot_dimension_numbers<[1], [0], [0], [1], [0, 0, 1, 1], [], []>} : vector<8x256xbf16>, vector<256x32xbf16>, vector<8x32xf32> -> vector<8x32xf32>
    %c0_14 = arith.constant 0 : index
    %c0_15 = arith.constant 0 : index
    %16 = vector.load %arg6[%c0_14, %c0_15] : memref<1x32xf32, #tpu.memory_space<vmem>>, vector<1x32xf32>
    %17 = vector.broadcast %16 : vector<1x32xf32> to vector<8x32xf32>
    %18 = arith.addf %15, %17 : vector<8x32xf32>
    %cst_16 = arith.constant 5.000000e-01 : f32
    %19 = vector.broadcast %cst_16 : f32 to vector<8x32xf32>
    %20 = arith.mulf %18, %19 : vector<8x32xf32>
    %21 = math.exp %20 : vector<8x32xf32>
    %c0_17 = arith.constant 0 : index
    %c0_18 = arith.constant 0 : index
    %22 = vector.load %arg7[%c0_17, %c0_18] : memref<8x32xf32, #tpu.memory_space<vmem>>, vector<8x32xf32>
    %23 = arith.mulf %21, %22 : vector<8x32xf32>
    %24 = arith.addf %13, %23 : vector<8x32xf32>
    %25 = arith.truncf %24 : vector<8x32xf32> to vector<8x32xbf16>
    %c0_19 = arith.constant 0 : index
    %c0_20 = arith.constant 0 : index
    %26 = vector.load %arg8[%c0_19, %c0_20] : memref<32x256xbf16, #tpu.memory_space<vmem>>, vector<32x256xbf16>
    %cst_21 = arith.constant dense<0.000000e+00> : vector<8x256xf32>
    %27 = tpu.matmul %25, %26, %cst_21 {dimension_numbers = #tpu.dot_dimension_numbers<[1], [0], [0], [1], [0, 0, 1, 1], [], []>} : vector<8x32xbf16>, vector<32x256xbf16>, vector<8x256xf32> -> vector<8x256xf32>
    %c0_22 = arith.constant 0 : index
    %c0_23 = arith.constant 0 : index
    %28 = vector.load %arg9[%c0_22, %c0_23] : memref<1x256xf32, #tpu.memory_space<vmem>>, vector<1x256xf32>
    %29 = vector.broadcast %28 : vector<1x256xf32> to vector<8x256xf32>
    %30 = arith.addf %27, %29 : vector<8x256xf32>
    %cst_24 = arith.constant 0.000000e+00 : f32
    %31 = vector.broadcast %cst_24 : f32 to vector<8x256xf32>
    %32 = arith.maximumf %30, %31 : vector<8x256xf32>
    %33 = arith.truncf %32 : vector<8x256xf32> to vector<8x256xbf16>
    %c0_25 = arith.constant 0 : index
    %c0_26 = arith.constant 0 : index
    %34 = vector.load %arg10[%c0_25, %c0_26] : memref<256x1024xbf16, #tpu.memory_space<vmem>>, vector<256x1024xbf16>
    %cst_27 = arith.constant dense<0.000000e+00> : vector<8x1024xf32>
    %35 = tpu.matmul %33, %34, %cst_27 {dimension_numbers = #tpu.dot_dimension_numbers<[1], [0], [0], [1], [0, 0, 1, 1], [], []>} : vector<8x256xbf16>, vector<256x1024xbf16>, vector<8x1024xf32> -> vector<8x1024xf32>
    %c0_28 = arith.constant 0 : index
    %c0_29 = arith.constant 0 : index
    %36 = vector.load %arg11[%c0_28, %c0_29] : memref<1x1024xf32, #tpu.memory_space<vmem>>, vector<1x1024xf32>
    %37 = vector.broadcast %36 : vector<1x1024xf32> to vector<8x1024xf32>
    %38 = arith.addf %35, %37 : vector<8x1024xf32>
    %cst_30 = arith.constant 0.000000e+00 : f32
    %39 = vector.broadcast %cst_30 : f32 to vector<8x1024xf32>
    %40 = arith.maximumf %38, %39 : vector<8x1024xf32>
    %c0_31 = arith.constant 0 : index
    %c0_32 = arith.constant 0 : index
    %41 = vector.load %arg12[%c0_31, %c0_32] : memref<8x32xf32, #tpu.memory_space<vmem>>, vector<8x32xf32>
    tpu.vector_store %arg12[%c0_31, %c0_32], %13 {strides = array<i32>} : memref<8x32xf32, #tpu.memory_space<vmem>>, vector<8x32xf32>,
    %c0_33 = arith.constant 0 : index
    %c0_34 = arith.constant 0 : index
    %42 = vector.load %arg13[%c0_33, %c0_34] : memref<8x32xf32, #tpu.memory_space<vmem>>, vector<8x32xf32>
    tpu.vector_store %arg13[%c0_33, %c0_34], %18 {strides = array<i32>} : memref<8x32xf32, #tpu.memory_space<vmem>>, vector<8x32xf32>,
    %43 = arith.truncf %40 : vector<8x1024xf32> to vector<8x1024xbf16>
    %c0_35 = arith.constant 0 : index
    %c0_36 = arith.constant 0 : index
    %44 = vector.load %arg14[%c0_35, %c0_36] : memref<8x1024xbf16, #tpu.memory_space<vmem>>, vector<8x1024xbf16>
    tpu.vector_store %arg14[%c0_35, %c0_36], %43 {strides = array<i32>} : memref<8x1024xbf16, #tpu.memory_space<vmem>>, vector<8x1024xbf16>,
    return
  }
}

module attributes {stable_mosaic.version = 11 : i64} {
  func.func @_mm_bias_act_kernel(%arg0: i32, %arg1: memref<32x576xbf16, #tpu.memory_space<vmem>>, %arg2: memref<576x256xbf16, #tpu.memory_space<vmem>>, %arg3: memref<1x256xf32, #tpu.memory_space<vmem>>, %arg4: memref<32x256xbf16, #tpu.memory_space<vmem>>) attributes {dimension_semantics = [#tpu.dimension_semantics<parallel>], iteration_bounds = array<i64: 1>, scalar_prefetch = 0 : i64, scratch_operands = 0 : i64, tpu.core_type = #tpu.core_type<tc>, window_params = [{transform_indices = @transform_0, window_bounds = array<i64: 32, 576>}, {pipeline_mode = #tpu.pipeline_mode<synchronous>, transform_indices = @transform_1, window_bounds = array<i64: 576, 256>}, {pipeline_mode = #tpu.pipeline_mode<synchronous>, transform_indices = @transform_2, window_bounds = array<i64: 1, 256>}, {transform_indices = @transform_3, window_bounds = array<i64: 32, 256>}]} {
    %c0 = arith.constant 0 : index
    %c0_0 = arith.constant 0 : index
    %0 = vector.load %arg1[%c0, %c0_0] : memref<32x576xbf16, #tpu.memory_space<vmem>>, vector<32x576xbf16>
    %c0_1 = arith.constant 0 : index
    %c0_2 = arith.constant 0 : index
    %1 = vector.load %arg2[%c0_1, %c0_2] : memref<576x256xbf16, #tpu.memory_space<vmem>>, vector<576x256xbf16>
    %cst = arith.constant dense<0.000000e+00> : vector<32x256xf32>
    %2 = tpu.matmul %0, %1, %cst {dimension_numbers = #tpu.dot_dimension_numbers<[1], [0], [0], [1], [0, 0, 1, 1], [], []>} : vector<32x576xbf16>, vector<576x256xbf16>, vector<32x256xf32> -> vector<32x256xf32>
    %c0_3 = arith.constant 0 : index
    %c0_4 = arith.constant 0 : index
    %3 = vector.load %arg3[%c0_3, %c0_4] : memref<1x256xf32, #tpu.memory_space<vmem>>, vector<1x256xf32>
    %4 = vector.broadcast %3 : vector<1x256xf32> to vector<32x256xf32>
    %5 = arith.addf %2, %4 : vector<32x256xf32>
    %cst_5 = arith.constant 0.000000e+00 : f32
    %6 = vector.broadcast %cst_5 : f32 to vector<32x256xf32>
    %7 = arith.maximumf %5, %6 : vector<32x256xf32>
    %8 = arith.truncf %7 : vector<32x256xf32> to vector<32x256xbf16>
    %c0_6 = arith.constant 0 : index
    %c0_7 = arith.constant 0 : index
    %9 = vector.load %arg4[%c0_6, %c0_7] : memref<32x256xbf16, #tpu.memory_space<vmem>>, vector<32x256xbf16>
    tpu.vector_store %arg4[%c0_6, %c0_7], %8 {strides = array<i32>} : memref<32x256xbf16, #tpu.memory_space<vmem>>, vector<32x256xbf16>,
    return
  }
  func.func @transform_0(%arg0: i32) -> (i32, i32) {
    %c0_i32 = arith.constant 0 : i32
    %c0_i32_0 = arith.constant 0 : i32
    return %arg0, %c0_i32 : i32, i32
  }
  func.func @transform_1(%arg0: i32) -> (i32, i32) {
    %c0_i32 = arith.constant 0 : i32
    %c0_i32_0 = arith.constant 0 : i32
    %c0_i32_1 = arith.constant 0 : i32
    return %c0_i32, %c0_i32_0 : i32, i32
  }
  func.func @transform_2(%arg0: i32) -> (i32, i32) {
    %c0_i32 = arith.constant 0 : i32
    %c0_i32_0 = arith.constant 0 : i32
    %c0_i32_1 = arith.constant 0 : i32
    return %c0_i32, %c0_i32_0 : i32, i32
  }
  func.func @transform_3(%arg0: i32) -> (i32, i32) {
    %c0_i32 = arith.constant 0 : i32
    %c0_i32_0 = arith.constant 0 : i32
    return %arg0, %c0_i32 : i32, i32
  }
}

module attributes {stable_mosaic.version = 11 : i64} {
  func.func @_mm_bias_act_kernel(%arg0: i32, %arg1: memref<128x576xbf16, #tpu.memory_space<vmem>>, %arg2: memref<576x128xbf16, #tpu.memory_space<vmem>>, %arg3: memref<1x128xf32, #tpu.memory_space<vmem>>, %arg4: memref<128x128xbf16, #tpu.memory_space<vmem>>) attributes {dimension_semantics = [#tpu.dimension_semantics<parallel>], iteration_bounds = array<i64: 1>, scalar_prefetch = 0 : i64, scratch_operands = 0 : i64, tpu.core_type = #tpu.core_type<tc>, window_params = [{transform_indices = @transform_0, window_bounds = array<i64: 128, 576>}, {pipeline_mode = #tpu.pipeline_mode<synchronous>, transform_indices = @transform_1, window_bounds = array<i64: 576, 128>}, {pipeline_mode = #tpu.pipeline_mode<synchronous>, transform_indices = @transform_2, window_bounds = array<i64: 1, 128>}, {transform_indices = @transform_3, window_bounds = array<i64: 128, 128>}]} {
    %c0 = arith.constant 0 : index
    %c0_0 = arith.constant 0 : index
    %0 = vector.load %arg1[%c0, %c0_0] : memref<128x576xbf16, #tpu.memory_space<vmem>>, vector<128x576xbf16>
    %c0_1 = arith.constant 0 : index
    %c0_2 = arith.constant 0 : index
    %1 = vector.load %arg2[%c0_1, %c0_2] : memref<576x128xbf16, #tpu.memory_space<vmem>>, vector<576x128xbf16>
    %cst = arith.constant dense<0.000000e+00> : vector<128x128xf32>
    %2 = tpu.matmul %0, %1, %cst {dimension_numbers = #tpu.dot_dimension_numbers<[1], [0], [0], [1], [0, 0, 1, 1], [], []>} : vector<128x576xbf16>, vector<576x128xbf16>, vector<128x128xf32> -> vector<128x128xf32>
    %c0_3 = arith.constant 0 : index
    %c0_4 = arith.constant 0 : index
    %3 = vector.load %arg3[%c0_3, %c0_4] : memref<1x128xf32, #tpu.memory_space<vmem>>, vector<1x128xf32>
    %4 = vector.broadcast %3 : vector<1x128xf32> to vector<128x128xf32>
    %5 = arith.addf %2, %4 : vector<128x128xf32>
    %cst_5 = arith.constant 0.000000e+00 : f32
    %6 = vector.broadcast %cst_5 : f32 to vector<128x128xf32>
    %7 = arith.maximumf %5, %6 : vector<128x128xf32>
    %8 = arith.truncf %7 : vector<128x128xf32> to vector<128x128xbf16>
    %c0_6 = arith.constant 0 : index
    %c0_7 = arith.constant 0 : index
    %9 = vector.load %arg4[%c0_6, %c0_7] : memref<128x128xbf16, #tpu.memory_space<vmem>>, vector<128x128xbf16>
    tpu.vector_store %arg4[%c0_6, %c0_7], %8 {strides = array<i32>} : memref<128x128xbf16, #tpu.memory_space<vmem>>, vector<128x128xbf16>,
    return
  }
  func.func @transform_0(%arg0: i32) -> (i32, i32) {
    %c0_i32 = arith.constant 0 : i32
    %c0_i32_0 = arith.constant 0 : i32
    return %arg0, %c0_i32 : i32, i32
  }
  func.func @transform_1(%arg0: i32) -> (i32, i32) {
    %c0_i32 = arith.constant 0 : i32
    %c0_i32_0 = arith.constant 0 : i32
    %c0_i32_1 = arith.constant 0 : i32
    return %c0_i32, %c0_i32_0 : i32, i32
  }
  func.func @transform_2(%arg0: i32) -> (i32, i32) {
    %c0_i32 = arith.constant 0 : i32
    %c0_i32_0 = arith.constant 0 : i32
    %c0_i32_1 = arith.constant 0 : i32
    return %c0_i32, %c0_i32_0 : i32, i32
  }
  func.func @transform_3(%arg0: i32) -> (i32, i32) {
    %c0_i32 = arith.constant 0 : i32
    %c0_i32_0 = arith.constant 0 : i32
    return %arg0, %c0_i32 : i32, i32
  }
}

module attributes {stable_mosaic.version = 11 : i64} {
  func.func @_mm_bias_act_kernel(%arg0: i32, %arg1: memref<256x288xbf16, #tpu.memory_space<vmem>>, %arg2: memref<288x128xbf16, #tpu.memory_space<vmem>>, %arg3: memref<1x128xf32, #tpu.memory_space<vmem>>, %arg4: memref<256x128xbf16, #tpu.memory_space<vmem>>) attributes {dimension_semantics = [#tpu.dimension_semantics<parallel>], iteration_bounds = array<i64: 2>, scalar_prefetch = 0 : i64, scratch_operands = 0 : i64, tpu.core_type = #tpu.core_type<tc>, window_params = [{transform_indices = @transform_0, window_bounds = array<i64: 256, 288>}, {pipeline_mode = #tpu.pipeline_mode<synchronous>, transform_indices = @transform_1, window_bounds = array<i64: 288, 128>}, {pipeline_mode = #tpu.pipeline_mode<synchronous>, transform_indices = @transform_2, window_bounds = array<i64: 1, 128>}, {transform_indices = @transform_3, window_bounds = array<i64: 256, 128>}]} {
    %c0 = arith.constant 0 : index
    %c0_0 = arith.constant 0 : index
    %0 = vector.load %arg1[%c0, %c0_0] : memref<256x288xbf16, #tpu.memory_space<vmem>>, vector<256x288xbf16>
    %c0_1 = arith.constant 0 : index
    %c0_2 = arith.constant 0 : index
    %1 = vector.load %arg2[%c0_1, %c0_2] : memref<288x128xbf16, #tpu.memory_space<vmem>>, vector<288x128xbf16>
    %cst = arith.constant dense<0.000000e+00> : vector<256x128xf32>
    %2 = tpu.matmul %0, %1, %cst {dimension_numbers = #tpu.dot_dimension_numbers<[1], [0], [0], [1], [0, 0, 1, 1], [], []>} : vector<256x288xbf16>, vector<288x128xbf16>, vector<256x128xf32> -> vector<256x128xf32>
    %c0_3 = arith.constant 0 : index
    %c0_4 = arith.constant 0 : index
    %3 = vector.load %arg3[%c0_3, %c0_4] : memref<1x128xf32, #tpu.memory_space<vmem>>, vector<1x128xf32>
    %4 = vector.broadcast %3 : vector<1x128xf32> to vector<256x128xf32>
    %5 = arith.addf %2, %4 : vector<256x128xf32>
    %cst_5 = arith.constant 0.000000e+00 : f32
    %6 = vector.broadcast %cst_5 : f32 to vector<256x128xf32>
    %7 = arith.maximumf %5, %6 : vector<256x128xf32>
    %8 = arith.truncf %7 : vector<256x128xf32> to vector<256x128xbf16>
    %c0_6 = arith.constant 0 : index
    %c0_7 = arith.constant 0 : index
    %9 = vector.load %arg4[%c0_6, %c0_7] : memref<256x128xbf16, #tpu.memory_space<vmem>>, vector<256x128xbf16>
    tpu.vector_store %arg4[%c0_6, %c0_7], %8 {strides = array<i32>} : memref<256x128xbf16, #tpu.memory_space<vmem>>, vector<256x128xbf16>,
    return
  }
  func.func @transform_0(%arg0: i32) -> (i32, i32) {
    %c0_i32 = arith.constant 0 : i32
    %c0_i32_0 = arith.constant 0 : i32
    return %arg0, %c0_i32 : i32, i32
  }
  func.func @transform_1(%arg0: i32) -> (i32, i32) {
    %c0_i32 = arith.constant 0 : i32
    %c0_i32_0 = arith.constant 0 : i32
    %c0_i32_1 = arith.constant 0 : i32
    return %c0_i32, %c0_i32_0 : i32, i32
  }
  func.func @transform_2(%arg0: i32) -> (i32, i32) {
    %c0_i32 = arith.constant 0 : i32
    %c0_i32_0 = arith.constant 0 : i32
    %c0_i32_1 = arith.constant 0 : i32
    return %c0_i32, %c0_i32_0 : i32, i32
  }
  func.func @transform_3(%arg0: i32) -> (i32, i32) {
    %c0_i32 = arith.constant 0 : i32
    %c0_i32_0 = arith.constant 0 : i32
    return %arg0, %c0_i32 : i32, i32
  }
}

module attributes {stable_mosaic.version = 11 : i64} {
  func.func @_mm_bias_act_kernel(%arg0: i32, %arg1: memref<512x288xbf16, #tpu.memory_space<vmem>>, %arg2: memref<288x4xbf16, #tpu.memory_space<vmem>>, %arg3: memref<1x4xf32, #tpu.memory_space<vmem>>, %arg4: memref<512x4xf32, #tpu.memory_space<vmem>>) attributes {dimension_semantics = [#tpu.dimension_semantics<parallel>], iteration_bounds = array<i64: 4>, scalar_prefetch = 0 : i64, scratch_operands = 0 : i64, tpu.core_type = #tpu.core_type<tc>, window_params = [{transform_indices = @transform_0, window_bounds = array<i64: 512, 288>}, {pipeline_mode = #tpu.pipeline_mode<synchronous>, transform_indices = @transform_1, window_bounds = array<i64: 288, 4>}, {pipeline_mode = #tpu.pipeline_mode<synchronous>, transform_indices = @transform_2, window_bounds = array<i64: 1, 4>}, {transform_indices = @transform_3, window_bounds = array<i64: 512, 4>}]} {
    %c0 = arith.constant 0 : index
    %c0_0 = arith.constant 0 : index
    %0 = vector.load %arg1[%c0, %c0_0] : memref<512x288xbf16, #tpu.memory_space<vmem>>, vector<512x288xbf16>
    %c0_1 = arith.constant 0 : index
    %c0_2 = arith.constant 0 : index
    %1 = vector.load %arg2[%c0_1, %c0_2] : memref<288x4xbf16, #tpu.memory_space<vmem>>, vector<288x4xbf16>
    %cst = arith.constant dense<0.000000e+00> : vector<512x4xf32>
    %2 = tpu.matmul %0, %1, %cst {dimension_numbers = #tpu.dot_dimension_numbers<[1], [0], [0], [1], [0, 0, 1, 1], [], []>} : vector<512x288xbf16>, vector<288x4xbf16>, vector<512x4xf32> -> vector<512x4xf32>
    %c0_3 = arith.constant 0 : index
    %c0_4 = arith.constant 0 : index
    %3 = vector.load %arg3[%c0_3, %c0_4] : memref<1x4xf32, #tpu.memory_space<vmem>>, vector<1x4xf32>
    %4 = vector.broadcast %3 : vector<1x4xf32> to vector<512x4xf32>
    %5 = arith.addf %2, %4 : vector<512x4xf32>
    %cst_5 = arith.constant -3.000000e+01 : f32
    %6 = vector.broadcast %cst_5 : f32 to vector<512x4xf32>
    %7 = arith.maximumf %5, %6 : vector<512x4xf32>
    %cst_6 = arith.constant 0.000000e+00 : f32
    %8 = vector.broadcast %cst_6 : f32 to vector<512x4xf32>
    %9 = arith.subf %8, %7 : vector<512x4xf32>
    %10 = math.exp %9 : vector<512x4xf32>
    %cst_7 = arith.constant 1.000000e+00 : f32
    %11 = vector.broadcast %cst_7 : f32 to vector<512x4xf32>
    %12 = arith.addf %11, %10 : vector<512x4xf32>
    %13 = tpu.reciprocal %12 {approx = true} : vector<512x4xf32> -> vector<512x4xf32>
    %cst_8 = arith.constant 0.000000e+00 : f32
    %cst_9 = arith.constant 1.000000e+00 : f32
    %14 = vector.broadcast %cst_8 : f32 to vector<512x4xf32>
    %15 = arith.maximumf %14, %13 : vector<512x4xf32>
    %16 = vector.broadcast %cst_9 : f32 to vector<512x4xf32>
    %17 = arith.minimumf %16, %15 : vector<512x4xf32>
    %c0_10 = arith.constant 0 : index
    %c0_11 = arith.constant 0 : index
    %18 = vector.load %arg4[%c0_10, %c0_11] : memref<512x4xf32, #tpu.memory_space<vmem>>, vector<512x4xf32>
    tpu.vector_store %arg4[%c0_10, %c0_11], %17 {strides = array<i32>} : memref<512x4xf32, #tpu.memory_space<vmem>>, vector<512x4xf32>,
    return
  }
  func.func @transform_0(%arg0: i32) -> (i32, i32) {
    %c0_i32 = arith.constant 0 : i32
    %c0_i32_0 = arith.constant 0 : i32
    return %arg0, %c0_i32 : i32, i32
  }
  func.func @transform_1(%arg0: i32) -> (i32, i32) {
    %c0_i32 = arith.constant 0 : i32
    %c0_i32_0 = arith.constant 0 : i32
    %c0_i32_1 = arith.constant 0 : i32
    return %c0_i32, %c0_i32_0 : i32, i32
  }
  func.func @transform_2(%arg0: i32) -> (i32, i32) {
    %c0_i32 = arith.constant 0 : i32
    %c0_i32_0 = arith.constant 0 : i32
    %c0_i32_1 = arith.constant 0 : i32
    return %c0_i32, %c0_i32_0 : i32, i32
  }
  func.func @transform_3(%arg0: i32) -> (i32, i32) {
    %c0_i32 = arith.constant 0 : i32
    %c0_i32_0 = arith.constant 0 : i32
    return %arg0, %c0_i32 : i32, i32
  }
}

</mosaic_0001>

<bundles_post_ra>
// kernel: beta_vae64_forward.10
= control target key start
LH: loop header
LB: loop body
LE: loop exit
PB: predicated region body
PF: predicated region fallthrough
CT: control target
= control target key end

     0   :  { %8 = vsyncpa [#allocation3], 0  ;;  %s1641_s0 = inlined_call_operand.vmem [shape: bf16[2048,16], index: 0, kind: input, shape index: {}]   ;;  %s1642_s1 = inlined_call_operand.hbm [shape: bf16[16,64], index: 1, kind: input, shape index: {}]   ;;  %s1643_s2 = inlined_call_operand.hbm [shape: f32[1,64], index: 2, kind: input, shape index: {}]   ;;  %s1644_s3 = inlined_call_operand.vmem [shape: bf16[2048,64], index: 3, kind: output, shape index: {}]  }
   0x1   :  { %9 = vsyncpa [#allocation5], 0  ;;  %s1327_s12 = smov 0  }
   0x2 LB: > { %s125_s15 = sshll.u32 %s1642_s1, 4  ;;  %s980_s16 = sadd.s32 4294967295, %s1301_s12   ;;  %s1301_s12 = sphi %s1327_s12, %s15_s12   ;;  %s126_s15 = int_to_ptr.hbm [resolvable:$true] %s125_s15 }
   0x3   : > { %p982_p0 = scmp.ge.s32.totalorder %s1301_s12, 1  ;;  %p114_p1 = scmp.lt.s32.totalorder %s1301_s12, 5 }
   0x4   : > { %p1338_p2 = scmp.eq.s32.totalorder %s980_s16, 0  ;;  %s1303_s19 = smov [#allocation2]  }
   0x5   : > { %p1342_p3 = pnand %p982_p0, %p114_p1  ;;  %s127_s20 = sshll.u32 %s1303_s19, 4  ;;  %s128_s20 = int_to_ptr.vmem [resolvable:$true] %s127_s20 }
   0x6   : > { %s140_s23 = sshll.u32 %s1643_s2, 4  ;;  %s1304_s24 = smov [#allocation4]   ;;  %s141_s23 = int_to_ptr.hbm [resolvable:$true] %s140_s23 }
   0x7   : > { %p1203_p4 = pneg %p1342_p3  ;;  %s142_s25 = sshll.u32 %s1304_s24, 4  ;;  %s143_s25 = int_to_ptr.vmem [resolvable:$true] %s142_s25 }
   0x8   : > { %s1305_s26 = smov 64   ;;  %s1306_s27 = smov 4  }
   0x9   : > { %p1204_p5 = pnand %p1338_p2, %p1203_p4  ;;  %164 = sbr.rel (%p1342_p3) target bundleno = 286 (0x11e), region = 32 }
   0xb   : > { %1206 = dma.hbm_to_vmem [thread:$0]  (!%p1204_p5), %s126_s15, 128, %s128_s20, [#allocation3], %s1305_s26, %s1305_s26, %s1306_s27  }
   0xc   : > { %1209 = dma.hbm_to_vmem [thread:$0]  (!%p1204_p5), %s141_s23, 16, %s143_s25, [#allocation5]  }
   0xe   : > { %1292 = dma.done.wait (%p1338_p2), [#allocation3], 128  }
   0xf   : > { %1294 = vsyncadd (%p1338_p2), [#allocation3], 4294967168 }
  0x10   : > { %1296 = dma.done.wait (%p1338_p2), [#allocation5], 16  }
  0x11   : > { %1298 = vsyncadd (%p1338_p2), [#allocation5], 4294967280  ;;  %s989_s28 = sshll.u32 %s980_s16, 6  ;;  %v1191_v0 = vld [vmem:[#allocation2] sm:$0xff]  ;;  %vm443_vm0 = vcmask 130048   ;;  %vm837_vm1 = vcmask 519168  }
  0x12   : > { %p195_p6 = scmp.lt.s32.totalorder %s989_s28, 255  ;;  %547 = vmatpush.bf16.msra.mxu0 %v1191_v0  ;;  %1192 = vmatpush.bf16.msra.mxu1 %v1191_v0  ;;  %v1437_v33 = vld [vmem:[#allocation4] ss:$0 sm:$0xff] }
  0x13   : > { %1193 = vmatpush.bf16.msra.mxu2 %v1191_v0  ;;  %1194 = vmatpush.bf16.msra.mxu3 %v1191_v0 }
  0x14   : > { %s1648_s28 = smov (!%p195_p6, %s989_s28), 255 }
  0x15   : > { %s990_s29 = sshll.u32 %s1648_s28, 2 }
  0x16   : > { %s1371_s5 = scalar_lea.vmem %s1641_s0, %s990_s29  ;;  %s1446_s8 = scalar_lea.vmem %s1644_s3, %s990_s29 }
  0x17   : > { %v1159_v1 = vld [vmem:[%s1371_s5] sm:$0xff]  ;;  %v1160_v5 = vld [vmem:[%s1371_s5 + $0x8] sm:$0xff]  ;;  %v1161_v9 = vld [vmem:[%s1371_s5 + $0x10] sm:$0xff] }
  0x18   : > { %v1167_v2 = vld [vmem:[%s1371_s5 + $0x40] sm:$0xff]  ;;  %1125 = vmatmul.msk.bf16.vlgmr.msra.gmra.mxu0 %vm443_vm0, %v1159_v1  ;;  %v1168_v6 = vld [vmem:[%s1371_s5 + $0x48] sm:$0xff]  ;;  %v1169_v10 = vld [vmem:[%s1371_s5 + $0x50] sm:$0xff] }
  0x19   : > { %v1175_v3 = vld [vmem:[%s1371_s5 + $0x80] sm:$0xff]  ;;  %1133 = vmatmul.msk.bf16.vlgmr.msra.gmra.mxu1 %vm443_vm0, %v1167_v2  ;;  %v1176_v7 = vld [vmem:[%s1371_s5 + $0x88] sm:$0xff]  ;;  %v1177_v11 = vld [vmem:[%s1371_s5 + $0x90] sm:$0xff] }
  0x1a   : > { %v1183_v4 = vld [vmem:[%s1371_s5 + $0xc0] sm:$0xff]  ;;  %1141 = vmatmul.msk.bf16.vlgmr.msra.gmra.mxu2 %vm443_vm0, %v1175_v3  ;;  %v1184_v8 = vld [vmem:[%s1371_s5 + $0xc8] sm:$0xff]  ;;  %v1185_v12 = vld [vmem:[%s1371_s5 + $0xd0] sm:$0xff] }
  0x1b   : > { %1149 = vmatmul.msk.bf16.vlgmr.msra.gmra.mxu3 %vm443_vm0, %v1183_v4  ;;  %v1162_v13 = vld [vmem:[%s1371_s5 + $0x18] sm:$0xff]  ;;  %v1163_v17 = vld [vmem:[%s1371_s5 + $0x20] sm:$0xff]  ;;  %v1164_v21 = vld [vmem:[%s1371_s5 + $0x28] sm:$0xff] }
  0x1c   : > { %v1170_v14 = vld [vmem:[%s1371_s5 + $0x58] sm:$0xff]  ;;  %v1171_v18 = vld [vmem:[%s1371_s5 + $0x60] sm:$0xff]  ;;  %v1172_v22 = vld [vmem:[%s1371_s5 + $0x68] sm:$0xff] }
  0x1d   : > { %v1178_v15 = vld [vmem:[%s1371_s5 + $0x98] sm:$0xff]  ;;  %v1179_v19 = vld [vmem:[%s1371_s5 + $0xa0] sm:$0xff]  ;;  %v1180_v23 = vld [vmem:[%s1371_s5 + $0xa8] sm:$0xff] }
  0x1e   : > { %v1186_v16 = vld [vmem:[%s1371_s5 + $0xd8] sm:$0xff]  ;;  %v1187_v20 = vld [vmem:[%s1371_s5 + $0xe0] sm:$0xff]  ;;  %v1188_v24 = vld [vmem:[%s1371_s5 + $0xe8] sm:$0xff] }
  0x1f   : > { %v1165_v25 = vld [vmem:[%s1371_s5 + $0x30] sm:$0xff]  ;;  %v1166_v29 = vld [vmem:[%s1371_s5 + $0x38] sm:$0xff] }
  0x20   : > { %v1173_v26 = vld [vmem:[%s1371_s5 + $0x70] sm:$0xff]  ;;  %v1174_v30 = vld [vmem:[%s1371_s5 + $0x78] sm:$0xff] }
  0x21   : > { %v1181_v27 = vld [vmem:[%s1371_s5 + $0xb0] sm:$0xff]  ;;  %v1182_v31 = vld [vmem:[%s1371_s5 + $0xb8] sm:$0xff] }
  0x22   : > { %v1189_v28 = vld [vmem:[%s1371_s5 + $0xf0] sm:$0xff]  ;;  %v1190_v32 = vld [vmem:[%s1371_s5 + $0xf8] sm:$0xff] }
  0x28   : > { %1126 = vmatmul.msk.bf16.gmra.mxu0 %vm443_vm0, %v1160_v5 }
  0x29   : > { %1134 = vmatmul.msk.bf16.gmra.mxu1 %vm443_vm0, %v1168_v6 }
  0x2a   : > { %1142 = vmatmul.msk.bf16.gmra.mxu2 %vm443_vm0, %v1176_v7 }
  0x2b   : > { %1150 = vmatmul.msk.bf16.gmra.mxu3 %vm443_vm0, %v1184_v8 }
  0x38   : > { %1127 = vmatmul.msk.bf16.gmra.mxu0 %vm443_vm0, %v1161_v9 }
  0x39   : > { %1135 = vmatmul.msk.bf16.gmra.mxu1 %vm443_vm0, %v1169_v10 }
  0x3a   : > { %1143 = vmatmul.msk.bf16.gmra.mxu2 %vm443_vm0, %v1177_v11 }
  0x3b   : > { %1151 = vmatmul.msk.bf16.gmra.mxu3 %vm443_vm0, %v1185_v12 }
  0x48   : > { %1128 = vmatmul.msk.bf16.gmra.mxu0 %vm443_vm0, %v1162_v13 }
  0x49   : > { %1136 = vmatmul.msk.bf16.gmra.mxu1 %vm443_vm0, %v1170_v14 }
  0x4a   : > { %1144 = vmatmul.msk.bf16.gmra.mxu2 %vm443_vm0, %v1178_v15 }
  0x4b   : > { %1152 = vmatmul.msk.bf16.gmra.mxu3 %vm443_vm0, %v1186_v16 }
  0x58   : > { %1129 = vmatmul.msk.bf16.gmra.mxu0 %vm443_vm0, %v1163_v17 }
  0x59   : > { %1137 = vmatmul.msk.bf16.gmra.mxu1 %vm443_vm0, %v1171_v18 }
  0x5a   : > { %1145 = vmatmul.msk.bf16.gmra.mxu2 %vm443_vm0, %v1179_v19 }
  0x5b   : > { %1153 = vmatmul.msk.bf16.gmra.mxu3 %vm443_vm0, %v1187_v20 }
  0x68   : > { %1130 = vmatmul.msk.bf16.gmra.mxu0 %vm443_vm0, %v1164_v21 }
  0x69   : > { %1138 = vmatmul.msk.bf16.gmra.mxu1 %vm443_vm0, %v1172_v22 }
  0x6a   : > { %1146 = vmatmul.msk.bf16.gmra.mxu2 %vm443_vm0, %v1180_v23 }
  0x6b   : > { %1154 = vmatmul.msk.bf16.gmra.mxu3 %vm443_vm0, %v1188_v24 }
  0x78   : > { %1131 = vmatmul.msk.bf16.gmra.mxu0 %vm443_vm0, %v1165_v25 }
  0x79   : > { %1139 = vmatmul.msk.bf16.gmra.mxu1 %vm443_vm0, %v1173_v26 }
  0x7a   : > { %1147 = vmatmul.msk.bf16.gmra.mxu2 %vm443_vm0, %v1181_v27 }
  0x7b   : > { %1155 = vmatmul.msk.bf16.gmra.mxu3 %vm443_vm0, %v1189_v28 }
  0x88   : > { %1132 = vmatmul.msk.bf16.gmra.mxu0 %vm443_vm0, %v1166_v29 }
  0x89   : > { %1140 = vmatmul.msk.bf16.gmra.mxu1 %vm443_vm0, %v1174_v30 }
  0x8a   : > { %1148 = vmatmul.msk.bf16.gmra.mxu2 %vm443_vm0, %v1182_v31 }
  0x8b   : > { %1156 = vmatmul.msk.bf16.gmra.mxu3 %vm443_vm0, %v1190_v32 }
  0x95   : > { %v549_v34 = vpop.f32.mrf.mxu0 }
  0x96   : > { %v589_v35 = vpop.f32.mrf.mxu1  ;;  %v550_v36 = vadd.f32 %v1437_v33, %v549_v34 }
  0x97   : > { %v590_v37 = vadd.f32 %v1437_v33, %v589_v35 }
  0x98   : > { %v709_v38 = vmax.f32 %v550_v36, 0.0 }
  0x99   : > { %v725_v39 = vmax.f32 %v590_v37, 0.0 }
  0x9a   : > { %v773_v40 = vpack.c.bf16 %v709_v38, %v709_v38 }
  0x9b   : > { %v789_v41 = vpack.c.bf16 %v725_v39, %v725_v39 }
  0x9c   : > { %838 = vst.msk [vmem:[%s1446_s8] sm:$0xf] %vm837_vm1, %v773_v40 }
  0x9d   : > { %v629_v42 = vpop.f32.mrf.mxu2  ;;  %854 = vst.msk [vmem:[%s1446_s8 + $0x40] sm:$0xf] %vm837_vm1, %v789_v41  ;;  %v551_v46 = vpop.f32.mrf.mxu0 }
  0x9e   : > { %v669_v43 = vpop.f32.mrf.mxu3  ;;  %v630_v44 = vadd.f32 %v1437_v33, %v629_v42  ;;  %v591_v47 = vpop.f32.mrf.mxu1  ;;  %v552_v48 = vadd.f32 %v1437_v33, %v551_v46 }
  0x9f   : > { %v670_v45 = vadd.f32 %v1437_v33, %v669_v43  ;;  %v592_v49 = vadd.f32 %v1437_v33, %v591_v47 }
  0xa0   : > { %v741_v50 = vmax.f32 %v630_v44, 0.0  ;;  %v710_v52 = vmax.f32 %v552_v48, 0.0 }
  0xa1   : > { %v757_v51 = vmax.f32 %v670_v45, 0.0  ;;  %v726_v53 = vmax.f32 %v592_v49, 0.0 }
  0xa2   : > { %v805_v54 = vpack.c.bf16 %v741_v50, %v741_v50  ;;  %v774_v56 = vpack.c.bf16 %v710_v52, %v710_v52 }
  0xa3   : > { %v821_v55 = vpack.c.bf16 %v757_v51, %v757_v51  ;;  %v790_v57 = vpack.c.bf16 %v726_v53, %v726_v53 }
  0xa4   : > { %870 = vst.msk [vmem:[%s1446_s8 + $0x80] sm:$0xf] %vm837_vm1, %v805_v54 }
  0xa5   : > { %886 = vst.msk [vmem:[%s1446_s8 + $0xc0] sm:$0xf] %vm837_vm1, %v821_v55  ;;  %v631_v58 = vpop.f32.mrf.mxu2  ;;  %v554_v62 = vpop.f32.mrf.mxu0 }
  0xa6   : > { %v671_v59 = vpop.f32.mrf.mxu3  ;;  %839 = vst.msk [vmem:[%s1446_s8 + $0x4] sm:$0xf] %vm837_vm1, %v774_v56  ;;  %v632_v60 = vadd.f32 %v1437_v33, %v631_v58  ;;  %v594_v63 = vpop.f32.mrf.mxu1  ;;  %v555_v0 = vadd.f32 %v1437_v33, %v554_v62 }
  0xa7   : > { %v672_v61 = vadd.f32 %v1437_v33, %v671_v59  ;;  %855 = vst.msk [vmem:[%s1446_s8 + $0x44] sm:$0xf] %vm837_vm1, %v790_v57  ;;  %v595_v1 = vadd.f32 %v1437_v33, %v594_v63 }
  0xa8   : > { %v742_v2 = vmax.f32 %v632_v60, 0.0  ;;  %v711_v4 = vmax.f32 %v555_v0, 0.0 }
  0xa9   : > { %v758_v3 = vmax.f32 %v672_v61, 0.0  ;;  %v727_v5 = vmax.f32 %v595_v1, 0.0 }
  0xaa   : > { %v806_v6 = vpack.c.bf16 %v742_v2, %v742_v2  ;;  %v775_v8 = vpack.c.bf16 %v711_v4, %v711_v4 }
  0xab   : > { %v822_v7 = vpack.c.bf16 %v758_v3, %v758_v3  ;;  %v791_v9 = vpack.c.bf16 %v727_v5, %v727_v5 }
  0xac   : > { %871 = vst.msk [vmem:[%s1446_s8 + $0x84] sm:$0xf] %vm837_vm1, %v806_v6 }
  0xad   : > { %887 = vst.msk [vmem:[%s1446_s8 + $0xc4] sm:$0xf] %vm837_vm1, %v822_v7  ;;  %v634_v10 = vpop.f32.mrf.mxu2  ;;  %v556_v14 = vpop.f32.mrf.mxu0 }
  0xae   : > { %v674_v11 = vpop.f32.mrf.mxu3  ;;  %840 = vst.msk [vmem:[%s1446_s8 + $0x8] sm:$0xf] %vm837_vm1, %v775_v8  ;;  %v635_v12 = vadd.f32 %v1437_v33, %v634_v10  ;;  %v596_v15 = vpop.f32.mrf.mxu1  ;;  %v557_v16 = vadd.f32 %v1437_v33, %v556_v14 }
  0xaf   : > { %v675_v13 = vadd.f32 %v1437_v33, %v674_v11  ;;  %856 = vst.msk [vmem:[%s1446_s8 + $0x48] sm:$0xf] %vm837_vm1, %v791_v9  ;;  %v597_v17 = vadd.f32 %v1437_v33, %v596_v15 }
  0xb0   : > { %v743_v18 = vmax.f32 %v635_v12, 0.0  ;;  %v712_v20 = vmax.f32 %v557_v16, 0.0 }
  0xb1   : > { %v759_v19 = vmax.f32 %v675_v13, 0.0  ;;  %v728_v21 = vmax.f32 %v597_v17, 0.0 }
  0xb2   : > { %v807_v22 = vpack.c.bf16 %v743_v18, %v743_v18  ;;  %v776_v24 = vpack.c.bf16 %v712_v20, %v712_v20 }
  0xb3   : > { %v823_v23 = vpack.c.bf16 %v759_v19, %v759_v19  ;;  %v792_v25 = vpack.c.bf16 %v728_v21, %v728_v21 }
  0xb4   : > { %872 = vst.msk [vmem:[%s1446_s8 + $0x88] sm:$0xf] %vm837_vm1, %v807_v22 }
  0xb5   : > { %888 = vst.msk [vmem:[%s1446_s8 + $0xc8] sm:$0xf] %vm837_vm1, %v823_v23  ;;  %v636_v26 = vpop.f32.mrf.mxu2  ;;  %v559_v30 = vpop.f32.mrf.mxu0 }
  0xb6   : > { %v676_v27 = vpop.f32.mrf.mxu3  ;;  %841 = vst.msk [vmem:[%s1446_s8 + $0xc] sm:$0xf] %vm837_vm1, %v776_v24  ;;  %v637_v28 = vadd.f32 %v1437_v33, %v636_v26  ;;  %v599_v31 = vpop.f32.mrf.mxu1  ;;  %v560_v32 = vadd.f32 %v1437_v33, %v559_v30 }
  0xb7   : > { %v677_v29 = vadd.f32 %v1437_v33, %v676_v27  ;;  %857 = vst.msk [vmem:[%s1446_s8 + $0x4c] sm:$0xf] %vm837_vm1, %v792_v25  ;;  %v600_v34 = vadd.f32 %v1437_v33, %v599_v31 }
  0xb8   : > { %v744_v35 = vmax.f32 %v637_v28, 0.0  ;;  %v713_v37 = vmax.f32 %v560_v32, 0.0 }
  0xb9   : > { %v760_v36 = vmax.f32 %v677_v29, 0.0  ;;  %v729_v38 = vmax.f32 %v600_v34, 0.0 }
  0xba   : > { %v808_v39 = vpack.c.bf16 %v744_v35, %v744_v35  ;;  %v777_v41 = vpack.c.bf16 %v713_v37, %v713_v37 }
  0xbb   : > { %v824_v40 = vpack.c.bf16 %v760_v36, %v760_v36  ;;  %v793_v42 = vpack.c.bf16 %v729_v38, %v729_v38 }
  0xbc   : > { %873 = vst.msk [vmem:[%s1446_s8 + $0x8c] sm:$0xf] %vm837_vm1, %v808_v39 }
  0xbd   : > { %889 = vst.msk [vmem:[%s1446_s8 + $0xcc] sm:$0xf] %vm837_vm1, %v824_v40  ;;  %v639_v43 = vpop.f32.mrf.mxu2  ;;  %v561_v47 = vpop.f32.mrf.mxu0 }
  0xbe   : > { %v679_v44 = vpop.f32.mrf.mxu3  ;;  %842 = vst.msk [vmem:[%s1446_s8 + $0x10] sm:$0xf] %vm837_vm1, %v777_v41  ;;  %v640_v45 = vadd.f32 %v1437_v33, %v639_v43  ;;  %v601_v48 = vpop.f32.mrf.mxu1  ;;  %v562_v49 = vadd.f32 %v1437_v33, %v561_v47 }
  0xbf   : > { %v680_v46 = vadd.f32 %v1437_v33, %v679_v44  ;;  %858 = vst.msk [vmem:[%s1446_s8 + $0x50] sm:$0xf] %vm837_vm1, %v793_v42  ;;  %v602_v50 = vadd.f32 %v1437_v33, %v601_v48 }
  0xc0   : > { %v745_v51 = vmax.f32 %v640_v45, 0.0  ;;  %v714_v53 = vmax.f32 %v562_v49, 0.0 }
  0xc1   : > { %v761_v52 = vmax.f32 %v680_v46, 0.0  ;;  %v730_v54 = vmax.f32 %v602_v50, 0.0 }
  0xc2   : > { %v809_v55 = vpack.c.bf16 %v745_v51, %v745_v51  ;;  %v778_v57 = vpack.c.bf16 %v714_v53, %v714_v53 }
  0xc3   : > { %v825_v56 = vpack.c.bf16 %v761_v52, %v761_v52  ;;  %v794_v58 = vpack.c.bf16 %v730_v54, %v730_v54 }
  0xc4   : > { %874 = vst.msk [vmem:[%s1446_s8 + $0x90] sm:$0xf] %vm837_vm1, %v809_v55 }
  0xc5   : > { %890 = vst.msk [vmem:[%s1446_s8 + $0xd0] sm:$0xf] %vm837_vm1, %v825_v56  ;;  %v641_v59 = vpop.f32.mrf.mxu2  ;;  %v564_v63 = vpop.f32.mrf.mxu0 }
  0xc6   : > { %v681_v60 = vpop.f32.mrf.mxu3  ;;  %843 = vst.msk [vmem:[%s1446_s8 + $0x14] sm:$0xf] %vm837_vm1, %v778_v57  ;;  %v642_v61 = vadd.f32 %v1437_v33, %v641_v59  ;;  %v604_v0 = vpop.f32.mrf.mxu1  ;;  %v565_v1 = vadd.f32 %v1437_v33, %v564_v63 }
  0xc7   : > { %v682_v62 = vadd.f32 %v1437_v33, %v681_v60  ;;  %859 = vst.msk [vmem:[%s1446_s8 + $0x54] sm:$0xf] %vm837_vm1, %v794_v58  ;;  %v605_v2 = vadd.f32 %v1437_v33, %v604_v0 }
  0xc8   : > { %v746_v3 = vmax.f32 %v642_v61, 0.0  ;;  %v715_v5 = vmax.f32 %v565_v1, 0.0 }
  0xc9   : > { %v762_v4 = vmax.f32 %v682_v62, 0.0  ;;  %v731_v6 = vmax.f32 %v605_v2, 0.0 }
  0xca   : > { %v810_v7 = vpack.c.bf16 %v746_v3, %v746_v3  ;;  %v779_v9 = vpack.c.bf16 %v715_v5, %v715_v5 }
  0xcb   : > { %v826_v8 = vpack.c.bf16 %v762_v4, %v762_v4  ;;  %v795_v10 = vpack.c.bf16 %v731_v6, %v731_v6 }
  0xcc   : > { %875 = vst.msk [vmem:[%s1446_s8 + $0x94] sm:$0xf] %vm837_vm1, %v810_v7 }
  0xcd   : > { %891 = vst.msk [vmem:[%s1446_s8 + $0xd4] sm:$0xf] %vm837_vm1, %v826_v8  ;;  %v644_v11 = vpop.f32.mrf.mxu2  ;;  %v566_v15 = vpop.f32.mrf.mxu0 }
  0xce   : > { %v684_v12 = vpop.f32.mrf.mxu3  ;;  %844 = vst.msk [vmem:[%s1446_s8 + $0x18] sm:$0xf] %vm837_vm1, %v779_v9  ;;  %v645_v13 = vadd.f32 %v1437_v33, %v644_v11  ;;  %v606_v16 = vpop.f32.mrf.mxu1  ;;  %v567_v17 = vadd.f32 %v1437_v33, %v566_v15 }
  0xcf   : > { %v685_v14 = vadd.f32 %v1437_v33, %v684_v12  ;;  %860 = vst.msk [vmem:[%s1446_s8 + $0x58] sm:$0xf] %vm837_vm1, %v795_v10  ;;  %v607_v18 = vadd.f32 %v1437_v33, %v606_v16 }
  0xd0   : > { %v747_v19 = vmax.f32 %v645_v13, 0.0  ;;  %v716_v21 = vmax.f32 %v567_v17, 0.0 }
  0xd1   : > { %v763_v20 = vmax.f32 %v685_v14, 0.0  ;;  %v732_v22 = vmax.f32 %v607_v18, 0.0 }
  0xd2   : > { %v811_v23 = vpack.c.bf16 %v747_v19, %v747_v19  ;;  %v780_v25 = vpack.c.bf16 %v716_v21, %v716_v21 }
  0xd3   : > { %v827_v24 = vpack.c.bf16 %v763_v20, %v763_v20  ;;  %v796_v26 = vpack.c.bf16 %v732_v22, %v732_v22 }
  0xd4   : > { %876 = vst.msk [vmem:[%s1446_s8 + $0x98] sm:$0xf] %vm837_vm1, %v811_v23 }
  0xd5   : > { %892 = vst.msk [vmem:[%s1446_s8 + $0xd8] sm:$0xf] %vm837_vm1, %v827_v24  ;;  %v646_v27 = vpop.f32.mrf.mxu2  ;;  %v569_v31 = vpop.f32.mrf.mxu0 }
  0xd6   : > { %v686_v28 = vpop.f32.mrf.mxu3  ;;  %845 = vst.msk [vmem:[%s1446_s8 + $0x1c] sm:$0xf] %vm837_vm1, %v780_v25  ;;  %v647_v29 = vadd.f32 %v1437_v33, %v646_v27  ;;  %v609_v32 = vpop.f32.mrf.mxu1  ;;  %v570_v34 = vadd.f32 %v1437_v33, %v569_v31 }
  0xd7   : > { %v687_v30 = vadd.f32 %v1437_v33, %v686_v28  ;;  %861 = vst.msk [vmem:[%s1446_s8 + $0x5c] sm:$0xf] %vm837_vm1, %v796_v26  ;;  %v610_v35 = vadd.f32 %v1437_v33, %v609_v32 }
  0xd8   : > { %v748_v36 = vmax.f32 %v647_v29, 0.0  ;;  %v717_v38 = vmax.f32 %v570_v34, 0.0 }
  0xd9   : > { %v764_v37 = vmax.f32 %v687_v30, 0.0  ;;  %v733_v39 = vmax.f32 %v610_v35, 0.0 }
  0xda   : > { %v812_v40 = vpack.c.bf16 %v748_v36, %v748_v36  ;;  %v781_v42 = vpack.c.bf16 %v717_v38, %v717_v38 }
  0xdb   : > { %v828_v41 = vpack.c.bf16 %v764_v37, %v764_v37  ;;  %v797_v43 = vpack.c.bf16 %v733_v39, %v733_v39 }
  0xdc   : > { %877 = vst.msk [vmem:[%s1446_s8 + $0x9c] sm:$0xf] %vm837_vm1, %v812_v40 }
  0xdd   : > { %893 = vst.msk [vmem:[%s1446_s8 + $0xdc] sm:$0xf] %vm837_vm1, %v828_v41  ;;  %v649_v44 = vpop.f32.mrf.mxu2  ;;  %v571_v48 = vpop.f32.mrf.mxu0 }
  0xde   : > { %v689_v45 = vpop.f32.mrf.mxu3  ;;  %846 = vst.msk [vmem:[%s1446_s8 + $0x20] sm:$0xf] %vm837_vm1, %v781_v42  ;;  %v650_v46 = vadd.f32 %v1437_v33, %v649_v44  ;;  %v611_v49 = vpop.f32.mrf.mxu1  ;;  %v572_v50 = vadd.f32 %v1437_v33, %v571_v48 }
  0xdf   : > { %v690_v47 = vadd.f32 %v1437_v33, %v689_v45  ;;  %862 = vst.msk [vmem:[%s1446_s8 + $0x60] sm:$0xf] %vm837_vm1, %v797_v43  ;;  %v612_v51 = vadd.f32 %v1437_v33, %v611_v49 }
  0xe0   : > { %v749_v52 = vmax.f32 %v650_v46, 0.0  ;;  %v718_v54 = vmax.f32 %v572_v50, 0.0 }
  0xe1   : > { %v765_v53 = vmax.f32 %v690_v47, 0.0  ;;  %v734_v55 = vmax.f32 %v612_v51, 0.0 }
  0xe2   : > { %v813_v56 = vpack.c.bf16 %v749_v52, %v749_v52  ;;  %v782_v58 = vpack.c.bf16 %v718_v54, %v718_v54 }
  0xe3   : > { %v829_v57 = vpack.c.bf16 %v765_v53, %v765_v53  ;;  %v798_v59 = vpack.c.bf16 %v734_v55, %v734_v55 }
  0xe4   : > { %878 = vst.msk [vmem:[%s1446_s8 + $0xa0] sm:$0xf] %vm837_vm1, %v813_v56 }
  0xe5   : > { %894 = vst.msk [vmem:[%s1446_s8 + $0xe0] sm:$0xf] %vm837_vm1, %v829_v57  ;;  %v651_v60 = vpop.f32.mrf.mxu2  ;;  %v574_v0 = vpop.f32.mrf.mxu0 }
  0xe6   : > { %v691_v61 = vpop.f32.mrf.mxu3  ;;  %847 = vst.msk [vmem:[%s1446_s8 + $0x24] sm:$0xf] %vm837_vm1, %v782_v58  ;;  %v652_v62 = vadd.f32 %v1437_v33, %v651_v60  ;;  %v614_v1 = vpop.f32.mrf.mxu1  ;;  %v575_v2 = vadd.f32 %v1437_v33, %v574_v0 }
  0xe7   : > { %v692_v63 = vadd.f32 %v1437_v33, %v691_v61  ;;  %863 = vst.msk [vmem:[%s1446_s8 + $0x64] sm:$0xf] %vm837_vm1, %v798_v59  ;;  %v615_v3 = vadd.f32 %v1437_v33, %v614_v1 }
  0xe8   : > { %v750_v4 = vmax.f32 %v652_v62, 0.0  ;;  %v719_v6 = vmax.f32 %v575_v2, 0.0 }
  0xe9   : > { %v766_v5 = vmax.f32 %v692_v63, 0.0  ;;  %v735_v7 = vmax.f32 %v615_v3, 0.0 }
  0xea   : > { %v814_v8 = vpack.c.bf16 %v750_v4, %v750_v4  ;;  %v783_v10 = vpack.c.bf16 %v719_v6, %v719_v6 }
  0xeb   : > { %v830_v9 = vpack.c.bf16 %v766_v5, %v766_v5  ;;  %v799_v11 = vpack.c.bf16 %v735_v7, %v735_v7 }
  0xec   : > { %879 = vst.msk [vmem:[%s1446_s8 + $0xa4] sm:$0xf] %vm837_vm1, %v814_v8 }
  0xed   : > { %895 = vst.msk [vmem:[%s1446_s8 + $0xe4] sm:$0xf] %vm837_vm1, %v830_v9  ;;  %v654_v12 = vpop.f32.mrf.mxu2  ;;  %v576_v16 = vpop.f32.mrf.mxu0 }
  0xee   : > { %v694_v13 = vpop.f32.mrf.mxu3  ;;  %848 = vst.msk [vmem:[%s1446_s8 + $0x28] sm:$0xf] %vm837_vm1, %v783_v10  ;;  %v655_v14 = vadd.f32 %v1437_v33, %v654_v12  ;;  %v616_v17 = vpop.f32.mrf.mxu1  ;;  %v577_v18 = vadd.f32 %v1437_v33, %v576_v16 }
  0xef   : > { %v695_v15 = vadd.f32 %v1437_v33, %v694_v13  ;;  %864 = vst.msk [vmem:[%s1446_s8 + $0x68] sm:$0xf] %vm837_vm1, %v799_v11  ;;  %v617_v19 = vadd.f32 %v1437_v33, %v616_v17 }
  0xf0   : > { %v751_v20 = vmax.f32 %v655_v14, 0.0  ;;  %v720_v22 = vmax.f32 %v577_v18, 0.0 }
  0xf1   : > { %v767_v21 = vmax.f32 %v695_v15, 0.0  ;;  %v736_v23 = vmax.f32 %v617_v19, 0.0 }
  0xf2   : > { %v815_v24 = vpack.c.bf16 %v751_v20, %v751_v20  ;;  %v784_v26 = vpack.c.bf16 %v720_v22, %v720_v22 }
  0xf3   : > { %v831_v25 = vpack.c.bf16 %v767_v21, %v767_v21  ;;  %v800_v27 = vpack.c.bf16 %v736_v23, %v736_v23 }
  0xf4   : > { %880 = vst.msk [vmem:[%s1446_s8 + $0xa8] sm:$0xf] %vm837_vm1, %v815_v24 }
  0xf5   : > { %896 = vst.msk [vmem:[%s1446_s8 + $0xe8] sm:$0xf] %vm837_vm1, %v831_v25  ;;  %v656_v28 = vpop.f32.mrf.mxu2  ;;  %v579_v32 = vpop.f32.mrf.mxu0 }
  0xf6   : > { %v696_v29 = vpop.f32.mrf.mxu3  ;;  %849 = vst.msk [vmem:[%s1446_s8 + $0x2c] sm:$0xf] %vm837_vm1, %v784_v26  ;;  %v657_v30 = vadd.f32 %v1437_v33, %v656_v28  ;;  %v619_v34 = vpop.f32.mrf.mxu1  ;;  %v580_v35 = vadd.f32 %v1437_v33, %v579_v32 }
  0xf7   : > { %v697_v31 = vadd.f32 %v1437_v33, %v696_v29  ;;  %865 = vst.msk [vmem:[%s1446_s8 + $0x6c] sm:$0xf] %vm837_vm1, %v800_v27  ;;  %v620_v36 = vadd.f32 %v1437_v33, %v619_v34 }
  0xf8   : > { %v752_v37 = vmax.f32 %v657_v30, 0.0  ;;  %v721_v39 = vmax.f32 %v580_v35, 0.0 }
  0xf9   : > { %v768_v38 = vmax.f32 %v697_v31, 0.0  ;;  %v737_v40 = vmax.f32 %v620_v36, 0.0 }
  0xfa   : > { %v816_v41 = vpack.c.bf16 %v752_v37, %v752_v37  ;;  %v785_v43 = vpack.c.bf16 %v721_v39, %v721_v39 }
  0xfb   : > { %v832_v42 = vpack.c.bf16 %v768_v38, %v768_v38  ;;  %v801_v44 = vpack.c.bf16 %v737_v40, %v737_v40 }
  0xfc   : > { %881 = vst.msk [vmem:[%s1446_s8 + $0xac] sm:$0xf] %vm837_vm1, %v816_v41 }
  0xfd   : > { %897 = vst.msk [vmem:[%s1446_s8 + $0xec] sm:$0xf] %vm837_vm1, %v832_v42  ;;  %v659_v45 = vpop.f32.mrf.mxu2  ;;  %v581_v49 = vpop.f32.mrf.mxu0 }
  0xfe   : > { %v699_v46 = vpop.f32.mrf.mxu3  ;;  %850 = vst.msk [vmem:[%s1446_s8 + $0x30] sm:$0xf] %vm837_vm1, %v785_v43  ;;  %v660_v47 = vadd.f32 %v1437_v33, %v659_v45  ;;  %v621_v50 = vpop.f32.mrf.mxu1  ;;  %v582_v51 = vadd.f32 %v1437_v33, %v581_v49 }
  0xff   : > { %v700_v48 = vadd.f32 %v1437_v33, %v699_v46  ;;  %866 = vst.msk [vmem:[%s1446_s8 + $0x70] sm:$0xf] %vm837_vm1, %v801_v44  ;;  %v622_v52 = vadd.f32 %v1437_v33, %v621_v50 }
 0x100   : > { %v753_v53 = vmax.f32 %v660_v47, 0.0  ;;  %v722_v55 = vmax.f32 %v582_v51, 0.0 }
 0x101   : > { %v769_v54 = vmax.f32 %v700_v48, 0.0  ;;  %v738_v56 = vmax.f32 %v622_v52, 0.0 }
 0x102   : > { %v817_v57 = vpack.c.bf16 %v753_v53, %v753_v53  ;;  %v786_v59 = vpack.c.bf16 %v722_v55, %v722_v55 }
 0x103   : > { %v833_v58 = vpack.c.bf16 %v769_v54, %v769_v54  ;;  %v802_v60 = vpack.c.bf16 %v738_v56, %v738_v56 }
 0x104   : > { %882 = vst.msk [vmem:[%s1446_s8 + $0xb0] sm:$0xf] %vm837_vm1, %v817_v57 }
 0x105   : > { %898 = vst.msk [vmem:[%s1446_s8 + $0xf0] sm:$0xf] %vm837_vm1, %v833_v58  ;;  %v661_v61 = vpop.f32.mrf.mxu2  ;;  %v584_v1 = vpop.f32.mrf.mxu0 }
 0x106   : > { %v701_v62 = vpop.f32.mrf.mxu3  ;;  %851 = vst.msk [vmem:[%s1446_s8 + $0x34] sm:$0xf] %vm837_vm1, %v786_v59  ;;  %v662_v63 = vadd.f32 %v1437_v33, %v661_v61  ;;  %v624_v2 = vpop.f32.mrf.mxu1  ;;  %v585_v3 = vadd.f32 %v1437_v33, %v584_v1 }
 0x107   : > { %v702_v0 = vadd.f32 %v1437_v33, %v701_v62  ;;  %867 = vst.msk [vmem:[%s1446_s8 + $0x74] sm:$0xf] %vm837_vm1, %v802_v60  ;;  %v625_v4 = vadd.f32 %v1437_v33, %v624_v2 }
 0x108   : > { %v754_v5 = vmax.f32 %v662_v63, 0.0  ;;  %v723_v7 = vmax.f32 %v585_v3, 0.0 }
 0x109   : > { %v770_v6 = vmax.f32 %v702_v0, 0.0  ;;  %v739_v8 = vmax.f32 %v625_v4, 0.0 }
 0x10a   : > { %v818_v9 = vpack.c.bf16 %v754_v5, %v754_v5  ;;  %v787_v11 = vpack.c.bf16 %v723_v7, %v723_v7 }
 0x10b   : > { %v834_v10 = vpack.c.bf16 %v770_v6, %v770_v6  ;;  %v803_v12 = vpack.c.bf16 %v739_v8, %v739_v8 }
 0x10c   : > { %883 = vst.msk [vmem:[%s1446_s8 + $0xb4] sm:$0xf] %vm837_vm1, %v818_v9 }
 0x10d   : > { %899 = vst.msk [vmem:[%s1446_s8 + $0xf4] sm:$0xf] %vm837_vm1, %v834_v10  ;;  %v664_v13 = vpop.f32.mrf.mxu2  ;;  %v586_v17 = vpop.f32.mrf.mxu0 }
 0x10e   : > { %v704_v14 = vpop.f32.mrf.mxu3  ;;  %852 = vst.msk [vmem:[%s1446_s8 + $0x38] sm:$0xf] %vm837_vm1, %v787_v11  ;;  %v665_v15 = vadd.f32 %v1437_v33, %v664_v13  ;;  %v626_v18 = vpop.f32.mrf.mxu1  ;;  %v587_v19 = vadd.f32 %v1437_v33, %v586_v17 }
 0x10f   : > { %v705_v16 = vadd.f32 %v1437_v33, %v704_v14  ;;  %868 = vst.msk [vmem:[%s1446_s8 + $0x78] sm:$0xf] %vm837_vm1, %v803_v12  ;;  %v627_v20 = vadd.f32 %v1437_v33, %v626_v18 }
 0x110   : > { %v755_v21 = vmax.f32 %v665_v15, 0.0  ;;  %v724_v23 = vmax.f32 %v587_v19, 0.0 }
 0x111   : > { %v771_v22 = vmax.f32 %v705_v16, 0.0  ;;  %v740_v24 = vmax.f32 %v627_v20, 0.0 }
 0x112   : > { %v819_v25 = vpack.c.bf16 %v755_v21, %v755_v21  ;;  %v788_v27 = vpack.c.bf16 %v724_v23, %v724_v23 }
 0x113   : > { %v835_v26 = vpack.c.bf16 %v771_v22, %v771_v22  ;;  %v804_v28 = vpack.c.bf16 %v740_v24, %v740_v24 }
 0x114   : > { %884 = vst.msk [vmem:[%s1446_s8 + $0xb8] sm:$0xf] %vm837_vm1, %v819_v25 }
 0x115   : > { %900 = vst.msk [vmem:[%s1446_s8 + $0xf8] sm:$0xf] %vm837_vm1, %v835_v26  ;;  %v666_v29 = vpop.f32.mrf.mxu2 }
 0x116   : > { %v706_v30 = vpop.f32.mrf.mxu3  ;;  %853 = vst.msk [vmem:[%s1446_s8 + $0x3c] sm:$0xf] %vm837_vm1, %v788_v27  ;;  %v667_v31 = vadd.f32 %v1437_v33, %v666_v29 }
 0x117   : > { %v707_v32 = vadd.f32 %v1437_v33, %v706_v30  ;;  %869 = vst.msk [vmem:[%s1446_s8 + $0x7c] sm:$0xf] %vm837_vm1, %v804_v28 }
 0x118   : > { %v756_v34 = vmax.f32 %v667_v31, 0.0 }
 0x119   : > { %v772_v35 = vmax.f32 %v707_v32, 0.0 }
 0x11a   : > { %v820_v36 = vpack.c.bf16 %v756_v34, %v756_v34 }
 0x11b   : > { %v836_v37 = vpack.c.bf16 %v772_v35, %v772_v35 }
 0x11c   : > { %885 = vst.msk [vmem:[%s1446_s8 + $0xbc] sm:$0xf] %vm837_vm1, %v820_v36 }
 0x11d   : > { %901 = vst.msk [vmem:[%s1446_s8 + $0xfc] sm:$0xf] %vm837_vm1, %v836_v37 }
 0x11e PF: > { %s15_s12 = sadd.s32 1, %s1301_s12  }
 0x11f   : > { %p12_p7 = scmp.ge.s32.totalorder %s15_s12, 6  }
 0x121   :  { %14 = sbr.rel (!%p12_p7) target bundleno = 2 (0x2), region = 71 }
 0x126   :  { %924 = vsyncpa [#allocation3], 1 }
 0x127   :  { %926 = vsyncpa [#allocation3 + $0x1], 1 }
 0x128   :  { %927 = vsyncpa [#allocation5], 1 }

// kernel: beta_vae64_forward.11
= control target key start
LH: loop header
LB: loop body
LE: loop exit
PB: predicated region body
PF: predicated region fallthrough
CT: control target
= control target key end

     0   :  { %s3337_s12 = smov 0   ;;  %s4008_s0 = inlined_call_operand.vmem [shape: bf16[512,1024], index: 0, kind: input, shape index: {}]   ;;  %s4009_s1 = inlined_call_operand.vmem [shape: bf16[1024,32], index: 1, kind: input, shape index: {}]   ;;  %s4010_s2 = inlined_call_operand.vmem [shape: f32[1,32], index: 2, kind: input, shape index: {}]   ;;  %s4011_s3 = inlined_call_operand.vmem [shape: bf16[512,32], index: 3, kind: output, shape index: {}]  }
   0x1 LB: > { %s2326_s13 = sadd.s32 4294967295, %s3315_s12   ;;  %p2330_p0 = scmp.ge.s32.totalorder %s3315_s12, 1  ;;  %s3315_s12 = sphi %s3337_s12, %s13_s12  }
   0x2   : > { %p139_p1 = scmp.lt.s32.totalorder %s3315_s12, 3 }
   0x4   : > { %p140_p2 = pnand %p2330_p0, %p139_p1 }
   0x5   : > { %s2331_s11 = sshll.u32 (!%p140_p2), %s2326_s13, 5 }
   0x6   : > { %143 = sbr.rel (%p140_p2) target bundleno = 690 (0x2b2), region = 32  ;;  %p165_p3 = scmp.lt.s32.totalorder (!%p140_p2), %s2331_s11, 63 }
   0xb   : > { %v3242_v0 = vld [vmem:[%s4009_s1 + $0x38] sm:$0xff]  ;;  %v3241_v4 = vld [vmem:[%s4009_s1 + $0x30] sm:$0xff]  ;;  %v3240_v8 = vld [vmem:[%s4009_s1 + $0x28] sm:$0xff]  ;;  %s4013_s11 = smov (!%p165_p3, %s2331_s11), 63  ;;  %vm2237_vm0 = vcmask 257024  }
   0xc   : > { %v3250_v1 = vld [vmem:[%s4009_s1 + $0x78] sm:$0xff]  ;;  %1461 = vmatpush.bf16.msra.mxu0 %v3242_v0  ;;  %v3249_v5 = vld [vmem:[%s4009_s1 + $0x70] sm:$0xff]  ;;  %v3248_v9 = vld [vmem:[%s4009_s1 + $0x68] sm:$0xff]  ;;  %s3106_s10 = sshll.u32 %s4013_s11, 5  ;;  %s2335_s28 = sshll.u32 %s4013_s11, 2 }
   0xd   : > { %v3258_v2 = vld [vmem:[%s4009_s1 + $0xb8] sm:$0xff]  ;;  %1550 = vmatpush.bf16.msra.mxu1 %v3250_v1  ;;  %v3257_v6 = vld [vmem:[%s4009_s1 + $0xb0] sm:$0xff]  ;;  %v3256_v10 = vld [vmem:[%s4009_s1 + $0xa8] sm:$0xff]  ;;  %s3429_s20 = scalar_lea.vmem %s4008_s0, %s3106_s10  ;;  %s3858_s4 = scalar_lea.vmem %s4011_s3, %s2335_s28 }
   0xe   : > { %v3266_v3 = vld [vmem:[%s4009_s1 + $0xf8] sm:$0xff]  ;;  %1639 = vmatpush.bf16.msra.mxu2 %v3258_v2  ;;  %v3265_v7 = vld [vmem:[%s4009_s1 + $0xf0] sm:$0xff]  ;;  %v3264_v11 = vld [vmem:[%s4009_s1 + $0xe8] sm:$0xff] }
   0xf   : > { %1728 = vmatpush.bf16.msra.mxu3 %v3266_v3  ;;  %v3239_v12 = vld [vmem:[%s4009_s1 + $0x20] sm:$0xff]  ;;  %v3238_v16 = vld [vmem:[%s4009_s1 + $0x18] sm:$0xff]  ;;  %v3237_v20 = vld [vmem:[%s4009_s1 + $0x10] sm:$0xff] }
  0x10   : > { %1462 = vmatpush.bf16.msra.mxu0 %v3241_v4  ;;  %v3247_v13 = vld [vmem:[%s4009_s1 + $0x60] sm:$0xff]  ;;  %v3246_v17 = vld [vmem:[%s4009_s1 + $0x58] sm:$0xff]  ;;  %v3245_v21 = vld [vmem:[%s4009_s1 + $0x50] sm:$0xff] }
  0x11   : > { %1551 = vmatpush.bf16.msra.mxu1 %v3249_v5  ;;  %v3255_v14 = vld [vmem:[%s4009_s1 + $0xa0] sm:$0xff]  ;;  %v3254_v18 = vld [vmem:[%s4009_s1 + $0x98] sm:$0xff]  ;;  %v3253_v22 = vld [vmem:[%s4009_s1 + $0x90] sm:$0xff] }
  0x12   : > { %1640 = vmatpush.bf16.msra.mxu2 %v3257_v6  ;;  %v3263_v15 = vld [vmem:[%s4009_s1 + $0xe0] sm:$0xff]  ;;  %v3262_v19 = vld [vmem:[%s4009_s1 + $0xd8] sm:$0xff]  ;;  %v3261_v23 = vld [vmem:[%s4009_s1 + $0xd0] sm:$0xff] }
  0x13   : > { %1729 = vmatpush.bf16.msra.mxu3 %v3265_v7  ;;  %v3236_v24 = vld [vmem:[%s4009_s1 + $0x8] sm:$0xff]  ;;  %v3235_v28 = vld [vmem:[%s4009_s1] sm:$0xff]  ;;  %v3290_v40 = vld [vmem:[%s4009_s1 + $0x1b8] sm:$0xff] }
  0x14   : > { %1463 = vmatpush.bf16.msra.mxu0 %v3240_v8  ;;  %v3244_v25 = vld [vmem:[%s4009_s1 + $0x48] sm:$0xff]  ;;  %v3243_v29 = vld [vmem:[%s4009_s1 + $0x40] sm:$0xff]  ;;  %v3274_v41 = vld [vmem:[%s4009_s1 + $0x138] sm:$0xff] }
  0x15   : > { %1552 = vmatpush.bf16.msra.mxu1 %v3248_v9  ;;  %v3252_v26 = vld [vmem:[%s4009_s1 + $0x88] sm:$0xff]  ;;  %v3251_v30 = vld [vmem:[%s4009_s1 + $0x80] sm:$0xff]  ;;  %v3298_v46 = vld [vmem:[%s4009_s1 + $0x1f8] sm:$0xff] }
  0x16   : > { %1641 = vmatpush.bf16.msra.mxu2 %v3256_v10  ;;  %v3260_v27 = vld [vmem:[%s4009_s1 + $0xc8] sm:$0xff]  ;;  %v3259_v31 = vld [vmem:[%s4009_s1 + $0xc0] sm:$0xff]  ;;  %v3282_v47 = vld [vmem:[%s4009_s1 + $0x178] sm:$0xff] }
  0x17   : > { %1730 = vmatpush.bf16.msra.mxu3 %v3264_v11  ;;  %v2338_v32 = vld [vmem:[%s3429_s20] sm:$0xf]  ;;  %v3107_v34 = vld [vmem:[%s3429_s20 + $0x4] sm:$0xf]  ;;  %v2346_v36 = vld [vmem:[%s3429_s20 + $0x8] sm:$0xf] }
  0x18   : > { %1464 = vmatpush.bf16.msra.mxu0 %v3239_v12  ;;  %v3111_v33 = vld [vmem:[%s3429_s20 + $0x1c] sm:$0xf0]  ;;  %v2340_v35 = vld [vmem:[%s3429_s20 + $0x20] sm:$0xf0]  ;;  %v3112_v37 = vld [vmem:[%s3429_s20 + $0x24] sm:$0xf0] }
  0x19   : > { %1553 = vmatpush.bf16.msra.mxu1 %v3247_v13  ;;  %v3108_v38 = vld [vmem:[%s3429_s20 + $0xc] sm:$0xf]  ;;  %v2339_v42 = vor.u32 %v3111_v33, %v2338_v32  ;;  %v2343_v43 = vor.u32 %v3107_v34, %v2340_v35  ;;  %v2347_v44 = vor.u32 %v3112_v37, %v2346_v36  ;;  %v3289_v48 = vld [vmem:[%s4009_s1 + $0x1b0] sm:$0xff]  ;;  %v2370_v52 = vld [vmem:[%s3429_s20 + $0x40] sm:$0xf] }
  0x1a   : > { %1642 = vmatpush.bf16.msra.mxu2 %v3255_v14  ;;  %v2348_v39 = vld [vmem:[%s3429_s20 + $0x28] sm:$0xf0]  ;;  %v3273_v49 = vld [vmem:[%s4009_s1 + $0x130] sm:$0xff]  ;;  %v3119_v53 = vld [vmem:[%s3429_s20 + $0x5c] sm:$0xf0] }
  0x1b   : > { %1731 = vmatpush.bf16.msra.mxu3 %v3263_v15  ;;  %v2351_v45 = vor.u32 %v3108_v38, %v2348_v39  ;;  %v3297_v50 = vld [vmem:[%s4009_s1 + $0x1f0] sm:$0xff]  ;;  %v3115_v54 = vld [vmem:[%s3429_s20 + $0x44] sm:$0xf]  ;;  %v2378_v56 = vld [vmem:[%s3429_s20 + $0x48] sm:$0xf]  ;;  %v2371_v60 = vor.u32 %v3119_v53, %v2370_v52 }
  0x1c   : > { %1465 = vmatpush.bf16.msra.mxu0 %v3238_v16  ;;  %v3281_v51 = vld [vmem:[%s4009_s1 + $0x170] sm:$0xff]  ;;  %v2372_v55 = vld [vmem:[%s3429_s20 + $0x60] sm:$0xf0]  ;;  %v3120_v57 = vld [vmem:[%s3429_s20 + $0x64] sm:$0xf0] }
  0x1d   : > { %1554 = vmatpush.bf16.msra.mxu1 %v3246_v17  ;;  %v3116_v58 = vld [vmem:[%s3429_s20 + $0x4c] sm:$0xf]  ;;  %v2375_v61 = vor.u32 %v3115_v54, %v2372_v55  ;;  %v2379_v62 = vor.u32 %v3120_v57, %v2378_v56  ;;  %v2402_v0 = vld [vmem:[%s3429_s20 + $0x80] sm:$0xf]  ;;  %v3123_v2 = vld [vmem:[%s3429_s20 + $0x84] sm:$0xf] }
  0x1e   : > { %1643 = vmatpush.bf16.msra.mxu2 %v3254_v18  ;;  %v2380_v59 = vld [vmem:[%s3429_s20 + $0x68] sm:$0xf0]  ;;  %v3127_v1 = vld [vmem:[%s3429_s20 + $0x9c] sm:$0xf0]  ;;  %v2404_v3 = vld [vmem:[%s3429_s20 + $0xa0] sm:$0xf0] }
  0x1f   : > { %1732 = vmatpush.bf16.msra.mxu3 %v3262_v19  ;;  %v2383_v63 = vor.u32 %v3116_v58, %v2380_v59  ;;  %v2410_v4 = vld [vmem:[%s3429_s20 + $0x88] sm:$0xf]  ;;  %v3124_v6 = vld [vmem:[%s3429_s20 + $0x8c] sm:$0xf]  ;;  %v2403_v8 = vor.u32 %v3127_v1, %v2402_v0  ;;  %v2407_v9 = vor.u32 %v3123_v2, %v2404_v3  ;;  %v2434_v16 = vld [vmem:[%s3429_s20 + $0xc0] sm:$0xf] }
  0x20   : > { %1466 = vmatpush.bf16.msra.mxu0 %v3237_v20  ;;  %v3128_v5 = vld [vmem:[%s3429_s20 + $0xa4] sm:$0xf0]  ;;  %v2412_v7 = vld [vmem:[%s3429_s20 + $0xa8] sm:$0xf0]  ;;  %v3135_v17 = vld [vmem:[%s3429_s20 + $0xdc] sm:$0xf0] }
  0x21   : > { %1555 = vmatpush.bf16.msra.mxu1 %v3245_v21  ;;  %v2411_v10 = vor.u32 %v3128_v5, %v2410_v4  ;;  %v2415_v11 = vor.u32 %v3124_v6, %v2412_v7  ;;  %v3288_v12 = vld [vmem:[%s4009_s1 + $0x1a8] sm:$0xff]  ;;  %v3131_v18 = vld [vmem:[%s3429_s20 + $0xc4] sm:$0xf]  ;;  %v2530_v56 = vld [vmem:[%s3429_s20 + $0x180] sm:$0xf] }
  0x22   : > { %1644 = vmatpush.bf16.msra.mxu2 %v3253_v22  ;;  %v3272_v13 = vld [vmem:[%s4009_s1 + $0x128] sm:$0xff]  ;;  %v2436_v19 = vld [vmem:[%s3429_s20 + $0xe0] sm:$0xf0]  ;;  %v3159_v57 = vld [vmem:[%s3429_s20 + $0x19c] sm:$0xf0] }
  0x23   : > { %1733 = vmatpush.bf16.msra.mxu3 %v3261_v23  ;;  %v3296_v14 = vld [vmem:[%s4009_s1 + $0x1e8] sm:$0xff]  ;;  %v3155_v58 = vld [vmem:[%s3429_s20 + $0x184] sm:$0xf]  ;;  %v2531_v0 = vor.u32 %v3159_v57, %v2530_v56  ;;  %v3286_v4 = vld [vmem:[%s4009_s1 + $0x198] sm:$0xff] }
  0x24   : > { %1467 = vmatpush.bf16.msra.mxu0 %v3236_v24  ;;  %v3280_v15 = vld [vmem:[%s4009_s1 + $0x168] sm:$0xff]  ;;  %v2435_v24 = vor.u32 %v3135_v17, %v2434_v16  ;;  %v2532_v59 = vld [vmem:[%s3429_s20 + $0x1a0] sm:$0xf0]  ;;  %v3270_v5 = vld [vmem:[%s4009_s1 + $0x118] sm:$0xff] }
  0x25   : > { %1556 = vmatpush.bf16.msra.mxu1 %v3244_v25  ;;  %v2442_v20 = vld [vmem:[%s3429_s20 + $0xc8] sm:$0xf]  ;;  %v3132_v22 = vld [vmem:[%s3429_s20 + $0xcc] sm:$0xf]  ;;  %v2439_v25 = vor.u32 %v3131_v18, %v2436_v19  ;;  %v2535_v1 = vor.u32 %v3155_v58, %v2532_v59  ;;  %v3294_v6 = vld [vmem:[%s4009_s1 + $0x1d8] sm:$0xff] }
  0x26   : > { %1645 = vmatpush.bf16.msra.mxu2 %v3252_v26  ;;  %v3136_v21 = vld [vmem:[%s3429_s20 + $0xe4] sm:$0xf0]  ;;  %v2444_v23 = vld [vmem:[%s3429_s20 + $0xe8] sm:$0xf0]  ;;  %v3278_v7 = vld [vmem:[%s4009_s1 + $0x158] sm:$0xff] }
  0x27   : > { %1734 = vmatpush.bf16.msra.mxu3 %v3260_v27  ;;  %v2443_v26 = vor.u32 %v3136_v21, %v2442_v20  ;;  %v2447_v27 = vor.u32 %v3132_v22, %v2444_v23  ;;  %v2474_v32 = vld [vmem:[%s3429_s20 + $0x108] sm:$0xf]  ;;  %v3140_v34 = vld [vmem:[%s3429_s20 + $0x10c] sm:$0xf]  ;;  %v3576_v20 = vld [vmem:[%s4010_s2] ss:$0 sm:$0xff] }
  0x28   : > { %1468 = vmatpush.bf16.msra.mxu0 %v3235_v28  ;;  %v2466_v28 = vld [vmem:[%s3429_s20 + $0x100] sm:$0xf]  ;;  %v3144_v33 = vld [vmem:[%s3429_s20 + $0x124] sm:$0xf0]  ;;  %v2476_v35 = vld [vmem:[%s3429_s20 + $0x128] sm:$0xf0] }
  0x29   : > { %1557 = vmatpush.bf16.msra.mxu1 %v3243_v29  ;;  %v3143_v29 = vld [vmem:[%s3429_s20 + $0x11c] sm:$0xf0]  ;;  %v2475_v38 = vor.u32 %v3144_v33, %v2474_v32  ;;  %v2479_v39 = vor.u32 %v3140_v34, %v2476_v35  ;;  %v3171_v23 = vld [vmem:[%s3429_s20 + $0x204] sm:$0xf]  ;;  %v2636_v56 = vld [vmem:[%s3429_s20 + $0x268] sm:$0xf0] }
  0x2a   : > { %1646 = vmatpush.bf16.msra.mxu2 %v3251_v30  ;;  %v3139_v30 = vld [vmem:[%s3429_s20 + $0x104] sm:$0xf]  ;;  %v2467_v36 = vor.u32 %v3143_v29, %v2466_v28  ;;  %v2594_v21 = vld [vmem:[%s3429_s20 + $0x200] sm:$0xf]  ;;  %v2604_v28 = vld [vmem:[%s3429_s20 + $0x228] sm:$0xf0] }
  0x2b   : > { %1735 = vmatpush.bf16.msra.mxu3 %v3259_v31  ;;  %1469 = vmatmul.bf16.vlgmr.msra.gmra.mxu0 %v2339_v42  ;;  %v2468_v31 = vld [vmem:[%s3429_s20 + $0x120] sm:$0xf0]  ;;  %v3175_v22 = vld [vmem:[%s3429_s20 + $0x21c] sm:$0xf0] }
  0x2c   : > { %1817 = vmatpush.bf16.msrb.mxu0 %v3274_v41  ;;  %1558 = vmatmul.bf16.vlgmr.msra.gmra.mxu1 %v2343_v43  ;;  %v2471_v37 = vor.u32 %v3139_v30, %v2468_v31  ;;  %v3271_v41 = vld [vmem:[%s4009_s1 + $0x120] sm:$0xff]  ;;  %v2595_v29 = vor.u32 %v3175_v22, %v2594_v21  ;;  %v2668_v21 = vld [vmem:[%s3429_s20 + $0x2a8] sm:$0xf0] }
  0x2d   : > { %1647 = vmatmul.bf16.vlgmr.msra.gmra.mxu2 %v2347_v44  ;;  %1906 = vmatpush.bf16.msrb.mxu1 %v3282_v47  ;;  %v3295_v42 = vld [vmem:[%s4009_s1 + $0x1e0] sm:$0xff] }
  0x2e   : > { %1995 = vmatpush.bf16.msrb.mxu2 %v3290_v40  ;;  %1736 = vmatmul.bf16.vlgmr.msra.gmra.mxu3 %v2351_v45  ;;  %v3287_v40 = vld [vmem:[%s4009_s1 + $0x1a0] sm:$0xff] }
  0x2f   : > { %2084 = vmatpush.bf16.msrb.mxu3 %v3298_v46  ;;  %v3279_v43 = vld [vmem:[%s4009_s1 + $0x160] sm:$0xff] }
  0x30   : > { %1818 = vmatpush.bf16.msrb.mxu0 %v3273_v49  ;;  %v2498_v44 = vld [vmem:[%s3429_s20 + $0x140] sm:$0xf]  ;;  %v3147_v46 = vld [vmem:[%s3429_s20 + $0x144] sm:$0xf]  ;;  %v3152_v49 = vld [vmem:[%s3429_s20 + $0x164] sm:$0xf0] }
  0x31   : > { %1907 = vmatpush.bf16.msrb.mxu1 %v3281_v51  ;;  %v3151_v45 = vld [vmem:[%s3429_s20 + $0x15c] sm:$0xf0]  ;;  %v2500_v47 = vld [vmem:[%s3429_s20 + $0x160] sm:$0xf0]  ;;  %v2508_v51 = vld [vmem:[%s3429_s20 + $0x168] sm:$0xf0] }
  0x32   : > { %1996 = vmatpush.bf16.msrb.mxu2 %v3289_v48  ;;  %v2506_v48 = vld [vmem:[%s3429_s20 + $0x148] sm:$0xf]  ;;  %v2499_v52 = vor.u32 %v3151_v45, %v2498_v44  ;;  %v2503_v53 = vor.u32 %v3147_v46, %v2500_v47  ;;  %v3277_v47 = vld [vmem:[%s4009_s1 + $0x150] sm:$0xff] }
  0x33   : > { %2085 = vmatpush.bf16.msrb.mxu3 %v3297_v50  ;;  %v3148_v50 = vld [vmem:[%s3429_s20 + $0x14c] sm:$0xf]  ;;  %v2507_v54 = vor.u32 %v3152_v49, %v2506_v48  ;;  %v2626_v49 = vld [vmem:[%s3429_s20 + $0x240] sm:$0xf] }
  0x34   : > { %1819 = vmatpush.bf16.msrb.mxu0 %v3272_v13  ;;  %v2511_v55 = vor.u32 %v3148_v50, %v2508_v51  ;;  %v3168_v13 = vld [vmem:[%s3429_s20 + $0x1e4] sm:$0xf0]  ;;  %v3183_v50 = vld [vmem:[%s3429_s20 + $0x25c] sm:$0xf0]  ;;  %v3179_v51 = vld [vmem:[%s3429_s20 + $0x244] sm:$0xf] }
  0x35   : > { %1908 = vmatpush.bf16.msrb.mxu1 %v3280_v15  ;;  %v2572_v15 = vld [vmem:[%s3429_s20 + $0x1e8] sm:$0xf0]  ;;  %v2627_v59 = vor.u32 %v3183_v50, %v2626_v49  ;;  %v3195_v49 = vld [vmem:[%s3429_s20 + $0x2c4] sm:$0xf] }
  0x36   : > { %1997 = vmatpush.bf16.msrb.mxu2 %v3288_v12  ;;  %v2570_v12 = vld [vmem:[%s3429_s20 + $0x1c8] sm:$0xf]  ;;  %v2692_v50 = vld [vmem:[%s3429_s20 + $0x2e0] sm:$0xf0] }
  0x37   : > { %2086 = vmatpush.bf16.msrb.mxu3 %v3296_v14  ;;  %v3164_v14 = vld [vmem:[%s3429_s20 + $0x1cc] sm:$0xf]  ;;  %v2571_v18 = vor.u32 %v3168_v13, %v2570_v12  ;;  %v2658_v13 = vld [vmem:[%s3429_s20 + $0x280] sm:$0xf] }
  0x38   : > { %1820 = vmatpush.bf16.msrb.mxu0 %v3271_v41  ;;  %v2575_v19 = vor.u32 %v3164_v14, %v2572_v15  ;;  %v3191_v14 = vld [vmem:[%s3429_s20 + $0x29c] sm:$0xf0]  ;;  %v3187_v15 = vld [vmem:[%s3429_s20 + $0x284] sm:$0xf] }
  0x39   : > { %1909 = vmatpush.bf16.msrb.mxu1 %v3279_v43 }
  0x3a   : > { %1998 = vmatpush.bf16.msrb.mxu2 %v3287_v40 }
  0x3b   : > { %1474 = vmatmul.bf16.gmra.mxu0 %v2371_v60  ;;  %2087 = vmatpush.bf16.msrb.mxu3 %v3295_v42  ;;  %v2538_v60 = vld [vmem:[%s3429_s20 + $0x188] sm:$0xf] }
  0x3c   : > { %1563 = vmatmul.bf16.gmra.mxu1 %v2375_v61  ;;  %v3160_v61 = vld [vmem:[%s3429_s20 + $0x1a4] sm:$0xf0]  ;;  %1821 = vmatpush.bf16.msrb.mxu0 %v3270_v5 }
  0x3d   : > { %1652 = vmatmul.bf16.gmra.mxu2 %v2379_v62  ;;  %v3156_v62 = vld [vmem:[%s3429_s20 + $0x18c] sm:$0xf]  ;;  %v2539_v2 = vor.u32 %v3160_v61, %v2538_v60  ;;  %1910 = vmatpush.bf16.msrb.mxu1 %v3278_v7 }
  0x3e   : > { %1741 = vmatmul.bf16.gmra.mxu3 %v2383_v63  ;;  %v2540_v63 = vld [vmem:[%s3429_s20 + $0x1a8] sm:$0xf0]  ;;  %1999 = vmatpush.bf16.msrb.mxu2 %v3286_v4 }
  0x3f   : > { %v2543_v3 = vor.u32 %v3156_v62, %v2540_v63  ;;  %2088 = vmatpush.bf16.msrb.mxu3 %v3294_v6 }
  0x41   : > { %1911 = vmatpush.bf16.msrb.mxu1 %v3277_v47  ;;  %v2690_v47 = vld [vmem:[%s3429_s20 + $0x2c0] sm:$0xf] }
  0x4b   : > { %1479 = vmatmul.bf16.gmra.mxu0 %v2403_v8  ;;  %v2562_v8 = vld [vmem:[%s3429_s20 + $0x1c0] sm:$0xf] }
  0x4c   : > { %1568 = vmatmul.bf16.gmra.mxu1 %v2407_v9  ;;  %v3167_v9 = vld [vmem:[%s3429_s20 + $0x1dc] sm:$0xf0] }
  0x4d   : > { %1657 = vmatmul.bf16.gmra.mxu2 %v2411_v10  ;;  %v3163_v10 = vld [vmem:[%s3429_s20 + $0x1c4] sm:$0xf]  ;;  %v2563_v16 = vor.u32 %v3167_v9, %v2562_v8 }
  0x4e   : > { %1746 = vmatmul.bf16.gmra.mxu3 %v2415_v11  ;;  %v2564_v11 = vld [vmem:[%s3429_s20 + $0x1e0] sm:$0xf0] }
  0x4f   : > { %v2567_v17 = vor.u32 %v3163_v10, %v2564_v11 }
  0x5b   : > { %1484 = vmatmul.bf16.gmra.mxu0 %v2435_v24  ;;  %v2596_v24 = vld [vmem:[%s3429_s20 + $0x220] sm:$0xf0] }
  0x5c   : > { %1573 = vmatmul.bf16.gmra.mxu1 %v2439_v25  ;;  %v2602_v25 = vld [vmem:[%s3429_s20 + $0x208] sm:$0xf]  ;;  %v2599_v30 = vor.u32 %v3171_v23, %v2596_v24  ;;  %v2659_v24 = vor.u32 %v3191_v14, %v2658_v13  ;;  %v2722_v13 = vld [vmem:[%s3429_s20 + $0x300] sm:$0xf] }
  0x5d   : > { %1662 = vmatmul.bf16.gmra.mxu2 %v2443_v26  ;;  %v3176_v26 = vld [vmem:[%s3429_s20 + $0x224] sm:$0xf0]  ;;  %v3207_v14 = vld [vmem:[%s3429_s20 + $0x31c] sm:$0xf0] }
  0x5e   : > { %1751 = vmatmul.bf16.gmra.mxu3 %v2447_v27  ;;  %v3172_v27 = vld [vmem:[%s3429_s20 + $0x20c] sm:$0xf]  ;;  %v2603_v33 = vor.u32 %v3176_v26, %v2602_v25 }
  0x5f   : > { %v2607_v34 = vor.u32 %v3172_v27, %v2604_v28 }
  0x6b   : > { %1489 = vmatmul.bf16.gmra.mxu0 %v2467_v36 }
  0x6c   : > { %1578 = vmatmul.bf16.gmra.mxu1 %v2471_v37  ;;  %v3285_v37 = vld [vmem:[%s4009_s1 + $0x190] sm:$0xff] }
  0x6d   : > { %1667 = vmatmul.bf16.gmra.mxu2 %v2475_v38  ;;  %v3269_v38 = vld [vmem:[%s4009_s1 + $0x110] sm:$0xff] }
  0x6e   : > { %1756 = vmatmul.bf16.gmra.mxu3 %v2479_v39  ;;  %v3293_v39 = vld [vmem:[%s4009_s1 + $0x1d0] sm:$0xff]  ;;  %2000 = vmatpush.bf16.msrb.mxu2 %v3285_v37 }
  0x6f   : > { %1822 = vmatpush.bf16.msrb.mxu0 %v3269_v38  ;;  %2089 = vmatpush.bf16.msrb.mxu3 %v3293_v39 }
  0x7b   : > { %1494 = vmatmul.bf16.gmra.mxu0 %v2499_v52  ;;  %v2628_v52 = vld [vmem:[%s3429_s20 + $0x260] sm:$0xf0] }
  0x7c   : > { %1583 = vmatmul.bf16.gmra.mxu1 %v2503_v53  ;;  %v2634_v53 = vld [vmem:[%s3429_s20 + $0x248] sm:$0xf]  ;;  %v2631_v60 = vor.u32 %v3179_v51, %v2628_v52 }
  0x7d   : > { %1672 = vmatmul.bf16.gmra.mxu2 %v2507_v54  ;;  %v3184_v54 = vld [vmem:[%s3429_s20 + $0x264] sm:$0xf0] }
  0x7e   : > { %1761 = vmatmul.bf16.gmra.mxu3 %v2511_v55  ;;  %v3180_v55 = vld [vmem:[%s3429_s20 + $0x24c] sm:$0xf]  ;;  %v2698_v51 = vld [vmem:[%s3429_s20 + $0x2c8] sm:$0xf] }
  0x7f   : > { %v3200_v52 = vld [vmem:[%s3429_s20 + $0x2e4] sm:$0xf0] }
  0x8b   : > { %1499 = vmatmul.bf16.gmra.mxu0 %v2531_v0  ;;  %v2635_v0 = vor.u32 %v3184_v54, %v2634_v53  ;;  %v3196_v53 = vld [vmem:[%s3429_s20 + $0x2cc] sm:$0xf] }
  0x8c   : > { %1588 = vmatmul.bf16.gmra.mxu1 %v2535_v1  ;;  %v2639_v1 = vor.u32 %v3180_v55, %v2636_v56  ;;  %v2700_v54 = vld [vmem:[%s3429_s20 + $0x2e8] sm:$0xf0] }
  0x8d   : > { %1677 = vmatmul.bf16.gmra.mxu2 %v2539_v2 }
  0x8e   : > { %1766 = vmatmul.bf16.gmra.mxu3 %v2543_v3 }
  0x9b   : > { %1504 = vmatmul.bf16.gmra.mxu0 %v2563_v16  ;;  %v2660_v16 = vld [vmem:[%s3429_s20 + $0x2a0] sm:$0xf0] }
  0x9c   : > { %1593 = vmatmul.bf16.gmra.mxu1 %v2567_v17  ;;  %v2666_v17 = vld [vmem:[%s3429_s20 + $0x288] sm:$0xf]  ;;  %v2663_v25 = vor.u32 %v3187_v15, %v2660_v16  ;;  %v3203_v15 = vld [vmem:[%s3429_s20 + $0x304] sm:$0xf] }
  0x9d   : > { %1682 = vmatmul.bf16.gmra.mxu2 %v2571_v18  ;;  %v3192_v18 = vld [vmem:[%s3429_s20 + $0x2a4] sm:$0xf0]  ;;  %v2724_v16 = vld [vmem:[%s3429_s20 + $0x320] sm:$0xf0] }
  0x9e   : > { %1771 = vmatmul.bf16.gmra.mxu3 %v2575_v19  ;;  %v3188_v19 = vld [vmem:[%s3429_s20 + $0x28c] sm:$0xf] }
  0xa8   : > { %v1470_v31 = vpop.f32.mrf.mxu0 }
  0xa9   : > { %v1559_v32 = vpop.f32.mrf.mxu1  ;;  %v1471_v35 = vadd.f32 %v3576_v20, %v1470_v31 }
  0xab   : > { %v1560_v36 = vadd.f32 %v1559_v32, %v1471_v35  ;;  %1509 = vmatmul.bf16.gmra.mxu0 %v2595_v29  ;;  %v2667_v29 = vor.u32 %v3192_v18, %v2666_v17  ;;  %v3268_v35 = vld [vmem:[%s4009_s1 + $0x108] sm:$0xff] }
  0xac   : > { %1598 = vmatmul.bf16.gmra.mxu1 %v2599_v30  ;;  %v2671_v30 = vor.u32 %v3188_v19, %v2668_v21  ;;  %1823 = vmatpush.bf16.msrb.mxu0 %v3268_v35  ;;  %v2730_v17 = vld [vmem:[%s3429_s20 + $0x308] sm:$0xf]  ;;  %v3204_v19 = vld [vmem:[%s3429_s20 + $0x30c] sm:$0xf]  ;;  %v3283_v35 = vld [vmem:[%s4009_s1 + $0x180] sm:$0xff] }
  0xad   : > { %1687 = vmatmul.bf16.gmra.mxu2 %v2603_v33  ;;  %v3208_v18 = vld [vmem:[%s3429_s20 + $0x324] sm:$0xf0]  ;;  %v2732_v21 = vld [vmem:[%s3429_s20 + $0x328] sm:$0xf0] }
  0xae   : > { %1776 = vmatmul.bf16.gmra.mxu3 %v2607_v34  ;;  %v3284_v34 = vld [vmem:[%s4009_s1 + $0x188] sm:$0xff] }
  0xaf   : > { %2001 = vmatpush.bf16.msrb.mxu2 %v3284_v34 }
  0xb0   : > { %v1648_v40 = vpop.f32.mrf.mxu2  ;;  %v1472_v43 = vpop.f32.mrf.mxu0 }
  0xb1   : > { %v1737_v41 = vpop.f32.mrf.mxu3  ;;  %v1649_v42 = vadd.f32 %v1648_v40, %v1560_v36  ;;  %v1561_v44 = vpop.f32.mrf.mxu1  ;;  %v1473_v45 = vadd.f32 %v3576_v20, %v1472_v43  ;;  %v3292_v36 = vld [vmem:[%s4009_s1 + $0x1c8] sm:$0xff] }
  0xb2   : > { %2090 = vmatpush.bf16.msrb.mxu3 %v3292_v36  ;;  %v3267_v36 = vld [vmem:[%s4009_s1 + $0x100] sm:$0xff] }
  0xb3   : > { %v3597_v46 = vadd.f32 %v1737_v41, %v1649_v42  ;;  %v1562_v48 = vadd.f32 %v1561_v44, %v1473_v45  ;;  %v3276_v44 = vld [vmem:[%s4009_s1 + $0x148] sm:$0xff]  ;;  %2002 = vmatpush.bf16.msrb.mxu2 %v3283_v35  ;;  %1824 = vmatpush.bf16.msrb.mxu0 %v3267_v36 }
  0xb4   : > { %1912 = vmatpush.bf16.msrb.mxu1 %v3276_v44 }
  0xb8   : > { %v1650_v57 = vpop.f32.mrf.mxu2  ;;  %v1475_v62 = vpop.f32.mrf.mxu0 }
  0xb9   : > { %v1739_v58 = vpop.f32.mrf.mxu3  ;;  %v1651_v61 = vadd.f32 %v1650_v57, %v1562_v48  ;;  %v1564_v63 = vpop.f32.mrf.mxu1  ;;  %v1476_v2 = vadd.f32 %v3576_v20, %v1475_v62  ;;  %v3199_v48 = vld [vmem:[%s3429_s20 + $0x2dc] sm:$0xf0]  ;;  %v2699_v62 = vor.u32 %v3200_v52, %v2698_v51  ;;  %v3211_v51 = vld [vmem:[%s3429_s20 + $0x344] sm:$0xf] }
  0xba   : > { %v2691_v57 = vor.u32 %v3199_v48, %v2690_v47  ;;  %v3275_v47 = vld [vmem:[%s4009_s1 + $0x140] sm:$0xff] }
  0xbb   : > { %v3611_v3 = vadd.f32 %v1739_v58, %v1651_v61  ;;  %v1565_v4 = vadd.f32 %v1564_v63, %v1476_v2  ;;  %1514 = vmatmul.bf16.gmra.mxu0 %v2627_v59  ;;  %v2695_v58 = vor.u32 %v3195_v49, %v2692_v50  ;;  %v2703_v63 = vor.u32 %v3196_v53, %v2700_v54  ;;  %v2754_v49 = vld [vmem:[%s3429_s20 + $0x340] sm:$0xf]  ;;  %v2756_v52 = vld [vmem:[%s3429_s20 + $0x360] sm:$0xf0]  ;;  %v2762_v53 = vld [vmem:[%s3429_s20 + $0x348] sm:$0xf] }
  0xbc   : > { %1603 = vmatmul.bf16.gmra.mxu1 %v2631_v60  ;;  %v3215_v50 = vld [vmem:[%s3429_s20 + $0x35c] sm:$0xf0]  ;;  %v3216_v54 = vld [vmem:[%s3429_s20 + $0x364] sm:$0xf0] }
  0xbd   : > { %1692 = vmatmul.bf16.gmra.mxu2 %v2635_v0  ;;  %1913 = vmatpush.bf16.msrb.mxu1 %v3275_v47 }
  0xbe   : > { %1781 = vmatmul.bf16.gmra.mxu3 %v2639_v1 }
  0xc0   : > { %v1653_v5 = vpop.f32.mrf.mxu2  ;;  %v1477_v8 = vpop.f32.mrf.mxu0 }
  0xc1   : > { %v1742_v6 = vpop.f32.mrf.mxu3  ;;  %v1654_v7 = vadd.f32 %v1653_v5, %v1565_v4  ;;  %v1566_v9 = vpop.f32.mrf.mxu1  ;;  %v1478_v10 = vadd.f32 %v3576_v20, %v1477_v8 }
  0xc3   : > { %v3614_v11 = vadd.f32 %v1742_v6, %v1654_v7  ;;  %v1567_v12 = vadd.f32 %v1566_v9, %v1478_v10 }
  0xc8   : > { %v1655_v22 = vpop.f32.mrf.mxu2  ;;  %v1480_v27 = vpop.f32.mrf.mxu0 }
  0xc9   : > { %v1744_v23 = vpop.f32.mrf.mxu3  ;;  %v1656_v26 = vadd.f32 %v1655_v22, %v1567_v12  ;;  %v1569_v28 = vpop.f32.mrf.mxu1  ;;  %v1481_v31 = vadd.f32 %v3576_v20, %v1480_v27 }
  0xcb   : > { %v3625_v32 = vadd.f32 %v1744_v23, %v1656_v26  ;;  %v1570_v33 = vadd.f32 %v1569_v28, %v1481_v31  ;;  %1519 = vmatmul.bf16.gmra.mxu0 %v2659_v24  ;;  %v2723_v24 = vor.u32 %v3207_v14, %v2722_v13 }
  0xcc   : > { %1608 = vmatmul.bf16.gmra.mxu1 %v2663_v25  ;;  %v2727_v25 = vor.u32 %v3203_v15, %v2724_v16 }
  0xcd   : > { %1697 = vmatmul.bf16.gmra.mxu2 %v2667_v29  ;;  %v2731_v29 = vor.u32 %v3208_v18, %v2730_v17  ;;  %v2786_v17 = vld [vmem:[%s3429_s20 + $0x380] sm:$0xf] }
  0xce   : > { %1786 = vmatmul.bf16.gmra.mxu3 %v2671_v30  ;;  %v2735_v30 = vor.u32 %v3204_v19, %v2732_v21  ;;  %v3223_v18 = vld [vmem:[%s3429_s20 + $0x39c] sm:$0xf0]  ;;  %v3219_v19 = vld [vmem:[%s3429_s20 + $0x384] sm:$0xf] }
  0xcf   : > { %v2788_v21 = vld [vmem:[%s3429_s20 + $0x3a0] sm:$0xf0] }
  0xd0   : > { %v1658_v37 = vpop.f32.mrf.mxu2  ;;  %v1482_v40 = vpop.f32.mrf.mxu0 }
  0xd1   : > { %v1747_v38 = vpop.f32.mrf.mxu3  ;;  %v1659_v39 = vadd.f32 %v1658_v37, %v1570_v33  ;;  %v1571_v41 = vpop.f32.mrf.mxu1  ;;  %v1483_v42 = vadd.f32 %v3576_v20, %v1482_v40  ;;  %v3291_v37 = vld [vmem:[%s4009_s1 + $0x1c0] sm:$0xff] }
  0xd2   : > { %2091 = vmatpush.bf16.msrb.mxu3 %v3291_v37 }
  0xd3   : > { %v3637_v43 = vadd.f32 %v1747_v38, %v1659_v39  ;;  %v1572_v45 = vadd.f32 %v1571_v41, %v1483_v42 }
  0xd8   : > { %v1660_v55 = vpop.f32.mrf.mxu2  ;;  %v1485_v60 = vpop.f32.mrf.mxu0 }
  0xd9   : > { %v1749_v56 = vpop.f32.mrf.mxu3  ;;  %v1661_v59 = vadd.f32 %v1660_v55, %v1572_v45  ;;  %v1574_v61 = vpop.f32.mrf.mxu1  ;;  %v1486_v0 = vadd.f32 %v3576_v20, %v1485_v60  ;;  %v3212_v55 = vld [vmem:[%s3429_s20 + $0x34c] sm:$0xf]  ;;  %v2759_v60 = vor.u32 %v3211_v51, %v2756_v52  ;;  %v2818_v51 = vld [vmem:[%s3429_s20 + $0x3c0] sm:$0xf] }
  0xda   : > { %v3231_v52 = vld [vmem:[%s3429_s20 + $0x3dc] sm:$0xf0] }
  0xdb   : > { %v3651_v1 = vadd.f32 %v1749_v56, %v1661_v59  ;;  %v1575_v2 = vadd.f32 %v1574_v61, %v1486_v0  ;;  %1524 = vmatmul.bf16.gmra.mxu0 %v2691_v57  ;;  %v2764_v56 = vld [vmem:[%s3429_s20 + $0x368] sm:$0xf0]  ;;  %v2755_v59 = vor.u32 %v3215_v50, %v2754_v49  ;;  %v2763_v0 = vor.u32 %v3216_v54, %v2762_v53  ;;  %v3227_v53 = vld [vmem:[%s3429_s20 + $0x3c4] sm:$0xf] }
  0xdc   : > { %1613 = vmatmul.bf16.gmra.mxu1 %v2695_v58  ;;  %v2820_v54 = vld [vmem:[%s3429_s20 + $0x3e0] sm:$0xf0] }
  0xdd   : > { %1702 = vmatmul.bf16.gmra.mxu2 %v2699_v62 }
  0xde   : > { %1791 = vmatmul.bf16.gmra.mxu3 %v2703_v63 }
  0xe0   : > { %v1663_v4 = vpop.f32.mrf.mxu2  ;;  %v1487_v7 = vpop.f32.mrf.mxu0 }
  0xe1   : > { %v1752_v5 = vpop.f32.mrf.mxu3  ;;  %v1664_v6 = vadd.f32 %v1663_v4, %v1575_v2  ;;  %v1576_v8 = vpop.f32.mrf.mxu1  ;;  %v1488_v9 = vadd.f32 %v3576_v20, %v1487_v7  ;;  %v2767_v2 = vor.u32 %v3212_v55, %v2764_v56  ;;  %v2826_v55 = vld [vmem:[%s3429_s20 + $0x3c8] sm:$0xf] }
  0xe2   : > { %v3232_v56 = vld [vmem:[%s3429_s20 + $0x3e4] sm:$0xf0] }
  0xe3   : > { %v3654_v10 = vadd.f32 %v1752_v5, %v1664_v6  ;;  %v1577_v12 = vadd.f32 %v1576_v8, %v1488_v9 }
  0xe8   : > { %v1665_v22 = vpop.f32.mrf.mxu2  ;;  %v1490_v27 = vpop.f32.mrf.mxu0 }
  0xe9   : > { %v1754_v23 = vpop.f32.mrf.mxu3  ;;  %v1666_v26 = vadd.f32 %v1665_v22, %v1577_v12  ;;  %v1579_v28 = vpop.f32.mrf.mxu1  ;;  %v1491_v31 = vadd.f32 %v3576_v20, %v1490_v27  ;;  %v2794_v22 = vld [vmem:[%s3429_s20 + $0x388] sm:$0xf] }
  0xeb   : > { %v3665_v33 = vadd.f32 %v1754_v23, %v1666_v26  ;;  %v1580_v34 = vadd.f32 %v1579_v28, %v1491_v31  ;;  %1529 = vmatmul.bf16.gmra.mxu0 %v2723_v24  ;;  %v3224_v23 = vld [vmem:[%s3429_s20 + $0x3a4] sm:$0xf0]  ;;  %v3220_v24 = vld [vmem:[%s3429_s20 + $0x38c] sm:$0xf]  ;;  %v2787_v28 = vor.u32 %v3223_v18, %v2786_v17 }
  0xec   : > { %1618 = vmatmul.bf16.gmra.mxu1 %v2727_v25  ;;  %v2796_v25 = vld [vmem:[%s3429_s20 + $0x3a8] sm:$0xf0]  ;;  %v2795_v35 = vor.u32 %v3224_v23, %v2794_v22  ;;  %v2354_v22 = vld [vmem:[%s3429_s20 + $0x10] sm:$0xf] }
  0xed   : > { %1707 = vmatmul.bf16.gmra.mxu2 %v2731_v29  ;;  %v2791_v29 = vor.u32 %v3219_v19, %v2788_v21  ;;  %v2799_v36 = vor.u32 %v3220_v24, %v2796_v25  ;;  %v3113_v23 = vld [vmem:[%s3429_s20 + $0x2c] sm:$0xf0]  ;;  %v3109_v24 = vld [vmem:[%s3429_s20 + $0x14] sm:$0xf] }
  0xee   : > { %1796 = vmatmul.bf16.gmra.mxu3 %v2735_v30  ;;  %v2356_v25 = vld [vmem:[%s3429_s20 + $0x30] sm:$0xf0] }
  0xf0   : > { %v1668_v38 = vpop.f32.mrf.mxu2  ;;  %v1492_v41 = vpop.f32.mrf.mxu0 }
  0xf1   : > { %v1757_v39 = vpop.f32.mrf.mxu3  ;;  %v1669_v40 = vadd.f32 %v1668_v38, %v1580_v34  ;;  %v1581_v42 = vpop.f32.mrf.mxu1  ;;  %v1493_v44 = vadd.f32 %v3576_v20, %v1492_v41 }
  0xf3   : > { %v3677_v45 = vadd.f32 %v1757_v39, %v1669_v40  ;;  %v1582_v48 = vadd.f32 %v1581_v42, %v1493_v44 }
  0xf8   : > { %v1670_v57 = vpop.f32.mrf.mxu2  ;;  %v1495_v62 = vpop.f32.mrf.mxu0 }
  0xf9   : > { %v1759_v58 = vpop.f32.mrf.mxu3  ;;  %v1671_v61 = vadd.f32 %v1670_v57, %v1582_v48  ;;  %v1584_v63 = vpop.f32.mrf.mxu1  ;;  %v1496_v4 = vadd.f32 %v3576_v20, %v1495_v62  ;;  %v3228_v57 = vld [vmem:[%s3429_s20 + $0x3cc] sm:$0xf]  ;;  %v2823_v62 = vor.u32 %v3227_v53, %v2820_v54 }
  0xfb   : > { %v3691_v5 = vadd.f32 %v1759_v58, %v1671_v61  ;;  %v1585_v6 = vadd.f32 %v1584_v63, %v1496_v4  ;;  %1534 = vmatmul.bf16.gmra.mxu0 %v2755_v59  ;;  %v2828_v58 = vld [vmem:[%s3429_s20 + $0x3e8] sm:$0xf0]  ;;  %v2819_v61 = vor.u32 %v3231_v52, %v2818_v51  ;;  %v2827_v4 = vor.u32 %v3232_v56, %v2826_v55 }
  0xfc   : > { %1623 = vmatmul.bf16.gmra.mxu1 %v2759_v60 }
  0xfd   : > { %1712 = vmatmul.bf16.gmra.mxu2 %v2763_v0 }
  0xfe   : > { %1801 = vmatmul.bf16.gmra.mxu3 %v2767_v2 }
 0x100   : > { %v1673_v7 = vpop.f32.mrf.mxu2  ;;  %v1497_v12 = vpop.f32.mrf.mxu0 }
 0x101   : > { %v1762_v8 = vpop.f32.mrf.mxu3  ;;  %v1674_v9 = vadd.f32 %v1673_v7, %v1585_v6  ;;  %v1586_v13 = vpop.f32.mrf.mxu1  ;;  %v1498_v14 = vadd.f32 %v3576_v20, %v1497_v12  ;;  %v2831_v6 = vor.u32 %v3228_v57, %v2828_v58  ;;  %v2386_v57 = vld [vmem:[%s3429_s20 + $0x50] sm:$0xf] }
 0x102   : > { %v3121_v58 = vld [vmem:[%s3429_s20 + $0x6c] sm:$0xf0] }
 0x103   : > { %v3694_v15 = vadd.f32 %v1762_v8, %v1674_v9  ;;  %v1587_v16 = vadd.f32 %v1586_v13, %v1498_v14 }
 0x108   : > { %v1675_v26 = vpop.f32.mrf.mxu2  ;;  %v1500_v31 = vpop.f32.mrf.mxu0 }
 0x109   : > { %v1764_v27 = vpop.f32.mrf.mxu3  ;;  %v1676_v30 = vadd.f32 %v1675_v26, %v1587_v16  ;;  %v1589_v34 = vpop.f32.mrf.mxu1  ;;  %v1501_v37 = vadd.f32 %v3576_v20, %v1500_v31  ;;  %v2362_v26 = vld [vmem:[%s3429_s20 + $0x18] sm:$0xf] }
 0x10b   : > { %v3705_v38 = vadd.f32 %v1764_v27, %v1676_v30  ;;  %v1590_v39 = vadd.f32 %v1589_v34, %v1501_v37  ;;  %1539 = vmatmul.bf16.gmra.mxu0 %v2787_v28  ;;  %v3114_v27 = vld [vmem:[%s3429_s20 + $0x34] sm:$0xf0]  ;;  %v3110_v28 = vld [vmem:[%s3429_s20 + $0x1c] sm:$0xf]  ;;  %v2355_v34 = vor.u32 %v3113_v23, %v2354_v22 }
 0x10c   : > { %1628 = vmatmul.bf16.gmra.mxu1 %v2791_v29  ;;  %v2364_v29 = vld [vmem:[%s3429_s20 + $0x38] sm:$0xf0] }
 0x10d   : > { %1717 = vmatmul.bf16.gmra.mxu2 %v2795_v35  ;;  %v2359_v35 = vor.u32 %v3109_v24, %v2356_v25 }
 0x10e   : > { %1806 = vmatmul.bf16.gmra.mxu3 %v2799_v36 }
 0x110   : > { %v1678_v40 = vpop.f32.mrf.mxu2  ;;  %v1502_v44 = vpop.f32.mrf.mxu0 }
 0x111   : > { %v1767_v41 = vpop.f32.mrf.mxu3  ;;  %v1679_v42 = vadd.f32 %v1678_v40, %v1590_v39  ;;  %v1591_v47 = vpop.f32.mrf.mxu1  ;;  %v1503_v48 = vadd.f32 %v3576_v20, %v1502_v44  ;;  %v2363_v40 = vor.u32 %v3114_v27, %v2362_v26 }
 0x113   : > { %v3708_v49 = vadd.f32 %v1767_v41, %v1679_v42  ;;  %v1592_v50 = vadd.f32 %v1591_v47, %v1503_v48  ;;  %v2367_v41 = vor.u32 %v3110_v28, %v2364_v29 }
 0x118   : > { %v1680_v59 = vpop.f32.mrf.mxu2  ;;  %v1505_v0 = vpop.f32.mrf.mxu0 }
 0x119   : > { %v1769_v60 = vpop.f32.mrf.mxu3  ;;  %v1681_v63 = vadd.f32 %v1680_v59, %v1592_v50  ;;  %v1594_v2 = vpop.f32.mrf.mxu1  ;;  %v1506_v7 = vadd.f32 %v3576_v20, %v1505_v0  ;;  %v3117_v59 = vld [vmem:[%s3429_s20 + $0x54] sm:$0xf]  ;;  %v2396_v0 = vld [vmem:[%s3429_s20 + $0x78] sm:$0xf0] }
 0x11b   : > { %v3719_v8 = vadd.f32 %v1769_v60, %v1681_v63  ;;  %v1595_v9 = vadd.f32 %v1594_v2, %v1506_v7  ;;  %1544 = vmatmul.bf16.gmra.mxu0 %v2819_v61  ;;  %v2388_v60 = vld [vmem:[%s3429_s20 + $0x70] sm:$0xf0]  ;;  %v2394_v61 = vld [vmem:[%s3429_s20 + $0x58] sm:$0xf]  ;;  %v3118_v63 = vld [vmem:[%s3429_s20 + $0x5c] sm:$0xf] }
 0x11c   : > { %1633 = vmatmul.bf16.gmra.mxu1 %v2823_v62  ;;  %v3122_v62 = vld [vmem:[%s3429_s20 + $0x74] sm:$0xf0]  ;;  %v2391_v7 = vor.u32 %v3117_v59, %v2388_v60 }
 0x11d   : > { %1722 = vmatmul.bf16.gmra.mxu2 %v2827_v4 }
 0x11e   : > { %1811 = vmatmul.bf16.gmra.mxu3 %v2831_v6  ;;  %v2387_v6 = vor.u32 %v3121_v58, %v2386_v57 }
 0x120   : > { %v1683_v12 = vpop.f32.mrf.mxu2  ;;  %v1507_v16 = vpop.f32.mrf.mxu0 }
 0x121   : > { %v1772_v13 = vpop.f32.mrf.mxu3  ;;  %v1684_v14 = vadd.f32 %v1683_v12, %v1595_v9  ;;  %v1596_v17 = vpop.f32.mrf.mxu1  ;;  %v1508_v18 = vadd.f32 %v3576_v20, %v1507_v16  ;;  %v2399_v16 = vor.u32 %v3118_v63, %v2396_v0 }
 0x123   : > { %v3722_v19 = vadd.f32 %v1772_v13, %v1684_v14  ;;  %v1597_v21 = vadd.f32 %v1596_v17, %v1508_v18  ;;  %v2395_v14 = vor.u32 %v3122_v62, %v2394_v61 }
 0x128   : > { %v1685_v30 = vpop.f32.mrf.mxu2  ;;  %v1510_v37 = vpop.f32.mrf.mxu0 }
 0x129   : > { %v1774_v31 = vpop.f32.mrf.mxu3  ;;  %v1686_v36 = vadd.f32 %v1685_v30, %v1597_v21  ;;  %v1599_v39 = vpop.f32.mrf.mxu1  ;;  %v1511_v42 = vadd.f32 %v3576_v20, %v1510_v37  ;;  %v2418_v30 = vld [vmem:[%s3429_s20 + $0x90] sm:$0xf]  ;;  %v3130_v37 = vld [vmem:[%s3429_s20 + $0xb4] sm:$0xf0] }
 0x12b   : > { %v3733_v44 = vadd.f32 %v1774_v31, %v1686_v36  ;;  %v1600_v47 = vadd.f32 %v1599_v39, %v1511_v42  ;;  %1825 = vmatmul.bf16.vlgmr.msrb.gmra.mxu0 %v2355_v34  ;;  %v3129_v31 = vld [vmem:[%s3429_s20 + $0xac] sm:$0xf0]  ;;  %v3125_v34 = vld [vmem:[%s3429_s20 + $0x94] sm:$0xf]  ;;  %v2426_v36 = vld [vmem:[%s3429_s20 + $0x98] sm:$0xf] }
 0x12c   : > { %1914 = vmatmul.bf16.vlgmr.msrb.gmra.mxu1 %v2359_v35  ;;  %v2420_v35 = vld [vmem:[%s3429_s20 + $0xb0] sm:$0xf0]  ;;  %v3126_v39 = vld [vmem:[%s3429_s20 + $0x9c] sm:$0xf] }
 0x12d   : > { %2003 = vmatmul.bf16.vlgmr.msrb.gmra.mxu2 %v2363_v40  ;;  %v2428_v40 = vld [vmem:[%s3429_s20 + $0xb8] sm:$0xf0] }
 0x12e   : > { %2092 = vmatmul.bf16.vlgmr.msrb.gmra.mxu3 %v2367_v41 }
 0x130   : > { %v1688_v48 = vpop.f32.mrf.mxu2  ;;  %v1512_v52 = vpop.f32.mrf.mxu0 }
 0x131   : > { %v1777_v50 = vpop.f32.mrf.mxu3  ;;  %v1689_v51 = vadd.f32 %v1688_v48, %v1600_v47  ;;  %v1601_v53 = vpop.f32.mrf.mxu1  ;;  %v1513_v54 = vadd.f32 %v3576_v20, %v1512_v52  ;;  %v2419_v47 = vor.u32 %v3129_v31, %v2418_v30  ;;  %v2423_v48 = vor.u32 %v3125_v34, %v2420_v35 }
 0x133   : > { %v3736_v55 = vadd.f32 %v1777_v50, %v1689_v51  ;;  %v1602_v56 = vadd.f32 %v1601_v53, %v1513_v54  ;;  %v2427_v53 = vor.u32 %v3130_v37, %v2426_v36  ;;  %v2431_v54 = vor.u32 %v3126_v39, %v2428_v40 }
 0x138   : > { %v1690_v2 = vpop.f32.mrf.mxu2  ;;  %v1515_v12 = vpop.f32.mrf.mxu0 }
 0x139   : > { %v1779_v4 = vpop.f32.mrf.mxu3  ;;  %v1691_v9 = vadd.f32 %v1690_v2, %v1602_v56  ;;  %v1604_v13 = vpop.f32.mrf.mxu1  ;;  %v1516_v17 = vadd.f32 %v3576_v20, %v1515_v12  ;;  %v2452_v12 = vld [vmem:[%s3429_s20 + $0xf0] sm:$0xf0] }
 0x13b   : > { %v3747_v18 = vadd.f32 %v1779_v4, %v1691_v9  ;;  %v1605_v21 = vadd.f32 %v1604_v13, %v1516_v17  ;;  %1830 = vmatmul.bf16.gmra.mxu0 %v2387_v6  ;;  %v2450_v6 = vld [vmem:[%s3429_s20 + $0xd0] sm:$0xf]  ;;  %v3133_v9 = vld [vmem:[%s3429_s20 + $0xd4] sm:$0xf]  ;;  %v2458_v13 = vld [vmem:[%s3429_s20 + $0xd8] sm:$0xf] }
 0x13c   : > { %1919 = vmatmul.bf16.gmra.mxu1 %v2391_v7  ;;  %v3137_v7 = vld [vmem:[%s3429_s20 + $0xec] sm:$0xf0]  ;;  %v2460_v17 = vld [vmem:[%s3429_s20 + $0xf8] sm:$0xf0] }
 0x13d   : > { %2008 = vmatmul.bf16.gmra.mxu2 %v2395_v14  ;;  %v3138_v14 = vld [vmem:[%s3429_s20 + $0xf4] sm:$0xf0] }
 0x13e   : > { %2097 = vmatmul.bf16.gmra.mxu3 %v2399_v16  ;;  %v3134_v16 = vld [vmem:[%s3429_s20 + $0xdc] sm:$0xf] }
 0x13f   : > { %v2463_v30 = vor.u32 %v3134_v16, %v2460_v17 }
 0x140   : > { %v1693_v22 = vpop.f32.mrf.mxu2  ;;  %v1517_v25 = vpop.f32.mrf.mxu0 }
 0x141   : > { %v1782_v23 = vpop.f32.mrf.mxu3  ;;  %v1694_v24 = vadd.f32 %v1693_v22, %v1605_v21  ;;  %v1606_v26 = vpop.f32.mrf.mxu1  ;;  %v1518_v27 = vadd.f32 %v3576_v20, %v1517_v25 }
 0x143   : > { %v3750_v28 = vadd.f32 %v1782_v23, %v1694_v24  ;;  %v1607_v29 = vadd.f32 %v1606_v26, %v1518_v27  ;;  %v2451_v23 = vor.u32 %v3137_v7, %v2450_v6  ;;  %v2455_v24 = vor.u32 %v3133_v9, %v2452_v12 }
 0x148   : > { %v1695_v41 = vpop.f32.mrf.mxu2  ;;  %v1520_v51 = vpop.f32.mrf.mxu0 }
 0x149   : > { %v1784_v42 = vpop.f32.mrf.mxu3  ;;  %v1696_v50 = vadd.f32 %v1695_v41, %v1607_v29  ;;  %v1609_v52 = vpop.f32.mrf.mxu1  ;;  %v1521_v56 = vadd.f32 %v3576_v20, %v1520_v51  ;;  %v2459_v29 = vor.u32 %v3138_v14, %v2458_v13  ;;  %v3145_v51 = vld [vmem:[%s3429_s20 + $0x12c] sm:$0xf0] }
 0x14b   : > { %v3761_v57 = vadd.f32 %v1784_v42, %v1696_v50  ;;  %v1610_v58 = vadd.f32 %v1609_v52, %v1521_v56  ;;  %1835 = vmatmul.bf16.gmra.mxu0 %v2419_v47  ;;  %v2482_v50 = vld [vmem:[%s3429_s20 + $0x110] sm:$0xf]  ;;  %v3141_v52 = vld [vmem:[%s3429_s20 + $0x114] sm:$0xf]  ;;  %v3146_v56 = vld [vmem:[%s3429_s20 + $0x134] sm:$0xf0] }
 0x14c   : > { %1924 = vmatmul.bf16.gmra.mxu1 %v2423_v48 }
 0x14d   : > { %2013 = vmatmul.bf16.gmra.mxu2 %v2427_v53  ;;  %v2484_v53 = vld [vmem:[%s3429_s20 + $0x130] sm:$0xf0] }
 0x14e   : > { %2102 = vmatmul.bf16.gmra.mxu3 %v2431_v54  ;;  %v2490_v54 = vld [vmem:[%s3429_s20 + $0x118] sm:$0xf] }
 0x14f   : > { %v2491_v7 = vor.u32 %v3146_v56, %v2490_v54 }
 0x150   : > { %v1698_v59 = vpop.f32.mrf.mxu2  ;;  %v1522_v62 = vpop.f32.mrf.mxu0 }
 0x151   : > { %v1787_v60 = vpop.f32.mrf.mxu3  ;;  %v1699_v61 = vadd.f32 %v1698_v59, %v1610_v58  ;;  %v1611_v63 = vpop.f32.mrf.mxu1  ;;  %v1523_v0 = vadd.f32 %v3576_v20, %v1522_v62  ;;  %v3142_v58 = vld [vmem:[%s3429_s20 + $0x11c] sm:$0xf]  ;;  %v2483_v62 = vor.u32 %v3145_v51, %v2482_v50 }
 0x152   : > { %v2492_v59 = vld [vmem:[%s3429_s20 + $0x138] sm:$0xf0] }
 0x153   : > { %v3764_v2 = vadd.f32 %v1787_v60, %v1699_v61  ;;  %v1612_v4 = vadd.f32 %v1611_v63, %v1523_v0  ;;  %v2487_v63 = vor.u32 %v3141_v52, %v2484_v53  ;;  %v2495_v9 = vor.u32 %v3142_v58, %v2492_v59 }
 0x158   : > { %v1700_v21 = vpop.f32.mrf.mxu2  ;;  %v1525_v26 = vpop.f32.mrf.mxu0 }
 0x159   : > { %v1789_v22 = vpop.f32.mrf.mxu3  ;;  %v1701_v25 = vadd.f32 %v1700_v21, %v1612_v4  ;;  %v1614_v27 = vpop.f32.mrf.mxu1  ;;  %v1526_v31 = vadd.f32 %v3576_v20, %v1525_v26 }
 0x15b   : > { %v3775_v34 = vadd.f32 %v1789_v22, %v1701_v25  ;;  %v1615_v35 = vadd.f32 %v1614_v27, %v1526_v31  ;;  %1840 = vmatmul.bf16.gmra.mxu0 %v2451_v23  ;;  %v2514_v27 = vld [vmem:[%s3429_s20 + $0x150] sm:$0xf]  ;;  %v2516_v31 = vld [vmem:[%s3429_s20 + $0x170] sm:$0xf0] }
 0x15c   : > { %1929 = vmatmul.bf16.gmra.mxu1 %v2455_v24 }
 0x15d   : > { %2018 = vmatmul.bf16.gmra.mxu2 %v2459_v29  ;;  %v3153_v29 = vld [vmem:[%s3429_s20 + $0x16c] sm:$0xf0] }
 0x15e   : > { %2107 = vmatmul.bf16.gmra.mxu3 %v2463_v30  ;;  %v3149_v30 = vld [vmem:[%s3429_s20 + $0x154] sm:$0xf] }
 0x160   : > { %v1703_v36 = vpop.f32.mrf.mxu2  ;;  %v1527_v40 = vpop.f32.mrf.mxu0 }
 0x161   : > { %v1792_v37 = vpop.f32.mrf.mxu3  ;;  %v1704_v39 = vadd.f32 %v1703_v36, %v1615_v35  ;;  %v1616_v41 = vpop.f32.mrf.mxu1  ;;  %v1528_v42 = vadd.f32 %v3576_v20, %v1527_v40  ;;  %v2522_v35 = vld [vmem:[%s3429_s20 + $0x158] sm:$0xf] }
 0x162   : > { %v3154_v36 = vld [vmem:[%s3429_s20 + $0x174] sm:$0xf0] }
 0x163   : > { %v3778_v47 = vadd.f32 %v1792_v37, %v1704_v39  ;;  %v1617_v48 = vadd.f32 %v1616_v41, %v1528_v42  ;;  %v3150_v37 = vld [vmem:[%s3429_s20 + $0x15c] sm:$0xf]  ;;  %v2515_v42 = vor.u32 %v3153_v29, %v2514_v27  ;;  %v2523_v53 = vor.u32 %v3154_v36, %v2522_v35 }
 0x164   : > { %v2524_v39 = vld [vmem:[%s3429_s20 + $0x178] sm:$0xf0] }
 0x165   : > { %v2527_v54 = vor.u32 %v3150_v37, %v2524_v39 }
 0x168   : > { %v1705_v60 = vpop.f32.mrf.mxu2  ;;  %v1530_v4 = vpop.f32.mrf.mxu0 }
 0x169   : > { %v1794_v61 = vpop.f32.mrf.mxu3  ;;  %v1706_v0 = vadd.f32 %v1705_v60, %v1617_v48  ;;  %v1619_v6 = vpop.f32.mrf.mxu1  ;;  %v1531_v12 = vadd.f32 %v3576_v20, %v1530_v4  ;;  %v2519_v48 = vor.u32 %v3149_v30, %v2516_v31 }
 0x16b   : > { %v3789_v13 = vadd.f32 %v1794_v61, %v1706_v0  ;;  %v1620_v14 = vadd.f32 %v1619_v6, %v1531_v12  ;;  %1845 = vmatmul.bf16.gmra.mxu0 %v2483_v62  ;;  %v3161_v12 = vld [vmem:[%s3429_s20 + $0x1ac] sm:$0xf0] }
 0x16c   : > { %1934 = vmatmul.bf16.gmra.mxu1 %v2487_v63 }
 0x16d   : > { %2023 = vmatmul.bf16.gmra.mxu2 %v2491_v7 }
 0x16e   : > { %2112 = vmatmul.bf16.gmra.mxu3 %v2495_v9  ;;  %v2546_v9 = vld [vmem:[%s3429_s20 + $0x190] sm:$0xf] }
 0x16f   : > { %v2547_v27 = vor.u32 %v3161_v12, %v2546_v9 }
 0x170   : > { %v1708_v16 = vpop.f32.mrf.mxu2  ;;  %v1532_v22 = vpop.f32.mrf.mxu0 }
 0x171   : > { %v1797_v17 = vpop.f32.mrf.mxu3  ;;  %v1709_v21 = vadd.f32 %v1708_v16, %v1620_v14  ;;  %v1621_v23 = vpop.f32.mrf.mxu1  ;;  %v1533_v24 = vadd.f32 %v3576_v20, %v1532_v22  ;;  %v3157_v14 = vld [vmem:[%s3429_s20 + $0x194] sm:$0xf]  ;;  %v3158_v22 = vld [vmem:[%s3429_s20 + $0x19c] sm:$0xf] }
 0x172   : > { %v2548_v16 = vld [vmem:[%s3429_s20 + $0x1b0] sm:$0xf0] }
 0x173   : > { %v3792_v25 = vadd.f32 %v1797_v17, %v1709_v21  ;;  %v1622_v26 = vadd.f32 %v1621_v23, %v1533_v24  ;;  %v2554_v17 = vld [vmem:[%s3429_s20 + $0x198] sm:$0xf]  ;;  %v2556_v23 = vld [vmem:[%s3429_s20 + $0x1b8] sm:$0xf0]  ;;  %v2551_v29 = vor.u32 %v3157_v14, %v2548_v16 }
 0x174   : > { %v3162_v21 = vld [vmem:[%s3429_s20 + $0x1b4] sm:$0xf0]  ;;  %v2559_v37 = vor.u32 %v3158_v22, %v2556_v23 }
 0x175   : > { %v2555_v36 = vor.u32 %v3162_v21, %v2554_v17 }
 0x178   : > { %v1710_v40 = vpop.f32.mrf.mxu2  ;;  %v1535_v51 = vpop.f32.mrf.mxu0 }
 0x179   : > { %v1799_v41 = vpop.f32.mrf.mxu3  ;;  %v1711_v50 = vadd.f32 %v1710_v40, %v1622_v26  ;;  %v1624_v52 = vpop.f32.mrf.mxu1  ;;  %v1536_v56 = vadd.f32 %v3576_v20, %v1535_v51 }
 0x17b   : > { %v3803_v58 = vadd.f32 %v1799_v41, %v1711_v50  ;;  %v1625_v59 = vadd.f32 %v1624_v52, %v1536_v56  ;;  %1850 = vmatmul.bf16.gmra.mxu0 %v2515_v42 }
 0x17c   : > { %1939 = vmatmul.bf16.gmra.mxu1 %v2519_v48 }
 0x17d   : > { %2028 = vmatmul.bf16.gmra.mxu2 %v2523_v53 }
 0x17e   : > { %2117 = vmatmul.bf16.gmra.mxu3 %v2527_v54 }
 0x180   : > { %v1713_v60 = vpop.f32.mrf.mxu2  ;;  %v1537_v63 = vpop.f32.mrf.mxu0 }
 0x181   : > { %v1802_v61 = vpop.f32.mrf.mxu3  ;;  %v1714_v62 = vadd.f32 %v1713_v60, %v1625_v59  ;;  %v1626_v0 = vpop.f32.mrf.mxu1  ;;  %v1538_v4 = vadd.f32 %v3576_v20, %v1537_v63  ;;  %v2578_v59 = vld [vmem:[%s3429_s20 + $0x1d0] sm:$0xf]  ;;  %v2586_v63 = vld [vmem:[%s3429_s20 + $0x1d8] sm:$0xf] }
 0x182   : > { %v3169_v60 = vld [vmem:[%s3429_s20 + $0x1ec] sm:$0xf0] }
 0x183   : > { %v3806_v6 = vadd.f32 %v1802_v61, %v1714_v62  ;;  %v1627_v7 = vadd.f32 %v1626_v0, %v1538_v4  ;;  %v3165_v61 = vld [vmem:[%s3429_s20 + $0x1d4] sm:$0xf]  ;;  %v3170_v0 = vld [vmem:[%s3429_s20 + $0x1f4] sm:$0xf0]  ;;  %v3166_v4 = vld [vmem:[%s3429_s20 + $0x1dc] sm:$0xf]  ;;  %v2579_v14 = vor.u32 %v3169_v60, %v2578_v59 }
 0x184   : > { %v2580_v62 = vld [vmem:[%s3429_s20 + $0x1f0] sm:$0xf0]  ;;  %v2587_v23 = vor.u32 %v3170_v0, %v2586_v63  ;;  %v3174_v59 = vld [vmem:[%s3429_s20 + $0x21c] sm:$0xf] }
 0x185   : > { %v2583_v16 = vor.u32 %v3165_v61, %v2580_v62  ;;  %v2620_v60 = vld [vmem:[%s3429_s20 + $0x238] sm:$0xf0] }
 0x188   : > { %v1715_v24 = vpop.f32.mrf.mxu2  ;;  %v1540_v31 = vpop.f32.mrf.mxu0 }
 0x189   : > { %v1804_v26 = vpop.f32.mrf.mxu3  ;;  %v1716_v30 = vadd.f32 %v1715_v24, %v1627_v7  ;;  %v1629_v35 = vpop.f32.mrf.mxu1  ;;  %v1541_v39 = vadd.f32 %v3576_v20, %v1540_v31  ;;  %v2588_v7 = vld [vmem:[%s3429_s20 + $0x1f8] sm:$0xf0]  ;;  %v3308_v24 = vld [vmem:[%s4010_s2] ss:$0 sm:$0xff] }
 0x18b   : > { %v3817_v40 = vadd.f32 %v1804_v26, %v1716_v30  ;;  %v1630_v41 = vadd.f32 %v1629_v35, %v1541_v39  ;;  %1855 = vmatmul.bf16.gmra.mxu0 %v2547_v27 }
 0x18c   : > { %1944 = vmatmul.bf16.gmra.mxu1 %v2551_v29 }
 0x18d   : > { %2033 = vmatmul.bf16.gmra.mxu2 %v2555_v36 }
 0x18e   : > { %2122 = vmatmul.bf16.gmra.mxu3 %v2559_v37 }
 0x190   : > { %v1718_v42 = vpop.f32.mrf.mxu2  ;;  %v1542_v51 = vpop.f32.mrf.mxu0 }
 0x191   : > { %v1807_v48 = vpop.f32.mrf.mxu3  ;;  %v1719_v50 = vadd.f32 %v1718_v42, %v1630_v41  ;;  %v1631_v52 = vpop.f32.mrf.mxu1  ;;  %v1543_v53 = vadd.f32 %v3576_v20, %v1542_v51  ;;  %v2591_v20 = vor.u32 %v3166_v4, %v2588_v7  ;;  %v3173_v51 = vld [vmem:[%s3429_s20 + $0x214] sm:$0xf] }
 0x193   : > { %v3820_v54 = vadd.f32 %v1807_v48, %v1719_v50  ;;  %v1632_v56 = vadd.f32 %v1631_v52, %v1543_v53  ;;  %v2610_v48 = vld [vmem:[%s3429_s20 + $0x210] sm:$0xf]  ;;  %v2612_v52 = vld [vmem:[%s3429_s20 + $0x230] sm:$0xf0]  ;;  %v2618_v53 = vld [vmem:[%s3429_s20 + $0x218] sm:$0xf] }
 0x194   : > { %v3177_v50 = vld [vmem:[%s3429_s20 + $0x22c] sm:$0xf0]  ;;  %v2615_v0 = vor.u32 %v3173_v51, %v2612_v52 }
 0x195   : > { %v2611_v63 = vor.u32 %v3177_v50, %v2610_v48  ;;  %v3182_v48 = vld [vmem:[%s3429_s20 + $0x25c] sm:$0xf] }
 0x196   : > { %v2652_v50 = vld [vmem:[%s3429_s20 + $0x278] sm:$0xf0] }
 0x198   : > { %v1720_v9 = vpop.f32.mrf.mxu2  ;;  %v1545_v21 = vpop.f32.mrf.mxu0 }
 0x199   : > { %v1809_v12 = vpop.f32.mrf.mxu3  ;;  %v1721_v17 = vadd.f32 %v1720_v9, %v1632_v56  ;;  %v1634_v22 = vpop.f32.mrf.mxu1  ;;  %v1546_v26 = vadd.f32 %v3308_v24, %v1545_v21  ;;  %v3178_v56 = vld [vmem:[%s3429_s20 + $0x234] sm:$0xf0] }
 0x19b   : > { %v3833_v27 = vadd.f32 %v1809_v12, %v1721_v17  ;;  %v1635_v29 = vadd.f32 %v1634_v22, %v1546_v26  ;;  %1860 = vmatmul.bf16.gmra.mxu0 %v2579_v14  ;;  %v2619_v12 = vor.u32 %v3178_v56, %v2618_v53  ;;  %v2623_v14 = vor.u32 %v3174_v59, %v2620_v60 }
 0x19c   : > { %1949 = vmatmul.bf16.gmra.mxu1 %v2583_v16 }
 0x19d   : > { %2038 = vmatmul.bf16.gmra.mxu2 %v2587_v23 }
 0x19e   : > { %2127 = vmatmul.bf16.gmra.mxu3 %v2591_v20 }
 0x1a0   : > { %v1723_v30 = vpop.f32.mrf.mxu2  ;;  %v1547_v36 = vpop.f32.mrf.mxu0 }
 0x1a1   : > { %v1812_v31 = vpop.f32.mrf.mxu3  ;;  %v1724_v35 = vadd.f32 %v1723_v30, %v1635_v29  ;;  %v1636_v37 = vpop.f32.mrf.mxu1  ;;  %v1548_v39 = vadd.f32 %v3308_v24, %v1547_v36  ;;  %v2642_v30 = vld [vmem:[%s3429_s20 + $0x250] sm:$0xf] }
 0x1a3   : > { %v3835_v41 = vadd.f32 %v1812_v31, %v1724_v35  ;;  %v1637_v42 = vadd.f32 %v1636_v37, %v1548_v39  ;;  %v3185_v31 = vld [vmem:[%s3429_s20 + $0x26c] sm:$0xf0]  ;;  %v3181_v35 = vld [vmem:[%s3429_s20 + $0x254] sm:$0xf]  ;;  %v2650_v39 = vld [vmem:[%s3429_s20 + $0x258] sm:$0xf] }
 0x1a4   : > { %v2644_v37 = vld [vmem:[%s3429_s20 + $0x270] sm:$0xf0]  ;;  %v2643_v56 = vor.u32 %v3185_v31, %v2642_v30 }
 0x1a5   : > { %v2647_v59 = vor.u32 %v3181_v35, %v2644_v37  ;;  %v2676_v31 = vld [vmem:[%s3429_s20 + $0x2b0] sm:$0xf0]  ;;  %v2682_v35 = vld [vmem:[%s3429_s20 + $0x298] sm:$0xf]  ;;  %v3190_v37 = vld [vmem:[%s3429_s20 + $0x29c] sm:$0xf] }
 0x1a8   : > { %v1725_v61 = vpop.f32.mrf.mxu2  ;;  %v1826_v7 = vpop.f32.mrf.mxu0 }
 0x1a9   : > { %v1814_v62 = vpop.f32.mrf.mxu3  ;;  %v1726_v4 = vadd.f32 %v1725_v61, %v1637_v42  ;;  %v1915_v9 = vpop.f32.mrf.mxu1  ;;  %v1827_v17 = vadd.f32 %v1826_v7, %v3597_v46  ;;  %v3186_v42 = vld [vmem:[%s3429_s20 + $0x274] sm:$0xf0] }
 0x1ab   : > { %v3845_v16 = vadd.f32 %v1814_v62, %v1726_v4  ;;  %1865 = vmatmul.bf16.gmra.mxu0 %v2611_v63  ;;  %v1916_v21 = vadd.f32 %v1915_v9, %v1827_v17  ;;  %v2651_v63 = vor.u32 %v3186_v42, %v2650_v39  ;;  %v2684_v39 = vld [vmem:[%s3429_s20 + $0x2b8] sm:$0xf0] }
 0x1ac   : > { %1954 = vmatmul.bf16.gmra.mxu1 %v2615_v0  ;;  %v2655_v0 = vor.u32 %v3182_v48, %v2652_v50 }
 0x1ad   : > { %2043 = vmatmul.bf16.gmra.mxu2 %v2619_v12 }
 0x1ae   : > { %2132 = vmatmul.bf16.gmra.mxu3 %v2623_v14 }
 0x1b0   : > { %v2004_v22 = vpop.f32.mrf.mxu2  ;;  %v1828_v24 = vpop.f32.mrf.mxu0 }
 0x1b1   : > { %v2093_v23 = vpop.f32.mrf.mxu3  ;;  %v2005_v20 = vadd.f32 %v2004_v22, %v1916_v21  ;;  %v1917_v26 = vpop.f32.mrf.mxu1  ;;  %v1829_v46 = vadd.f32 %v1828_v24, %v3611_v3 }
 0x1b3   : > { %v2094_v29 = vadd.f32 %v2093_v23, %v2005_v20  ;;  %v1918_v52 = vadd.f32 %v1917_v26, %v1829_v46  ;;  %v2674_v26 = vld [vmem:[%s3429_s20 + $0x290] sm:$0xf]  ;;  %v3189_v46 = vld [vmem:[%s3429_s20 + $0x294] sm:$0xf] }
 0x1b5   : > { %v2173_v36 = vmax.f32 %v2094_v29, 0.0  ;;  %v3193_v29 = vld [vmem:[%s3429_s20 + $0x2ac] sm:$0xf0] }
 0x1b7   : > { %v2205_v51 = vpack.c.bf16 %v2173_v36, %v2173_v36  ;;  %v3194_v36 = vld [vmem:[%s3429_s20 + $0x2b4] sm:$0xf0] }
 0x1b8   : > { %v2006_v53 = vpop.f32.mrf.mxu2  ;;  %v1831_v61 = vpop.f32.mrf.mxu0 }
 0x1b9   : > { %v2095_v3 = vpop.f32.mrf.mxu3  ;;  %2238 = vst.msk [vmem:[%s3858_s4] sm:$0xf] %vm2237_vm0, %v2205_v51  ;;  %v2007_v60 = vadd.f32 %v2006_v53, %v1918_v52  ;;  %v1920_v62 = vpop.f32.mrf.mxu1  ;;  %v1832_v7 = vadd.f32 %v1831_v61, %v3614_v11  ;;  %v2675_v52 = vor.u32 %v3193_v29, %v2674_v26  ;;  %v2679_v53 = vor.u32 %v3189_v46, %v2676_v31  ;;  %v2714_v26 = vld [vmem:[%s3429_s20 + $0x2d8] sm:$0xf]  ;;  %v3198_v46 = vld [vmem:[%s3429_s20 + $0x2dc] sm:$0xf] }
 0x1ba   : > { %v3202_v29 = vld [vmem:[%s3429_s20 + $0x2f4] sm:$0xf0] }
 0x1bb   : > { %v2096_v4 = vadd.f32 %v2095_v3, %v2007_v60  ;;  %1870 = vmatmul.bf16.gmra.mxu0 %v2643_v56  ;;  %v1921_v14 = vadd.f32 %v1920_v62, %v1832_v7  ;;  %v2687_v60 = vor.u32 %v3190_v37, %v2684_v39 }
 0x1bc   : > { %1959 = vmatmul.bf16.gmra.mxu1 %v2647_v59  ;;  %v2683_v59 = vor.u32 %v3194_v36, %v2682_v35 }
 0x1bd   : > { %v2174_v9 = vmax.f32 %v2096_v4, 0.0  ;;  %2048 = vmatmul.bf16.gmra.mxu2 %v2651_v63 }
 0x1be   : > { %2137 = vmatmul.bf16.gmra.mxu3 %v2655_v0 }
 0x1bf   : > { %v2206_v12 = vpack.c.bf16 %v2174_v9, %v2174_v9 }
 0x1c0   : > { %v2009_v17 = vpop.f32.mrf.mxu2  ;;  %v1833_v22 = vpop.f32.mrf.mxu0 }
 0x1c1   : > { %v2098_v21 = vpop.f32.mrf.mxu3  ;;  %2239 = vst.msk [vmem:[%s3858_s4 + $0x4] sm:$0xf] %vm2237_vm0, %v2206_v12  ;;  %v2010_v11 = vadd.f32 %v2009_v17, %v1921_v14  ;;  %v1922_v23 = vpop.f32.mrf.mxu1  ;;  %v1834_v24 = vadd.f32 %v1833_v22, %v3625_v32  ;;  %v3201_v22 = vld [vmem:[%s3429_s20 + $0x2ec] sm:$0xf0] }
 0x1c3   : > { %v2099_v20 = vadd.f32 %v2098_v21, %v2010_v11  ;;  %v1923_v48 = vadd.f32 %v1922_v23, %v1834_v24  ;;  %v2706_v11 = vld [vmem:[%s3429_s20 + $0x2d0] sm:$0xf]  ;;  %v3197_v23 = vld [vmem:[%s3429_s20 + $0x2d4] sm:$0xf] }
 0x1c4   : > { %v2708_v24 = vld [vmem:[%s3429_s20 + $0x2f0] sm:$0xf0]  ;;  %v2707_v39 = vor.u32 %v3201_v22, %v2706_v11  ;;  %v3206_v11 = vld [vmem:[%s3429_s20 + $0x31c] sm:$0xf] }
 0x1c5   : > { %v2175_v30 = vmax.f32 %v2099_v20, 0.0  ;;  %v2748_v22 = vld [vmem:[%s3429_s20 + $0x338] sm:$0xf0] }
 0x1c7   : > { %v2207_v42 = vpack.c.bf16 %v2175_v30, %v2175_v30  ;;  %v2716_v30 = vld [vmem:[%s3429_s20 + $0x2f8] sm:$0xf0] }
 0x1c8   : > { %v2011_v50 = vpop.f32.mrf.mxu2  ;;  %v1836_v32 = vpop.f32.mrf.mxu0 }
 0x1c9   : > { %v2100_v51 = vpop.f32.mrf.mxu3  ;;  %2240 = vst.msk [vmem:[%s3858_s4 + $0x8] sm:$0xf] %vm2237_vm0, %v2207_v42  ;;  %v2012_v3 = vadd.f32 %v2011_v50, %v1923_v48  ;;  %v1925_v56 = vpop.f32.mrf.mxu1  ;;  %v1837_v62 = vadd.f32 %v1836_v32, %v3637_v43  ;;  %v2711_v42 = vor.u32 %v3197_v23, %v2708_v24 }
 0x1cb   : > { %v2101_v61 = vadd.f32 %v2100_v51, %v2012_v3  ;;  %1875 = vmatmul.bf16.gmra.mxu0 %v2675_v52  ;;  %v1926_v4 = vadd.f32 %v1925_v56, %v1837_v62  ;;  %v2715_v51 = vor.u32 %v3202_v29, %v2714_v26  ;;  %v2719_v52 = vor.u32 %v3198_v46, %v2716_v30 }
 0x1cc   : > { %1964 = vmatmul.bf16.gmra.mxu1 %v2679_v53 }
 0x1cd   : > { %v2176_v63 = vmax.f32 %v2101_v61, 0.0  ;;  %2053 = vmatmul.bf16.gmra.mxu2 %v2683_v59 }
 0x1ce   : > { %2142 = vmatmul.bf16.gmra.mxu3 %v2687_v60 }
 0x1cf   : > { %v2208_v0 = vpack.c.bf16 %v2176_v63, %v2176_v63 }
 0x1d0   : > { %v2014_v7 = vpop.f32.mrf.mxu2  ;;  %v1838_v12 = vpop.f32.mrf.mxu0 }
 0x1d1   : > { %v2103_v9 = vpop.f32.mrf.mxu3  ;;  %2241 = vst.msk [vmem:[%s3858_s4 + $0xc] sm:$0xf] %vm2237_vm0, %v2208_v0  ;;  %v2015_v43 = vadd.f32 %v2014_v7, %v1926_v4  ;;  %v1927_v14 = vpop.f32.mrf.mxu1  ;;  %v1839_v21 = vadd.f32 %v1838_v12, %v3651_v1  ;;  %v2738_v7 = vld [vmem:[%s3429_s20 + $0x310] sm:$0xf] }
 0x1d3   : > { %v2104_v17 = vadd.f32 %v2103_v9, %v2015_v43  ;;  %v1928_v35 = vadd.f32 %v1927_v14, %v1839_v21  ;;  %v3209_v9 = vld [vmem:[%s3429_s20 + $0x32c] sm:$0xf0]  ;;  %v3205_v43 = vld [vmem:[%s3429_s20 + $0x314] sm:$0xf]  ;;  %v3210_v21 = vld [vmem:[%s3429_s20 + $0x334] sm:$0xf0] }
 0x1d4   : > { %v2740_v14 = vld [vmem:[%s3429_s20 + $0x330] sm:$0xf0]  ;;  %v2739_v29 = vor.u32 %v3209_v9, %v2738_v7 }
 0x1d5   : > { %v2177_v20 = vmax.f32 %v2104_v17, 0.0  ;;  %v2746_v17 = vld [vmem:[%s3429_s20 + $0x318] sm:$0xf]  ;;  %v2743_v46 = vor.u32 %v3205_v43, %v2740_v14 }
 0x1d7   : > { %v2209_v31 = vpack.c.bf16 %v2177_v20, %v2177_v20 }
 0x1d8   : > { %v2016_v36 = vpop.f32.mrf.mxu2  ;;  %v1841_v1 = vpop.f32.mrf.mxu0 }
 0x1d9   : > { %v2105_v37 = vpop.f32.mrf.mxu3  ;;  %2242 = vst.msk [vmem:[%s3858_s4 + $0x10] sm:$0xf] %vm2237_vm0, %v2209_v31  ;;  %v2017_v48 = vadd.f32 %v2016_v36, %v1928_v35  ;;  %v1930_v50 = vpop.f32.mrf.mxu1  ;;  %v1842_v3 = vadd.f32 %v1841_v1, %v3654_v10  ;;  %v2747_v35 = vor.u32 %v3210_v21, %v2746_v17  ;;  %v2751_v36 = vor.u32 %v3206_v11, %v2748_v22 }
 0x1db   : > { %v2106_v53 = vadd.f32 %v2105_v37, %v2017_v48  ;;  %1880 = vmatmul.bf16.gmra.mxu0 %v2707_v39  ;;  %v1931_v59 = vadd.f32 %v1930_v50, %v1842_v3 }
 0x1dc   : > { %1969 = vmatmul.bf16.gmra.mxu1 %v2711_v42 }
 0x1dd   : > { %v2178_v32 = vmax.f32 %v2106_v53, 0.0  ;;  %2058 = vmatmul.bf16.gmra.mxu2 %v2715_v51 }
 0x1de   : > { %2147 = vmatmul.bf16.gmra.mxu3 %v2719_v52 }
 0x1df   : > { %v2210_v56 = vpack.c.bf16 %v2178_v32, %v2178_v32 }
 0x1e0   : > { %v2019_v60 = vpop.f32.mrf.mxu2  ;;  %v1843_v62 = vpop.f32.mrf.mxu0 }
 0x1e1   : > { %v2108_v61 = vpop.f32.mrf.mxu3  ;;  %2243 = vst.msk [vmem:[%s3858_s4 + $0x14] sm:$0xf] %vm2237_vm0, %v2210_v56  ;;  %v2020_v10 = vadd.f32 %v2019_v60, %v1931_v59  ;;  %v1932_v63 = vpop.f32.mrf.mxu1  ;;  %v1844_v4 = vadd.f32 %v1843_v62, %v3665_v33  ;;  %v2770_v56 = vld [vmem:[%s3429_s20 + $0x350] sm:$0xf]  ;;  %v3213_v60 = vld [vmem:[%s3429_s20 + $0x354] sm:$0xf] }
 0x1e2   : > { %v3217_v59 = vld [vmem:[%s3429_s20 + $0x36c] sm:$0xf0]  ;;  %v2778_v62 = vld [vmem:[%s3429_s20 + $0x358] sm:$0xf] }
 0x1e3   : > { %v2109_v0 = vadd.f32 %v2108_v61, %v2020_v10  ;;  %v1933_v20 = vadd.f32 %v1932_v63, %v1844_v4  ;;  %v2772_v10 = vld [vmem:[%s3429_s20 + $0x370] sm:$0xf0]  ;;  %v3218_v63 = vld [vmem:[%s3429_s20 + $0x374] sm:$0xf0]  ;;  %v2780_v4 = vld [vmem:[%s3429_s20 + $0x378] sm:$0xf0]  ;;  %v2771_v14 = vor.u32 %v3217_v59, %v2770_v56 }
 0x1e4   : > { %v2775_v17 = vor.u32 %v3213_v60, %v2772_v10  ;;  %v2779_v22 = vor.u32 %v3218_v63, %v2778_v62 }
 0x1e5   : > { %v2179_v12 = vmax.f32 %v2109_v0, 0.0  ;;  %v3214_v0 = vld [vmem:[%s3429_s20 + $0x35c] sm:$0xf] }
 0x1e7   : > { %v2211_v23 = vpack.c.bf16 %v2179_v12, %v2179_v12 }
 0x1e8   : > { %v2021_v24 = vpop.f32.mrf.mxu2  ;;  %v1846_v33 = vpop.f32.mrf.mxu0 }
 0x1e9   : > { %v2110_v26 = vpop.f32.mrf.mxu3  ;;  %2244 = vst.msk [vmem:[%s3858_s4 + $0x18] sm:$0xf] %vm2237_vm0, %v2211_v23  ;;  %v2022_v30 = vadd.f32 %v2021_v24, %v1933_v20  ;;  %v1935_v31 = vpop.f32.mrf.mxu1  ;;  %v1847_v39 = vadd.f32 %v1846_v33, %v3677_v45  ;;  %v2783_v23 = vor.u32 %v3214_v0, %v2780_v4 }
 0x1eb   : > { %v2111_v37 = vadd.f32 %v2110_v26, %v2022_v30  ;;  %1885 = vmatmul.bf16.gmra.mxu0 %v2739_v29  ;;  %v1936_v1 = vadd.f32 %v1935_v31, %v1847_v39  ;;  %v2802_v39 = vld [vmem:[%s3429_s20 + $0x390] sm:$0xf] }
 0x1ec   : > { %1974 = vmatmul.bf16.gmra.mxu1 %v2743_v46 }
 0x1ed   : > { %v2180_v42 = vmax.f32 %v2111_v37, 0.0  ;;  %2063 = vmatmul.bf16.gmra.mxu2 %v2747_v35 }
 0x1ee   : > { %2152 = vmatmul.bf16.gmra.mxu3 %v2751_v36 }
 0x1ef   : > { %v2212_v48 = vpack.c.bf16 %v2180_v42, %v2180_v42  ;;  %v3225_v42 = vld [vmem:[%s3429_s20 + $0x3ac] sm:$0xf0] }
 0x1f0   : > { %v2024_v50 = vpop.f32.mrf.mxu2  ;;  %v1848_v52 = vpop.f32.mrf.mxu0  ;;  %v2803_v60 = vor.u32 %v3225_v42, %v2802_v39 }
 0x1f1   : > { %v2113_v51 = vpop.f32.mrf.mxu3  ;;  %2245 = vst.msk [vmem:[%s3858_s4 + $0x1c] sm:$0xf] %vm2237_vm0, %v2212_v48  ;;  %v2025_v45 = vadd.f32 %v2024_v50, %v1936_v1  ;;  %v1937_v53 = vpop.f32.mrf.mxu1  ;;  %v1849_v32 = vadd.f32 %v1848_v52, %v3691_v5  ;;  %v3221_v48 = vld [vmem:[%s3429_s20 + $0x394] sm:$0xf]  ;;  %v3222_v52 = vld [vmem:[%s3429_s20 + $0x39c] sm:$0xf] }
 0x1f2   : > { %v2804_v50 = vld [vmem:[%s3429_s20 + $0x3b0] sm:$0xf0] }
 0x1f3   : > { %v2114_v3 = vadd.f32 %v2113_v51, %v2025_v45  ;;  %v1938_v9 = vadd.f32 %v1937_v53, %v1849_v32  ;;  %v2810_v51 = vld [vmem:[%s3429_s20 + $0x398] sm:$0xf]  ;;  %v2812_v53 = vld [vmem:[%s3429_s20 + $0x3b8] sm:$0xf0] }
 0x1f4   : > { %v3226_v45 = vld [vmem:[%s3429_s20 + $0x3b4] sm:$0xf0]  ;;  %v2815_v0 = vor.u32 %v3222_v52, %v2812_v53 }
 0x1f5   : > { %v2181_v61 = vmax.f32 %v2114_v3, 0.0  ;;  %v2811_v63 = vor.u32 %v3226_v45, %v2810_v51 }
 0x1f7   : > { %v2213_v7 = vpack.c.bf16 %v2181_v61, %v2181_v61  ;;  %v2807_v61 = vor.u32 %v3221_v48, %v2804_v50 }
 0x1f8   : > { %v2026_v43 = vpop.f32.mrf.mxu2  ;;  %v1851_v5 = vpop.f32.mrf.mxu0 }
 0x1f9   : > { %v2115_v12 = vpop.f32.mrf.mxu3  ;;  %2246 = vst.msk [vmem:[%s3858_s4 + $0x20] sm:$0xf] %vm2237_vm0, %v2213_v7  ;;  %v2027_v21 = vadd.f32 %v2026_v43, %v1938_v9  ;;  %v1940_v11 = vpop.f32.mrf.mxu1  ;;  %v1852_v24 = vadd.f32 %v1851_v5, %v3694_v15 }
 0x1fb   : > { %v2116_v20 = vadd.f32 %v2115_v12, %v2027_v21  ;;  %1890 = vmatmul.bf16.gmra.mxu0 %v2771_v14  ;;  %v1941_v46 = vadd.f32 %v1940_v11, %v1852_v24  ;;  %v3229_v24 = vld [vmem:[%s3429_s20 + $0x3d4] sm:$0xf] }
 0x1fc   : > { %1979 = vmatmul.bf16.gmra.mxu1 %v2775_v17 }
 0x1fd   : > { %v2182_v26 = vmax.f32 %v2116_v20, 0.0  ;;  %2068 = vmatmul.bf16.gmra.mxu2 %v2779_v22  ;;  %v3233_v20 = vld [vmem:[%s3429_s20 + $0x3ec] sm:$0xf0] }
 0x1fe   : > { %2157 = vmatmul.bf16.gmra.mxu3 %v2783_v23  ;;  %v2834_v23 = vld [vmem:[%s3429_s20 + $0x3d0] sm:$0xf] }
 0x1ff   : > { %v2214_v29 = vpack.c.bf16 %v2182_v26, %v2182_v26  ;;  %v2835_v39 = vor.u32 %v3233_v20, %v2834_v23 }
 0x200   : > { %v2029_v30 = vpop.f32.mrf.mxu2  ;;  %v1853_v31 = vpop.f32.mrf.mxu0 }
 0x201   : > { %v2118_v33 = vpop.f32.mrf.mxu3  ;;  %2247 = vst.msk [vmem:[%s3858_s4 + $0x24] sm:$0xf] %vm2237_vm0, %v2214_v29  ;;  %v2030_v15 = vadd.f32 %v2029_v30, %v1941_v46  ;;  %v1942_v35 = vpop.f32.mrf.mxu1  ;;  %v1854_v37 = vadd.f32 %v1853_v31, %v3705_v38  ;;  %v2836_v29 = vld [vmem:[%s3429_s20 + $0x3f0] sm:$0xf0]  ;;  %v2842_v46 = vld [vmem:[%s3429_s20 + $0x3d8] sm:$0xf] }
 0x202   : > { %v3234_v30 = vld [vmem:[%s3429_s20 + $0x3f4] sm:$0xf0]  ;;  %v2839_v42 = vor.u32 %v3229_v24, %v2836_v29 }
 0x203   : > { %v2119_v36 = vadd.f32 %v2118_v33, %v2030_v15  ;;  %v1943_v32 = vadd.f32 %v1942_v35, %v1854_v37  ;;  %v3230_v33 = vld [vmem:[%s3429_s20 + $0x3dc] sm:$0xf]  ;;  %v2843_v50 = vor.u32 %v3234_v30, %v2842_v46 }
 0x204   : > { %v2844_v15 = vld [vmem:[%s3429_s20 + $0x3f8] sm:$0xf0] }
 0x205   : > { %v2183_v1 = vmax.f32 %v2119_v36, 0.0  ;;  %v2847_v51 = vor.u32 %v3230_v33, %v2844_v15 }
 0x207   : > { %v2215_v3 = vpack.c.bf16 %v2183_v1, %v2183_v1 }
 0x208   : > { %v2031_v56 = vpop.f32.mrf.mxu2  ;;  %v1856_v38 = vpop.f32.mrf.mxu0 }
 0x209   : > { %v2120_v59 = vpop.f32.mrf.mxu3  ;;  %2248 = vst.msk [vmem:[%s3858_s4 + $0x28] sm:$0xf] %vm2237_vm0, %v2215_v3  ;;  %v2032_v10 = vadd.f32 %v2031_v56, %v1943_v32  ;;  %v1945_v62 = vpop.f32.mrf.mxu1  ;;  %v1857_v7 = vadd.f32 %v1856_v38, %v3708_v49 }
 0x20b   : > { %v2121_v4 = vadd.f32 %v2120_v59, %v2032_v10  ;;  %1895 = vmatmul.bf16.gmra.mxu0 %v2803_v60  ;;  %v1946_v12 = vadd.f32 %v1945_v62, %v1857_v7 }
 0x20c   : > { %1984 = vmatmul.bf16.gmra.mxu1 %v2807_v61 }
 0x20d   : > { %v2184_v9 = vmax.f32 %v2121_v4, 0.0  ;;  %2073 = vmatmul.bf16.gmra.mxu2 %v2811_v63 }
 0x20e   : > { %2162 = vmatmul.bf16.gmra.mxu3 %v2815_v0 }
 0x20f   : > { %v2216_v43 = vpack.c.bf16 %v2184_v9, %v2184_v9 }
 0x210   : > { %v2034_v14 = vpop.f32.mrf.mxu2  ;;  %v1858_v21 = vpop.f32.mrf.mxu0 }
 0x211   : > { %v2123_v17 = vpop.f32.mrf.mxu3  ;;  %2249 = vst.msk [vmem:[%s3858_s4 + $0x2c] sm:$0xf] %vm2237_vm0, %v2216_v43  ;;  %v2035_v49 = vadd.f32 %v2034_v14, %v1946_v12  ;;  %v1947_v5 = vpop.f32.mrf.mxu1  ;;  %v1859_v22 = vadd.f32 %v1858_v21, %v3719_v8 }
 0x213   : > { %v2124_v11 = vadd.f32 %v2123_v17, %v2035_v49  ;;  %v1948_v35 = vadd.f32 %v1947_v5, %v1859_v22 }
 0x215   : > { %v2185_v26 = vmax.f32 %v2124_v11, 0.0 }
 0x217   : > { %v2217_v31 = vpack.c.bf16 %v2185_v26, %v2185_v26 }
 0x218   : > { %v2036_v36 = vpop.f32.mrf.mxu2  ;;  %v1861_v8 = vpop.f32.mrf.mxu0 }
 0x219   : > { %v2125_v37 = vpop.f32.mrf.mxu3  ;;  %2250 = vst.msk [vmem:[%s3858_s4 + $0x30] sm:$0xf] %vm2237_vm0, %v2217_v31  ;;  %v2037_v48 = vadd.f32 %v2036_v36, %v1948_v35  ;;  %v1950_v1 = vpop.f32.mrf.mxu1  ;;  %v1862_v52 = vadd.f32 %v1861_v8, %v3722_v19 }
 0x21b   : > { %v2126_v45 = vadd.f32 %v2125_v37, %v2037_v48  ;;  %1900 = vmatmul.bf16.gmra.mxu0 %v2835_v39  ;;  %v1951_v32 = vadd.f32 %v1950_v1, %v1862_v52 }
 0x21c   : > { %1989 = vmatmul.bf16.gmra.mxu1 %v2839_v42 }
 0x21d   : > { %v2186_v53 = vmax.f32 %v2126_v45, 0.0  ;;  %2078 = vmatmul.bf16.gmra.mxu2 %v2843_v50 }
 0x21e   : > { %2167 = vmatmul.bf16.gmra.mxu3 %v2847_v51 }
 0x21f   : > { %v2218_v3 = vpack.c.bf16 %v2186_v53, %v2186_v53 }
 0x220   : > { %v2039_v56 = vpop.f32.mrf.mxu2  ;;  %v1863_v61 = vpop.f32.mrf.mxu0 }
 0x221   : > { %v2128_v59 = vpop.f32.mrf.mxu3  ;;  %2251 = vst.msk [vmem:[%s3858_s4 + $0x34] sm:$0xf] %vm2237_vm0, %v2218_v3  ;;  %v2040_v60 = vadd.f32 %v2039_v56, %v1951_v32  ;;  %v1952_v10 = vpop.f32.mrf.mxu1  ;;  %v1864_v62 = vadd.f32 %v1863_v61, %v3733_v44 }
 0x223   : > { %v2129_v38 = vadd.f32 %v2128_v59, %v2040_v60  ;;  %v1953_v0 = vadd.f32 %v1952_v10, %v1864_v62 }
 0x225   : > { %v2187_v63 = vmax.f32 %v2129_v38, 0.0 }
 0x227   : > { %v2219_v19 = vpack.c.bf16 %v2187_v63, %v2187_v63 }
 0x228   : > { %v2041_v4 = vpop.f32.mrf.mxu2  ;;  %v1866_v43 = vpop.f32.mrf.mxu0 }
 0x229   : > { %v2130_v7 = vpop.f32.mrf.mxu3  ;;  %2252 = vst.msk [vmem:[%s3858_s4 + $0x38] sm:$0xf] %vm2237_vm0, %v2219_v19  ;;  %v2042_v9 = vadd.f32 %v2041_v4, %v1953_v0  ;;  %v1955_v12 = vpop.f32.mrf.mxu1  ;;  %v1867_v17 = vadd.f32 %v1866_v43, %v3736_v55 }
 0x22b   : > { %v2131_v14 = vadd.f32 %v2130_v7, %v2042_v9  ;;  %v1956_v5 = vadd.f32 %v1955_v12, %v1867_v17 }
 0x22d   : > { %v2188_v49 = vmax.f32 %v2131_v14, 0.0 }
 0x22f   : > { %v2220_v21 = vpack.c.bf16 %v2188_v49, %v2188_v49 }
 0x230   : > { %v2044_v11 = vpop.f32.mrf.mxu2  ;;  %v1868_v23 = vpop.f32.mrf.mxu0 }
 0x231   : > { %v2133_v44 = vpop.f32.mrf.mxu3  ;;  %2253 = vst.msk [vmem:[%s3858_s4 + $0x3c] sm:$0xf] %vm2237_vm0, %v2220_v21  ;;  %v2045_v22 = vadd.f32 %v2044_v11, %v1956_v5  ;;  %v1957_v20 = vpop.f32.mrf.mxu1  ;;  %v1869_v26 = vadd.f32 %v1868_v23, %v3747_v18 }
 0x233   : > { %v2134_v24 = vadd.f32 %v2133_v44, %v2045_v22  ;;  %v1958_v30 = vadd.f32 %v1957_v20, %v1869_v26 }
 0x235   : > { %v2189_v29 = vmax.f32 %v2134_v24, 0.0 }
 0x237   : > { %v2221_v46 = vpack.c.bf16 %v2189_v29, %v2189_v29 }
 0x238   : > { %v2046_v33 = vpop.f32.mrf.mxu2  ;;  %v1871_v31 = vpop.f32.mrf.mxu0 }
 0x239   : > { %v2135_v55 = vpop.f32.mrf.mxu3  ;;  %2254 = vst.msk [vmem:[%s3858_s4 + $0x40] sm:$0xf] %vm2237_vm0, %v2221_v46  ;;  %v2047_v15 = vadd.f32 %v2046_v33, %v1958_v30  ;;  %v1960_v35 = vpop.f32.mrf.mxu1  ;;  %v1872_v37 = vadd.f32 %v1871_v31, %v3750_v28 }
 0x23b   : > { %v2136_v36 = vadd.f32 %v2135_v55, %v2047_v15  ;;  %v1961_v48 = vadd.f32 %v1960_v35, %v1872_v37 }
 0x23d   : > { %v2190_v39 = vmax.f32 %v2136_v36, 0.0 }
 0x23f   : > { %v2222_v42 = vpack.c.bf16 %v2190_v39, %v2190_v39 }
 0x240   : > { %v2049_v8 = vpop.f32.mrf.mxu2  ;;  %v1873_v50 = vpop.f32.mrf.mxu0 }
 0x241   : > { %v2138_v18 = vpop.f32.mrf.mxu3  ;;  %2255 = vst.msk [vmem:[%s3858_s4 + $0x44] sm:$0xf] %vm2237_vm0, %v2222_v42  ;;  %v2050_v1 = vadd.f32 %v2049_v8, %v1961_v48  ;;  %v1962_v51 = vpop.f32.mrf.mxu1  ;;  %v1874_v52 = vadd.f32 %v1873_v50, %v3761_v57 }
 0x243   : > { %v2139_v45 = vadd.f32 %v2138_v18, %v2050_v1  ;;  %v1963_v32 = vadd.f32 %v1962_v51, %v1874_v52 }
 0x245   : > { %v2191_v53 = vmax.f32 %v2139_v45, 0.0 }
 0x247   : > { %v2223_v3 = vpack.c.bf16 %v2191_v53, %v2191_v53 }
 0x248   : > { %v2051_v56 = vpop.f32.mrf.mxu2  ;;  %v1876_v60 = vpop.f32.mrf.mxu0 }
 0x249   : > { %v2140_v28 = vpop.f32.mrf.mxu3  ;;  %2256 = vst.msk [vmem:[%s3858_s4 + $0x48] sm:$0xf] %vm2237_vm0, %v2223_v3  ;;  %v2052_v59 = vadd.f32 %v2051_v56, %v1963_v32  ;;  %v1965_v61 = vpop.f32.mrf.mxu1  ;;  %v1877_v38 = vadd.f32 %v1876_v60, %v3764_v2 }
 0x24b   : > { %v2141_v10 = vadd.f32 %v2140_v28, %v2052_v59  ;;  %v1966_v19 = vadd.f32 %v1965_v61, %v1877_v38 }
 0x24d   : > { %v2192_v62 = vmax.f32 %v2141_v10, 0.0 }
 0x24f   : > { %v2224_v63 = vpack.c.bf16 %v2192_v62, %v2192_v62 }
 0x250   : > { %v2054_v0 = vpop.f32.mrf.mxu2  ;;  %v1878_v7 = vpop.f32.mrf.mxu0 }
 0x251   : > { %v2143_v57 = vpop.f32.mrf.mxu3  ;;  %2257 = vst.msk [vmem:[%s3858_s4 + $0x4c] sm:$0xf] %vm2237_vm0, %v2224_v63  ;;  %v2055_v4 = vadd.f32 %v2054_v0, %v1966_v19  ;;  %v1967_v9 = vpop.f32.mrf.mxu1  ;;  %v1879_v12 = vadd.f32 %v1878_v7, %v3775_v34 }
 0x253   : > { %v2144_v43 = vadd.f32 %v2143_v57, %v2055_v4  ;;  %v1968_v49 = vadd.f32 %v1967_v9, %v1879_v12 }
 0x255   : > { %v2193_v14 = vmax.f32 %v2144_v43, 0.0 }
 0x257   : > { %v2225_v17 = vpack.c.bf16 %v2193_v14, %v2193_v14 }
 0x258   : > { %v2056_v21 = vpop.f32.mrf.mxu2  ;;  %v1881_v11 = vpop.f32.mrf.mxu0 }
 0x259   : > { %v2145_v2 = vpop.f32.mrf.mxu3  ;;  %2258 = vst.msk [vmem:[%s3858_s4 + $0x50] sm:$0xf] %vm2237_vm0, %v2225_v17  ;;  %v2057_v5 = vadd.f32 %v2056_v21, %v1968_v49  ;;  %v1970_v44 = vpop.f32.mrf.mxu1  ;;  %v1882_v23 = vadd.f32 %v1881_v11, %v3778_v47 }
 0x25b   : > { %v2146_v22 = vadd.f32 %v2145_v2, %v2057_v5  ;;  %v1971_v26 = vadd.f32 %v1970_v44, %v1882_v23 }
 0x25d   : > { %v2194_v20 = vmax.f32 %v2146_v22, 0.0 }
 0x25f   : > { %v2226_v24 = vpack.c.bf16 %v2194_v20, %v2194_v20 }
 0x260   : > { %v2059_v29 = vpop.f32.mrf.mxu2  ;;  %v1883_v30 = vpop.f32.mrf.mxu0 }
 0x261   : > { %v2148_v34 = vpop.f32.mrf.mxu3  ;;  %2259 = vst.msk [vmem:[%s3858_s4 + $0x54] sm:$0xf] %vm2237_vm0, %v2226_v24  ;;  %v2060_v46 = vadd.f32 %v2059_v29, %v1971_v26  ;;  %v1972_v33 = vpop.f32.mrf.mxu1  ;;  %v1884_v15 = vadd.f32 %v1883_v30, %v3789_v13 }
 0x263   : > { %v2149_v55 = vadd.f32 %v2148_v34, %v2060_v46  ;;  %v1973_v36 = vadd.f32 %v1972_v33, %v1884_v15 }
 0x265   : > { %v2195_v31 = vmax.f32 %v2149_v55, 0.0 }
 0x267   : > { %v2227_v35 = vpack.c.bf16 %v2195_v31, %v2195_v31 }
 0x268   : > { %v2061_v37 = vpop.f32.mrf.mxu2  ;;  %v1886_v42 = vpop.f32.mrf.mxu0 }
 0x269   : > { %v2150_v47 = vpop.f32.mrf.mxu3  ;;  %2260 = vst.msk [vmem:[%s3858_s4 + $0x58] sm:$0xf] %vm2237_vm0, %v2227_v35  ;;  %v2062_v39 = vadd.f32 %v2061_v37, %v1973_v36  ;;  %v1975_v48 = vpop.f32.mrf.mxu1  ;;  %v1887_v18 = vadd.f32 %v1886_v42, %v3792_v25 }
 0x26b   : > { %v2151_v8 = vadd.f32 %v2150_v47, %v2062_v39  ;;  %v1976_v51 = vadd.f32 %v1975_v48, %v1887_v18 }
 0x26d   : > { %v2196_v1 = vmax.f32 %v2151_v8, 0.0 }
 0x26f   : > { %v2228_v50 = vpack.c.bf16 %v2196_v1, %v2196_v1 }
 0x270   : > { %v2064_v45 = vpop.f32.mrf.mxu2  ;;  %v1888_v53 = vpop.f32.mrf.mxu0 }
 0x271   : > { %v2153_v13 = vpop.f32.mrf.mxu3  ;;  %2261 = vst.msk [vmem:[%s3858_s4 + $0x5c] sm:$0xf] %vm2237_vm0, %v2228_v50  ;;  %v2065_v52 = vadd.f32 %v2064_v45, %v1976_v51  ;;  %v1977_v3 = vpop.f32.mrf.mxu1  ;;  %v1889_v56 = vadd.f32 %v1888_v53, %v3803_v58 }
 0x273   : > { %v2154_v32 = vadd.f32 %v2153_v13, %v2065_v52  ;;  %v1978_v60 = vadd.f32 %v1977_v3, %v1889_v56 }
 0x275   : > { %v2197_v28 = vmax.f32 %v2154_v32, 0.0 }
 0x277   : > { %v2229_v59 = vpack.c.bf16 %v2197_v28, %v2197_v28 }
 0x278   : > { %v2066_v61 = vpop.f32.mrf.mxu2  ;;  %v1891_v38 = vpop.f32.mrf.mxu0 }
 0x279   : > { %v2155_v25 = vpop.f32.mrf.mxu3  ;;  %2262 = vst.msk [vmem:[%s3858_s4 + $0x60] sm:$0xf] %vm2237_vm0, %v2229_v59  ;;  %v2067_v10 = vadd.f32 %v2066_v61, %v1978_v60  ;;  %v1980_v62 = vpop.f32.mrf.mxu1  ;;  %v1892_v19 = vadd.f32 %v1891_v38, %v3806_v6 }
 0x27b   : > { %v2156_v63 = vadd.f32 %v2155_v25, %v2067_v10  ;;  %v1981_v4 = vadd.f32 %v1980_v62, %v1892_v19 }
 0x27d   : > { %v2198_v0 = vmax.f32 %v2156_v63, 0.0 }
 0x27f   : > { %v2230_v57 = vpack.c.bf16 %v2198_v0, %v2198_v0 }
 0x280   : > { %v2069_v7 = vpop.f32.mrf.mxu2  ;;  %v1893_v43 = vpop.f32.mrf.mxu0 }
 0x281   : > { %v2158_v58 = vpop.f32.mrf.mxu3  ;;  %2263 = vst.msk [vmem:[%s3858_s4 + $0x64] sm:$0xf] %vm2237_vm0, %v2230_v57  ;;  %v2070_v9 = vadd.f32 %v2069_v7, %v1981_v4  ;;  %v1982_v12 = vpop.f32.mrf.mxu1  ;;  %v1894_v17 = vadd.f32 %v1893_v43, %v3817_v40 }
 0x283   : > { %v2159_v14 = vadd.f32 %v2158_v58, %v2070_v9  ;;  %v1983_v2 = vadd.f32 %v1982_v12, %v1894_v17 }
 0x285   : > { %v2199_v49 = vmax.f32 %v2159_v14, 0.0 }
 0x287   : > { %v2231_v21 = vpack.c.bf16 %v2199_v49, %v2199_v49 }
 0x288   : > { %v2071_v5 = vpop.f32.mrf.mxu2  ;;  %v1896_v44 = vpop.f32.mrf.mxu0 }
 0x289   : > { %v2160_v6 = vpop.f32.mrf.mxu3  ;;  %2264 = vst.msk [vmem:[%s3858_s4 + $0x68] sm:$0xf] %vm2237_vm0, %v2231_v21  ;;  %v2072_v11 = vadd.f32 %v2071_v5, %v1983_v2  ;;  %v1985_v22 = vpop.f32.mrf.mxu1  ;;  %v1897_v20 = vadd.f32 %v1896_v44, %v3820_v54 }
 0x28b   : > { %v2161_v23 = vadd.f32 %v2160_v6, %v2072_v11  ;;  %v1986_v29 = vadd.f32 %v1985_v22, %v1897_v20 }
 0x28d   : > { %v2200_v24 = vmax.f32 %v2161_v23, 0.0 }
 0x28f   : > { %v2232_v26 = vpack.c.bf16 %v2200_v24, %v2200_v24 }
 0x290   : > { %v2074_v34 = vpop.f32.mrf.mxu2  ;;  %v1898_v30 = vpop.f32.mrf.mxu0 }
 0x291   : > { %v2163_v40 = vpop.f32.mrf.mxu3  ;;  %2265 = vst.msk [vmem:[%s3858_s4 + $0x6c] sm:$0xf] %vm2237_vm0, %v2232_v26  ;;  %v2075_v46 = vadd.f32 %v2074_v34, %v1986_v29  ;;  %v1987_v33 = vpop.f32.mrf.mxu1  ;;  %v1899_v15 = vadd.f32 %v1898_v30, %v3833_v27 }
 0x293   : > { %v2164_v55 = vadd.f32 %v2163_v40, %v2075_v46  ;;  %v1988_v36 = vadd.f32 %v1987_v33, %v1899_v15 }
 0x295   : > { %v2201_v31 = vmax.f32 %v2164_v55, 0.0 }
 0x297   : > { %v2233_v35 = vpack.c.bf16 %v2201_v31, %v2201_v31 }
 0x298   : > { %v2076_v37 = vpop.f32.mrf.mxu2  ;;  %v1901_v39 = vpop.f32.mrf.mxu0 }
 0x299   : > { %v2165_v54 = vpop.f32.mrf.mxu3  ;;  %2266 = vst.msk [vmem:[%s3858_s4 + $0x70] sm:$0xf] %vm2237_vm0, %v2233_v35  ;;  %v2077_v47 = vadd.f32 %v2076_v37, %v1988_v36  ;;  %v1902_v48 = vadd.f32 %v1901_v39, %v3835_v41  ;;  %v1990_v8 = vpop.f32.mrf.mxu1 }
 0x29b   : > { %v2166_v42 = vadd.f32 %v2165_v54, %v2077_v47  ;;  %v1991_v50 = vadd.f32 %v1990_v8, %v1902_v48 }
 0x29d   : > { %v2202_v18 = vmax.f32 %v2166_v42, 0.0 }
 0x29f   : > { %v2234_v1 = vpack.c.bf16 %v2202_v18, %v2202_v18 }
 0x2a0   : > { %v2079_v51 = vpop.f32.mrf.mxu2  ;;  %v1903_v13 = vpop.f32.mrf.mxu0 }
 0x2a1   : > { %v2168_v27 = vpop.f32.mrf.mxu3  ;;  %2267 = vst.msk [vmem:[%s3858_s4 + $0x74] sm:$0xf] %vm2237_vm0, %v2234_v1  ;;  %v2080_v45 = vadd.f32 %v2079_v51, %v1991_v50  ;;  %v1904_v53 = vadd.f32 %v1903_v13, %v3845_v16  ;;  %v1992_v32 = vpop.f32.mrf.mxu1 }
 0x2a3   : > { %v2169_v52 = vadd.f32 %v2168_v27, %v2080_v45  ;;  %v1993_v28 = vadd.f32 %v1992_v32, %v1904_v53 }
 0x2a5   : > { %v2203_v3 = vmax.f32 %v2169_v52, 0.0 }
 0x2a7   : > { %v2235_v56 = vpack.c.bf16 %v2203_v3, %v2203_v3 }
 0x2a8   : > { %v2081_v41 = vpop.f32.mrf.mxu2 }
 0x2a9   : > { %2268 = vst.msk [vmem:[%s3858_s4 + $0x78] sm:$0xf] %vm2237_vm0, %v2235_v56  ;;  %v2082_v59 = vadd.f32 %v2081_v41, %v1993_v28  ;;  %v2170_v60 = vpop.f32.mrf.mxu3 }
 0x2ab   : > { %v2171_v61 = vadd.f32 %v2170_v60, %v2082_v59 }
 0x2ad   : > { %v2204_v25 = vmax.f32 %v2171_v61, 0.0 }
 0x2af   : > { %v2236_v10 = vpack.c.bf16 %v2204_v25, %v2204_v25 }
 0x2b1   : > { %2269 = vst.msk [vmem:[%s3858_s4 + $0x7c] sm:$0xf] %vm2237_vm0, %v2236_v10 }
 0x2b2 PF: > { %s13_s12 = sadd.s32 1, %s3315_s12  }
 0x2b3   : > { %p10_p4 = scmp.ge.s32.totalorder %s13_s12, 4  }
 0x2b5   :  { %12 = sbr.rel (!%p10_p4) target bundleno = 1 (0x1), region = 62 }

// kernel: beta_vae64_forward.12
= control target key start
LH: loop header
LB: loop body
LE: loop exit
PB: predicated region body
PF: predicated region fallthrough
CT: control target
= control target key end

     0   :  { %vm694_vm0 = vcmask 257024   ;;  %s1429_s1 = inlined_call_operand.vmem [shape: bf16[512,32], index: 1, kind: input, shape index: {}]   ;;  %s1430_s2 = inlined_call_operand.vmem [shape: f32[1,32], index: 2, kind: input, shape index: {}]   ;;  %s1431_s0 = inlined_call_operand.vmem [shape: bf16[128,512], index: 0, kind: input, shape index: {}]   ;;  %s1432_s3 = inlined_call_operand.vmem [shape: bf16[128,32], index: 3, kind: output, shape index: {}]  }
   0x1   :  { %v1010_v0 = vld [vmem:[%s1429_s1 + $0x38] sm:$0xff]  ;;  %v1009_v4 = vld [vmem:[%s1429_s1 + $0x30] sm:$0xff]  ;;  %v1008_v8 = vld [vmem:[%s1429_s1 + $0x28] sm:$0xff] }
   0x2   :  { %v1018_v1 = vld [vmem:[%s1429_s1 + $0x78] sm:$0xff]  ;;  %466 = vmatpush.bf16.msra.mxu0 %v1010_v0  ;;  %v1017_v5 = vld [vmem:[%s1429_s1 + $0x70] sm:$0xff]  ;;  %v1016_v9 = vld [vmem:[%s1429_s1 + $0x68] sm:$0xff] }
   0x3   :  { %v1026_v2 = vld [vmem:[%s1429_s1 + $0xb8] sm:$0xff]  ;;  %515 = vmatpush.bf16.msra.mxu1 %v1018_v1  ;;  %v1025_v6 = vld [vmem:[%s1429_s1 + $0xb0] sm:$0xff]  ;;  %v1024_v10 = vld [vmem:[%s1429_s1 + $0xa8] sm:$0xff] }
   0x4   :  { %v1034_v3 = vld [vmem:[%s1429_s1 + $0xf8] sm:$0xff]  ;;  %564 = vmatpush.bf16.msra.mxu2 %v1026_v2  ;;  %v1033_v7 = vld [vmem:[%s1429_s1 + $0xf0] sm:$0xff]  ;;  %v1032_v11 = vld [vmem:[%s1429_s1 + $0xe8] sm:$0xff] }
   0x5   :  { %613 = vmatpush.bf16.msra.mxu3 %v1034_v3  ;;  %v1007_v12 = vld [vmem:[%s1429_s1 + $0x20] sm:$0xff]  ;;  %v1006_v16 = vld [vmem:[%s1429_s1 + $0x18] sm:$0xff]  ;;  %v1005_v20 = vld [vmem:[%s1429_s1 + $0x10] sm:$0xff] }
   0x6   :  { %467 = vmatpush.bf16.msra.mxu0 %v1009_v4  ;;  %v1015_v13 = vld [vmem:[%s1429_s1 + $0x60] sm:$0xff]  ;;  %v1014_v17 = vld [vmem:[%s1429_s1 + $0x58] sm:$0xff]  ;;  %v1013_v21 = vld [vmem:[%s1429_s1 + $0x50] sm:$0xff] }
   0x7   :  { %516 = vmatpush.bf16.msra.mxu1 %v1017_v5  ;;  %v1023_v14 = vld [vmem:[%s1429_s1 + $0xa0] sm:$0xff]  ;;  %v1022_v18 = vld [vmem:[%s1429_s1 + $0x98] sm:$0xff]  ;;  %v1021_v22 = vld [vmem:[%s1429_s1 + $0x90] sm:$0xff] }
   0x8   :  { %565 = vmatpush.bf16.msra.mxu2 %v1025_v6  ;;  %v1031_v15 = vld [vmem:[%s1429_s1 + $0xe0] sm:$0xff]  ;;  %v1030_v19 = vld [vmem:[%s1429_s1 + $0xd8] sm:$0xff]  ;;  %v1029_v23 = vld [vmem:[%s1429_s1 + $0xd0] sm:$0xff] }
   0x9   :  { %614 = vmatpush.bf16.msra.mxu3 %v1033_v7  ;;  %v1004_v24 = vld [vmem:[%s1429_s1 + $0x8] sm:$0xff]  ;;  %v1003_v28 = vld [vmem:[%s1429_s1] sm:$0xff]  ;;  %v973_v33 = vld [vmem:[%s1431_s0 + $0xc] sm:$0xf0] }
   0xa   :  { %468 = vmatpush.bf16.msra.mxu0 %v1008_v8  ;;  %v1012_v25 = vld [vmem:[%s1429_s1 + $0x48] sm:$0xff]  ;;  %v1011_v29 = vld [vmem:[%s1429_s1 + $0x40] sm:$0xff]  ;;  %v719_v35 = vld [vmem:[%s1431_s0 + $0x10] sm:$0xf0] }
   0xb   :  { %517 = vmatpush.bf16.msra.mxu1 %v1016_v9  ;;  %v1020_v26 = vld [vmem:[%s1429_s1 + $0x88] sm:$0xff]  ;;  %v1019_v30 = vld [vmem:[%s1429_s1 + $0x80] sm:$0xff]  ;;  %v974_v37 = vld [vmem:[%s1431_s0 + $0x14] sm:$0xf0] }
   0xc   :  { %566 = vmatpush.bf16.msra.mxu2 %v1024_v10  ;;  %v1028_v27 = vld [vmem:[%s1429_s1 + $0xc8] sm:$0xff]  ;;  %v1027_v31 = vld [vmem:[%s1429_s1 + $0xc0] sm:$0xff]  ;;  %v727_v39 = vld [vmem:[%s1431_s0 + $0x18] sm:$0xf0] }
   0xd   :  { %615 = vmatpush.bf16.msra.mxu3 %v1032_v11  ;;  %v717_v32 = vld [vmem:[%s1431_s0] sm:$0xf]  ;;  %v971_v34 = vld [vmem:[%s1431_s0 + $0x4] sm:$0xf]  ;;  %v725_v36 = vld [vmem:[%s1431_s0 + $0x8] sm:$0xf] }
   0xe   :  { %469 = vmatpush.bf16.msra.mxu0 %v1007_v12  ;;  %v972_v38 = vld [vmem:[%s1431_s0 + $0xc] sm:$0xf]  ;;  %v718_v40 = vor.u32 %v973_v33, %v717_v32  ;;  %v722_v41 = vor.u32 %v971_v34, %v719_v35  ;;  %v726_v42 = vor.u32 %v974_v37, %v725_v36  ;;  %v733_v44 = vld [vmem:[%s1431_s0 + $0x20] sm:$0xf]  ;;  %v977_v45 = vld [vmem:[%s1431_s0 + $0x2c] sm:$0xf0] }
   0xf   :  { %518 = vmatpush.bf16.msra.mxu1 %v1015_v13  ;;  %v730_v43 = vor.u32 %v972_v38, %v727_v39  ;;  %v975_v46 = vld [vmem:[%s1431_s0 + $0x24] sm:$0xf]  ;;  %v735_v47 = vld [vmem:[%s1431_s0 + $0x30] sm:$0xf0]  ;;  %v741_v48 = vld [vmem:[%s1431_s0 + $0x28] sm:$0xf]  ;;  %v734_v52 = vor.u32 %v977_v45, %v733_v44 }
  0x10   :  { %567 = vmatpush.bf16.msra.mxu2 %v1023_v14  ;;  %v978_v49 = vld [vmem:[%s1431_s0 + $0x34] sm:$0xf0]  ;;  %v976_v50 = vld [vmem:[%s1431_s0 + $0x2c] sm:$0xf]  ;;  %v743_v51 = vld [vmem:[%s1431_s0 + $0x38] sm:$0xf0]  ;;  %v738_v53 = vor.u32 %v975_v46, %v735_v47 }
  0x11   :  { %616 = vmatpush.bf16.msra.mxu3 %v1031_v15  ;;  %v742_v54 = vor.u32 %v978_v49, %v741_v48  ;;  %v746_v55 = vor.u32 %v976_v50, %v743_v51  ;;  %v749_v56 = vld [vmem:[%s1431_s0 + $0x40] sm:$0xf]  ;;  %v981_v57 = vld [vmem:[%s1431_s0 + $0x4c] sm:$0xf0]  ;;  %v979_v58 = vld [vmem:[%s1431_s0 + $0x44] sm:$0xf] }
  0x12   :  { %470 = vmatpush.bf16.msra.mxu0 %v1006_v16  ;;  %v751_v59 = vld [vmem:[%s1431_s0 + $0x50] sm:$0xf0]  ;;  %v757_v60 = vld [vmem:[%s1431_s0 + $0x48] sm:$0xf]  ;;  %v982_v61 = vld [vmem:[%s1431_s0 + $0x54] sm:$0xf0]  ;;  %v750_v0 = vor.u32 %v981_v57, %v749_v56 }
  0x13   :  { %519 = vmatpush.bf16.msra.mxu1 %v1014_v17  ;;  %v980_v62 = vld [vmem:[%s1431_s0 + $0x4c] sm:$0xf]  ;;  %v759_v63 = vld [vmem:[%s1431_s0 + $0x58] sm:$0xf0]  ;;  %v754_v1 = vor.u32 %v979_v58, %v751_v59  ;;  %v758_v2 = vor.u32 %v982_v61, %v757_v60  ;;  %v765_v4 = vld [vmem:[%s1431_s0 + $0x60] sm:$0xf] }
  0x14   :  { %568 = vmatpush.bf16.msra.mxu2 %v1022_v18  ;;  %v762_v3 = vor.u32 %v980_v62, %v759_v63  ;;  %v985_v5 = vld [vmem:[%s1431_s0 + $0x6c] sm:$0xf0]  ;;  %v983_v6 = vld [vmem:[%s1431_s0 + $0x64] sm:$0xf]  ;;  %v767_v7 = vld [vmem:[%s1431_s0 + $0x70] sm:$0xf0] }
  0x15   :  { %617 = vmatpush.bf16.msra.mxu3 %v1030_v19  ;;  %v773_v8 = vld [vmem:[%s1431_s0 + $0x68] sm:$0xf]  ;;  %v986_v9 = vld [vmem:[%s1431_s0 + $0x74] sm:$0xf0]  ;;  %v984_v10 = vld [vmem:[%s1431_s0 + $0x6c] sm:$0xf]  ;;  %v766_v12 = vor.u32 %v985_v5, %v765_v4  ;;  %v770_v13 = vor.u32 %v983_v6, %v767_v7 }
  0x16   :  { %471 = vmatpush.bf16.msra.mxu0 %v1005_v20  ;;  %v775_v11 = vld [vmem:[%s1431_s0 + $0x78] sm:$0xf0]  ;;  %v774_v14 = vor.u32 %v986_v9, %v773_v8  ;;  %v781_v16 = vld [vmem:[%s1431_s0 + $0x80] sm:$0xf]  ;;  %v989_v17 = vld [vmem:[%s1431_s0 + $0x8c] sm:$0xf0] }
  0x17   :  { %520 = vmatpush.bf16.msra.mxu1 %v1013_v21  ;;  %v778_v15 = vor.u32 %v984_v10, %v775_v11  ;;  %v987_v18 = vld [vmem:[%s1431_s0 + $0x84] sm:$0xf]  ;;  %v783_v19 = vld [vmem:[%s1431_s0 + $0x90] sm:$0xf0]  ;;  %v789_v20 = vld [vmem:[%s1431_s0 + $0x88] sm:$0xf] }
  0x18   :  { %569 = vmatpush.bf16.msra.mxu2 %v1021_v22  ;;  %v990_v21 = vld [vmem:[%s1431_s0 + $0x94] sm:$0xf0]  ;;  %v988_v22 = vld [vmem:[%s1431_s0 + $0x8c] sm:$0xf]  ;;  %v805_v32 = vld [vmem:[%s1431_s0 + $0xa8] sm:$0xf] }
  0x19   :  { %618 = vmatpush.bf16.msra.mxu3 %v1029_v23  ;;  %v791_v23 = vld [vmem:[%s1431_s0 + $0x98] sm:$0xf0]  ;;  %v994_v33 = vld [vmem:[%s1431_s0 + $0xb4] sm:$0xf0]  ;;  %v992_v34 = vld [vmem:[%s1431_s0 + $0xac] sm:$0xf] }
  0x1a   :  { %472 = vmatpush.bf16.msra.mxu0 %v1004_v24  ;;  %v782_v24 = vor.u32 %v989_v17, %v781_v16  ;;  %v807_v35 = vld [vmem:[%s1431_s0 + $0xb8] sm:$0xf0]  ;;  %v806_v38 = vor.u32 %v994_v33, %v805_v32  ;;  %v821_v44 = vld [vmem:[%s1431_s0 + $0xc8] sm:$0xf]  ;;  %v998_v45 = vld [vmem:[%s1431_s0 + $0xd4] sm:$0xf0] }
  0x1b   :  { %521 = vmatpush.bf16.msra.mxu1 %v1012_v25  ;;  %v786_v25 = vor.u32 %v987_v18, %v783_v19  ;;  %v810_v39 = vor.u32 %v992_v34, %v807_v35  ;;  %v996_v46 = vld [vmem:[%s1431_s0 + $0xcc] sm:$0xf]  ;;  %v823_v47 = vld [vmem:[%s1431_s0 + $0xd8] sm:$0xf0]  ;;  %v822_v50 = vor.u32 %v998_v45, %v821_v44  ;;  %v837_v56 = vld [vmem:[%s1431_s0 + $0xe8] sm:$0xf] }
  0x1c   :  { %570 = vmatpush.bf16.msra.mxu2 %v1020_v26  ;;  %v790_v26 = vor.u32 %v990_v21, %v789_v20  ;;  %v826_v51 = vor.u32 %v996_v46, %v823_v47  ;;  %v1002_v57 = vld [vmem:[%s1431_s0 + $0xf4] sm:$0xf0]  ;;  %v1000_v58 = vld [vmem:[%s1431_s0 + $0xec] sm:$0xf]  ;;  %v839_v59 = vld [vmem:[%s1431_s0 + $0xf8] sm:$0xf0] }
  0x1d   :  { %619 = vmatpush.bf16.msra.mxu3 %v1028_v27  ;;  %v794_v27 = vor.u32 %v988_v22, %v791_v23  ;;  %v838_v62 = vor.u32 %v1002_v57, %v837_v56  ;;  %v842_v63 = vor.u32 %v1000_v58, %v839_v59 }
  0x1e   :  { %473 = vmatpush.bf16.msra.mxu0 %v1003_v28  ;;  %v797_v28 = vld [vmem:[%s1431_s0 + $0xa0] sm:$0xf] }
  0x1f   :  { %522 = vmatpush.bf16.msra.mxu1 %v1011_v29  ;;  %v993_v29 = vld [vmem:[%s1431_s0 + $0xac] sm:$0xf0] }
  0x20   :  { %571 = vmatpush.bf16.msra.mxu2 %v1019_v30  ;;  %v991_v30 = vld [vmem:[%s1431_s0 + $0xa4] sm:$0xf]  ;;  %v798_v36 = vor.u32 %v993_v29, %v797_v28 }
  0x21   :  { %620 = vmatpush.bf16.msra.mxu3 %v1027_v31  ;;  %474 = vmatmul.bf16.vlgmr.msra.gmra.mxu0 %v718_v40  ;;  %v799_v31 = vld [vmem:[%s1431_s0 + $0xb0] sm:$0xf0]  ;;  %v813_v40 = vld [vmem:[%s1431_s0 + $0xc0] sm:$0xf] }
  0x22   :  { %523 = vmatmul.bf16.vlgmr.msra.gmra.mxu1 %v722_v41  ;;  %v802_v37 = vor.u32 %v991_v30, %v799_v31  ;;  %v997_v41 = vld [vmem:[%s1431_s0 + $0xcc] sm:$0xf0] }
  0x23   :  { %572 = vmatmul.bf16.vlgmr.msra.gmra.mxu2 %v726_v42  ;;  %v995_v42 = vld [vmem:[%s1431_s0 + $0xc4] sm:$0xf]  ;;  %v814_v48 = vor.u32 %v997_v41, %v813_v40 }
  0x24   :  { %621 = vmatmul.bf16.vlgmr.msra.gmra.mxu3 %v730_v43  ;;  %v815_v43 = vld [vmem:[%s1431_s0 + $0xd0] sm:$0xf0] }
  0x25   :  { %v818_v49 = vor.u32 %v995_v42, %v815_v43 }
  0x31   :  { %479 = vmatmul.bf16.gmra.mxu0 %v734_v52  ;;  %v829_v52 = vld [vmem:[%s1431_s0 + $0xe0] sm:$0xf] }
  0x32   :  { %528 = vmatmul.bf16.gmra.mxu1 %v738_v53  ;;  %v1001_v53 = vld [vmem:[%s1431_s0 + $0xec] sm:$0xf0] }
  0x33   :  { %577 = vmatmul.bf16.gmra.mxu2 %v742_v54  ;;  %v999_v54 = vld [vmem:[%s1431_s0 + $0xe4] sm:$0xf]  ;;  %v830_v60 = vor.u32 %v1001_v53, %v829_v52 }
  0x34   :  { %626 = vmatmul.bf16.gmra.mxu3 %v746_v55  ;;  %v831_v55 = vld [vmem:[%s1431_s0 + $0xf0] sm:$0xf0] }
  0x35   :  { %v834_v61 = vor.u32 %v999_v54, %v831_v55 }
  0x41   :  { %484 = vmatmul.bf16.gmra.mxu0 %v750_v0  ;;  %v1347_v0 = vld [vmem:[%s1430_s2] ss:$0 sm:$0xff] }
  0x42   :  { %533 = vmatmul.bf16.gmra.mxu1 %v754_v1 }
  0x43   :  { %582 = vmatmul.bf16.gmra.mxu2 %v758_v2 }
  0x44   :  { %631 = vmatmul.bf16.gmra.mxu3 %v762_v3 }
  0x51   :  { %489 = vmatmul.bf16.gmra.mxu0 %v766_v12 }
  0x52   :  { %538 = vmatmul.bf16.gmra.mxu1 %v770_v13 }
  0x53   :  { %587 = vmatmul.bf16.gmra.mxu2 %v774_v14 }
  0x54   :  { %636 = vmatmul.bf16.gmra.mxu3 %v778_v15 }
  0x61   :  { %494 = vmatmul.bf16.gmra.mxu0 %v782_v24 }
  0x62   :  { %543 = vmatmul.bf16.gmra.mxu1 %v786_v25 }
  0x63   :  { %592 = vmatmul.bf16.gmra.mxu2 %v790_v26 }
  0x64   :  { %641 = vmatmul.bf16.gmra.mxu3 %v794_v27 }
  0x71   :  { %499 = vmatmul.bf16.gmra.mxu0 %v798_v36 }
  0x72   :  { %548 = vmatmul.bf16.gmra.mxu1 %v802_v37 }
  0x73   :  { %597 = vmatmul.bf16.gmra.mxu2 %v806_v38 }
  0x74   :  { %646 = vmatmul.bf16.gmra.mxu3 %v810_v39 }
  0x81   :  { %504 = vmatmul.bf16.gmra.mxu0 %v814_v48 }
  0x82   :  { %553 = vmatmul.bf16.gmra.mxu1 %v818_v49 }
  0x83   :  { %602 = vmatmul.bf16.gmra.mxu2 %v822_v50 }
  0x84   :  { %651 = vmatmul.bf16.gmra.mxu3 %v826_v51 }
  0x91   :  { %509 = vmatmul.bf16.gmra.mxu0 %v830_v60 }
  0x92   :  { %558 = vmatmul.bf16.gmra.mxu1 %v834_v61 }
  0x93   :  { %607 = vmatmul.bf16.gmra.mxu2 %v838_v62 }
  0x94   :  { %656 = vmatmul.bf16.gmra.mxu3 %v842_v63 }
  0x9e   :  { %v475_v1 = vpop.f32.mrf.mxu0 }
  0x9f   :  { %v524_v2 = vpop.f32.mrf.mxu1  ;;  %v476_v3 = vadd.f32 %v1347_v0, %v475_v1 }
  0xa1   :  { %v525_v4 = vadd.f32 %v524_v2, %v476_v3 }
  0xa6   :  { %v573_v5 = vpop.f32.mrf.mxu2  ;;  %v477_v8 = vpop.f32.mrf.mxu0 }
  0xa7   :  { %v622_v6 = vpop.f32.mrf.mxu3  ;;  %v574_v7 = vadd.f32 %v573_v5, %v525_v4  ;;  %v526_v9 = vpop.f32.mrf.mxu1  ;;  %v478_v11 = vadd.f32 %v1347_v0, %v477_v8 }
  0xa9   :  { %v623_v10 = vadd.f32 %v622_v6, %v574_v7  ;;  %v527_v14 = vadd.f32 %v526_v9, %v478_v11 }
  0xab   :  { %v662_v12 = vmax.f32 %v623_v10, 0.0 }
  0xad   :  { %v678_v13 = vpack.c.bf16 %v662_v12, %v662_v12 }
  0xae   :  { %v575_v15 = vpop.f32.mrf.mxu2  ;;  %v480_v18 = vpop.f32.mrf.mxu0 }
  0xaf   :  { %v624_v16 = vpop.f32.mrf.mxu3  ;;  %695 = vst.msk [vmem:[%s1432_s3] sm:$0xf] %vm694_vm0, %v678_v13  ;;  %v576_v17 = vadd.f32 %v575_v15, %v527_v14  ;;  %v529_v19 = vpop.f32.mrf.mxu1  ;;  %v481_v20 = vadd.f32 %v1347_v0, %v480_v18 }
  0xb1   :  { %v625_v21 = vadd.f32 %v624_v16, %v576_v17  ;;  %v530_v23 = vadd.f32 %v529_v19, %v481_v20 }
  0xb3   :  { %v663_v22 = vmax.f32 %v625_v21, 0.0 }
  0xb5   :  { %v679_v24 = vpack.c.bf16 %v663_v22, %v663_v22 }
  0xb6   :  { %v578_v25 = vpop.f32.mrf.mxu2  ;;  %v482_v28 = vpop.f32.mrf.mxu0 }
  0xb7   :  { %v627_v26 = vpop.f32.mrf.mxu3  ;;  %696 = vst.msk [vmem:[%s1432_s3 + $0x4] sm:$0xf] %vm694_vm0, %v679_v24  ;;  %v579_v27 = vadd.f32 %v578_v25, %v530_v23  ;;  %v531_v29 = vpop.f32.mrf.mxu1  ;;  %v483_v31 = vadd.f32 %v1347_v0, %v482_v28 }
  0xb9   :  { %v628_v30 = vadd.f32 %v627_v26, %v579_v27  ;;  %v532_v34 = vadd.f32 %v531_v29, %v483_v31 }
  0xbb   :  { %v664_v32 = vmax.f32 %v628_v30, 0.0 }
  0xbd   :  { %v680_v33 = vpack.c.bf16 %v664_v32, %v664_v32 }
  0xbe   :  { %v580_v35 = vpop.f32.mrf.mxu2  ;;  %v485_v38 = vpop.f32.mrf.mxu0 }
  0xbf   :  { %v629_v36 = vpop.f32.mrf.mxu3  ;;  %697 = vst.msk [vmem:[%s1432_s3 + $0x8] sm:$0xf] %vm694_vm0, %v680_v33  ;;  %v581_v37 = vadd.f32 %v580_v35, %v532_v34  ;;  %v534_v39 = vpop.f32.mrf.mxu1  ;;  %v486_v40 = vadd.f32 %v1347_v0, %v485_v38 }
  0xc1   :  { %v630_v41 = vadd.f32 %v629_v36, %v581_v37  ;;  %v535_v43 = vadd.f32 %v534_v39, %v486_v40 }
  0xc3   :  { %v665_v42 = vmax.f32 %v630_v41, 0.0 }
  0xc5   :  { %v681_v44 = vpack.c.bf16 %v665_v42, %v665_v42 }
  0xc6   :  { %v583_v45 = vpop.f32.mrf.mxu2  ;;  %v487_v48 = vpop.f32.mrf.mxu0 }
  0xc7   :  { %v632_v46 = vpop.f32.mrf.mxu3  ;;  %698 = vst.msk [vmem:[%s1432_s3 + $0xc] sm:$0xf] %vm694_vm0, %v681_v44  ;;  %v584_v47 = vadd.f32 %v583_v45, %v535_v43  ;;  %v536_v49 = vpop.f32.mrf.mxu1  ;;  %v488_v51 = vadd.f32 %v1347_v0, %v487_v48 }
  0xc9   :  { %v633_v50 = vadd.f32 %v632_v46, %v584_v47  ;;  %v537_v54 = vadd.f32 %v536_v49, %v488_v51 }
  0xcb   :  { %v666_v52 = vmax.f32 %v633_v50, 0.0 }
  0xcd   :  { %v682_v53 = vpack.c.bf16 %v666_v52, %v666_v52 }
  0xce   :  { %v585_v55 = vpop.f32.mrf.mxu2  ;;  %v490_v58 = vpop.f32.mrf.mxu0 }
  0xcf   :  { %v634_v56 = vpop.f32.mrf.mxu3  ;;  %699 = vst.msk [vmem:[%s1432_s3 + $0x10] sm:$0xf] %vm694_vm0, %v682_v53  ;;  %v586_v57 = vadd.f32 %v585_v55, %v537_v54  ;;  %v539_v59 = vpop.f32.mrf.mxu1  ;;  %v491_v60 = vadd.f32 %v1347_v0, %v490_v58 }
  0xd1   :  { %v635_v61 = vadd.f32 %v634_v56, %v586_v57  ;;  %v540_v63 = vadd.f32 %v539_v59, %v491_v60 }
  0xd3   :  { %v667_v62 = vmax.f32 %v635_v61, 0.0 }
  0xd5   :  { %v683_v1 = vpack.c.bf16 %v667_v62, %v667_v62 }
  0xd6   :  { %v588_v2 = vpop.f32.mrf.mxu2  ;;  %v492_v5 = vpop.f32.mrf.mxu0 }
  0xd7   :  { %v637_v3 = vpop.f32.mrf.mxu3  ;;  %700 = vst.msk [vmem:[%s1432_s3 + $0x14] sm:$0xf] %vm694_vm0, %v683_v1  ;;  %v589_v4 = vadd.f32 %v588_v2, %v540_v63  ;;  %v541_v6 = vpop.f32.mrf.mxu1  ;;  %v493_v8 = vadd.f32 %v1347_v0, %v492_v5 }
  0xd9   :  { %v638_v7 = vadd.f32 %v637_v3, %v589_v4  ;;  %v542_v11 = vadd.f32 %v541_v6, %v493_v8 }
  0xdb   :  { %v668_v9 = vmax.f32 %v638_v7, 0.0 }
  0xdd   :  { %v684_v10 = vpack.c.bf16 %v668_v9, %v668_v9 }
  0xde   :  { %v590_v12 = vpop.f32.mrf.mxu2  ;;  %v495_v15 = vpop.f32.mrf.mxu0 }
  0xdf   :  { %v639_v13 = vpop.f32.mrf.mxu3  ;;  %701 = vst.msk [vmem:[%s1432_s3 + $0x18] sm:$0xf] %vm694_vm0, %v684_v10  ;;  %v591_v14 = vadd.f32 %v590_v12, %v542_v11  ;;  %v544_v16 = vpop.f32.mrf.mxu1  ;;  %v496_v17 = vadd.f32 %v1347_v0, %v495_v15 }
  0xe1   :  { %v640_v18 = vadd.f32 %v639_v13, %v591_v14  ;;  %v545_v20 = vadd.f32 %v544_v16, %v496_v17 }
  0xe3   :  { %v669_v19 = vmax.f32 %v640_v18, 0.0 }
  0xe5   :  { %v685_v21 = vpack.c.bf16 %v669_v19, %v669_v19 }
  0xe6   :  { %v593_v22 = vpop.f32.mrf.mxu2  ;;  %v497_v25 = vpop.f32.mrf.mxu0 }
  0xe7   :  { %v642_v23 = vpop.f32.mrf.mxu3  ;;  %702 = vst.msk [vmem:[%s1432_s3 + $0x1c] sm:$0xf] %vm694_vm0, %v685_v21  ;;  %v594_v24 = vadd.f32 %v593_v22, %v545_v20  ;;  %v546_v26 = vpop.f32.mrf.mxu1  ;;  %v498_v28 = vadd.f32 %v1347_v0, %v497_v25 }
  0xe9   :  { %v643_v27 = vadd.f32 %v642_v23, %v594_v24  ;;  %v547_v31 = vadd.f32 %v546_v26, %v498_v28 }
  0xeb   :  { %v670_v29 = vmax.f32 %v643_v27, 0.0 }
  0xed   :  { %v686_v30 = vpack.c.bf16 %v670_v29, %v670_v29 }
  0xee   :  { %v595_v32 = vpop.f32.mrf.mxu2  ;;  %v500_v35 = vpop.f32.mrf.mxu0 }
  0xef   :  { %v644_v33 = vpop.f32.mrf.mxu3  ;;  %703 = vst.msk [vmem:[%s1432_s3 + $0x20] sm:$0xf] %vm694_vm0, %v686_v30  ;;  %v596_v34 = vadd.f32 %v595_v32, %v547_v31  ;;  %v549_v36 = vpop.f32.mrf.mxu1  ;;  %v501_v37 = vadd.f32 %v1347_v0, %v500_v35 }
  0xf1   :  { %v645_v38 = vadd.f32 %v644_v33, %v596_v34  ;;  %v550_v40 = vadd.f32 %v549_v36, %v501_v37 }
  0xf3   :  { %v671_v39 = vmax.f32 %v645_v38, 0.0 }
  0xf5   :  { %v687_v41 = vpack.c.bf16 %v671_v39, %v671_v39 }
  0xf6   :  { %v598_v42 = vpop.f32.mrf.mxu2  ;;  %v502_v45 = vpop.f32.mrf.mxu0 }
  0xf7   :  { %v647_v43 = vpop.f32.mrf.mxu3  ;;  %704 = vst.msk [vmem:[%s1432_s3 + $0x24] sm:$0xf] %vm694_vm0, %v687_v41  ;;  %v599_v44 = vadd.f32 %v598_v42, %v550_v40  ;;  %v551_v46 = vpop.f32.mrf.mxu1  ;;  %v503_v48 = vadd.f32 %v1347_v0, %v502_v45 }
  0xf9   :  { %v648_v47 = vadd.f32 %v647_v43, %v599_v44  ;;  %v552_v51 = vadd.f32 %v551_v46, %v503_v48 }
  0xfb   :  { %v672_v49 = vmax.f32 %v648_v47, 0.0 }
  0xfd   :  { %v688_v50 = vpack.c.bf16 %v672_v49, %v672_v49 }
  0xfe   :  { %v600_v52 = vpop.f32.mrf.mxu2  ;;  %v505_v55 = vpop.f32.mrf.mxu0 }
  0xff   :  { %v649_v53 = vpop.f32.mrf.mxu3  ;;  %705 = vst.msk [vmem:[%s1432_s3 + $0x28] sm:$0xf] %vm694_vm0, %v688_v50  ;;  %v601_v54 = vadd.f32 %v600_v52, %v552_v51  ;;  %v554_v56 = vpop.f32.mrf.mxu1  ;;  %v506_v57 = vadd.f32 %v1347_v0, %v505_v55 }
 0x101   :  { %v650_v58 = vadd.f32 %v649_v53, %v601_v54  ;;  %v555_v60 = vadd.f32 %v554_v56, %v506_v57 }
 0x103   :  { %v673_v59 = vmax.f32 %v650_v58, 0.0 }
 0x105   :  { %v689_v61 = vpack.c.bf16 %v673_v59, %v673_v59 }
 0x106   :  { %v603_v62 = vpop.f32.mrf.mxu2  ;;  %v507_v2 = vpop.f32.mrf.mxu0 }
 0x107   :  { %v652_v63 = vpop.f32.mrf.mxu3  ;;  %706 = vst.msk [vmem:[%s1432_s3 + $0x2c] sm:$0xf] %vm694_vm0, %v689_v61  ;;  %v604_v1 = vadd.f32 %v603_v62, %v555_v60  ;;  %v556_v3 = vpop.f32.mrf.mxu1  ;;  %v508_v5 = vadd.f32 %v1347_v0, %v507_v2 }
 0x109   :  { %v653_v4 = vadd.f32 %v652_v63, %v604_v1  ;;  %v557_v8 = vadd.f32 %v556_v3, %v508_v5 }
 0x10b   :  { %v674_v6 = vmax.f32 %v653_v4, 0.0 }
 0x10d   :  { %v690_v7 = vpack.c.bf16 %v674_v6, %v674_v6 }
 0x10e   :  { %v605_v9 = vpop.f32.mrf.mxu2  ;;  %v510_v12 = vpop.f32.mrf.mxu0 }
 0x10f   :  { %v654_v10 = vpop.f32.mrf.mxu3  ;;  %707 = vst.msk [vmem:[%s1432_s3 + $0x30] sm:$0xf] %vm694_vm0, %v690_v7  ;;  %v606_v11 = vadd.f32 %v605_v9, %v557_v8  ;;  %v511_v13 = vadd.f32 %v1347_v0, %v510_v12  ;;  %v559_v15 = vpop.f32.mrf.mxu1 }
 0x111   :  { %v655_v14 = vadd.f32 %v654_v10, %v606_v11  ;;  %v560_v17 = vadd.f32 %v559_v15, %v511_v13 }
 0x113   :  { %v675_v16 = vmax.f32 %v655_v14, 0.0 }
 0x115   :  { %v691_v18 = vpack.c.bf16 %v675_v16, %v675_v16 }
 0x116   :  { %v608_v19 = vpop.f32.mrf.mxu2  ;;  %v512_v22 = vpop.f32.mrf.mxu0 }
 0x117   :  { %v657_v20 = vpop.f32.mrf.mxu3  ;;  %708 = vst.msk [vmem:[%s1432_s3 + $0x34] sm:$0xf] %vm694_vm0, %v691_v18  ;;  %v609_v21 = vadd.f32 %v608_v19, %v560_v17  ;;  %v513_v24 = vadd.f32 %v1347_v0, %v512_v22  ;;  %v561_v26 = vpop.f32.mrf.mxu1 }
 0x119   :  { %v658_v23 = vadd.f32 %v657_v20, %v609_v21  ;;  %v562_v28 = vadd.f32 %v561_v26, %v513_v24 }
 0x11b   :  { %v676_v25 = vmax.f32 %v658_v23, 0.0 }
 0x11d   :  { %v692_v27 = vpack.c.bf16 %v676_v25, %v676_v25 }
 0x11e   :  { %v610_v29 = vpop.f32.mrf.mxu2 }
 0x11f   :  { %709 = vst.msk [vmem:[%s1432_s3 + $0x38] sm:$0xf] %vm694_vm0, %v692_v27  ;;  %v611_v30 = vadd.f32 %v610_v29, %v562_v28  ;;  %v659_v31 = vpop.f32.mrf.mxu3 }
 0x121   :  { %v660_v32 = vadd.f32 %v659_v31, %v611_v30 }
 0x123   :  { %v677_v33 = vmax.f32 %v660_v32, 0.0 }
 0x125   :  { %v693_v34 = vpack.c.bf16 %v677_v33, %v677_v33 }
 0x127   :  { %710 = vst.msk [vmem:[%s1432_s3 + $0x3c] sm:$0xf] %vm694_vm0, %v693_v34 }

// kernel: beta_vae64_forward.13
= control target key start
LH: loop header
LB: loop body
LE: loop exit
PB: predicated region body
PF: predicated region fallthrough
CT: control target
= control target key end

     0   :  { %vm201_vm0 = vcmask 261120   ;;  %vm273_vm1 = vcmask 519168   ;;  %s544_s1 = inlined_call_operand.vmem [shape: bf16[288,64], index: 1, kind: input, shape index: {}]   ;;  %s545_s0 = inlined_call_operand.vmem [shape: bf16[32,288], index: 0, kind: input, shape index: {}]   ;;  %s546_s2 = inlined_call_operand.vmem [shape: f32[1,64], index: 2, kind: input, shape index: {}]   ;;  %s547_s3 = inlined_call_operand.vmem [shape: bf16[32,64], index: 3, kind: output, shape index: {}]  }
   0x1   :  { %v393_v0 = vld [vmem:[%s544_s1 + $0x38] sm:$0xff]  ;;  %v392_v2 = vld [vmem:[%s544_s1 + $0x30] sm:$0xff]  ;;  %v403_v3 = vld [vmem:[%s544_s1 + $0x88] sm:$0xff] }
   0x2   :  { %v401_v1 = vld [vmem:[%s544_s1 + $0x78] sm:$0xff]  ;;  %208 = vmatpush.bf16.msra.mxu0 %v393_v0  ;;  %404 = vmatpush.bf16.msra.mxu3 %v393_v0  ;;  %v400_v4 = vld [vmem:[%s544_s1 + $0x70] sm:$0xff]  ;;  %v402_v5 = vld [vmem:[%s544_s1 + $0x80] sm:$0xff] }
   0x3   :  { %227 = vmatpush.bf16.msra.mxu1 %v401_v1  ;;  %252 = vmatpush.bf16.msra.mxu2 %v403_v3  ;;  %v292_v6 = vld [vmem:[%s545_s0 + $0x8] sm:$0xf]  ;;  %v382_v7 = vld [vmem:[%s545_s0 + $0x10] sm:$0xf0]  ;;  %v390_v11 = vld [vmem:[%s544_s1 + $0x20] sm:$0xff] }
   0x4   :  { %v391_v8 = vld [vmem:[%s544_s1 + $0x28] sm:$0xff]  ;;  %v293_v10 = vor.u32 %v382_v7, %v292_v6  ;;  %v398_v12 = vld [vmem:[%s544_s1 + $0x60] sm:$0xff]  ;;  %v389_v13 = vld [vmem:[%s544_s1 + $0x18] sm:$0xff] }
   0x5   :  { %v399_v9 = vld [vmem:[%s544_s1 + $0x68] sm:$0xff]  ;;  %v397_v14 = vld [vmem:[%s544_s1 + $0x58] sm:$0xff]  ;;  %v388_v15 = vld [vmem:[%s544_s1 + $0x10] sm:$0xff] }
   0x6   :  { %209 = vmatpush.bf16.msra.mxu0 %v392_v2  ;;  %405 = vmatpush.bf16.msra.mxu3 %v392_v2  ;;  %v396_v16 = vld [vmem:[%s544_s1 + $0x50] sm:$0xff]  ;;  %v304_v17 = vld [vmem:[%s545_s0 + $0x20] sm:$0xf]  ;;  %v385_v18 = vld [vmem:[%s545_s0 + $0x28] sm:$0xf0] }
   0x7   :  { %228 = vmatpush.bf16.msra.mxu1 %v400_v4  ;;  %253 = vmatpush.bf16.msra.mxu2 %v402_v5  ;;  %v387_v19 = vld [vmem:[%s544_s1 + $0x8] sm:$0xff]  ;;  %v305_v21 = vor.u32 %v385_v18, %v304_v17  ;;  %v386_v22 = vld [vmem:[%s544_s1] sm:$0xff]  ;;  %v296_v25 = vld [vmem:[%s545_s0 + $0x18] sm:$0xf] }
   0x8   :  { %v395_v20 = vld [vmem:[%s544_s1 + $0x48] sm:$0xff]  ;;  %v284_v23 = vld [vmem:[%s545_s0] sm:$0xf]  ;;  %v384_v26 = vld [vmem:[%s545_s0 + $0x20] sm:$0xf0] }
   0x9   :  { %v381_v24 = vld [vmem:[%s545_s0 + $0x8] sm:$0xf0]  ;;  %v394_v27 = vld [vmem:[%s544_s1 + $0x40] sm:$0xff]  ;;  %v286_v29 = vld [vmem:[%s545_s0 + $0xc] sm:$0xf0]  ;;  %v297_v31 = vor.u32 %v384_v26, %v296_v25 }
   0xa   :  { %210 = vmatpush.bf16.msra.mxu0 %v391_v8  ;;  %406 = vmatpush.bf16.msra.mxu3 %v391_v8  ;;  %v380_v28 = vld [vmem:[%s545_s0 + $0x4] sm:$0xf]  ;;  %v285_v30 = vor.u32 %v381_v24, %v284_v23  ;;  %v383_v33 = vld [vmem:[%s545_s0 + $0x1c] sm:$0xf]  ;;  %v298_v34 = vld [vmem:[%s545_s0 + $0x24] sm:$0xf0] }
   0xb   :  { %229 = vmatpush.bf16.msra.mxu1 %v399_v9  ;;  %378 = vmatmul.msk.bf16.vlgmr.msra.gmra.mxu2 %vm201_vm0, %v293_v10  ;;  %v289_v32 = vor.u32 %v380_v28, %v286_v29  ;;  %v301_v35 = vor.u32 %v383_v33, %v298_v34  ;;  %v412_v37 = vld [vmem:[%s546_s2] ss:$0 sm:$0xff] }
   0xe   :  { %211 = vmatpush.bf16.msra.mxu0 %v390_v11  ;;  %407 = vmatpush.bf16.msra.mxu3 %v390_v11 }
   0xf   :  { %230 = vmatpush.bf16.msra.mxu1 %v398_v12 }
  0x12   :  { %212 = vmatpush.bf16.msra.mxu0 %v389_v13  ;;  %408 = vmatpush.bf16.msra.mxu3 %v389_v13 }
  0x13   :  { %231 = vmatpush.bf16.msra.mxu1 %v397_v14 }
  0x16   :  { %213 = vmatpush.bf16.msra.mxu0 %v388_v15  ;;  %409 = vmatpush.bf16.msra.mxu3 %v388_v15 }
  0x17   :  { %232 = vmatpush.bf16.msra.mxu1 %v396_v16 }
  0x1a   :  { %214 = vmatpush.bf16.msra.mxu0 %v387_v19  ;;  %410 = vmatpush.bf16.msra.mxu3 %v387_v19 }
  0x1b   :  { %233 = vmatpush.bf16.msra.mxu1 %v395_v20  ;;  %379 = vmatmul.msk.bf16.gmra.mxu2 %vm201_vm0, %v305_v21 }
  0x1e   :  { %215 = vmatpush.bf16.msra.mxu0 %v386_v22  ;;  %411 = vmatpush.bf16.msra.mxu3 %v386_v22 }
  0x1f   :  { %234 = vmatpush.bf16.msra.mxu1 %v394_v27 }
  0x21   :  { %216 = vmatmul.bf16.vlgmr.msra.gmra.mxu0 %v285_v30  ;;  %221 = vmatmul.bf16.vlgmr.msra.gmra.mxu3 %v297_v31 }
  0x22   :  { %235 = vmatmul.bf16.vlgmr.msra.gmra.mxu1 %v289_v32 }
  0x32   :  { %240 = vmatmul.bf16.gmra.mxu1 %v301_v35 }
  0x8e   :  { %v255_v36 = vpop.f32.mrf.mxu2 }
  0x96   :  { %v257_v44 = vpop.f32.mrf.mxu2 }
  0x9e   :  { %v217_v38 = vpop.f32.mrf.mxu0  ;;  %v260_v55 = vpop.f32.mrf.mxu2 }
  0x9f   :  { %v218_v39 = vadd.f32 %v412_v37, %v217_v38  ;;  %v236_v40 = vpop.f32.mrf.mxu1 }
  0xa1   :  { %v237_v41 = vadd.f32 %v236_v40, %v218_v39 }
  0xa3   :  { %v256_v42 = vadd.f32 %v255_v36, %v237_v41 }
  0xa4   :  { %v222_v49 = vpop.f32.mrf.mxu3 }
  0xa5   :  { %v265_v43 = vmax.f32 %v256_v42, 0.0  ;;  %v223_v52 = vadd.f32 %v412_v37, %v222_v49 }
  0xa6   :  { %v219_v45 = vpop.f32.mrf.mxu0  ;;  %v262_v1 = vpop.f32.mrf.mxu2 }
  0xa7   :  { %v269_v46 = vpack.c.bf16 %v265_v43, %v265_v43  ;;  %v220_v47 = vadd.f32 %v412_v37, %v219_v45  ;;  %v238_v48 = vpop.f32.mrf.mxu1 }
  0xa9   :  { %274 = vst.msk [vmem:[%s547_s3] sm:$0xf] %vm273_vm1, %v269_v46  ;;  %v239_v50 = vadd.f32 %v238_v48, %v220_v47 }
  0xab   :  { %v258_v51 = vadd.f32 %v257_v44, %v239_v50 }
  0xac   :  { %v224_v59 = vpop.f32.mrf.mxu3 }
  0xad   :  { %v266_v53 = vmax.f32 %v258_v51, 0.0  ;;  %v225_v61 = vadd.f32 %v412_v37, %v224_v59 }
  0xaf   :  { %v270_v54 = vpack.c.bf16 %v266_v53, %v266_v53  ;;  %v241_v56 = vpop.f32.mrf.mxu1 }
  0xb0   :  { %v242_v57 = vadd.f32 %v241_v56, %v223_v52 }
  0xb1   :  { %275 = vst.msk [vmem:[%s547_s3 + $0x4] sm:$0xf] %vm273_vm1, %v270_v54 }
  0xb2   :  { %v261_v58 = vadd.f32 %v260_v55, %v242_v57 }
  0xb4   :  { %v267_v60 = vmax.f32 %v261_v58, 0.0 }
  0xb6   :  { %v271_v62 = vpack.c.bf16 %v267_v60, %v267_v60 }
  0xb7   :  { %v243_v63 = vpop.f32.mrf.mxu1 }
  0xb8   :  { %276 = vst.msk [vmem:[%s547_s3 + $0x8] sm:$0xf] %vm273_vm1, %v271_v62  ;;  %v244_v0 = vadd.f32 %v243_v63, %v225_v61 }
  0xba   :  { %v263_v2 = vadd.f32 %v262_v1, %v244_v0 }
  0xbc   :  { %v268_v3 = vmax.f32 %v263_v2, 0.0 }
  0xbe   :  { %v272_v4 = vpack.c.bf16 %v268_v3, %v268_v3 }
  0xc0   :  { %277 = vst.msk [vmem:[%s547_s3 + $0xc] sm:$0xf] %vm273_vm1, %v272_v4 }

// kernel: beta_vae64_forward.14
= control target key start
LH: loop header
LB: loop body
LE: loop exit
PB: predicated region body
PF: predicated region fallthrough
CT: control target
= control target key end

     0   :  { %vm668_vm0 = vcmask 519168   ;;  %s1225_s1 = inlined_call_operand.vmem [shape: bf16[1024,64], index: 1, kind: input, shape index: {}]   ;;  %s1226_s2 = inlined_call_operand.vmem [shape: f32[1,64], index: 2, kind: input, shape index: {}]   ;;  %s1227_s0 = inlined_call_operand.vmem [shape: bf16[8,1024], index: 0, kind: input, shape index: {}]   ;;  %s1228_s3 = inlined_call_operand.vmem [shape: bf16[8,64], index: 3, kind: output, shape index: {}]  }
   0x1   :  { %v937_v0 = vld [vmem:[%s1225_s1 + $0x38] sm:$0xff]  ;;  %v936_v4 = vld [vmem:[%s1225_s1 + $0x30] sm:$0xff]  ;;  %v935_v8 = vld [vmem:[%s1225_s1 + $0x28] sm:$0xff] }
   0x2   :  { %v945_v1 = vld [vmem:[%s1225_s1 + $0x78] sm:$0xff]  ;;  %562 = vmatpush.bf16.msra.mxu0 %v937_v0  ;;  %v944_v5 = vld [vmem:[%s1225_s1 + $0x70] sm:$0xff]  ;;  %v943_v9 = vld [vmem:[%s1225_s1 + $0x68] sm:$0xff] }
   0x3   :  { %v953_v2 = vld [vmem:[%s1225_s1 + $0xb8] sm:$0xff]  ;;  %575 = vmatpush.bf16.msra.mxu1 %v945_v1  ;;  %v952_v6 = vld [vmem:[%s1225_s1 + $0xb0] sm:$0xff]  ;;  %v951_v10 = vld [vmem:[%s1225_s1 + $0xa8] sm:$0xff] }
   0x4   :  { %v961_v3 = vld [vmem:[%s1225_s1 + $0xf8] sm:$0xff]  ;;  %588 = vmatpush.bf16.msra.mxu2 %v953_v2  ;;  %v960_v7 = vld [vmem:[%s1225_s1 + $0xf0] sm:$0xff]  ;;  %v959_v11 = vld [vmem:[%s1225_s1 + $0xe8] sm:$0xff] }
   0x5   :  { %601 = vmatpush.bf16.msra.mxu3 %v961_v3  ;;  %v934_v12 = vld [vmem:[%s1225_s1 + $0x20] sm:$0xff]  ;;  %v933_v16 = vld [vmem:[%s1225_s1 + $0x18] sm:$0xff]  ;;  %v932_v20 = vld [vmem:[%s1225_s1 + $0x10] sm:$0xff] }
   0x6   :  { %563 = vmatpush.bf16.msra.mxu0 %v936_v4  ;;  %v942_v13 = vld [vmem:[%s1225_s1 + $0x60] sm:$0xff]  ;;  %v941_v17 = vld [vmem:[%s1225_s1 + $0x58] sm:$0xff]  ;;  %v940_v21 = vld [vmem:[%s1225_s1 + $0x50] sm:$0xff] }
   0x7   :  { %576 = vmatpush.bf16.msra.mxu1 %v944_v5  ;;  %v950_v14 = vld [vmem:[%s1225_s1 + $0xa0] sm:$0xff]  ;;  %v949_v18 = vld [vmem:[%s1225_s1 + $0x98] sm:$0xff]  ;;  %v948_v22 = vld [vmem:[%s1225_s1 + $0x90] sm:$0xff] }
   0x8   :  { %589 = vmatpush.bf16.msra.mxu2 %v952_v6  ;;  %v958_v15 = vld [vmem:[%s1225_s1 + $0xe0] sm:$0xff]  ;;  %v957_v19 = vld [vmem:[%s1225_s1 + $0xd8] sm:$0xff]  ;;  %v956_v23 = vld [vmem:[%s1225_s1 + $0xd0] sm:$0xff] }
   0x9   :  { %602 = vmatpush.bf16.msra.mxu3 %v960_v7  ;;  %v931_v24 = vld [vmem:[%s1225_s1 + $0x8] sm:$0xff]  ;;  %v14_v29 = vld [vmem:[%s1227_s0] sm:$0xff]  ;;  %v969_v38 = vld [vmem:[%s1225_s1 + $0x138] sm:$0xff] }
   0xa   :  { %564 = vmatpush.bf16.msra.mxu0 %v935_v8  ;;  %v939_v25 = vld [vmem:[%s1225_s1 + $0x48] sm:$0xff]  ;;  %v930_v30 = vld [vmem:[%s1225_s1] sm:$0xff]  ;;  %v154_v36 = vunpack.c.l.b16 %v14_v29  ;;  %v155_v37 = vunpack.c.h.b16 %v14_v29  ;;  %v977_v39 = vld [vmem:[%s1225_s1 + $0x178] sm:$0xff] }
   0xb   :  { %577 = vmatpush.bf16.msra.mxu1 %v943_v9  ;;  %v947_v26 = vld [vmem:[%s1225_s1 + $0x88] sm:$0xff]  ;;  %v938_v31 = vld [vmem:[%s1225_s1 + $0x40] sm:$0xff]  ;;  %v985_v40 = vld [vmem:[%s1225_s1 + $0x1b8] sm:$0xff] }
   0xc   :  { %590 = vmatpush.bf16.msra.mxu2 %v951_v10  ;;  %v955_v27 = vld [vmem:[%s1225_s1 + $0xc8] sm:$0xff]  ;;  %v946_v34 = vld [vmem:[%s1225_s1 + $0x80] sm:$0xff]  ;;  %v993_v41 = vld [vmem:[%s1225_s1 + $0x1f8] sm:$0xff]  ;;  %v162_v44 = vpack.c.b16 %v154_v36, %v154_v36  ;;  %v163_v45 = vpack.c.b16 %v155_v37, %v155_v37 }
   0xd   :  { %603 = vmatpush.bf16.msra.mxu3 %v959_v11  ;;  %v15_v28 = vld [vmem:[%s1227_s0 + $0x8] sm:$0xff]  ;;  %v954_v35 = vld [vmem:[%s1225_s1 + $0xc0] sm:$0xff]  ;;  %v968_v46 = vld [vmem:[%s1225_s1 + $0x130] sm:$0xff] }
   0xe   :  { %565 = vmatpush.bf16.msra.mxu0 %v934_v12  ;;  %v156_v32 = vunpack.c.l.b16 %v15_v28  ;;  %v157_v33 = vunpack.c.h.b16 %v15_v28  ;;  %v976_v47 = vld [vmem:[%s1225_s1 + $0x170] sm:$0xff]  ;;  %v967_v50 = vld [vmem:[%s1225_s1 + $0x128] sm:$0xff]  ;;  %v966_v54 = vld [vmem:[%s1225_s1 + $0x120] sm:$0xff] }
   0xf   :  { %578 = vmatpush.bf16.msra.mxu1 %v942_v13  ;;  %v984_v48 = vld [vmem:[%s1225_s1 + $0x1b0] sm:$0xff]  ;;  %v975_v51 = vld [vmem:[%s1225_s1 + $0x168] sm:$0xff]  ;;  %v974_v55 = vld [vmem:[%s1225_s1 + $0x160] sm:$0xff] }
  0x10   :  { %591 = vmatpush.bf16.msra.mxu2 %v950_v14  ;;  %v164_v42 = vpack.c.b16 %v156_v32, %v156_v32  ;;  %v165_v43 = vpack.c.b16 %v157_v33, %v157_v33  ;;  %v992_v49 = vld [vmem:[%s1225_s1 + $0x1f0] sm:$0xff]  ;;  %v983_v52 = vld [vmem:[%s1225_s1 + $0x1a8] sm:$0xff]  ;;  %v982_v56 = vld [vmem:[%s1225_s1 + $0x1a0] sm:$0xff] }
  0x11   :  { %604 = vmatpush.bf16.msra.mxu3 %v958_v15  ;;  %v991_v53 = vld [vmem:[%s1225_s1 + $0x1e8] sm:$0xff]  ;;  %v990_v57 = vld [vmem:[%s1225_s1 + $0x1e0] sm:$0xff]  ;;  %v965_v58 = vld [vmem:[%s1225_s1 + $0x118] sm:$0xff] }
  0x12   :  { %566 = vmatpush.bf16.msra.mxu0 %v933_v16  ;;  %v973_v59 = vld [vmem:[%s1225_s1 + $0x158] sm:$0xff]  ;;  %v964_v62 = vld [vmem:[%s1225_s1 + $0x110] sm:$0xff]  ;;  %v963_v2 = vld [vmem:[%s1225_s1 + $0x108] sm:$0xff] }
  0x13   :  { %579 = vmatpush.bf16.msra.mxu1 %v941_v17  ;;  %v981_v60 = vld [vmem:[%s1225_s1 + $0x198] sm:$0xff]  ;;  %v972_v63 = vld [vmem:[%s1225_s1 + $0x150] sm:$0xff]  ;;  %v971_v3 = vld [vmem:[%s1225_s1 + $0x148] sm:$0xff] }
  0x14   :  { %592 = vmatpush.bf16.msra.mxu2 %v949_v18  ;;  %v989_v61 = vld [vmem:[%s1225_s1 + $0x1d8] sm:$0xff]  ;;  %v980_v0 = vld [vmem:[%s1225_s1 + $0x190] sm:$0xff]  ;;  %v979_v5 = vld [vmem:[%s1225_s1 + $0x188] sm:$0xff] }
  0x15   :  { %605 = vmatpush.bf16.msra.mxu3 %v957_v19  ;;  %v988_v1 = vld [vmem:[%s1225_s1 + $0x1d0] sm:$0xff]  ;;  %v987_v6 = vld [vmem:[%s1225_s1 + $0x1c8] sm:$0xff]  ;;  %v17_v7 = vld [vmem:[%s1227_s0 + $0x18] sm:$0xff] }
  0x16   :  { %567 = vmatpush.bf16.msra.mxu0 %v932_v20  ;;  %v16_v4 = vld [vmem:[%s1227_s0 + $0x10] sm:$0xff]  ;;  %v962_v10 = vld [vmem:[%s1225_s1 + $0x100] sm:$0xff]  ;;  %v160_v12 = vunpack.c.l.b16 %v17_v7  ;;  %v161_v13 = vunpack.c.h.b16 %v17_v7 }
  0x17   :  { %580 = vmatpush.bf16.msra.mxu1 %v940_v21  ;;  %v158_v8 = vunpack.c.l.b16 %v16_v4  ;;  %v159_v9 = vunpack.c.h.b16 %v16_v4  ;;  %v970_v11 = vld [vmem:[%s1225_s1 + $0x140] sm:$0xff] }
  0x18   :  { %593 = vmatpush.bf16.msra.mxu2 %v948_v22  ;;  %v978_v14 = vld [vmem:[%s1225_s1 + $0x180] sm:$0xff]  ;;  %v168_v18 = vpack.c.b16 %v160_v12, %v160_v12  ;;  %v169_v19 = vpack.c.b16 %v161_v13, %v161_v13 }
  0x19   :  { %606 = vmatpush.bf16.msra.mxu3 %v956_v23  ;;  %v986_v15 = vld [vmem:[%s1225_s1 + $0x1c0] sm:$0xff]  ;;  %v166_v16 = vpack.c.b16 %v158_v8, %v158_v8  ;;  %v167_v17 = vpack.c.b16 %v159_v9, %v159_v9 }
  0x1a   :  { %568 = vmatpush.bf16.msra.mxu0 %v931_v24 }
  0x1b   :  { %581 = vmatpush.bf16.msra.mxu1 %v939_v25 }
  0x1c   :  { %594 = vmatpush.bf16.msra.mxu2 %v947_v26  ;;  %v994_v26 = vld [vmem:[%s1226_s2] ss:$0 sm:$0xff] }
  0x1d   :  { %607 = vmatpush.bf16.msra.mxu3 %v955_v27 }
  0x1e   :  { %569 = vmatpush.bf16.msra.mxu0 %v930_v30 }
  0x1f   :  { %582 = vmatpush.bf16.msra.mxu1 %v938_v31 }
  0x20   :  { %595 = vmatpush.bf16.msra.mxu2 %v946_v34 }
  0x21   :  { %608 = vmatpush.bf16.msra.mxu3 %v954_v35  ;;  %570 = vmatmul.bf16.vlgmr.msra.gmra.mxu0 %v162_v44 }
  0x22   :  { %614 = vmatpush.bf16.msrb.mxu0 %v969_v38  ;;  %583 = vmatmul.bf16.vlgmr.msra.gmra.mxu1 %v163_v45 }
  0x23   :  { %627 = vmatpush.bf16.msrb.mxu1 %v977_v39  ;;  %596 = vmatmul.bf16.vlgmr.msra.gmra.mxu2 %v164_v42 }
  0x24   :  { %640 = vmatpush.bf16.msrb.mxu2 %v985_v40  ;;  %609 = vmatmul.bf16.vlgmr.msra.gmra.mxu3 %v165_v43 }
  0x25   :  { %653 = vmatpush.bf16.msrb.mxu3 %v993_v41 }
  0x26   :  { %615 = vmatpush.bf16.msrb.mxu0 %v968_v46 }
  0x27   :  { %628 = vmatpush.bf16.msrb.mxu1 %v976_v47 }
  0x28   :  { %641 = vmatpush.bf16.msrb.mxu2 %v984_v48 }
  0x29   :  { %654 = vmatpush.bf16.msrb.mxu3 %v992_v49 }
  0x2a   :  { %616 = vmatpush.bf16.msrb.mxu0 %v967_v50 }
  0x2b   :  { %629 = vmatpush.bf16.msrb.mxu1 %v975_v51 }
  0x2c   :  { %642 = vmatpush.bf16.msrb.mxu2 %v983_v52 }
  0x2d   :  { %655 = vmatpush.bf16.msrb.mxu3 %v991_v53 }
  0x2e   :  { %617 = vmatpush.bf16.msrb.mxu0 %v966_v54 }
  0x2f   :  { %630 = vmatpush.bf16.msrb.mxu1 %v974_v55 }
  0x30   :  { %643 = vmatpush.bf16.msrb.mxu2 %v982_v56 }
  0x31   :  { %656 = vmatpush.bf16.msrb.mxu3 %v990_v57 }
  0x32   :  { %618 = vmatpush.bf16.msrb.mxu0 %v965_v58 }
  0x33   :  { %631 = vmatpush.bf16.msrb.mxu1 %v973_v59 }
  0x34   :  { %644 = vmatpush.bf16.msrb.mxu2 %v981_v60 }
  0x35   :  { %657 = vmatpush.bf16.msrb.mxu3 %v989_v61 }
  0x36   :  { %619 = vmatpush.bf16.msrb.mxu0 %v964_v62 }
  0x37   :  { %632 = vmatpush.bf16.msrb.mxu1 %v972_v63 }
  0x38   :  { %645 = vmatpush.bf16.msrb.mxu2 %v980_v0 }
  0x39   :  { %658 = vmatpush.bf16.msrb.mxu3 %v988_v1 }
  0x3a   :  { %620 = vmatpush.bf16.msrb.mxu0 %v963_v2 }
  0x3b   :  { %633 = vmatpush.bf16.msrb.mxu1 %v971_v3 }
  0x3c   :  { %646 = vmatpush.bf16.msrb.mxu2 %v979_v5 }
  0x3d   :  { %659 = vmatpush.bf16.msrb.mxu3 %v987_v6 }
  0x3e   :  { %621 = vmatpush.bf16.msrb.mxu0 %v962_v10 }
  0x3f   :  { %634 = vmatpush.bf16.msrb.mxu1 %v970_v11 }
  0x40   :  { %647 = vmatpush.bf16.msrb.mxu2 %v978_v14 }
  0x41   :  { %660 = vmatpush.bf16.msrb.mxu3 %v986_v15  ;;  %622 = vmatmul.bf16.vlgmr.msrb.gmra.mxu0 %v166_v16 }
  0x42   :  { %635 = vmatmul.bf16.vlgmr.msrb.gmra.mxu1 %v167_v17 }
  0x43   :  { %648 = vmatmul.bf16.vlgmr.msrb.gmra.mxu2 %v168_v18 }
  0x44   :  { %661 = vmatmul.bf16.vlgmr.msrb.gmra.mxu3 %v169_v19 }
  0x9e   :  { %v571_v20 = vpop.f32.mrf.mxu0 }
  0x9f   :  { %v584_v21 = vpop.f32.mrf.mxu1  ;;  %v572_v29 = vadd.f32 %v994_v26, %v571_v20 }
  0xa1   :  { %v585_v30 = vadd.f32 %v584_v21, %v572_v29 }
  0xa6   :  { %v597_v22 = vpop.f32.mrf.mxu2  ;;  %v573_v24 = vpop.f32.mrf.mxu0 }
  0xa7   :  { %v610_v23 = vpop.f32.mrf.mxu3  ;;  %v586_v25 = vpop.f32.mrf.mxu1  ;;  %v598_v31 = vadd.f32 %v597_v22, %v585_v30 }
  0xa9   :  { %v611_v32 = vadd.f32 %v610_v23, %v598_v31 }
  0xae   :  { %v599_v27 = vpop.f32.mrf.mxu2 }
  0xaf   :  { %v612_v28 = vpop.f32.mrf.mxu3 }
  0xbe   :  { %v623_v33 = vpop.f32.mrf.mxu0 }
  0xbf   :  { %v636_v34 = vpop.f32.mrf.mxu1  ;;  %v624_v35 = vadd.f32 %v623_v33, %v611_v32 }
  0xc1   :  { %v637_v36 = vadd.f32 %v636_v34, %v624_v35 }
  0xc6   :  { %v649_v37 = vpop.f32.mrf.mxu2  ;;  %v625_v40 = vpop.f32.mrf.mxu0 }
  0xc7   :  { %v662_v38 = vpop.f32.mrf.mxu3  ;;  %v650_v39 = vadd.f32 %v649_v37, %v637_v36  ;;  %v638_v41 = vpop.f32.mrf.mxu1 }
  0xc9   :  { %v663_v42 = vadd.f32 %v662_v38, %v650_v39 }
  0xcb   :  { %v666_v43 = vmax.f32 %v663_v42, 0.0 }
  0xcd   :  { %v667_v44 = vpack.c.bf16 %v666_v43, %v666_v43 }
  0xce   :  { %v651_v45 = vpop.f32.mrf.mxu2 }
  0xcf   :  { %v664_v46 = vpop.f32.mrf.mxu3  ;;  %669 = vst.msk [vmem:[%s1228_s3] sm:$0xf] %vm668_vm0, %v667_v44 }

// kernel: beta_vae64_forward.16
= control target key start
LH: loop header
LB: loop body
LE: loop exit
PB: predicated region body
PF: predicated region fallthrough
CT: control target
= control target key end

     0   :  { %vm515_vm0 = vcmask 523264   ;;  %s1727_s1 = inlined_call_operand.vmem [shape: bf16[576,256], index: 1, kind: input, shape index: {}]   ;;  %s1728_s0 = inlined_call_operand.vmem [shape: bf16[32,576], index: 0, kind: input, shape index: {}]   ;;  %s1729_s2 = inlined_call_operand.vmem [shape: f32[1,256], index: 2, kind: input, shape index: {}]   ;;  %s1730_s3 = inlined_call_operand.vmem [shape: bf16[32,256], index: 3, kind: output, shape index: {}]  }
   0x1   :  { %v830_v0 = vld [vmem:[%s1727_s1 + $0x70] sm:$0xf]  ;;  %v1089_v1 = vld [vmem:[%s1727_s1 + $0x74] sm:$0xf0]  ;;  %v822_v11 = vld [vmem:[%s1727_s1 + $0x60] sm:$0xf] }
   0x2   :  { %v894_v2 = vld [vmem:[%s1727_s1 + $0xf0] sm:$0xf]  ;;  %v831_v3 = vor.u32 %v1089_v1, %v830_v0  ;;  %v1105_v4 = vld [vmem:[%s1727_s1 + $0xf4] sm:$0xf0]  ;;  %v1087_v13 = vld [vmem:[%s1727_s1 + $0x64] sm:$0xf0] }
   0x3   :  { %v958_v5 = vld [vmem:[%s1727_s1 + $0x170] sm:$0xf]  ;;  %v1121_v6 = vld [vmem:[%s1727_s1 + $0x174] sm:$0xf0]  ;;  %v895_v7 = vor.u32 %v1105_v4, %v894_v2  ;;  %v886_v14 = vld [vmem:[%s1727_s1 + $0xe0] sm:$0xf]  ;;  %v823_v16 = vor.u32 %v1087_v13, %v822_v11 }
   0x4   :  { %v959_v8 = vor.u32 %v1121_v6, %v958_v5  ;;  %v1022_v9 = vld [vmem:[%s1727_s1 + $0x1f0] sm:$0xf]  ;;  %v1137_v10 = vld [vmem:[%s1727_s1 + $0x1f4] sm:$0xf0]  ;;  %522 = vmatpush.bf16.msra.mxu0 %v831_v3  ;;  %v1103_v15 = vld [vmem:[%s1727_s1 + $0xe4] sm:$0xf0] }
   0x5   :  { %v1023_v12 = vor.u32 %v1137_v10, %v1022_v9  ;;  %541 = vmatpush.bf16.msra.mxu1 %v895_v7  ;;  %v887_v17 = vor.u32 %v1103_v15, %v886_v14  ;;  %v950_v18 = vld [vmem:[%s1727_s1 + $0x160] sm:$0xf]  ;;  %v1119_v19 = vld [vmem:[%s1727_s1 + $0x164] sm:$0xf0]  ;;  %v814_v23 = vld [vmem:[%s1727_s1 + $0x50] sm:$0xf] }
   0x6   :  { %560 = vmatpush.bf16.msra.mxu2 %v959_v8  ;;  %v1014_v20 = vld [vmem:[%s1727_s1 + $0x1e0] sm:$0xf]  ;;  %v951_v21 = vor.u32 %v1119_v19, %v950_v18  ;;  %v1135_v22 = vld [vmem:[%s1727_s1 + $0x1e4] sm:$0xf0]  ;;  %v1085_v24 = vld [vmem:[%s1727_s1 + $0x54] sm:$0xf0] }
   0x7   :  { %579 = vmatpush.bf16.msra.mxu3 %v1023_v12  ;;  %v1015_v25 = vor.u32 %v1135_v22, %v1014_v20  ;;  %v878_v26 = vld [vmem:[%s1727_s1 + $0xd0] sm:$0xf]  ;;  %v1101_v27 = vld [vmem:[%s1727_s1 + $0xd4] sm:$0xf0]  ;;  %v815_v29 = vor.u32 %v1085_v24, %v814_v23  ;;  %v806_v35 = vld [vmem:[%s1727_s1 + $0x40] sm:$0xf] }
   0x8   :  { %v942_v28 = vld [vmem:[%s1727_s1 + $0x150] sm:$0xf]  ;;  %523 = vmatpush.bf16.msra.mxu0 %v823_v16  ;;  %v1117_v30 = vld [vmem:[%s1727_s1 + $0x154] sm:$0xf0]  ;;  %v879_v33 = vor.u32 %v1101_v27, %v878_v26  ;;  %v1083_v36 = vld [vmem:[%s1727_s1 + $0x44] sm:$0xf0] }
   0x9   :  { %v1006_v31 = vld [vmem:[%s1727_s1 + $0x1d0] sm:$0xf]  ;;  %v1133_v32 = vld [vmem:[%s1727_s1 + $0x1d4] sm:$0xf0]  ;;  %542 = vmatpush.bf16.msra.mxu1 %v887_v17  ;;  %v943_v34 = vor.u32 %v1117_v30, %v942_v28  ;;  %v870_v37 = vld [vmem:[%s1727_s1 + $0xc0] sm:$0xf]  ;;  %v807_v44 = vor.u32 %v1083_v36, %v806_v35 }
   0xa   :  { %561 = vmatpush.bf16.msra.mxu2 %v951_v21  ;;  %v1007_v38 = vor.u32 %v1133_v32, %v1006_v31  ;;  %v1099_v39 = vld [vmem:[%s1727_s1 + $0xc4] sm:$0xf0]  ;;  %v934_v40 = vld [vmem:[%s1727_s1 + $0x140] sm:$0xf]  ;;  %v798_v47 = vld [vmem:[%s1727_s1 + $0x30] sm:$0xf] }
   0xb   :  { %580 = vmatpush.bf16.msra.mxu3 %v1015_v25  ;;  %v1115_v41 = vld [vmem:[%s1727_s1 + $0x144] sm:$0xf0]  ;;  %v998_v42 = vld [vmem:[%s1727_s1 + $0x1c0] sm:$0xf]  ;;  %v871_v45 = vor.u32 %v1099_v39, %v870_v37  ;;  %v1081_v48 = vld [vmem:[%s1727_s1 + $0x34] sm:$0xf0] }
   0xc   :  { %v1131_v43 = vld [vmem:[%s1727_s1 + $0x1c4] sm:$0xf0]  ;;  %524 = vmatpush.bf16.msra.mxu0 %v815_v29  ;;  %v935_v46 = vor.u32 %v1115_v41, %v934_v40  ;;  %v862_v49 = vld [vmem:[%s1727_s1 + $0xb0] sm:$0xf]  ;;  %v1097_v51 = vld [vmem:[%s1727_s1 + $0xb4] sm:$0xf0]  ;;  %v799_v56 = vor.u32 %v1081_v48, %v798_v47 }
   0xd   :  { %543 = vmatpush.bf16.msra.mxu1 %v879_v33  ;;  %v999_v50 = vor.u32 %v1131_v43, %v998_v42  ;;  %v926_v52 = vld [vmem:[%s1727_s1 + $0x130] sm:$0xf]  ;;  %v1113_v53 = vld [vmem:[%s1727_s1 + $0x134] sm:$0xf0]  ;;  %v863_v57 = vor.u32 %v1097_v51, %v862_v49  ;;  %v790_v59 = vld [vmem:[%s1727_s1 + $0x20] sm:$0xf] }
   0xe   :  { %562 = vmatpush.bf16.msra.mxu2 %v943_v34  ;;  %v990_v54 = vld [vmem:[%s1727_s1 + $0x1b0] sm:$0xf]  ;;  %v1129_v55 = vld [vmem:[%s1727_s1 + $0x1b4] sm:$0xf0]  ;;  %v927_v58 = vor.u32 %v1113_v53, %v926_v52  ;;  %v1079_v60 = vld [vmem:[%s1727_s1 + $0x24] sm:$0xf0] }
   0xf   :  { %581 = vmatpush.bf16.msra.mxu3 %v1007_v38  ;;  %v854_v61 = vld [vmem:[%s1727_s1 + $0xa0] sm:$0xf]  ;;  %v991_v62 = vor.u32 %v1129_v55, %v990_v54  ;;  %v1095_v63 = vld [vmem:[%s1727_s1 + $0xa4] sm:$0xf0]  ;;  %v791_v4 = vor.u32 %v1079_v60, %v790_v59  ;;  %v782_v7 = vld [vmem:[%s1727_s1 + $0x10] sm:$0xf] }
  0x10   :  { %525 = vmatpush.bf16.msra.mxu0 %v807_v44  ;;  %v918_v0 = vld [vmem:[%s1727_s1 + $0x120] sm:$0xf]  ;;  %v1111_v1 = vld [vmem:[%s1727_s1 + $0x124] sm:$0xf0]  ;;  %v855_v5 = vor.u32 %v1095_v63, %v854_v61  ;;  %v1077_v8 = vld [vmem:[%s1727_s1 + $0x14] sm:$0xf0] }
  0x11   :  { %544 = vmatpush.bf16.msra.mxu1 %v871_v45  ;;  %v982_v2 = vld [vmem:[%s1727_s1 + $0x1a0] sm:$0xf]  ;;  %v1127_v3 = vld [vmem:[%s1727_s1 + $0x1a4] sm:$0xf0]  ;;  %v919_v6 = vor.u32 %v1111_v1, %v918_v0  ;;  %v846_v9 = vld [vmem:[%s1727_s1 + $0x90] sm:$0xf]  ;;  %v783_v17 = vor.u32 %v1077_v8, %v782_v7 }
  0x12   :  { %563 = vmatpush.bf16.msra.mxu2 %v935_v46  ;;  %v983_v10 = vor.u32 %v1127_v3, %v982_v2  ;;  %v1093_v11 = vld [vmem:[%s1727_s1 + $0x94] sm:$0xf0]  ;;  %v910_v12 = vld [vmem:[%s1727_s1 + $0x110] sm:$0xf]  ;;  %v774_v16 = vld [vmem:[%s1727_s1] sm:$0xf] }
  0x13   :  { %582 = vmatpush.bf16.msra.mxu3 %v999_v50  ;;  %v1109_v13 = vld [vmem:[%s1727_s1 + $0x114] sm:$0xf0]  ;;  %v974_v14 = vld [vmem:[%s1727_s1 + $0x190] sm:$0xf]  ;;  %v1075_v18 = vld [vmem:[%s1727_s1 + $0x4] sm:$0xf0]  ;;  %v847_v21 = vor.u32 %v1093_v11, %v846_v9 }
  0x14   :  { %526 = vmatpush.bf16.msra.mxu0 %v799_v56  ;;  %v1125_v15 = vld [vmem:[%s1727_s1 + $0x194] sm:$0xf0]  ;;  %v838_v19 = vld [vmem:[%s1727_s1 + $0x80] sm:$0xf]  ;;  %v1091_v20 = vld [vmem:[%s1727_s1 + $0x84] sm:$0xf0]  ;;  %v911_v22 = vor.u32 %v1109_v13, %v910_v12  ;;  %v775_v34 = vor.u32 %v1075_v18, %v774_v16 }
  0x15   :  { %545 = vmatpush.bf16.msra.mxu1 %v863_v57  ;;  %v902_v23 = vld [vmem:[%s1727_s1 + $0x100] sm:$0xf]  ;;  %v1107_v24 = vld [vmem:[%s1727_s1 + $0x104] sm:$0xf0]  ;;  %v975_v26 = vor.u32 %v1125_v15, %v974_v14  ;;  %v1066_v29 = vld [vmem:[%s1728_s0 + $0x10] sm:$0xf0]  ;;  %v839_v38 = vor.u32 %v1091_v20, %v838_v19 }
  0x16   :  { %564 = vmatpush.bf16.msra.mxu2 %v927_v58  ;;  %v966_v25 = vld [vmem:[%s1727_s1 + $0x180] sm:$0xf]  ;;  %v1123_v27 = vld [vmem:[%s1727_s1 + $0x184] sm:$0xf0]  ;;  %v1064_v30 = vld [vmem:[%s1728_s0 + $0x4] sm:$0xf]  ;;  %v903_v39 = vor.u32 %v1107_v24, %v902_v23 }
  0x17   :  { %583 = vmatpush.bf16.msra.mxu3 %v991_v62  ;;  %v734_v28 = vld [vmem:[%s1728_s0] sm:$0xf]  ;;  %v736_v31 = vld [vmem:[%s1728_s0 + $0x14] sm:$0xf0]  ;;  %v1104_v32 = vld [vmem:[%s1727_s1 + $0xf4] sm:$0xf]  ;;  %v967_v43 = vor.u32 %v1123_v27, %v966_v25 }
  0x18   :  { %527 = vmatpush.bf16.msra.mxu0 %v791_v4  ;;  %v896_v33 = vld [vmem:[%s1727_s1 + $0xf8] sm:$0xf0]  ;;  %v742_v35 = vld [vmem:[%s1728_s0 + $0x8] sm:$0xf]  ;;  %v1088_v36 = vld [vmem:[%s1727_s1 + $0x74] sm:$0xf]  ;;  %v1415_v48 = vor.u32 %v1066_v29, %v734_v28  ;;  %v1426_v53 = vor.u32 %v1064_v30, %v736_v31 }
  0x19   :  { %546 = vmatpush.bf16.msra.mxu1 %v855_v5  ;;  %v832_v37 = vld [vmem:[%s1727_s1 + $0x78] sm:$0xf0]  ;;  %v1065_v41 = vld [vmem:[%s1728_s0 + $0xc] sm:$0xf]  ;;  %v744_v42 = vld [vmem:[%s1728_s0 + $0x1c] sm:$0xf0]  ;;  %v899_v44 = vor.u32 %v1104_v32, %v896_v33 }
  0x1a   :  { %565 = vmatpush.bf16.msra.mxu2 %v919_v6  ;;  %v1067_v40 = vld [vmem:[%s1728_s0 + $0x18] sm:$0xf0]  ;;  %v1120_v45 = vld [vmem:[%s1727_s1 + $0x174] sm:$0xf]  ;;  %v1054_v46 = vld [vmem:[%s1727_s1 + $0x230] sm:$0xf]  ;;  %v835_v49 = vor.u32 %v1088_v36, %v832_v37  ;;  %v1436_v57 = vor.u32 %v1065_v41, %v744_v42 }
  0x1b   :  { %584 = vmatpush.bf16.msra.mxu3 %v983_v10  ;;  %v1145_v47 = vld [vmem:[%s1727_s1 + $0x234] sm:$0xf0]  ;;  %v960_v50 = vld [vmem:[%s1727_s1 + $0x178] sm:$0xf0]  ;;  %v1102_v51 = vld [vmem:[%s1727_s1 + $0xe4] sm:$0xf]  ;;  %v1428_v54 = vor.u32 %v1067_v40, %v742_v35 }
  0x1c   :  { %528 = vmatpush.bf16.msra.mxu0 %v783_v17  ;;  %v888_v52 = vld [vmem:[%s1727_s1 + $0xe8] sm:$0xf0]  ;;  %v1086_v55 = vld [vmem:[%s1727_s1 + $0x64] sm:$0xf]  ;;  %v1055_v58 = vor.u32 %v1145_v47, %v1054_v46  ;;  %v963_v59 = vor.u32 %v1120_v45, %v960_v50  ;;  %v1046_v62 = vld [vmem:[%s1727_s1 + $0x220] sm:$0xf] }
  0x1d   :  { %547 = vmatpush.bf16.msra.mxu1 %v847_v21  ;;  %v824_v56 = vld [vmem:[%s1727_s1 + $0x68] sm:$0xf0]  ;;  %v891_v60 = vor.u32 %v1102_v51, %v888_v52  ;;  %v1118_v61 = vld [vmem:[%s1727_s1 + $0x164] sm:$0xf]  ;;  %v1143_v63 = vld [vmem:[%s1727_s1 + $0x224] sm:$0xf0] }
  0x1e   :  { %566 = vmatpush.bf16.msra.mxu2 %v911_v22  ;;  %v827_v0 = vor.u32 %v1086_v55, %v824_v56  ;;  %v952_v1 = vld [vmem:[%s1727_s1 + $0x168] sm:$0xf0]  ;;  %v1100_v2 = vld [vmem:[%s1727_s1 + $0xd4] sm:$0xf]  ;;  %v880_v3 = vld [vmem:[%s1727_s1 + $0xd8] sm:$0xf0]  ;;  %v1047_v6 = vor.u32 %v1143_v63, %v1046_v62 }
  0x1f   :  { %585 = vmatpush.bf16.msra.mxu3 %v975_v26  ;;  %v1084_v4 = vld [vmem:[%s1727_s1 + $0x54] sm:$0xf]  ;;  %v816_v5 = vld [vmem:[%s1727_s1 + $0x58] sm:$0xf0]  ;;  %v955_v7 = vor.u32 %v1118_v61, %v952_v1  ;;  %v883_v8 = vor.u32 %v1100_v2, %v880_v3  ;;  %v1098_v12 = vld [vmem:[%s1727_s1 + $0xc4] sm:$0xf] }
  0x20   :  { %529 = vmatpush.bf16.msra.mxu0 %v775_v34  ;;  %v1116_v9 = vld [vmem:[%s1727_s1 + $0x154] sm:$0xf]  ;;  %v819_v10 = vor.u32 %v1084_v4, %v816_v5  ;;  %v944_v11 = vld [vmem:[%s1727_s1 + $0x158] sm:$0xf0]  ;;  %v872_v13 = vld [vmem:[%s1727_s1 + $0xc8] sm:$0xf0] }
  0x21   :  { %548 = vmatpush.bf16.msra.mxu1 %v839_v38  ;;  %v1082_v14 = vld [vmem:[%s1727_s1 + $0x44] sm:$0xf]  ;;  %v808_v15 = vld [vmem:[%s1727_s1 + $0x48] sm:$0xf0]  ;;  %v1038_v17 = vld [vmem:[%s1727_s1 + $0x210] sm:$0xf]  ;;  %v947_v19 = vor.u32 %v1116_v9, %v944_v11  ;;  %v875_v20 = vor.u32 %v1098_v12, %v872_v13 }
  0x22   :  { %567 = vmatpush.bf16.msra.mxu2 %v903_v39  ;;  %v1114_v16 = vld [vmem:[%s1727_s1 + $0x144] sm:$0xf]  ;;  %v1141_v18 = vld [vmem:[%s1727_s1 + $0x214] sm:$0xf0]  ;;  %v936_v21 = vld [vmem:[%s1727_s1 + $0x148] sm:$0xf0]  ;;  %v811_v25 = vor.u32 %v1082_v14, %v808_v15 }
  0x23   :  { %586 = vmatpush.bf16.msra.mxu3 %v967_v43  ;;  %530 = vmatmul.bf16.vlgmr.msra.gmra.mxu0 %v1415_v48  ;;  %v754_v22 = vld [vmem:[%s1728_s0 + $0x28] sm:$0xf]  ;;  %v1071_v23 = vld [vmem:[%s1728_s0 + $0x38] sm:$0xf0]  ;;  %v1039_v24 = vor.u32 %v1141_v18, %v1038_v17  ;;  %v1069_v26 = vld [vmem:[%s1728_s0 + $0x2c] sm:$0xf]  ;;  %v939_v39 = vor.u32 %v1114_v16, %v936_v21 }
  0x24   :  { %549 = vmatmul.bf16.vlgmr.msra.gmra.mxu1 %v1426_v53  ;;  %602 = vmatpush.bf16.msrb.mxu0 %v1055_v58  ;;  %v756_v27 = vld [vmem:[%s1728_s0 + $0x3c] sm:$0xf0]  ;;  %v762_v28 = vld [vmem:[%s1728_s0 + $0x30] sm:$0xf]  ;;  %v1096_v29 = vld [vmem:[%s1727_s1 + $0xb4] sm:$0xf] }
  0x25   :  { %617 = vmatpush.bf16.msrb.mxu1 %v835_v49  ;;  %568 = vmatmul.bf16.vlgmr.msra.gmra.mxu2 %v1428_v54  ;;  %v864_v30 = vld [vmem:[%s1727_s1 + $0xb8] sm:$0xf0]  ;;  %v1080_v31 = vld [vmem:[%s1727_s1 + $0x34] sm:$0xf]  ;;  %v1030_v33 = vld [vmem:[%s1727_s1 + $0x200] sm:$0xf]  ;;  %v1558_v50 = vor.u32 %v1069_v26, %v756_v27 }
  0x26   :  { %636 = vmatpush.bf16.msrb.mxu2 %v899_v44  ;;  %587 = vmatmul.bf16.vlgmr.msra.gmra.mxu3 %v1436_v57  ;;  %v800_v32 = vld [vmem:[%s1727_s1 + $0x38] sm:$0xf0]  ;;  %v1139_v34 = vld [vmem:[%s1727_s1 + $0x204] sm:$0xf0]  ;;  %v1072_v35 = vld [vmem:[%s1728_s0 + $0x40] sm:$0xf0]  ;;  %v867_v40 = vor.u32 %v1096_v29, %v864_v30  ;;  %v1547_v44 = vor.u32 %v1071_v23, %v754_v22 }
  0x27   :  { %655 = vmatpush.bf16.msrb.mxu3 %v963_v59  ;;  %v1070_v36 = vld [vmem:[%s1728_s0 + $0x34] sm:$0xf]  ;;  %v764_v37 = vld [vmem:[%s1728_s0 + $0x44] sm:$0xf0]  ;;  %v1031_v38 = vor.u32 %v1139_v34, %v1030_v33  ;;  %v928_v42 = vld [vmem:[%s1727_s1 + $0x138] sm:$0xf0]  ;;  %v803_v45 = vor.u32 %v1080_v31, %v800_v32  ;;  %v1560_v51 = vor.u32 %v1072_v35, %v762_v28 }
  0x28   :  { %603 = vmatpush.bf16.msrb.mxu0 %v1047_v6  ;;  %v1112_v41 = vld [vmem:[%s1727_s1 + $0x134] sm:$0xf]  ;;  %v1094_v43 = vld [vmem:[%s1727_s1 + $0xa4] sm:$0xf]  ;;  %v856_v46 = vld [vmem:[%s1727_s1 + $0xa8] sm:$0xf0]  ;;  %v1568_v56 = vor.u32 %v1070_v36, %v764_v37 }
  0x29   :  { %618 = vmatpush.bf16.msrb.mxu1 %v827_v0  ;;  %v1136_v47 = vld [vmem:[%s1727_s1 + $0x1f4] sm:$0xf]  ;;  %v1024_v49 = vld [vmem:[%s1727_s1 + $0x1f8] sm:$0xf0]  ;;  %v1078_v52 = vld [vmem:[%s1727_s1 + $0x24] sm:$0xf]  ;;  %v931_v59 = vor.u32 %v1112_v41, %v928_v42 }
  0x2a   :  { %637 = vmatpush.bf16.msrb.mxu2 %v891_v60  ;;  %v792_v55 = vld [vmem:[%s1727_s1 + $0x28] sm:$0xf0]  ;;  %v1027_v58 = vor.u32 %v1136_v47, %v1024_v49  ;;  %v859_v60 = vor.u32 %v1094_v43, %v856_v46  ;;  %v1110_v61 = vld [vmem:[%s1727_s1 + $0x124] sm:$0xf]  ;;  %v1092_v2 = vld [vmem:[%s1727_s1 + $0x94] sm:$0xf] }
  0x2b   :  { %656 = vmatpush.bf16.msrb.mxu3 %v955_v7  ;;  %v1134_v62 = vld [vmem:[%s1727_s1 + $0x1e4] sm:$0xf]  ;;  %v1016_v63 = vld [vmem:[%s1727_s1 + $0x1e8] sm:$0xf0]  ;;  %v795_v0 = vor.u32 %v1078_v52, %v792_v55  ;;  %v848_v3 = vld [vmem:[%s1727_s1 + $0x98] sm:$0xf0] }
  0x2c   :  { %604 = vmatpush.bf16.msrb.mxu0 %v1039_v24  ;;  %v920_v1 = vld [vmem:[%s1727_s1 + $0x128] sm:$0xf0]  ;;  %v1076_v4 = vld [vmem:[%s1727_s1 + $0x14] sm:$0xf]  ;;  %v784_v5 = vld [vmem:[%s1727_s1 + $0x18] sm:$0xf0]  ;;  %v1019_v6 = vor.u32 %v1134_v62, %v1016_v63 }
  0x2d   :  { %619 = vmatpush.bf16.msrb.mxu1 %v819_v10  ;;  %v923_v7 = vor.u32 %v1110_v61, %v920_v1  ;;  %v1108_v9 = vld [vmem:[%s1727_s1 + $0x114] sm:$0xf]  ;;  %v1008_v11 = vld [vmem:[%s1727_s1 + $0x1d8] sm:$0xf0]  ;;  %v787_v12 = vor.u32 %v1076_v4, %v784_v5  ;;  %v1090_v14 = vld [vmem:[%s1727_s1 + $0x84] sm:$0xf] }
  0x2e   :  { %638 = vmatpush.bf16.msrb.mxu2 %v883_v8  ;;  %v851_v8 = vor.u32 %v1092_v2, %v848_v3  ;;  %v1132_v10 = vld [vmem:[%s1727_s1 + $0x1d4] sm:$0xf]  ;;  %v912_v13 = vld [vmem:[%s1727_s1 + $0x118] sm:$0xf0]  ;;  %v840_v15 = vld [vmem:[%s1727_s1 + $0x88] sm:$0xf0] }
  0x2f   :  { %657 = vmatpush.bf16.msrb.mxu3 %v947_v19  ;;  %v1074_v16 = vld [vmem:[%s1727_s1 + $0x4] sm:$0xf]  ;;  %v776_v17 = vld [vmem:[%s1727_s1 + $0x8] sm:$0xf0]  ;;  %v1144_v18 = vld [vmem:[%s1727_s1 + $0x234] sm:$0xf]  ;;  %v915_v21 = vor.u32 %v1108_v9, %v912_v13  ;;  %v843_v22 = vor.u32 %v1090_v14, %v840_v15 }
  0x30   :  { %605 = vmatpush.bf16.msrb.mxu0 %v1031_v38  ;;  %v1056_v19 = vld [vmem:[%s1727_s1 + $0x238] sm:$0xf0]  ;;  %v1130_v23 = vld [vmem:[%s1727_s1 + $0x1c4] sm:$0xf]  ;;  %v1000_v24 = vld [vmem:[%s1727_s1 + $0x1c8] sm:$0xf0] }
  0x31   :  { %620 = vmatpush.bf16.msrb.mxu1 %v811_v25  ;;  %v779_v25 = vor.u32 %v1074_v16, %v776_v17  ;;  %v1106_v26 = vld [vmem:[%s1727_s1 + $0x104] sm:$0xf]  ;;  %v904_v27 = vld [vmem:[%s1727_s1 + $0x108] sm:$0xf0]  ;;  %v750_v28 = vld [vmem:[%s1728_s0 + $0x10] sm:$0xf]  ;;  %v1059_v30 = vor.u32 %v1144_v18, %v1056_v19  ;;  %v1003_v31 = vor.u32 %v1130_v23, %v1000_v24 }
  0x32   :  { %639 = vmatpush.bf16.msrb.mxu2 %v875_v20  ;;  %v1011_v20 = vor.u32 %v1132_v10, %v1008_v11  ;;  %v1068_v29 = vld [vmem:[%s1728_s0 + $0x20] sm:$0xf0]  ;;  %v907_v32 = vor.u32 %v1106_v26, %v904_v27  ;;  %v1048_v35 = vld [vmem:[%s1727_s1 + $0x228] sm:$0xf0]  ;;  %v1128_v36 = vld [vmem:[%s1727_s1 + $0x1b4] sm:$0xf] }
  0x33   :  { %658 = vmatpush.bf16.msrb.mxu3 %v939_v39  ;;  %535 = vmatmul.bf16.gmra.mxu0 %v1547_v44  ;;  %v1142_v33 = vld [vmem:[%s1727_s1 + $0x224] sm:$0xf]  ;;  %v751_v34 = vor.u32 %v1068_v29, %v750_v28  ;;  %v992_v37 = vld [vmem:[%s1727_s1 + $0x1b8] sm:$0xf0]  ;;  %v984_v43 = vld [vmem:[%s1727_s1 + $0x1a8] sm:$0xf0] }
  0x34   :  { %554 = vmatmul.bf16.gmra.mxu1 %v1558_v50  ;;  %674 = vmatpush.bf16.msra.mxu0 %v1027_v58  ;;  %v1051_v38 = vor.u32 %v1142_v33, %v1048_v35  ;;  %v995_v39 = vor.u32 %v1128_v36, %v992_v37  ;;  %v1040_v41 = vld [vmem:[%s1727_s1 + $0x218] sm:$0xf0]  ;;  %v1126_v42 = vld [vmem:[%s1727_s1 + $0x1a4] sm:$0xf]  ;;  %v1124_v47 = vld [vmem:[%s1727_s1 + $0x194] sm:$0xf] }
  0x35   :  { %621 = vmatpush.bf16.msrb.mxu1 %v803_v45  ;;  %573 = vmatmul.bf16.gmra.mxu2 %v1560_v51  ;;  %v987_v46 = vor.u32 %v1126_v42, %v984_v43  ;;  %v976_v49 = vld [vmem:[%s1727_s1 + $0x198] sm:$0xf0]  ;;  %v1122_v55 = vld [vmem:[%s1727_s1 + $0x184] sm:$0xf]  ;;  %v99_v16 = vld [vmem:[%s1729_s2] sm:$0x3] }
  0x36   :  { %640 = vmatpush.bf16.msrb.mxu2 %v867_v40  ;;  %592 = vmatmul.bf16.gmra.mxu3 %v1568_v56  ;;  %v1140_v40 = vld [vmem:[%s1727_s1 + $0x214] sm:$0xf]  ;;  %v101_v17 = vperm.slane %v99_v16, 0  ;;  %v102_v23 = vperm.slane %v99_v16, 1 }
  0x37   :  { %659 = vmatpush.bf16.msrb.mxu3 %v931_v59  ;;  %v1043_v45 = vor.u32 %v1140_v40, %v1040_v41  ;;  %v770_v59 = vld [vmem:[%s1728_s0 + $0x38] sm:$0xf] }
  0x38   :  { %675 = vmatpush.bf16.msra.mxu0 %v1019_v6 }
  0x39   :  { %622 = vmatpush.bf16.msrb.mxu1 %v795_v0 }
  0x3a   :  { %641 = vmatpush.bf16.msrb.mxu2 %v859_v60  ;;  %v1073_v60 = vld [vmem:[%s1728_s0 + $0x48] sm:$0xf0] }
  0x3b   :  { %660 = vmatpush.bf16.msrb.mxu3 %v923_v7  ;;  %v771_v62 = vor.u32 %v1073_v60, %v770_v59 }
  0x3c   :  { %676 = vmatpush.bf16.msra.mxu0 %v1011_v20 }
  0x3d   :  { %623 = vmatpush.bf16.msrb.mxu1 %v787_v12 }
  0x3e   :  { %642 = vmatpush.bf16.msrb.mxu2 %v851_v8 }
  0x3f   :  { %661 = vmatpush.bf16.msrb.mxu3 %v915_v21 }
  0x40   :  { %677 = vmatpush.bf16.msra.mxu0 %v1003_v31 }
  0x41   :  { %624 = vmatpush.bf16.msrb.mxu1 %v779_v25 }
  0x42   :  { %643 = vmatpush.bf16.msrb.mxu2 %v843_v22 }
  0x43   :  { %662 = vmatpush.bf16.msrb.mxu3 %v907_v32  ;;  %1060 = vmatmul.msk.bf16.vlgmr.msrb.gmra.mxu0 %vm515_vm0, %v751_v34 }
  0x44   :  { %625 = vmatmul.bf16.vlgmr.msrb.gmra.mxu1 %v1415_v48  ;;  %678 = vmatpush.bf16.msra.mxu0 %v995_v39  ;;  %v1138_v48 = vld [vmem:[%s1727_s1 + $0x204] sm:$0xf] }
  0x45   :  { %697 = vmatpush.bf16.msra.mxu1 %v1059_v30  ;;  %644 = vmatmul.bf16.vlgmr.msrb.gmra.mxu2 %v1426_v53  ;;  %v1032_v53 = vld [vmem:[%s1727_s1 + $0x208] sm:$0xf0] }
  0x46   :  { %1146 = vmatpush.bf16.msra.mxu2 %v1027_v58  ;;  %663 = vmatmul.bf16.vlgmr.msrb.gmra.mxu3 %v1428_v54  ;;  %v979_v54 = vor.u32 %v1124_v47, %v976_v49  ;;  %v1035_v52 = vor.u32 %v1138_v48, %v1032_v53  ;;  %v968_v58 = vld [vmem:[%s1727_s1 + $0x188] sm:$0xf0] }
  0x47   :  { %1154 = vmatpush.bf16.msra.mxu3 %v1059_v30  ;;  %v971_v61 = vor.u32 %v1122_v55, %v968_v58 }
  0x48   :  { %679 = vmatpush.bf16.msra.mxu0 %v987_v46 }
  0x49   :  { %698 = vmatpush.bf16.msra.mxu1 %v1051_v38 }
  0x4a   :  { %1147 = vmatpush.bf16.msra.mxu2 %v1019_v6 }
  0x4b   :  { %1155 = vmatpush.bf16.msra.mxu3 %v1051_v38 }
  0x4c   :  { %680 = vmatpush.bf16.msra.mxu0 %v979_v54 }
  0x4d   :  { %699 = vmatpush.bf16.msra.mxu1 %v1043_v45 }
  0x4e   :  { %1148 = vmatpush.bf16.msra.mxu2 %v1011_v20 }
  0x4f   :  { %1156 = vmatpush.bf16.msra.mxu3 %v1043_v45 }
  0x50   :  { %681 = vmatpush.bf16.msra.mxu0 %v971_v61 }
  0x51   :  { %700 = vmatpush.bf16.msra.mxu1 %v1035_v52 }
  0x52   :  { %1149 = vmatpush.bf16.msra.mxu2 %v1003_v31 }
  0x53   :  { %1157 = vmatpush.bf16.msra.mxu3 %v1035_v52  ;;  %1061 = vmatmul.msk.bf16.gmra.mxu0 %vm515_vm0, %v771_v62 }
  0x54   :  { %630 = vmatmul.bf16.gmra.mxu1 %v1547_v44 }
  0x55   :  { %649 = vmatmul.bf16.gmra.mxu2 %v1558_v50 }
  0x56   :  { %1150 = vmatpush.bf16.msra.mxu2 %v995_v39  ;;  %668 = vmatmul.bf16.gmra.mxu3 %v1560_v51 }
  0x5a   :  { %1151 = vmatpush.bf16.msra.mxu2 %v987_v46 }
  0x5e   :  { %1152 = vmatpush.bf16.msra.mxu2 %v979_v54 }
  0x62   :  { %1153 = vmatpush.bf16.msra.mxu2 %v971_v61 }
  0x63   :  { %682 = vmatmul.bf16.vlgmr.msra.gmra.mxu0 %v1436_v57 }
  0x64   :  { %1062 = vmatmul.msk.bf16.vlgmr.msra.gmra.mxu1 %vm515_vm0, %v751_v34 }
  0x65   :  { %687 = vmatmul.bf16.vlgmr.msra.gmra.mxu2 %v1568_v56 }
  0x66   :  { %1063 = vmatmul.msk.bf16.vlgmr.msra.gmra.mxu3 %vm515_vm0, %v771_v62 }
  0xa0   :  { %v531_v63 = vpop.f32.mrf.mxu0 }
  0xa1   :  { %v550_v0 = vpop.f32.mrf.mxu1  ;;  %v532_v22 = vadd.f32 %v531_v63, %v101_v17 }
  0xa3   :  { %v551_v24 = vadd.f32 %v550_v0, %v532_v22 }
  0xa8   :  { %v569_v1 = vpop.f32.mrf.mxu2  ;;  %v533_v44 = vpop.f32.mrf.mxu0 }
  0xa9   :  { %v588_v2 = vpop.f32.mrf.mxu3  ;;  %v552_v3 = vpop.f32.mrf.mxu1  ;;  %v570_v31 = vadd.f32 %v569_v1, %v551_v24  ;;  %v534_v33 = vadd.f32 %v533_v44, %v101_v17 }
  0xab   :  { %v589_v36 = vadd.f32 %v588_v2, %v570_v31  ;;  %v553_v41 = vadd.f32 %v552_v3, %v534_v33 }
  0xb0   :  { %v571_v50 = vpop.f32.mrf.mxu2  ;;  %v536_v51 = vpop.f32.mrf.mxu0 }
  0xb1   :  { %v590_v4 = vpop.f32.mrf.mxu3  ;;  %v555_v5 = vpop.f32.mrf.mxu1  ;;  %v537_v30 = vadd.f32 %v536_v51, %v101_v17  ;;  %v572_v48 = vadd.f32 %v571_v50, %v553_v41 }
  0xb3   :  { %v556_v34 = vadd.f32 %v555_v5, %v537_v30  ;;  %v591_v61 = vadd.f32 %v590_v4, %v572_v48 }
  0xb8   :  { %v574_v6 = vpop.f32.mrf.mxu2  ;;  %v538_v8 = vpop.f32.mrf.mxu0 }
  0xb9   :  { %v593_v7 = vpop.f32.mrf.mxu3  ;;  %v557_v57 = vpop.f32.mrf.mxu1  ;;  %v575_v47 = vadd.f32 %v574_v6, %v556_v34  ;;  %v539_v52 = vadd.f32 %v538_v8, %v101_v17 }
  0xbb   :  { %v594_v59 = vadd.f32 %v593_v7, %v575_v47  ;;  %v558_v1 = vadd.f32 %v557_v57, %v539_v52 }
  0xc0   :  { %v1706_v9 = vpop.f32.mrf.mxu2  ;;  %v607_v10 = vpop.f32.mrf.mxu0 }
  0xc1   :  { %v1708_v56 = vpop.f32.mrf.mxu3  ;;  %v626_v11 = vpop.f32.mrf.mxu1  ;;  %v608_v42 = vadd.f32 %v607_v10, %v589_v36  ;;  %v577_v8 = vadd.f32 %v1706_v9, %v558_v1 }
  0xc2   :  { %v627_v25 = vadd.f32 %v626_v11, %v102_v23 }
  0xc3   :  { %v712_v55 = vmax.f32 %v608_v42, 0.0  ;;  %v596_v16 = vadd.f32 %v1708_v56, %v577_v8 }
  0xc8   :  { %v645_v12 = vpop.f32.mrf.mxu2  ;;  %v609_v14 = vpop.f32.mrf.mxu0 }
  0xc9   :  { %v664_v13 = vpop.f32.mrf.mxu3  ;;  %v628_v15 = vpop.f32.mrf.mxu1  ;;  %v646_v32 = vadd.f32 %v645_v12, %v627_v25  ;;  %v610_v6 = vadd.f32 %v609_v14, %v591_v61 }
  0xca   :  { %v629_v43 = vadd.f32 %v628_v15, %v102_v23 }
  0xcb   :  { %v665_v37 = vadd.f32 %v664_v13, %v646_v32  ;;  %v714_v57 = vmax.f32 %v610_v6, 0.0 }
  0xd0   :  { %v647_v18 = vpop.f32.mrf.mxu2  ;;  %v612_v20 = vpop.f32.mrf.mxu0 }
  0xd1   :  { %v666_v19 = vpop.f32.mrf.mxu3  ;;  %v631_v21 = vpop.f32.mrf.mxu1  ;;  %v648_v53 = vadd.f32 %v647_v18, %v629_v43  ;;  %v613_v2 = vadd.f32 %v612_v20, %v594_v59 }
  0xd2   :  { %v632_v35 = vadd.f32 %v631_v21, %v102_v23 }
  0xd3   :  { %v667_v62 = vadd.f32 %v666_v19, %v648_v53  ;;  %v716_v12 = vmax.f32 %v613_v2, 0.0 }
  0xd8   :  { %v650_v26 = vpop.f32.mrf.mxu2  ;;  %v614_v28 = vpop.f32.mrf.mxu0 }
  0xd9   :  { %v669_v27 = vpop.f32.mrf.mxu3  ;;  %v633_v29 = vpop.f32.mrf.mxu1  ;;  %v651_v49 = vadd.f32 %v650_v26, %v632_v35  ;;  %v615_v20 = vadd.f32 %v614_v28, %v596_v16 }
  0xda   :  { %v634_v44 = vadd.f32 %v633_v29, %v102_v23 }
  0xdb   :  { %v670_v60 = vadd.f32 %v669_v27, %v651_v49  ;;  %v718_v23 = vmax.f32 %v615_v20, 0.0 }
  0xe0   :  { %v652_v38 = vpop.f32.mrf.mxu2  ;;  %v683_v40 = vpop.f32.mrf.mxu0 }
  0xe1   :  { %v671_v39 = vpop.f32.mrf.mxu3  ;;  %v684_v45 = vadd.f32 %v683_v40, %v665_v37  ;;  %v702_v46 = vpop.f32.mrf.mxu1  ;;  %v653_v7 = vadd.f32 %v652_v38, %v634_v44 }
  0xe3   :  { %v703_v54 = vadd.f32 %v702_v46, %v684_v45  ;;  %v672_v17 = vadd.f32 %v671_v39, %v653_v7 }
  0xe5   :  { %v713_v58 = vmax.f32 %v703_v54, 0.0 }
  0xe7   :  { %v720_v63 = vpack.c.bf16 %v713_v58, %v712_v55 }
  0xe8   :  { %v688_v0 = vpop.f32.mrf.mxu2  ;;  %v685_v5 = vpop.f32.mrf.mxu0 }
  0xe9   :  { %v689_v3 = vadd.f32 %v688_v0, %v670_v60  ;;  %v707_v51 = vpop.f32.mrf.mxu3  ;;  %724 = vst [vmem:[%s1730_s3] sm:$0xff] %v720_v63  ;;  %v686_v50 = vadd.f32 %v685_v5, %v667_v62  ;;  %v704_v4 = vpop.f32.mrf.mxu1 }
  0xeb   :  { %v708_v10 = vadd.f32 %v707_v51, %v689_v3  ;;  %v705_v11 = vadd.f32 %v704_v4, %v686_v50 }
  0xed   :  { %v717_v13 = vmax.f32 %v708_v10, 0.0  ;;  %v715_v15 = vmax.f32 %v705_v11, 0.0 }
  0xef   :  { %v722_v18 = vpack.c.bf16 %v717_v13, %v716_v12  ;;  %v721_v14 = vpack.c.bf16 %v715_v15, %v714_v57 }
  0xf0   :  { %v690_v19 = vpop.f32.mrf.mxu2 }
  0xf1   :  { %726 = vst [vmem:[%s1730_s3 + $0x10] sm:$0xff] %v722_v18  ;;  %v691_v9 = vadd.f32 %v690_v19, %v672_v17  ;;  %v709_v21 = vpop.f32.mrf.mxu3 }
  0xf2   :  { %725 = vst [vmem:[%s1730_s3 + $0x8] sm:$0xff] %v721_v14 }
  0xf3   :  { %v710_v22 = vadd.f32 %v709_v21, %v691_v9 }
  0xf5   :  { %v719_v24 = vmax.f32 %v710_v22, 0.0 }
  0xf7   :  { %v723_v25 = vpack.c.bf16 %v719_v24, %v718_v23 }
  0xf9   :  { %727 = vst [vmem:[%s1730_s3 + $0x18] sm:$0xff] %v723_v25 }

// kernel: beta_vae64_forward.15
= control target key start
LH: loop header
LB: loop body
LE: loop exit
PB: predicated region body
PF: predicated region fallthrough
CT: control target
= control target key end

     0   :  { %vm1416_vm0 = vcmask 261120   ;;  %s5796_s1 = inlined_call_operand.vmem [shape: bf16[1024,256], index: 1, kind: input, shape index: {}]   ;;  %s5797_s0 = inlined_call_operand.vmem [shape: bf16[8,1024], index: 0, kind: input, shape index: {}]   ;;  %s5798_s3 = inlined_call_operand.vmem [shape: bf16[256,32], index: 3, kind: input, shape index: {}]   ;;  %s5799_s5 = inlined_call_operand.vmem [shape: bf16[256,32], index: 5, kind: input, shape index: {}]   ;;  %s5800_s4 = inlined_call_operand.vmem [shape: f32[1,32], index: 4, kind: input, shape index: {}]   ;;  %s5801_s2 = inlined_call_operand.vmem [shape: f32[1,256], index: 2, kind: input, shape index: {}]   ;;  %s5802_s6 = inlined_call_operand.vmem [shape: f32[1,32], index: 6, kind: input, shape index: {}]   ;;  %s5803_s8 = inlined_call_operand.vmem [shape: bf16[32,256], index: 8, kind: input, shape index: {}]   ;;  %s5804_s10 = inlined_call_operand.vmem [shape: bf16[256,1024], index: 10, kind: input, shape index: {}]   ;;  %s5805_s12 = inlined_call_operand.vmem [shape: f32[8,32], index: 12, kind: output, shape index: {0}]   ;;  %s5806_s13 = inlined_call_operand.vmem [shape: f32[8,32], index: 13, kind: output, shape index: {1}]   ;;  %s5807_s7 = inlined_call_operand.vmem [shape: f32[8,32], index: 7, kind: input, shape index: {}]   ;;  %s5808_s9 = inlined_call_operand.vmem [shape: f32[1,256], index: 9, kind: input, shape index: {}]   ;;  %s5809_s11 = inlined_call_operand.vmem [shape: f32[1,1024], index: 11, kind: input, shape index: {}]   ;;  %s5810_s14 = inlined_call_operand.vmem [shape: bf16[8,1024], index: 14, kind: output, shape index: {2}]  }
   0x1   :  { %v2532_v0 = vld [vmem:[%s5796_s1 + $0x70] sm:$0xf]  ;;  %v3659_v1 = vld [vmem:[%s5796_s1 + $0x74] sm:$0xf0]  ;;  %v2524_v11 = vld [vmem:[%s5796_s1 + $0x60] sm:$0xf] }
   0x2   :  { %v2596_v2 = vld [vmem:[%s5796_s1 + $0xf0] sm:$0xf]  ;;  %v2533_v3 = vor.u32 %v3659_v1, %v2532_v0  ;;  %v3675_v4 = vld [vmem:[%s5796_s1 + $0xf4] sm:$0xf0]  ;;  %v3657_v13 = vld [vmem:[%s5796_s1 + $0x64] sm:$0xf0] }
   0x3   :  { %v2660_v5 = vld [vmem:[%s5796_s1 + $0x170] sm:$0xf]  ;;  %v3691_v6 = vld [vmem:[%s5796_s1 + $0x174] sm:$0xf0]  ;;  %v2597_v7 = vor.u32 %v3675_v4, %v2596_v2  ;;  %v2588_v14 = vld [vmem:[%s5796_s1 + $0xe0] sm:$0xf]  ;;  %v2525_v16 = vor.u32 %v3657_v13, %v2524_v11 }
   0x4   :  { %v2661_v8 = vor.u32 %v3691_v6, %v2660_v5  ;;  %v2724_v9 = vld [vmem:[%s5796_s1 + $0x1f0] sm:$0xf]  ;;  %v3707_v10 = vld [vmem:[%s5796_s1 + $0x1f4] sm:$0xf0]  ;;  %851 = vmatpush.bf16.msra.mxu0 %v2533_v3  ;;  %v3673_v15 = vld [vmem:[%s5796_s1 + $0xe4] sm:$0xf0] }
   0x5   :  { %v2725_v12 = vor.u32 %v3707_v10, %v2724_v9  ;;  %864 = vmatpush.bf16.msra.mxu1 %v2597_v7  ;;  %v2589_v17 = vor.u32 %v3673_v15, %v2588_v14  ;;  %v2652_v18 = vld [vmem:[%s5796_s1 + $0x160] sm:$0xf]  ;;  %v3689_v19 = vld [vmem:[%s5796_s1 + $0x164] sm:$0xf0]  ;;  %v2516_v23 = vld [vmem:[%s5796_s1 + $0x50] sm:$0xf] }
   0x6   :  { %877 = vmatpush.bf16.msra.mxu2 %v2661_v8  ;;  %v2716_v20 = vld [vmem:[%s5796_s1 + $0x1e0] sm:$0xf]  ;;  %v2653_v21 = vor.u32 %v3689_v19, %v2652_v18  ;;  %v3705_v22 = vld [vmem:[%s5796_s1 + $0x1e4] sm:$0xf0]  ;;  %v3655_v24 = vld [vmem:[%s5796_s1 + $0x54] sm:$0xf0] }
   0x7   :  { %890 = vmatpush.bf16.msra.mxu3 %v2725_v12  ;;  %v2717_v25 = vor.u32 %v3705_v22, %v2716_v20  ;;  %v2580_v26 = vld [vmem:[%s5796_s1 + $0xd0] sm:$0xf]  ;;  %v3671_v27 = vld [vmem:[%s5796_s1 + $0xd4] sm:$0xf0]  ;;  %v2517_v29 = vor.u32 %v3655_v24, %v2516_v23  ;;  %v2508_v35 = vld [vmem:[%s5796_s1 + $0x40] sm:$0xf] }
   0x8   :  { %v2644_v28 = vld [vmem:[%s5796_s1 + $0x150] sm:$0xf]  ;;  %852 = vmatpush.bf16.msra.mxu0 %v2525_v16  ;;  %v3687_v30 = vld [vmem:[%s5796_s1 + $0x154] sm:$0xf0]  ;;  %v2581_v33 = vor.u32 %v3671_v27, %v2580_v26  ;;  %v3653_v36 = vld [vmem:[%s5796_s1 + $0x44] sm:$0xf0] }
   0x9   :  { %v2708_v31 = vld [vmem:[%s5796_s1 + $0x1d0] sm:$0xf]  ;;  %v3703_v32 = vld [vmem:[%s5796_s1 + $0x1d4] sm:$0xf0]  ;;  %865 = vmatpush.bf16.msra.mxu1 %v2589_v17  ;;  %v2645_v34 = vor.u32 %v3687_v30, %v2644_v28  ;;  %v2572_v37 = vld [vmem:[%s5796_s1 + $0xc0] sm:$0xf]  ;;  %v2509_v44 = vor.u32 %v3653_v36, %v2508_v35 }
   0xa   :  { %878 = vmatpush.bf16.msra.mxu2 %v2653_v21  ;;  %v2709_v38 = vor.u32 %v3703_v32, %v2708_v31  ;;  %v3669_v39 = vld [vmem:[%s5796_s1 + $0xc4] sm:$0xf0]  ;;  %v2636_v40 = vld [vmem:[%s5796_s1 + $0x140] sm:$0xf]  ;;  %v2500_v47 = vld [vmem:[%s5796_s1 + $0x30] sm:$0xf] }
   0xb   :  { %891 = vmatpush.bf16.msra.mxu3 %v2717_v25  ;;  %v3685_v41 = vld [vmem:[%s5796_s1 + $0x144] sm:$0xf0]  ;;  %v2700_v42 = vld [vmem:[%s5796_s1 + $0x1c0] sm:$0xf]  ;;  %v2573_v45 = vor.u32 %v3669_v39, %v2572_v37  ;;  %v3651_v48 = vld [vmem:[%s5796_s1 + $0x34] sm:$0xf0] }
   0xc   :  { %v3701_v43 = vld [vmem:[%s5796_s1 + $0x1c4] sm:$0xf0]  ;;  %853 = vmatpush.bf16.msra.mxu0 %v2517_v29  ;;  %v2637_v46 = vor.u32 %v3685_v41, %v2636_v40  ;;  %v2564_v49 = vld [vmem:[%s5796_s1 + $0xb0] sm:$0xf]  ;;  %v3667_v51 = vld [vmem:[%s5796_s1 + $0xb4] sm:$0xf0]  ;;  %v2501_v56 = vor.u32 %v3651_v48, %v2500_v47 }
   0xd   :  { %866 = vmatpush.bf16.msra.mxu1 %v2581_v33  ;;  %v2701_v50 = vor.u32 %v3701_v43, %v2700_v42  ;;  %v2628_v52 = vld [vmem:[%s5796_s1 + $0x130] sm:$0xf]  ;;  %v3683_v53 = vld [vmem:[%s5796_s1 + $0x134] sm:$0xf0]  ;;  %v2565_v57 = vor.u32 %v3667_v51, %v2564_v49  ;;  %v2492_v59 = vld [vmem:[%s5796_s1 + $0x20] sm:$0xf] }
   0xe   :  { %879 = vmatpush.bf16.msra.mxu2 %v2645_v34  ;;  %v2692_v54 = vld [vmem:[%s5796_s1 + $0x1b0] sm:$0xf]  ;;  %v3699_v55 = vld [vmem:[%s5796_s1 + $0x1b4] sm:$0xf0]  ;;  %v2629_v58 = vor.u32 %v3683_v53, %v2628_v52  ;;  %v3649_v60 = vld [vmem:[%s5796_s1 + $0x24] sm:$0xf0] }
   0xf   :  { %892 = vmatpush.bf16.msra.mxu3 %v2709_v38  ;;  %v2556_v61 = vld [vmem:[%s5796_s1 + $0xa0] sm:$0xf]  ;;  %v2693_v62 = vor.u32 %v3699_v55, %v2692_v54  ;;  %v3665_v63 = vld [vmem:[%s5796_s1 + $0xa4] sm:$0xf0]  ;;  %v2493_v4 = vor.u32 %v3649_v60, %v2492_v59  ;;  %v2484_v7 = vld [vmem:[%s5796_s1 + $0x10] sm:$0xf] }
  0x10   :  { %854 = vmatpush.bf16.msra.mxu0 %v2509_v44  ;;  %v2620_v0 = vld [vmem:[%s5796_s1 + $0x120] sm:$0xf]  ;;  %v3681_v1 = vld [vmem:[%s5796_s1 + $0x124] sm:$0xf0]  ;;  %v2557_v5 = vor.u32 %v3665_v63, %v2556_v61  ;;  %v3647_v8 = vld [vmem:[%s5796_s1 + $0x14] sm:$0xf0] }
  0x11   :  { %867 = vmatpush.bf16.msra.mxu1 %v2573_v45  ;;  %v2684_v2 = vld [vmem:[%s5796_s1 + $0x1a0] sm:$0xf]  ;;  %v3697_v3 = vld [vmem:[%s5796_s1 + $0x1a4] sm:$0xf0]  ;;  %v2621_v6 = vor.u32 %v3681_v1, %v2620_v0  ;;  %v2548_v9 = vld [vmem:[%s5796_s1 + $0x90] sm:$0xf]  ;;  %v2485_v16 = vor.u32 %v3647_v8, %v2484_v7 }
  0x12   :  { %880 = vmatpush.bf16.msra.mxu2 %v2637_v46  ;;  %v2685_v10 = vor.u32 %v3697_v3, %v2684_v2  ;;  %v3663_v11 = vld [vmem:[%s5796_s1 + $0x94] sm:$0xf0]  ;;  %v2612_v12 = vld [vmem:[%s5796_s1 + $0x110] sm:$0xf]  ;;  %v2476_v17 = vld [vmem:[%s5796_s1] sm:$0xf] }
  0x13   :  { %893 = vmatpush.bf16.msra.mxu3 %v2701_v50  ;;  %v3679_v13 = vld [vmem:[%s5796_s1 + $0x114] sm:$0xf0]  ;;  %v2676_v14 = vld [vmem:[%s5796_s1 + $0x190] sm:$0xf]  ;;  %v3645_v18 = vld [vmem:[%s5796_s1 + $0x4] sm:$0xf0]  ;;  %v2549_v19 = vor.u32 %v3663_v11, %v2548_v9 }
  0x14   :  { %855 = vmatpush.bf16.msra.mxu0 %v2501_v56  ;;  %v3695_v15 = vld [vmem:[%s5796_s1 + $0x194] sm:$0xf0]  ;;  %v2613_v20 = vor.u32 %v3679_v13, %v2612_v12  ;;  %v2540_v21 = vld [vmem:[%s5796_s1 + $0x80] sm:$0xf]  ;;  %v3661_v22 = vld [vmem:[%s5796_s1 + $0x84] sm:$0xf0]  ;;  %v2477_v31 = vor.u32 %v3645_v18, %v2476_v17 }
  0x15   :  { %868 = vmatpush.bf16.msra.mxu1 %v2565_v57  ;;  %v2604_v23 = vld [vmem:[%s5796_s1 + $0x100] sm:$0xf]  ;;  %v2677_v24 = vor.u32 %v3695_v15, %v2676_v14  ;;  %v3677_v25 = vld [vmem:[%s5796_s1 + $0x104] sm:$0xf0]  ;;  %v2788_v28 = vld [vmem:[%s5796_s1 + $0x270] sm:$0xf]  ;;  %v2541_v35 = vor.u32 %v3661_v22, %v2540_v21 }
  0x16   :  { %881 = vmatpush.bf16.msra.mxu2 %v2629_v58  ;;  %v2668_v26 = vld [vmem:[%s5796_s1 + $0x180] sm:$0xf]  ;;  %v3693_v27 = vld [vmem:[%s5796_s1 + $0x184] sm:$0xf0]  ;;  %v3723_v29 = vld [vmem:[%s5796_s1 + $0x274] sm:$0xf0]  ;;  %v2605_v36 = vor.u32 %v3677_v25, %v2604_v23 }
  0x17   :  { %894 = vmatpush.bf16.msra.mxu3 %v2693_v62  ;;  %v2852_v30 = vld [vmem:[%s5796_s1 + $0x2f0] sm:$0xf]  ;;  %v3739_v32 = vld [vmem:[%s5796_s1 + $0x2f4] sm:$0xf0]  ;;  %v2669_v39 = vor.u32 %v3693_v27, %v2668_v26  ;;  %v2789_v40 = vor.u32 %v3723_v29, %v2788_v28  ;;  %v2780_v43 = vld [vmem:[%s5796_s1 + $0x260] sm:$0xf] }
  0x18   :  { %856 = vmatpush.bf16.msra.mxu0 %v2493_v4  ;;  %v2916_v33 = vld [vmem:[%s5796_s1 + $0x370] sm:$0xf]  ;;  %v3755_v34 = vld [vmem:[%s5796_s1 + $0x374] sm:$0xf0]  ;;  %v2853_v41 = vor.u32 %v3739_v32, %v2852_v30  ;;  %v3721_v44 = vld [vmem:[%s5796_s1 + $0x264] sm:$0xf0] }
  0x19   :  { %869 = vmatpush.bf16.msra.mxu1 %v2557_v5  ;;  %v2980_v37 = vld [vmem:[%s5796_s1 + $0x3f0] sm:$0xf]  ;;  %v3771_v38 = vld [vmem:[%s5796_s1 + $0x3f4] sm:$0xf0]  ;;  %v2917_v42 = vor.u32 %v3755_v34, %v2916_v33  ;;  %v2844_v45 = vld [vmem:[%s5796_s1 + $0x2e0] sm:$0xf]  ;;  %v2781_v53 = vor.u32 %v3721_v44, %v2780_v43 }
  0x1a   :  { %882 = vmatpush.bf16.msra.mxu2 %v2621_v6  ;;  %v2981_v46 = vor.u32 %v3771_v38, %v2980_v37  ;;  %v3737_v47 = vld [vmem:[%s5796_s1 + $0x2e4] sm:$0xf0]  ;;  %v2908_v48 = vld [vmem:[%s5796_s1 + $0x360] sm:$0xf]  ;;  %v2772_v54 = vld [vmem:[%s5796_s1 + $0x250] sm:$0xf] }
  0x1b   :  { %895 = vmatpush.bf16.msra.mxu3 %v2685_v10  ;;  %v3753_v49 = vld [vmem:[%s5796_s1 + $0x364] sm:$0xf0]  ;;  %v2972_v50 = vld [vmem:[%s5796_s1 + $0x3e0] sm:$0xf]  ;;  %v2845_v57 = vor.u32 %v3737_v47, %v2844_v45  ;;  %v3719_v59 = vld [vmem:[%s5796_s1 + $0x254] sm:$0xf0] }
  0x1c   :  { %857 = vmatpush.bf16.msra.mxu0 %v2485_v16  ;;  %v3769_v51 = vld [vmem:[%s5796_s1 + $0x3e4] sm:$0xf0]  ;;  %v2909_v58 = vor.u32 %v3753_v49, %v2908_v48  ;;  %v2836_v60 = vld [vmem:[%s5796_s1 + $0x2d0] sm:$0xf]  ;;  %v3735_v61 = vld [vmem:[%s5796_s1 + $0x2d4] sm:$0xf0]  ;;  %v2773_v8 = vor.u32 %v3719_v59, %v2772_v54 }
  0x1d   :  { %870 = vmatpush.bf16.msra.mxu1 %v2549_v19  ;;  %v46_v52 = vld [vmem:[%s5797_s0 + $0x8] sm:$0xff]  ;;  %v2973_v62 = vor.u32 %v3769_v51, %v2972_v50  ;;  %v2900_v63 = vld [vmem:[%s5796_s1 + $0x350] sm:$0xf]  ;;  %v3751_v0 = vld [vmem:[%s5796_s1 + $0x354] sm:$0xf0]  ;;  %v2837_v9 = vor.u32 %v3735_v61, %v2836_v60 }
  0x1e   :  { %883 = vmatpush.bf16.msra.mxu2 %v2613_v20  ;;  %v189_v55 = vunpack.c.l.b16 %v46_v52  ;;  %v190_v56 = vunpack.c.h.b16 %v46_v52  ;;  %v45_v2 = vld [vmem:[%s5797_s0] sm:$0xff]  ;;  %v2964_v3 = vld [vmem:[%s5796_s1 + $0x3d0] sm:$0xf]  ;;  %v3767_v4 = vld [vmem:[%s5796_s1 + $0x3d4] sm:$0xf0]  ;;  %v2901_v10 = vor.u32 %v3751_v0, %v2900_v63 }
  0x1f   :  { %896 = vmatpush.bf16.msra.mxu3 %v2677_v24  ;;  %v187_v5 = vunpack.c.l.b16 %v45_v2  ;;  %v188_v7 = vunpack.c.h.b16 %v45_v2  ;;  %v2764_v11 = vld [vmem:[%s5796_s1 + $0x240] sm:$0xf]  ;;  %v3717_v12 = vld [vmem:[%s5796_s1 + $0x244] sm:$0xf0]  ;;  %v2965_v16 = vor.u32 %v3767_v4, %v2964_v3  ;;  %v2756_v25 = vld [vmem:[%s5796_s1 + $0x230] sm:$0xf] }
  0x20   :  { %858 = vmatpush.bf16.msra.mxu0 %v2477_v31  ;;  %v4276_v1 = vpack.c.b16 %v189_v55, %v189_v55  ;;  %v4287_v6 = vpack.c.b16 %v190_v56, %v190_v56  ;;  %v2828_v13 = vld [vmem:[%s5796_s1 + $0x2c0] sm:$0xf]  ;;  %v3733_v17 = vld [vmem:[%s5796_s1 + $0x2c4] sm:$0xf0]  ;;  %v2765_v22 = vor.u32 %v3717_v12, %v2764_v11  ;;  %v3715_v26 = vld [vmem:[%s5796_s1 + $0x234] sm:$0xf0] }
  0x21   :  { %871 = vmatpush.bf16.msra.mxu1 %v2541_v35  ;;  %v4299_v14 = vpack.c.b16 %v187_v5, %v187_v5  ;;  %v4301_v15 = vpack.c.b16 %v188_v7, %v188_v7  ;;  %v2892_v18 = vld [vmem:[%s5796_s1 + $0x340] sm:$0xf]  ;;  %v3749_v19 = vld [vmem:[%s5796_s1 + $0x344] sm:$0xf0]  ;;  %v2829_v23 = vor.u32 %v3733_v17, %v2828_v13  ;;  %v2820_v27 = vld [vmem:[%s5796_s1 + $0x2b0] sm:$0xf]  ;;  %v2757_v34 = vor.u32 %v3715_v26, %v2756_v25 }
  0x22   :  { %884 = vmatpush.bf16.msra.mxu2 %v2605_v36  ;;  %v2956_v20 = vld [vmem:[%s5796_s1 + $0x3c0] sm:$0xf]  ;;  %v3765_v21 = vld [vmem:[%s5796_s1 + $0x3c4] sm:$0xf0]  ;;  %v2893_v24 = vor.u32 %v3749_v19, %v2892_v18  ;;  %v3731_v29 = vld [vmem:[%s5796_s1 + $0x2b4] sm:$0xf0] }
  0x23   :  { %897 = vmatpush.bf16.msra.mxu3 %v2669_v39  ;;  %859 = vmatmul.bf16.vlgmr.msra.gmra.mxu0 %v4299_v14  ;;  %v2957_v28 = vor.u32 %v3765_v21, %v2956_v20  ;;  %v2884_v30 = vld [vmem:[%s5796_s1 + $0x330] sm:$0xf]  ;;  %v3747_v31 = vld [vmem:[%s5796_s1 + $0x334] sm:$0xf0]  ;;  %v2821_v35 = vor.u32 %v3731_v29, %v2820_v27  ;;  %v2748_v37 = vld [vmem:[%s5796_s1 + $0x220] sm:$0xf] }
  0x24   :  { %903 = vmatpush.bf16.msrb.mxu0 %v2789_v40  ;;  %872 = vmatmul.bf16.vlgmr.msra.gmra.mxu1 %v4301_v15  ;;  %v2948_v32 = vld [vmem:[%s5796_s1 + $0x3b0] sm:$0xf]  ;;  %v3763_v33 = vld [vmem:[%s5796_s1 + $0x3b4] sm:$0xf0]  ;;  %v2885_v36 = vor.u32 %v3747_v31, %v2884_v30  ;;  %v3713_v38 = vld [vmem:[%s5796_s1 + $0x224] sm:$0xf0] }
  0x25   :  { %916 = vmatpush.bf16.msrb.mxu1 %v2853_v41  ;;  %885 = vmatmul.bf16.vlgmr.msra.gmra.mxu2 %v4276_v1  ;;  %v2812_v39 = vld [vmem:[%s5796_s1 + $0x2a0] sm:$0xf]  ;;  %v2949_v40 = vor.u32 %v3763_v33, %v2948_v32  ;;  %v3729_v41 = vld [vmem:[%s5796_s1 + $0x2a4] sm:$0xf0]  ;;  %v2740_v49 = vld [vmem:[%s5796_s1 + $0x210] sm:$0xf] }
  0x26   :  { %929 = vmatpush.bf16.msrb.mxu2 %v2917_v42  ;;  %898 = vmatmul.bf16.vlgmr.msra.gmra.mxu3 %v4287_v6  ;;  %v2876_v42 = vld [vmem:[%s5796_s1 + $0x320] sm:$0xf]  ;;  %v3745_v43 = vld [vmem:[%s5796_s1 + $0x324] sm:$0xf0]  ;;  %v2813_v47 = vor.u32 %v3729_v41, %v2812_v39  ;;  %v3711_v50 = vld [vmem:[%s5796_s1 + $0x214] sm:$0xf0] }
  0x27   :  { %942 = vmatpush.bf16.msrb.mxu3 %v2981_v46  ;;  %v2940_v44 = vld [vmem:[%s5796_s1 + $0x3a0] sm:$0xf]  ;;  %v3761_v45 = vld [vmem:[%s5796_s1 + $0x3a4] sm:$0xf0]  ;;  %v2749_v46 = vor.u32 %v3713_v38, %v2748_v37  ;;  %v2877_v48 = vor.u32 %v3745_v43, %v2876_v42  ;;  %v2804_v51 = vld [vmem:[%s5796_s1 + $0x290] sm:$0xf]  ;;  %v2741_v59 = vor.u32 %v3711_v50, %v2740_v49 }
  0x28   :  { %904 = vmatpush.bf16.msrb.mxu0 %v2781_v53  ;;  %v2941_v52 = vor.u32 %v3761_v45, %v2940_v44  ;;  %v3727_v53 = vld [vmem:[%s5796_s1 + $0x294] sm:$0xf0]  ;;  %v2868_v54 = vld [vmem:[%s5796_s1 + $0x310] sm:$0xf]  ;;  %v3709_v60 = vld [vmem:[%s5796_s1 + $0x204] sm:$0xf0] }
  0x29   :  { %917 = vmatpush.bf16.msrb.mxu1 %v2845_v57  ;;  %v3743_v55 = vld [vmem:[%s5796_s1 + $0x314] sm:$0xf0]  ;;  %v2932_v56 = vld [vmem:[%s5796_s1 + $0x390] sm:$0xf]  ;;  %v2796_v61 = vld [vmem:[%s5796_s1 + $0x280] sm:$0xf]  ;;  %v2805_v63 = vor.u32 %v3727_v53, %v2804_v51 }
  0x2a   :  { %930 = vmatpush.bf16.msrb.mxu2 %v2909_v58  ;;  %v3759_v57 = vld [vmem:[%s5796_s1 + $0x394] sm:$0xf0]  ;;  %v2732_v58 = vld [vmem:[%s5796_s1 + $0x200] sm:$0xf]  ;;  %v2869_v0 = vor.u32 %v3743_v55, %v2868_v54  ;;  %v3741_v3 = vld [vmem:[%s5796_s1 + $0x304] sm:$0xf0] }
  0x2b   :  { %943 = vmatpush.bf16.msrb.mxu3 %v2973_v62  ;;  %v3725_v62 = vld [vmem:[%s5796_s1 + $0x284] sm:$0xf0]  ;;  %v2860_v2 = vld [vmem:[%s5796_s1 + $0x300] sm:$0xf]  ;;  %v48_v4 = vld [vmem:[%s5797_s0 + $0x18] sm:$0xff]  ;;  %v2933_v5 = vor.u32 %v3759_v57, %v2932_v56  ;;  %v2733_v13 = vor.u32 %v3709_v60, %v2732_v58 }
  0x2c   :  { %905 = vmatpush.bf16.msrb.mxu0 %v2773_v8  ;;  %v2924_v7 = vld [vmem:[%s5796_s1 + $0x380] sm:$0xf]  ;;  %v3757_v8 = vld [vmem:[%s5796_s1 + $0x384] sm:$0xf0]  ;;  %v2534_v11 = vld [vmem:[%s5796_s1 + $0x78] sm:$0xf0]  ;;  %v193_v19 = vunpack.c.l.b16 %v48_v4  ;;  %v2797_v20 = vor.u32 %v3725_v62, %v2796_v61  ;;  %v2861_v21 = vor.u32 %v3741_v3, %v2860_v2  ;;  %v194_v25 = vunpack.c.h.b16 %v48_v4 }
  0x2d   :  { %918 = vmatpush.bf16.msrb.mxu1 %v2837_v9  ;;  %v47_v9 = vld [vmem:[%s5797_s0 + $0x10] sm:$0xff]  ;;  %v2662_v18 = vld [vmem:[%s5796_s1 + $0x178] sm:$0xf0]  ;;  %v2925_v26 = vor.u32 %v3757_v8, %v2924_v7  ;;  %v3656_v31 = vld [vmem:[%s5796_s1 + $0x64] sm:$0xf] }
  0x2e   :  { %931 = vmatpush.bf16.msrb.mxu2 %v2901_v10  ;;  %v3658_v10 = vld [vmem:[%s5796_s1 + $0x74] sm:$0xf]  ;;  %v2526_v32 = vld [vmem:[%s5796_s1 + $0x68] sm:$0xf0]  ;;  %v3672_v33 = vld [vmem:[%s5796_s1 + $0xe4] sm:$0xf] }
  0x2f   :  { %944 = vmatpush.bf16.msrb.mxu3 %v2965_v16  ;;  %v3674_v12 = vld [vmem:[%s5796_s1 + $0xf4] sm:$0xf]  ;;  %v2598_v16 = vld [vmem:[%s5796_s1 + $0xf8] sm:$0xf0]  ;;  %v2537_v27 = vor.u32 %v3658_v10, %v2534_v11  ;;  %v3688_v37 = vld [vmem:[%s5796_s1 + $0x164] sm:$0xf]  ;;  %v2529_v43 = vor.u32 %v3656_v31, %v2526_v32 }
  0x30   :  { %906 = vmatpush.bf16.msrb.mxu0 %v2765_v22  ;;  %v3690_v17 = vld [vmem:[%s5796_s1 + $0x174] sm:$0xf]  ;;  %v2601_v29 = vor.u32 %v3674_v12, %v2598_v16  ;;  %v2654_v38 = vld [vmem:[%s5796_s1 + $0x168] sm:$0xf0]  ;;  %v3704_v41 = vld [vmem:[%s5796_s1 + $0x1e4] sm:$0xf] }
  0x31   :  { %919 = vmatpush.bf16.msrb.mxu1 %v2829_v23  ;;  %v3706_v22 = vld [vmem:[%s5796_s1 + $0x1f4] sm:$0xf]  ;;  %v2726_v23 = vld [vmem:[%s5796_s1 + $0x1f8] sm:$0xf0]  ;;  %v2665_v30 = vor.u32 %v3690_v17, %v2662_v18  ;;  %v2718_v42 = vld [vmem:[%s5796_s1 + $0x1e8] sm:$0xf0] }
  0x32   :  { %932 = vmatpush.bf16.msrb.mxu2 %v2893_v24  ;;  %v191_v24 = vunpack.c.l.b16 %v47_v9  ;;  %v3670_v49 = vld [vmem:[%s5796_s1 + $0xd4] sm:$0xf]  ;;  %v2721_v50 = vor.u32 %v3704_v41, %v2718_v42  ;;  %v2582_v51 = vld [vmem:[%s5796_s1 + $0xd8] sm:$0xf0]  ;;  %v2510_v60 = vld [vmem:[%s5796_s1 + $0x48] sm:$0xf0] }
  0x33   :  { %945 = vmatpush.bf16.msrb.mxu3 %v2957_v28  ;;  %v192_v28 = vunpack.c.h.b16 %v47_v9  ;;  %v2646_v53 = vld [vmem:[%s5796_s1 + $0x158] sm:$0xf0]  ;;  %v3702_v54 = vld [vmem:[%s5796_s1 + $0x1d4] sm:$0xf]  ;;  %v2585_v57 = vor.u32 %v3670_v49, %v2582_v51  ;;  %v3668_v61 = vld [vmem:[%s5796_s1 + $0xc4] sm:$0xf] }
  0x34   :  { %907 = vmatpush.bf16.msrb.mxu0 %v2757_v34  ;;  %v2729_v34 = vor.u32 %v3706_v22, %v2726_v23  ;;  %v4467_v39 = vpack.c.b16 %v191_v24, %v191_v24  ;;  %v2710_v55 = vld [vmem:[%s5796_s1 + $0x1d8] sm:$0xf0]  ;;  %v2638_v2 = vld [vmem:[%s5796_s1 + $0x148] sm:$0xf0]  ;;  %v3700_v3 = vld [vmem:[%s5796_s1 + $0x1c4] sm:$0xf] }
  0x35   :  { %920 = vmatpush.bf16.msrb.mxu1 %v2821_v35  ;;  %v4456_v35 = vpack.c.b16 %v193_v19, %v193_v19  ;;  %v4477_v44 = vpack.c.b16 %v192_v28, %v192_v28  ;;  %v2713_v62 = vor.u32 %v3702_v54, %v2710_v55  ;;  %v2702_v4 = vld [vmem:[%s5796_s1 + $0x1c8] sm:$0xf0]  ;;  %v3650_v9 = vld [vmem:[%s5796_s1 + $0x34] sm:$0xf]  ;;  %v2502_v10 = vld [vmem:[%s5796_s1 + $0x38] sm:$0xf0] }
  0x36   :  { %933 = vmatpush.bf16.msrb.mxu2 %v2885_v36  ;;  %v2590_v36 = vld [vmem:[%s5796_s1 + $0xe8] sm:$0xf0]  ;;  %v3666_v11 = vld [vmem:[%s5796_s1 + $0xb4] sm:$0xf]  ;;  %v2705_v12 = vor.u32 %v3700_v3, %v2702_v4  ;;  %v2630_v17 = vld [vmem:[%s5796_s1 + $0x138] sm:$0xf0] }
  0x37   :  { %946 = vmatpush.bf16.msrb.mxu3 %v2949_v40  ;;  %v4469_v40 = vpack.c.b16 %v194_v25, %v194_v25  ;;  %v2593_v45 = vor.u32 %v3672_v33, %v2590_v36  ;;  %v3682_v16 = vld [vmem:[%s5796_s1 + $0x134] sm:$0xf]  ;;  %v2694_v19 = vld [vmem:[%s5796_s1 + $0x1b8] sm:$0xf0]  ;;  %v3648_v23 = vld [vmem:[%s5796_s1 + $0x24] sm:$0xf] }
  0x38   :  { %908 = vmatpush.bf16.msrb.mxu0 %v2749_v46  ;;  %v2657_v46 = vor.u32 %v3688_v37, %v2654_v38  ;;  %v3698_v18 = vld [vmem:[%s5796_s1 + $0x1b4] sm:$0xf]  ;;  %v2633_v22 = vor.u32 %v3682_v16, %v2630_v17  ;;  %v2494_v24 = vld [vmem:[%s5796_s1 + $0x28] sm:$0xf0]  ;;  %v3664_v25 = vld [vmem:[%s5796_s1 + $0xa4] sm:$0xf] }
  0x39   :  { %921 = vmatpush.bf16.msrb.mxu1 %v2813_v47  ;;  %v3654_v47 = vld [vmem:[%s5796_s1 + $0x54] sm:$0xf]  ;;  %v3680_v28 = vld [vmem:[%s5796_s1 + $0x124] sm:$0xf]  ;;  %v2686_v31 = vld [vmem:[%s5796_s1 + $0x1a8] sm:$0xf0]  ;;  %v2497_v32 = vor.u32 %v3648_v23, %v2494_v24 }
  0x3a   :  { %934 = vmatpush.bf16.msrb.mxu2 %v2877_v48  ;;  %v2518_v48 = vld [vmem:[%s5796_s1 + $0x58] sm:$0xf0]  ;;  %v3646_v36 = vld [vmem:[%s5796_s1 + $0x14] sm:$0xf]  ;;  %v3644_v49 = vld [vmem:[%s5796_s1 + $0x4] sm:$0xf] }
  0x3b   :  { %947 = vmatpush.bf16.msrb.mxu3 %v2941_v52  ;;  %v3686_v52 = vld [vmem:[%s5796_s1 + $0x154] sm:$0xf]  ;;  %v2521_v56 = vor.u32 %v3654_v47, %v2518_v48  ;;  %v2486_v37 = vld [vmem:[%s5796_s1 + $0x18] sm:$0xf0]  ;;  %v2542_v54 = vld [vmem:[%s5796_s1 + $0x88] sm:$0xf0] }
  0x3c   :  { %909 = vmatpush.bf16.msrb.mxu0 %v2741_v59  ;;  %v2649_v58 = vor.u32 %v3686_v52, %v2646_v53  ;;  %v3652_v59 = vld [vmem:[%s5796_s1 + $0x44] sm:$0xf]  ;;  %v3662_v38 = vld [vmem:[%s5796_s1 + $0x94] sm:$0xf]  ;;  %v2550_v42 = vld [vmem:[%s5796_s1 + $0x98] sm:$0xf0]  ;;  %v2489_v48 = vor.u32 %v3646_v36, %v2486_v37 }
  0x3d   :  { %922 = vmatpush.bf16.msrb.mxu1 %v2805_v63  ;;  %v2574_v63 = vld [vmem:[%s5796_s1 + $0xc8] sm:$0xf0]  ;;  %v2678_v47 = vld [vmem:[%s5796_s1 + $0x198] sm:$0xf0]  ;;  %v2553_v51 = vor.u32 %v3662_v38, %v2550_v42  ;;  %v3660_v53 = vld [vmem:[%s5796_s1 + $0x84] sm:$0xf] }
  0x3e   :  { %935 = vmatpush.bf16.msrb.mxu2 %v2869_v0  ;;  %v3684_v0 = vld [vmem:[%s5796_s1 + $0x144] sm:$0xf]  ;;  %v2577_v7 = vor.u32 %v3668_v61, %v2574_v63  ;;  %v2790_v61 = vld [vmem:[%s5796_s1 + $0x278] sm:$0xf0]  ;;  %v2545_v4 = vor.u32 %v3660_v53, %v2542_v54  ;;  %v2782_v16 = vld [vmem:[%s5796_s1 + $0x268] sm:$0xf0] }
  0x3f   :  { %948 = vmatpush.bf16.msrb.mxu3 %v2933_v5  ;;  %v2513_v5 = vor.u32 %v3652_v59, %v2510_v60  ;;  %v2641_v8 = vor.u32 %v3684_v0, %v2638_v2  ;;  %v3676_v55 = vld [vmem:[%s5796_s1 + $0x104] sm:$0xf]  ;;  %v2670_v59 = vld [vmem:[%s5796_s1 + $0x188] sm:$0xf0]  ;;  %v3722_v60 = vld [vmem:[%s5796_s1 + $0x274] sm:$0xf] }
  0x40   :  { %910 = vmatpush.bf16.msrb.mxu0 %v2733_v13  ;;  %v2566_v13 = vld [vmem:[%s5796_s1 + $0xb8] sm:$0xf0]  ;;  %v3754_v2 = vld [vmem:[%s5796_s1 + $0x374] sm:$0xf]  ;;  %v3736_v17 = vld [vmem:[%s5796_s1 + $0x2e4] sm:$0xf] }
  0x41   :  { %923 = vmatpush.bf16.msrb.mxu1 %v2797_v20  ;;  %v2505_v20 = vor.u32 %v3650_v9, %v2502_v10  ;;  %v2854_v0 = vld [vmem:[%s5796_s1 + $0x2f8] sm:$0xf0]  ;;  %v2793_v10 = vor.u32 %v3722_v60, %v2790_v61  ;;  %v2974_v23 = vld [vmem:[%s5796_s1 + $0x3e8] sm:$0xf0]  ;;  %v3730_v53 = vld [vmem:[%s5796_s1 + $0x2b4] sm:$0xf] }
  0x42   :  { %936 = vmatpush.bf16.msrb.mxu2 %v2861_v21  ;;  %v2569_v21 = vor.u32 %v3666_v11, %v2566_v13  ;;  %v2918_v3 = vld [vmem:[%s5796_s1 + $0x378] sm:$0xf0]  ;;  %v3720_v13 = vld [vmem:[%s5796_s1 + $0x264] sm:$0xf]  ;;  %v2766_v42 = vld [vmem:[%s5796_s1 + $0x248] sm:$0xf0] }
  0x43   :  { %949 = vmatpush.bf16.msrb.mxu3 %v2925_v26  ;;  %911 = vmatmul.bf16.vlgmr.msrb.gmra.mxu0 %v4467_v39  ;;  %v2697_v26 = vor.u32 %v3698_v18, %v2694_v19  ;;  %v2846_v19 = vld [vmem:[%s5796_s1 + $0x2e8] sm:$0xf0]  ;;  %v2785_v24 = vor.u32 %v3720_v13, %v2782_v16  ;;  %v3710_v13 = vld [vmem:[%s5796_s1 + $0x214] sm:$0xf]  ;;  %v2742_v16 = vld [vmem:[%s5796_s1 + $0x218] sm:$0xf0] }
  0x44   :  { %955 = vmatpush.bf16.msra.mxu0 %v2537_v27  ;;  %924 = vmatmul.bf16.vlgmr.msrb.gmra.mxu1 %v4477_v44  ;;  %v2558_v27 = vld [vmem:[%s5796_s1 + $0xa8] sm:$0xf0] }
  0x45   :  { %968 = vmatpush.bf16.msra.mxu1 %v2601_v29  ;;  %937 = vmatmul.bf16.vlgmr.msrb.gmra.mxu2 %v4456_v35  ;;  %v2622_v29 = vld [vmem:[%s5796_s1 + $0x128] sm:$0xf0]  ;;  %v2561_v33 = vor.u32 %v3664_v25, %v2558_v27  ;;  %v2849_v25 = vor.u32 %v3736_v17, %v2846_v19  ;;  %v3718_v27 = vld [vmem:[%s5796_s1 + $0x254] sm:$0xf]  ;;  %v2806_v19 = vld [vmem:[%s5796_s1 + $0x298] sm:$0xf0] }
  0x46   :  { %981 = vmatpush.bf16.msra.mxu2 %v2665_v30  ;;  %950 = vmatmul.bf16.vlgmr.msrb.gmra.mxu3 %v4469_v40  ;;  %v3696_v30 = vld [vmem:[%s5796_s1 + $0x1a4] sm:$0xf]  ;;  %v3726_v17 = vld [vmem:[%s5796_s1 + $0x294] sm:$0xf] }
  0x47   :  { %994 = vmatpush.bf16.msra.mxu3 %v2729_v34  ;;  %v2625_v34 = vor.u32 %v3680_v28, %v2622_v29  ;;  %v2689_v41 = vor.u32 %v3696_v30, %v2686_v31  ;;  %v2774_v28 = vld [vmem:[%s5796_s1 + $0x258] sm:$0xf0]  ;;  %v3734_v29 = vld [vmem:[%s5796_s1 + $0x2d4] sm:$0xf] }
  0x48   :  { %956 = vmatpush.bf16.msra.mxu0 %v2529_v43  ;;  %v3678_v43 = vld [vmem:[%s5796_s1 + $0x114] sm:$0xf]  ;;  %v2838_v31 = vld [vmem:[%s5796_s1 + $0x2d8] sm:$0xf0]  ;;  %v2777_v36 = vor.u32 %v3718_v27, %v2774_v28  ;;  %v3708_v27 = vld [vmem:[%s5796_s1 + $0x204] sm:$0xf] }
  0x49   :  { %969 = vmatpush.bf16.msra.mxu1 %v2593_v45  ;;  %v2614_v45 = vld [vmem:[%s5796_s1 + $0x118] sm:$0xf0]  ;;  %v2841_v37 = vor.u32 %v3734_v29, %v2838_v31  ;;  %v2734_v28 = vld [vmem:[%s5796_s1 + $0x208] sm:$0xf0]  ;;  %v3724_v29 = vld [vmem:[%s5796_s1 + $0x284] sm:$0xf] }
  0x4a   :  { %982 = vmatpush.bf16.msra.mxu2 %v2657_v46  ;;  %v3694_v46 = vld [vmem:[%s5796_s1 + $0x194] sm:$0xf]  ;;  %v2617_v52 = vor.u32 %v3678_v43, %v2614_v45  ;;  %v3748_v43 = vld [vmem:[%s5796_s1 + $0x344] sm:$0xf]  ;;  %v2894_v45 = vld [vmem:[%s5796_s1 + $0x348] sm:$0xf0] }
  0x4b   :  { %995 = vmatpush.bf16.msra.mxu3 %v2721_v50  ;;  %v2478_v50 = vld [vmem:[%s5796_s1 + $0x8] sm:$0xf0] }
  0x4c   :  { %957 = vmatpush.bf16.msra.mxu0 %v2521_v56  ;;  %v2681_v56 = vor.u32 %v3694_v46, %v2678_v47  ;;  %v2481_v63 = vor.u32 %v3644_v49, %v2478_v50  ;;  %v3764_v46 = vld [vmem:[%s5796_s1 + $0x3c4] sm:$0xf]  ;;  %v2958_v47 = vld [vmem:[%s5796_s1 + $0x3c8] sm:$0xf0]  ;;  %v2897_v50 = vor.u32 %v3748_v43, %v2894_v45  ;;  %v3775_v43 = vld [vmem:[%s5798_s3 + $0x18] sm:$0xff] }
  0x4d   :  { %970 = vmatpush.bf16.msra.mxu1 %v2585_v57  ;;  %v2606_v57 = vld [vmem:[%s5796_s1 + $0x108] sm:$0xf0]  ;;  %v2961_v54 = vor.u32 %v3764_v46, %v2958_v47  ;;  %v3791_v45 = vld [vmem:[%s5799_s5 + $0x18] sm:$0xff]  ;;  %v3774_v46 = vld [vmem:[%s5798_s3 + $0x10] sm:$0xff] }
  0x4e   :  { %983 = vmatpush.bf16.msra.mxu2 %v2649_v58  ;;  %v3692_v58 = vld [vmem:[%s5796_s1 + $0x184] sm:$0xf]  ;;  %v2798_v31 = vld [vmem:[%s5796_s1 + $0x288] sm:$0xf0]  ;;  %v3790_v47 = vld [vmem:[%s5799_s5 + $0x10] sm:$0xff] }
  0x4f   :  { %996 = vmatpush.bf16.msra.mxu3 %v2713_v62  ;;  %v3738_v62 = vld [vmem:[%s5796_s1 + $0x2f4] sm:$0xf]  ;;  %v2673_v9 = vor.u32 %v3692_v58, %v2670_v59  ;;  %v2950_v59 = vld [vmem:[%s5796_s1 + $0x3b8] sm:$0xf0] }
  0x50   :  { %958 = vmatpush.bf16.msra.mxu0 %v2513_v5  ;;  %v2609_v5 = vor.u32 %v3676_v55, %v2606_v57  ;;  %v2857_v11 = vor.u32 %v3738_v62, %v2854_v0  ;;  %v2822_v55 = vld [vmem:[%s5796_s1 + $0x2b8] sm:$0xf0]  ;;  %v3762_v58 = vld [vmem:[%s5796_s1 + $0x3b4] sm:$0xf]  ;;  %v2750_v0 = vld [vmem:[%s5796_s1 + $0x228] sm:$0xf0] }
  0x51   :  { %971 = vmatpush.bf16.msra.mxu1 %v2577_v7  ;;  %v3770_v7 = vld [vmem:[%s5796_s1 + $0x3f4] sm:$0xf]  ;;  %v2886_v57 = vld [vmem:[%s5796_s1 + $0x338] sm:$0xf0]  ;;  %v2825_v61 = vor.u32 %v3730_v53, %v2822_v55  ;;  %v4872_v53 = vld [vmem:[%s5801_s2] sm:$0x3] }
  0x52   :  { %984 = vmatpush.bf16.msra.mxu2 %v2641_v8  ;;  %v2982_v8 = vld [vmem:[%s5796_s1 + $0x3f8] sm:$0xf0]  ;;  %v3772_v55 = vld [vmem:[%s5798_s3] sm:$0xff] }
  0x53   :  { %997 = vmatpush.bf16.msra.mxu3 %v2705_v12  ;;  %v2921_v12 = vor.u32 %v3754_v2, %v2918_v3  ;;  %v2985_v18 = vor.u32 %v3770_v7, %v2982_v8  ;;  %v3728_v2 = vld [vmem:[%s5796_s1 + $0x2a4] sm:$0xf]  ;;  %v2953_v3 = vor.u32 %v3762_v58, %v2950_v59  ;;  %v2878_v7 = vld [vmem:[%s5796_s1 + $0x328] sm:$0xf0] }
  0x54   :  { %959 = vmatpush.bf16.msra.mxu0 %v2505_v20  ;;  %v3752_v20 = vld [vmem:[%s5796_s1 + $0x364] sm:$0xf] }
  0x55   :  { %972 = vmatpush.bf16.msra.mxu1 %v2569_v21  ;;  %v2910_v21 = vld [vmem:[%s5796_s1 + $0x368] sm:$0xf0]  ;;  %v3760_v8 = vld [vmem:[%s5796_s1 + $0x3a4] sm:$0xf] }
  0x56   :  { %985 = vmatpush.bf16.msra.mxu2 %v2633_v22  ;;  %v3768_v22 = vld [vmem:[%s5796_s1 + $0x3e4] sm:$0xf] }
  0x57   :  { %998 = vmatpush.bf16.msra.mxu3 %v2697_v26  ;;  %v2913_v26 = vor.u32 %v3752_v20, %v2910_v21  ;;  %v2977_v30 = vor.u32 %v3768_v22, %v2974_v23  ;;  %v3742_v20 = vld [vmem:[%s5796_s1 + $0x314] sm:$0xf]  ;;  %v2870_v21 = vld [vmem:[%s5796_s1 + $0x318] sm:$0xf0] }
  0x58   :  { %960 = vmatpush.bf16.msra.mxu0 %v2497_v32  ;;  %v3750_v32 = vld [vmem:[%s5796_s1 + $0x354] sm:$0xf]  ;;  %v2934_v23 = vld [vmem:[%s5796_s1 + $0x398] sm:$0xf0] }
  0x59   :  { %973 = vmatpush.bf16.msra.mxu1 %v2561_v33  ;;  %v2902_v33 = vld [vmem:[%s5796_s1 + $0x358] sm:$0xf0]  ;;  %v3758_v22 = vld [vmem:[%s5796_s1 + $0x394] sm:$0xf] }
  0x5a   :  { %986 = vmatpush.bf16.msra.mxu2 %v2625_v34  ;;  %v3766_v34 = vld [vmem:[%s5796_s1 + $0x3d4] sm:$0xf]  ;;  %v2905_v38 = vor.u32 %v3750_v32, %v2902_v33  ;;  %v3740_v32 = vld [vmem:[%s5796_s1 + $0x304] sm:$0xf]  ;;  %v2862_v33 = vld [vmem:[%s5796_s1 + $0x308] sm:$0xf0] }
  0x5b   :  { %999 = vmatpush.bf16.msra.mxu3 %v2689_v41  ;;  %v3716_v41 = vld [vmem:[%s5796_s1 + $0x244] sm:$0xf] }
  0x5c   :  { %961 = vmatpush.bf16.msra.mxu0 %v2489_v48  ;;  %v2769_v48 = vor.u32 %v3716_v41, %v2766_v42  ;;  %v3779_v42 = vld [vmem:[%s5798_s3 + $0x38] sm:$0xff] }
  0x5d   :  { %974 = vmatpush.bf16.msra.mxu1 %v2553_v51  ;;  %v3714_v51 = vld [vmem:[%s5796_s1 + $0x234] sm:$0xf] }
  0x5e   :  { %987 = vmatpush.bf16.msra.mxu2 %v2617_v52  ;;  %v2758_v52 = vld [vmem:[%s5796_s1 + $0x238] sm:$0xf0] }
  0x5f   :  { %1000 = vmatpush.bf16.msra.mxu3 %v2681_v56  ;;  %v3746_v56 = vld [vmem:[%s5796_s1 + $0x334] sm:$0xf]  ;;  %v2761_v60 = vor.u32 %v3714_v51, %v2758_v52  ;;  %v3789_v51 = vld [vmem:[%s5799_s5 + $0x8] sm:$0xff] }
  0x60   :  { %962 = vmatpush.bf16.msra.mxu0 %v2481_v63  ;;  %v2889_v62 = vor.u32 %v3746_v56, %v2886_v57  ;;  %v3712_v63 = vld [vmem:[%s5796_s1 + $0x224] sm:$0xf]  ;;  %v179_v57 = vperm.slane %v4872_v53, 0 }
  0x61   :  { %975 = vmatpush.bf16.msra.mxu1 %v2545_v4  ;;  %v2814_v4 = vld [vmem:[%s5796_s1 + $0x2a8] sm:$0xf0]  ;;  %v3788_v56 = vld [vmem:[%s5799_s5] sm:$0xff] }
  0x62   :  { %988 = vmatpush.bf16.msra.mxu2 %v2609_v5  ;;  %v3744_v5 = vld [vmem:[%s5796_s1 + $0x324] sm:$0xf] }
  0x63   :  { %1001 = vmatpush.bf16.msra.mxu3 %v2673_v9  ;;  %963 = vmatmul.bf16.vlgmr.msra.gmra.mxu0 %v4299_v14  ;;  %v2942_v9 = vld [vmem:[%s5796_s1 + $0x3a8] sm:$0xf0] }
  0x64   :  { %1007 = vmatpush.bf16.msrb.mxu0 %v2793_v10  ;;  %976 = vmatmul.bf16.vlgmr.msra.gmra.mxu1 %v4301_v15  ;;  %v2830_v15 = vld [vmem:[%s5796_s1 + $0x2c8] sm:$0xf0]  ;;  %v2753_v10 = vor.u32 %v3712_v63, %v2750_v0 }
  0x65   :  { %1020 = vmatpush.bf16.msrb.mxu1 %v2857_v11  ;;  %989 = vmatmul.bf16.vlgmr.msra.gmra.mxu2 %v4276_v1  ;;  %v2966_v1 = vld [vmem:[%s5796_s1 + $0x3d8] sm:$0xf0]  ;;  %v2817_v11 = vor.u32 %v3728_v2, %v2814_v4 }
  0x66   :  { %1033 = vmatpush.bf16.msrb.mxu2 %v2921_v12  ;;  %1002 = vmatmul.bf16.vlgmr.msra.gmra.mxu3 %v4287_v6  ;;  %v3732_v6 = vld [vmem:[%s5796_s1 + $0x2c4] sm:$0xf]  ;;  %v2969_v14 = vor.u32 %v3766_v34, %v2966_v1  ;;  %v2881_v12 = vor.u32 %v3744_v5, %v2878_v7  ;;  %v2926_v1 = vld [vmem:[%s5796_s1 + $0x388] sm:$0xf0] }
  0x67   :  { %1046 = vmatpush.bf16.msrb.mxu3 %v2985_v18  ;;  %v2833_v49 = vor.u32 %v3732_v6, %v2830_v15  ;;  %v2945_v18 = vor.u32 %v3760_v8, %v2942_v9  ;;  %v3756_v34 = vld [vmem:[%s5796_s1 + $0x384] sm:$0xf]  ;;  %v3795_v6 = vld [vmem:[%s5799_s5 + $0x38] sm:$0xff]  ;;  %v3794_v15 = vld [vmem:[%s5799_s5 + $0x30] sm:$0xff] }
  0x68   :  { %1008 = vmatpush.bf16.msrb.mxu0 %v2785_v24  ;;  %v2745_v24 = vor.u32 %v3710_v13, %v2742_v16  ;;  %v2929_v41 = vor.u32 %v3756_v34, %v2926_v1  ;;  %v3781_v34 = vld [vmem:[%s5798_s3 + $0x48] sm:$0xff] }
  0x69   :  { %1021 = vmatpush.bf16.msrb.mxu1 %v2849_v25  ;;  %v2809_v25 = vor.u32 %v3726_v17, %v2806_v19  ;;  %v3786_v17 = vld [vmem:[%s5798_s3 + $0x70] sm:$0xff]  ;;  %v3797_v1 = vld [vmem:[%s5799_s5 + $0x48] sm:$0xff] }
  0x6a   :  { %1034 = vmatpush.bf16.msrb.mxu2 %v2913_v26  ;;  %v2873_v26 = vor.u32 %v3742_v20, %v2870_v21 }
  0x6b   :  { %1047 = vmatpush.bf16.msrb.mxu3 %v2977_v30  ;;  %v2937_v30 = vor.u32 %v3758_v22, %v2934_v23  ;;  %v3785_v22 = vld [vmem:[%s5798_s3 + $0x68] sm:$0xff] }
  0x6c   :  { %1009 = vmatpush.bf16.msrb.mxu0 %v2777_v36  ;;  %v2737_v36 = vor.u32 %v3708_v27, %v2734_v28  ;;  %v3801_v23 = vld [vmem:[%s5799_s5 + $0x68] sm:$0xff]  ;;  %v3800_v27 = vld [vmem:[%s5799_s5 + $0x60] sm:$0xff]  ;;  %v3783_v28 = vld [vmem:[%s5798_s3 + $0x58] sm:$0xff] }
  0x6d   :  { %1022 = vmatpush.bf16.msrb.mxu1 %v2841_v37  ;;  %v2801_v37 = vor.u32 %v3724_v29, %v2798_v31  ;;  %v3799_v29 = vld [vmem:[%s5799_s5 + $0x58] sm:$0xff]  ;;  %v3798_v31 = vld [vmem:[%s5799_s5 + $0x50] sm:$0xff] }
  0x6e   :  { %1035 = vmatpush.bf16.msrb.mxu2 %v2905_v38  ;;  %v2865_v38 = vor.u32 %v3740_v32, %v2862_v33 }
  0x6f   :  { %1048 = vmatpush.bf16.msrb.mxu3 %v2969_v14  ;;  %v3778_v14 = vld [vmem:[%s5798_s3 + $0x30] sm:$0xff] }
  0x70   :  { %1010 = vmatpush.bf16.msrb.mxu0 %v2769_v48 }
  0x71   :  { %1023 = vmatpush.bf16.msrb.mxu1 %v2833_v49 }
  0x72   :  { %1036 = vmatpush.bf16.msrb.mxu2 %v2897_v50  ;;  %v3773_v50 = vld [vmem:[%s5798_s3 + $0x8] sm:$0xff] }
  0x73   :  { %1049 = vmatpush.bf16.msrb.mxu3 %v2961_v54 }
  0x74   :  { %1011 = vmatpush.bf16.msrb.mxu0 %v2761_v60 }
  0x75   :  { %1024 = vmatpush.bf16.msrb.mxu1 %v2825_v61 }
  0x76   :  { %1037 = vmatpush.bf16.msrb.mxu2 %v2889_v62 }
  0x77   :  { %1050 = vmatpush.bf16.msrb.mxu3 %v2953_v3 }
  0x78   :  { %1012 = vmatpush.bf16.msrb.mxu0 %v2753_v10 }
  0x79   :  { %1025 = vmatpush.bf16.msrb.mxu1 %v2817_v11  ;;  %v3787_v11 = vld [vmem:[%s5798_s3 + $0x78] sm:$0xff] }
  0x7a   :  { %1038 = vmatpush.bf16.msrb.mxu2 %v2881_v12  ;;  %v3803_v12 = vld [vmem:[%s5799_s5 + $0x78] sm:$0xff] }
  0x7b   :  { %1051 = vmatpush.bf16.msrb.mxu3 %v2945_v18  ;;  %v3802_v18 = vld [vmem:[%s5799_s5 + $0x70] sm:$0xff] }
  0x7c   :  { %1013 = vmatpush.bf16.msrb.mxu0 %v2745_v24 }
  0x7d   :  { %1026 = vmatpush.bf16.msrb.mxu1 %v2809_v25 }
  0x7e   :  { %1039 = vmatpush.bf16.msrb.mxu2 %v2873_v26  ;;  %v3784_v26 = vld [vmem:[%s5798_s3 + $0x60] sm:$0xff] }
  0x7f   :  { %1052 = vmatpush.bf16.msrb.mxu3 %v2937_v30  ;;  %v3782_v30 = vld [vmem:[%s5798_s3 + $0x50] sm:$0xff] }
  0x80   :  { %1014 = vmatpush.bf16.msrb.mxu0 %v2737_v36 }
  0x81   :  { %1027 = vmatpush.bf16.msrb.mxu1 %v2801_v37 }
  0x82   :  { %1040 = vmatpush.bf16.msrb.mxu2 %v2865_v38 }
  0x83   :  { %1053 = vmatpush.bf16.msrb.mxu3 %v2929_v41  ;;  %1015 = vmatmul.bf16.vlgmr.msrb.gmra.mxu0 %v4467_v39  ;;  %v3777_v39 = vld [vmem:[%s5798_s3 + $0x28] sm:$0xff]  ;;  %v3780_v41 = vld [vmem:[%s5798_s3 + $0x40] sm:$0xff] }
  0x84   :  { %1195 = vmatpush.bf16.msra.mxu0 %v3779_v42  ;;  %1028 = vmatmul.bf16.vlgmr.msrb.gmra.mxu1 %v4477_v44  ;;  %v3792_v44 = vld [vmem:[%s5799_s5 + $0x20] sm:$0xff] }
  0x85   :  { %1041 = vmatmul.bf16.vlgmr.msrb.gmra.mxu2 %v4456_v35  ;;  %v3793_v35 = vld [vmem:[%s5799_s5 + $0x28] sm:$0xff]  ;;  %1208 = vmatpush.bf16.msra.mxu1 %v3787_v11  ;;  %v3796_v42 = vld [vmem:[%s5799_s5 + $0x40] sm:$0xff] }
  0x86   :  { %1353 = vmatpush.bf16.msra.mxu2 %v3795_v6  ;;  %1054 = vmatmul.bf16.vlgmr.msrb.gmra.mxu3 %v4469_v40  ;;  %v3776_v40 = vld [vmem:[%s5798_s3 + $0x20] sm:$0xff]  ;;  %v3118_v11 = vld [vmem:[%s5803_s8 + $0x8] sm:$0xf0] }
  0x87   :  { %1366 = vmatpush.bf16.msra.mxu3 %v3803_v12 }
  0x88   :  { %1196 = vmatpush.bf16.msra.mxu0 %v3778_v14  ;;  %v180_v14 = vperm.slane %v4872_v53, 1 }
  0x89   :  { %1209 = vmatpush.bf16.msra.mxu1 %v3786_v17  ;;  %v3868_v17 = vld [vmem:[%s5804_s10 + $0x1dc] sm:$0xf0] }
  0x8a   :  { %1354 = vmatpush.bf16.msra.mxu2 %v3794_v15 }
  0x8b   :  { %1367 = vmatpush.bf16.msra.mxu3 %v3802_v18  ;;  %v3614_v18 = vld [vmem:[%s5804_s10 + $0x3c0] sm:$0xf] }
  0x8c   :  { %1197 = vmatpush.bf16.msra.mxu0 %v3777_v39 }
  0x8d   :  { %1210 = vmatpush.bf16.msra.mxu1 %v3785_v22  ;;  %v3360_v22 = vld [vmem:[%s5804_s10 + $0x1e0] sm:$0xf0] }
  0x8e   :  { %1355 = vmatpush.bf16.msra.mxu2 %v3793_v35 }
  0x8f   :  { %1368 = vmatpush.bf16.msra.mxu3 %v3801_v23 }
  0x90   :  { %1198 = vmatpush.bf16.msra.mxu0 %v3776_v40 }
  0x91   :  { %1211 = vmatpush.bf16.msra.mxu1 %v3784_v26  ;;  %v3616_v26 = vld [vmem:[%s5804_s10 + $0x3e0] sm:$0xf0] }
  0x92   :  { %1356 = vmatpush.bf16.msra.mxu2 %v3792_v44 }
  0x93   :  { %1369 = vmatpush.bf16.msra.mxu3 %v3800_v27  ;;  %v3326_v27 = vld [vmem:[%s5804_s10 + $0x180] sm:$0xf] }
  0x94   :  { %1199 = vmatpush.bf16.msra.mxu0 %v3775_v43 }
  0x95   :  { %1212 = vmatpush.bf16.msra.mxu1 %v3783_v28 }
  0x96   :  { %1357 = vmatpush.bf16.msra.mxu2 %v3791_v45 }
  0x97   :  { %1370 = vmatpush.bf16.msra.mxu3 %v3799_v29  ;;  %v3860_v29 = vld [vmem:[%s5804_s10 + $0x19c] sm:$0xf0] }
  0x98   :  { %1200 = vmatpush.bf16.msra.mxu0 %v3774_v46 }
  0x99   :  { %1213 = vmatpush.bf16.msra.mxu1 %v3782_v30  ;;  %v3582_v30 = vld [vmem:[%s5804_s10 + $0x380] sm:$0xf] }
  0x9a   :  { %1358 = vmatpush.bf16.msra.mxu2 %v3790_v47 }
  0x9b   :  { %1371 = vmatpush.bf16.msra.mxu3 %v3798_v31  ;;  %v3924_v31 = vld [vmem:[%s5804_s10 + $0x39c] sm:$0xf0] }
  0x9c   :  { %1201 = vmatpush.bf16.msra.mxu0 %v3773_v50 }
  0x9d   :  { %1214 = vmatpush.bf16.msra.mxu1 %v3781_v34  ;;  %v3856_v34 = vld [vmem:[%s5804_s10 + $0x184] sm:$0xf] }
  0x9e   :  { %1359 = vmatpush.bf16.msra.mxu2 %v3789_v51 }
  0x9f   :  { %1372 = vmatpush.bf16.msra.mxu3 %v3797_v1  ;;  %v3328_v1 = vld [vmem:[%s5804_s10 + $0x1a0] sm:$0xf0] }
  0xa0   :  { %v860_v48 = vpop.f32.mrf.mxu0  ;;  %1202 = vmatpush.bf16.msra.mxu0 %v3772_v55 }
  0xa1   :  { %v873_v49 = vpop.f32.mrf.mxu1  ;;  %v861_v60 = vadd.f32 %v860_v48, %v179_v57  ;;  %1215 = vmatpush.bf16.msra.mxu1 %v3780_v41  ;;  %v3331_v41 = vor.u32 %v3856_v34, %v3328_v1  ;;  %v3166_v34 = vld [vmem:[%s5804_s10 + $0x40] sm:$0xf] }
  0xa2   :  { %1360 = vmatpush.bf16.msra.mxu2 %v3788_v56  ;;  %v3820_v1 = vld [vmem:[%s5804_s10 + $0x5c] sm:$0xf0] }
  0xa3   :  { %v874_v63 = vadd.f32 %v873_v49, %v861_v60  ;;  %1373 = vmatpush.bf16.msra.mxu3 %v3796_v42  ;;  %v3584_v42 = vld [vmem:[%s5804_s10 + $0x3a0] sm:$0xf0] }
  0xa8   :  { %v886_v52 = vpop.f32.mrf.mxu2  ;;  %v862_v58 = vpop.f32.mrf.mxu0 }
  0xa9   :  { %v899_v54 = vpop.f32.mrf.mxu3  ;;  %v875_v59 = vpop.f32.mrf.mxu1  ;;  %v887_v0 = vadd.f32 %v886_v52, %v874_v63  ;;  %v3124_v63 = vld [vmem:[%s5803_s8 + $0x10] sm:$0xf] }
  0xab   :  { %v900_v2 = vadd.f32 %v899_v54, %v887_v0  ;;  %v3807_v0 = vld [vmem:[%s5803_s8 + $0x14] sm:$0xf0] }
  0xb0   :  { %v888_v61 = vpop.f32.mrf.mxu2 }
  0xb1   :  { %v901_v62 = vpop.f32.mrf.mxu3 }
  0xc0   :  { %v912_v3 = vpop.f32.mrf.mxu0 }
  0xc1   :  { %v913_v4 = vadd.f32 %v912_v3, %v900_v2  ;;  %v925_v5 = vpop.f32.mrf.mxu1  ;;  %v3806_v2 = vld [vmem:[%s5803_s8 + $0x14] sm:$0xf]  ;;  %v3125_v3 = vor.u32 %v3807_v0, %v3124_v63 }
  0xc3   :  { %v926_v7 = vadd.f32 %v925_v5, %v913_v4  ;;  %v3126_v4 = vld [vmem:[%s5803_s8 + $0x18] sm:$0xf0]  ;;  %1426 = vmatpush.bf16.msrb.mxu0 %v3125_v3  ;;  %v3230_v3 = vld [vmem:[%s5804_s10 + $0xc0] sm:$0xf] }
  0xc4   :  { %v3129_v5 = vor.u32 %v3806_v2, %v3126_v4  ;;  %v3836_v4 = vld [vmem:[%s5804_s10 + $0xdc] sm:$0xf0] }
  0xc6   :  { %1439 = vmatpush.bf16.msrb.mxu1 %v3129_v5  ;;  %v3486_v5 = vld [vmem:[%s5804_s10 + $0x2c0] sm:$0xf] }
  0xc8   :  { %v938_v8 = vpop.f32.mrf.mxu2  ;;  %v914_v16 = vpop.f32.mrf.mxu0 }
  0xc9   :  { %v939_v9 = vadd.f32 %v938_v8, %v926_v7  ;;  %v951_v10 = vpop.f32.mrf.mxu3  ;;  %v927_v19 = vpop.f32.mrf.mxu1  ;;  %v3116_v7 = vld [vmem:[%s5803_s8] sm:$0xf]  ;;  %v3805_v8 = vld [vmem:[%s5803_s8 + $0x4] sm:$0xf0] }
  0xca   :  { %v3358_v16 = vld [vmem:[%s5804_s10 + $0x1c0] sm:$0xf] }
  0xcb   :  { %v952_v13 = vadd.f32 %v951_v10, %v939_v9  ;;  %v3804_v9 = vld [vmem:[%s5803_s8 + $0x4] sm:$0xf]  ;;  %v3117_v10 = vor.u32 %v3805_v8, %v3116_v7  ;;  %v3359_v19 = vor.u32 %v3868_v17, %v3358_v16  ;;  %v3900_v8 = vld [vmem:[%s5804_s10 + $0x2dc] sm:$0xf0]  ;;  %v3231_v17 = vor.u32 %v3836_v4, %v3230_v3  ;;  %v3624_v3 = vld [vmem:[%s5804_s10 + $0x3e8] sm:$0xf0] }
  0xcc   :  { %v3121_v12 = vor.u32 %v3804_v9, %v3118_v11  ;;  %v3832_v9 = vld [vmem:[%s5804_s10 + $0xc4] sm:$0xf] }
  0xcd   :  { %v1059_v20 = vmax.f32 %v952_v13, 0.0  ;;  %1427 = vmatpush.bf16.msrb.mxu0 %v3117_v10  ;;  %v3936_v13 = vld [vmem:[%s5800_s4] ss:$0 sm:$0xff]  ;;  %2236 = vmatpush.bf16.msrb.mxu2 %v3359_v19  ;;  %v3232_v10 = vld [vmem:[%s5804_s10 + $0xe0] sm:$0xf0]  ;;  %v3487_v19 = vor.u32 %v3900_v8, %v3486_v5 }
  0xce   :  { %1440 = vmatpush.bf16.msrb.mxu1 %v3121_v12  ;;  %v3896_v12 = vld [vmem:[%s5804_s10 + $0x2c4] sm:$0xf] }
  0xcf   :  { %v1061_v21 = vpack.c.bf16 %v1059_v20, %v1059_v20  ;;  %v3932_v20 = vld [vmem:[%s5804_s10 + $0x3dc] sm:$0xf0] }
  0xd0   :  { %v940_v24 = vpop.f32.mrf.mxu2  ;;  %v3615_v23 = vor.u32 %v3932_v20, %v3614_v18  ;;  %v3198_v18 = vld [vmem:[%s5804_s10 + $0x80] sm:$0xf]  ;;  %v3235_v20 = vor.u32 %v3832_v9, %v3232_v10  ;;  %v3334_v9 = vld [vmem:[%s5804_s10 + $0x188] sm:$0xf] }
  0xd1   :  { %1203 = vmatmul.bf16.vlgmr.msra.gmra.mxu0 %v1061_v21  ;;  %1361 = vmatmul.bf16.vlgmr.msra.gmra.mxu2 %v1061_v21  ;;  %v953_v25 = vpop.f32.mrf.mxu3  ;;  %v3864_v21 = vld [vmem:[%s5804_s10 + $0x1c4] sm:$0xf]  ;;  %v3861_v10 = vld [vmem:[%s5804_s10 + $0x1a4] sm:$0xf0] }
  0xd2   :  { %v3363_v24 = vor.u32 %v3864_v21, %v3360_v22  ;;  %v3928_v25 = vld [vmem:[%s5804_s10 + $0x3c4] sm:$0xf]  ;;  %2249 = vmatpush.bf16.msrb.mxu3 %v3615_v23  ;;  %v3828_v21 = vld [vmem:[%s5804_s10 + $0x9c] sm:$0xf0] }
  0xd3   :  { %v3619_v28 = vor.u32 %v3928_v25, %v3616_v26  ;;  %v3454_v22 = vld [vmem:[%s5804_s10 + $0x280] sm:$0xf]  ;;  %v3824_v26 = vld [vmem:[%s5804_s10 + $0x84] sm:$0xf] }
  0xd4   :  { %2262 = vmatpush.bf16.msra.mxu0 %v3363_v24  ;;  %v3892_v23 = vld [vmem:[%s5804_s10 + $0x29c] sm:$0xf0] }
  0xd8   :  { %2263 = vmatpush.bf16.msra.mxu0 %v3331_v41  ;;  %v3816_v41 = vld [vmem:[%s5804_s10 + $0x44] sm:$0xf] }
  0xe0   :  { %v964_v32 = vpop.f32.mrf.mxu0 }
  0xe1   :  { %v977_v33 = vpop.f32.mrf.mxu1  ;;  %v965_v35 = vadd.f32 %v964_v32, %v180_v14  ;;  %v3327_v32 = vor.u32 %v3860_v29, %v3326_v27  ;;  %v3852_v14 = vld [vmem:[%s5804_s10 + $0x15c] sm:$0xf0]  ;;  %v3200_v27 = vld [vmem:[%s5804_s10 + $0xa0] sm:$0xf0] }
  0xe2   :  { %v3456_v29 = vld [vmem:[%s5804_s10 + $0x2a0] sm:$0xf0] }
  0xe3   :  { %v978_v40 = vadd.f32 %v977_v33, %v965_v35  ;;  %v3583_v33 = vor.u32 %v3924_v31, %v3582_v30  ;;  %v3550_v35 = vld [vmem:[%s5804_s10 + $0x340] sm:$0xf]  ;;  %2237 = vmatpush.bf16.msrb.mxu2 %v3327_v32  ;;  %v3199_v30 = vor.u32 %v3828_v21, %v3198_v18  ;;  %v3455_v32 = vor.u32 %v3892_v23, %v3454_v22  ;;  %v3921_v18 = vld [vmem:[%s5804_s10 + $0x38c] sm:$0xf]  ;;  %v3302_v23 = vld [vmem:[%s5804_s10 + $0x148] sm:$0xf] }
  0xe5   :  { %2250 = vmatpush.bf16.msrb.mxu3 %v3583_v33  ;;  %v3203_v33 = vor.u32 %v3824_v26, %v3200_v27  ;;  %v3917_v27 = vld [vmem:[%s5804_s10 + $0x364] sm:$0xf0] }
  0xe8   :  { %v990_v36 = vpop.f32.mrf.mxu2  ;;  %v966_v38 = vpop.f32.mrf.mxu0 }
  0xe9   :  { %v1003_v37 = vpop.f32.mrf.mxu3  ;;  %v979_v6 = vpop.f32.mrf.mxu1  ;;  %v991_v44 = vadd.f32 %v990_v36, %v978_v40  ;;  %v3920_v36 = vld [vmem:[%s5804_s10 + $0x384] sm:$0xf]  ;;  %v3937_v38 = vld [vmem:[%s5802_s6] ss:$0 sm:$0xff] }
  0xea   :  { %v3294_v6 = vld [vmem:[%s5804_s10 + $0x140] sm:$0xf] }
  0xeb   :  { %v1004_v43 = vadd.f32 %v1003_v37, %v991_v44  ;;  %v3916_v40 = vld [vmem:[%s5804_s10 + $0x35c] sm:$0xf0]  ;;  %v3848_v44 = vld [vmem:[%s5804_s10 + $0x144] sm:$0xf] }
  0xf0   :  { %v992_v15 = vpop.f32.mrf.mxu2 }
  0xf1   :  { %v1005_v39 = vpop.f32.mrf.mxu3 }
  0xf2   :  { %v3587_v39 = vor.u32 %v3920_v36, %v3584_v42  ;;  %v3422_v36 = vld [vmem:[%s5804_s10 + $0x240] sm:$0xf]  ;;  %v3168_v42 = vld [vmem:[%s5804_s10 + $0x60] sm:$0xf0] }
 0x100   :  { %v1016_v45 = vpop.f32.mrf.mxu0 }
 0x101   :  { %v1029_v46 = vpop.f32.mrf.mxu1  ;;  %v1017_v47 = vadd.f32 %v1016_v45, %v1004_v43  ;;  %v3295_v45 = vor.u32 %v3852_v14, %v3294_v6  ;;  %v3880_v6 = vld [vmem:[%s5804_s10 + $0x244] sm:$0xf] }
 0x102   :  { %v3424_v14 = vld [vmem:[%s5804_s10 + $0x260] sm:$0xf0] }
 0x103   :  { %v1030_v48 = vadd.f32 %v1029_v46, %v1017_v47  ;;  %v3296_v46 = vld [vmem:[%s5804_s10 + $0x160] sm:$0xf0]  ;;  %2238 = vmatpush.bf16.msrb.mxu2 %v3295_v45  ;;  %v3812_v45 = vld [vmem:[%s5804_s10 + $0x1c] sm:$0xf0] }
 0x104   :  { %v3912_v47 = vld [vmem:[%s5804_s10 + $0x344] sm:$0xf] }
 0x108   :  { %v1042_v49 = vpop.f32.mrf.mxu2  ;;  %v1018_v52 = vpop.f32.mrf.mxu0 }
 0x109   :  { %v1043_v50 = vadd.f32 %v1042_v49, %v1030_v48  ;;  %v1055_v51 = vpop.f32.mrf.mxu3  ;;  %v1031_v54 = vpop.f32.mrf.mxu1  ;;  %v3552_v48 = vld [vmem:[%s5804_s10 + $0x360] sm:$0xf0]  ;;  %v3551_v49 = vor.u32 %v3916_v40, %v3550_v35  ;;  %v3844_v52 = vld [vmem:[%s5804_s10 + $0x11c] sm:$0xf0]  ;;  %v3171_v40 = vor.u32 %v3816_v41, %v3168_v42  ;;  %v3909_v41 = vld [vmem:[%s5804_s10 + $0x324] sm:$0xf0] }
 0x10a   :  { %v3518_v54 = vld [vmem:[%s5804_s10 + $0x300] sm:$0xf]  ;;  %v3841_v42 = vld [vmem:[%s5804_s10 + $0x10c] sm:$0xf] }
 0x10b   :  { %v1056_v55 = vadd.f32 %v1055_v51, %v1043_v50  ;;  %v3299_v50 = vor.u32 %v3848_v44, %v3296_v46  ;;  %v3262_v51 = vld [vmem:[%s5804_s10 + $0x100] sm:$0xf]  ;;  %2251 = vmatpush.bf16.msrb.mxu3 %v3551_v49 }
 0x10c   :  { %v3134_v44 = vld [vmem:[%s5804_s10] sm:$0xf] }
 0x10d   :  { %v1060_v56 = vmax.f32 %v1056_v55, 0.0  ;;  %v3555_v55 = vor.u32 %v3912_v47, %v3552_v48  ;;  %2264 = vmatpush.bf16.msra.mxu0 %v3299_v50  ;;  %v3427_v47 = vor.u32 %v3880_v6, %v3424_v14  ;;  %v3390_v48 = vld [vmem:[%s5804_s10 + $0x200] sm:$0xf]  ;;  %v3808_v50 = vld [vmem:[%s5804_s10 + $0x4] sm:$0xf] }
 0x10e   :  { %v3876_v49 = vld [vmem:[%s5804_s10 + $0x21c] sm:$0xf0]  ;;  %v3272_v6 = vld [vmem:[%s5804_s10 + $0x128] sm:$0xf0] }
 0x10f   :  { %v1062_v57 = vpack.c.bf16 %v1060_v56, %v1060_v56  ;;  %v3908_v56 = vld [vmem:[%s5804_s10 + $0x31c] sm:$0xf0]  ;;  %v3905_v14 = vld [vmem:[%s5804_s10 + $0x30c] sm:$0xf] }
 0x110   :  { %v1044_v58 = vpop.f32.mrf.mxu2  ;;  %v3519_v0 = vor.u32 %v3908_v56, %v3518_v54  ;;  %v3872_v54 = vld [vmem:[%s5804_s10 + $0x204] sm:$0xf]  ;;  %v3135_v56 = vor.u32 %v3812_v45, %v3134_v44  ;;  %v3238_v44 = vld [vmem:[%s5804_s10 + $0xc8] sm:$0xf] }
 0x111   :  { %v1057_v53 = vpop.f32.mrf.mxu3  ;;  %1216 = vmatmul.bf16.vlgmr.msra.gmra.mxu1 %v1062_v57  ;;  %1374 = vmatmul.bf16.vlgmr.msra.gmra.mxu3 %v1062_v57  ;;  %v3840_v57 = vld [vmem:[%s5804_s10 + $0x104] sm:$0xf]  ;;  %v3837_v45 = vld [vmem:[%s5804_s10 + $0xe4] sm:$0xf0] }
 0x112   :  { %2275 = vmatpush.bf16.msra.mxu1 %v3619_v28  ;;  %v3264_v58 = vld [vmem:[%s5804_s10 + $0x120] sm:$0xf0]  ;;  %2252 = vmatpush.bf16.msrb.mxu3 %v3519_v0  ;;  %v3391_v0 = vor.u32 %v3876_v49, %v3390_v48  ;;  %v3901_v48 = vld [vmem:[%s5804_s10 + $0x2e4] sm:$0xf0]  ;;  %v3833_v49 = vld [vmem:[%s5804_s10 + $0xcc] sm:$0xf] }
 0x113   :  { %v3904_v53 = vld [vmem:[%s5804_s10 + $0x304] sm:$0xf]  ;;  %v3267_v2 = vor.u32 %v3840_v57, %v3264_v58  ;;  %v3366_v57 = vld [vmem:[%s5804_s10 + $0x1c8] sm:$0xf] }
 0x114   :  { %v3888_v28 = vld [vmem:[%s5804_s10 + $0x284] sm:$0xf]  ;;  %v3869_v58 = vld [vmem:[%s5804_s10 + $0x1e4] sm:$0xf0] }
 0x115   :  { %2265 = vmatpush.bf16.msra.mxu0 %v3267_v2 }
 0x116   :  { %2276 = vmatpush.bf16.msra.mxu1 %v3587_v39  ;;  %2253 = vmatpush.bf16.msrb.mxu3 %v3487_v19  ;;  %v3167_v39 = vor.u32 %v3820_v1, %v3166_v34  ;;  %v3592_v19 = vld [vmem:[%s5804_s10 + $0x3a8] sm:$0xf0]  ;;  %v3270_v1 = vld [vmem:[%s5804_s10 + $0x108] sm:$0xf] }
 0x117   :  { %v3595_v26 = vor.u32 %v3921_v18, %v3592_v19 }
 0x119   :  { %2266 = vmatpush.bf16.msra.mxu0 %v3235_v20  ;;  %v3335_v20 = vor.u32 %v3861_v10, %v3334_v9  ;;  %v3430_v9 = vld [vmem:[%s5804_s10 + $0x248] sm:$0xf] }
 0x11a   :  { %2277 = vmatpush.bf16.msra.mxu1 %v3555_v55  ;;  %2254 = vmatpush.bf16.msrb.mxu3 %v3455_v32  ;;  %v3392_v55 = vld [vmem:[%s5804_s10 + $0x220] sm:$0xf0]  ;;  %v3885_v10 = vld [vmem:[%s5804_s10 + $0x264] sm:$0xf0] }
 0x11b   :  { %v3395_v5 = vor.u32 %v3872_v54, %v3392_v55  ;;  %v3239_v54 = vor.u32 %v3837_v45, %v3238_v44  ;;  %v3930_v44 = vld [vmem:[%s5804_s10 + $0x3d4] sm:$0xf] }
 0x11c   :  { %v3632_v45 = vld [vmem:[%s5804_s10 + $0x3f0] sm:$0xf0] }
 0x11d   :  { %2267 = vmatpush.bf16.msra.mxu0 %v3203_v33 }
 0x121   :  { %2268 = vmatpush.bf16.msra.mxu0 %v3171_v40  ;;  %v3275_v40 = vor.u32 %v3841_v42, %v3272_v6  ;;  %v3870_v42 = vld [vmem:[%s5804_s10 + $0x1ec] sm:$0xf0] }
 0x122   :  { %v3630_v6 = vld [vmem:[%s5804_s10 + $0x3d0] sm:$0xf] }
 0x14e   :  { %v1204_v59 = vpop.f32.mrf.mxu0 }
 0x14f   :  { %v1205_v37 = vadd.f32 %v3936_v13, %v1204_v59  ;;  %v3520_v59 = vld [vmem:[%s5804_s10 + $0x320] sm:$0xf0] }
 0x150   :  { %v3523_v7 = vor.u32 %v3904_v53, %v3520_v59  ;;  %v3488_v13 = vld [vmem:[%s5804_s10 + $0x2e0] sm:$0xf0]  ;;  %v3622_v53 = vld [vmem:[%s5804_s10 + $0x3c8] sm:$0xf] }
 0x151   :  { %v3491_v25 = vor.u32 %v3896_v12, %v3488_v13  ;;  %v3925_v13 = vld [vmem:[%s5804_s10 + $0x3a4] sm:$0xf0] }
 0x152   :  { %2278 = vmatpush.bf16.msra.mxu1 %v3523_v7 }
 0x154   :  { %v4930_v60 = vpop.f32.mrf.mxu2 }
 0x156   :  { %v1206_v61 = vpop.f32.mrf.mxu0  ;;  %2279 = vmatpush.bf16.msra.mxu1 %v3491_v25  ;;  %v3558_v25 = vld [vmem:[%s5804_s10 + $0x348] sm:$0xf] }
 0x157   :  { %v1363_v61 = vadd.f32 %v3937_v38, %v4930_v60  ;;  %v3884_v38 = vld [vmem:[%s5804_s10 + $0x25c] sm:$0xf0]  ;;  %v3559_v33 = vor.u32 %v3917_v27, %v3558_v25  ;;  %v3809_v25 = vld [vmem:[%s5804_s10 + $0xc] sm:$0xf] }
 0x158   :  { %v3423_v35 = vor.u32 %v3884_v38, %v3422_v36  ;;  %v3845_v36 = vld [vmem:[%s5804_s10 + $0x124] sm:$0xf0] }
 0x15a   :  { %2255 = vmatpush.bf16.msrb.mxu3 %v3423_v35 }
 0x15c   :  { %v1364_v62 = vpop.f32.mrf.mxu2 }
 0x15d   :  { %v3263_v62 = vor.u32 %v3844_v52, %v3262_v51  ;;  %v3136_v52 = vld [vmem:[%s5804_s10 + $0x20] sm:$0xf0] }
 0x15e   :  { %v3139_v2 = vor.u32 %v3808_v50, %v3136_v52  ;;  %2256 = vmatpush.bf16.msrb.mxu3 %v3391_v0  ;;  %v3240_v50 = vld [vmem:[%s5804_s10 + $0xe8] sm:$0xf0] }
 0x15f   :  { %2239 = vmatpush.bf16.msrb.mxu2 %v3263_v62  ;;  %v3865_v62 = vld [vmem:[%s5804_s10 + $0x1cc] sm:$0xf] }
 0x160   :  { %2269 = vmatpush.bf16.msra.mxu0 %v3139_v2  ;;  %v3496_v52 = vld [vmem:[%s5804_s10 + $0x2e8] sm:$0xf0] }
 0x161   :  { %v3889_v0 = vld [vmem:[%s5804_s10 + $0x28c] sm:$0xf] }
 0x162   :  { %v3464_v2 = vld [vmem:[%s5804_s10 + $0x2a8] sm:$0xf0] }
 0x163   :  { %2240 = vmatpush.bf16.msrb.mxu2 %v3231_v17  ;;  %v3336_v17 = vld [vmem:[%s5804_s10 + $0x1a8] sm:$0xf0] }
 0x167   :  { %2241 = vmatpush.bf16.msrb.mxu2 %v3199_v30  ;;  %v3913_v30 = vld [vmem:[%s5804_s10 + $0x34c] sm:$0xf] }
 0x16b   :  { %2242 = vmatpush.bf16.msrb.mxu2 %v3167_v39  ;;  %v3271_v39 = vor.u32 %v3845_v36, %v3270_v1 }
 0x16f   :  { %2243 = vmatpush.bf16.msrb.mxu2 %v3135_v56  ;;  %v3243_v56 = vor.u32 %v3833_v49, %v3240_v50  ;;  %v3342_v50 = vld [vmem:[%s5804_s10 + $0x190] sm:$0xf] }
 0x18e   :  { %v1217_v15 = vpop.f32.mrf.mxu1 }
 0x18f   :  { %v5025_v43 = vadd.f32 %v1217_v15, %v1205_v37  ;;  %v3459_v37 = vor.u32 %v3888_v28, %v3456_v29  ;;  %v1382_v15 = vld [vmem:[%s5807_s7] sm:$0xff]  ;;  %v3849_v28 = vld [vmem:[%s5804_s10 + $0x14c] sm:$0xf] }
 0x190   :  { %v3304_v29 = vld [vmem:[%s5804_s10 + $0x168] sm:$0xf0] }
 0x191   :  { %2452 = vst.msk [vmem:[%s5805_s12] sm:$0xff] %vm1416_vm0, %v5025_v43  ;;  %2280 = vmatpush.bf16.msra.mxu1 %v3459_v37  ;;  %v3307_v34 = vor.u32 %v3849_v28, %v3304_v29  ;;  %v3526_v37 = vld [vmem:[%s5804_s10 + $0x308] sm:$0xf]  ;;  %v3873_v29 = vld [vmem:[%s5804_s10 + $0x20c] sm:$0xf] }
 0x192   :  { %v3527_v35 = vor.u32 %v3909_v41, %v3526_v37  ;;  %v3374_v41 = vld [vmem:[%s5804_s10 + $0x1d0] sm:$0xf] }
 0x194   :  { %v1375_v63 = vpop.f32.mrf.mxu3 }
 0x195   :  { %v1376_v60 = vadd.f32 %v1375_v63, %v1363_v61  ;;  %v3933_v61 = vld [vmem:[%s5804_s10 + $0x3e4] sm:$0xf0]  ;;  %v3368_v63 = vld [vmem:[%s5804_s10 + $0x1e8] sm:$0xf0]  ;;  %2281 = vmatpush.bf16.msra.mxu1 %v3427_v47 }
 0x196   :  { %v1219_v11 = vpop.f32.mrf.mxu1  ;;  %v3623_v7 = vor.u32 %v3933_v61, %v3622_v53  ;;  %v3371_v8 = vor.u32 %v3865_v62, %v3368_v63  ;;  %v3462_v53 = vld [vmem:[%s5804_s10 + $0x288] sm:$0xf]  ;;  %v3825_v62 = vld [vmem:[%s5804_s10 + $0x8c] sm:$0xf] }
 0x197   :  { %v1379_v16 = vmul.f32 0.5, %v1376_v60  ;;  %2453 = vst.msk [vmem:[%s5806_s13] sm:$0xff] %vm1416_vm0, %v1376_v60  ;;  %v3367_v60 = vor.u32 %v3869_v58, %v3366_v57  ;;  %v3590_v11 = vld [vmem:[%s5804_s10 + $0x388] sm:$0xf]  ;;  %v3208_v63 = vld [vmem:[%s5804_s10 + $0xa8] sm:$0xf0] }
 0x198   :  { %2301 = vmatpush.bf16.msra.mxu3 %v3623_v7  ;;  %v3591_v21 = vor.u32 %v3925_v13, %v3590_v11  ;;  %v3206_v57 = vld [vmem:[%s5804_s10 + $0x88] sm:$0xf]  ;;  %v3817_v11 = vld [vmem:[%s5804_s10 + $0x4c] sm:$0xf] }
 0x199   :  { %v1380_v24 = vmul.f32 1.442695, %v1379_v16  ;;  %v3857_v16 = vld [vmem:[%s5804_s10 + $0x18c] sm:$0xf]  ;;  %2282 = vmatpush.bf16.msra.mxu1 %v3395_v5  ;;  %2288 = vmatpush.bf16.msra.mxu2 %v3367_v60  ;;  %v3829_v58 = vld [vmem:[%s5804_s10 + $0xa4] sm:$0xf0]  ;;  %v3467_v5 = vor.u32 %v3889_v0, %v3464_v2 }
 0x19a   :  { %v3339_v22 = vor.u32 %v3857_v16, %v3336_v17  ;;  %v3893_v61 = vld [vmem:[%s5804_s10 + $0x2a4] sm:$0xf0]  ;;  %v3176_v13 = vld [vmem:[%s5804_s10 + $0x68] sm:$0xf0]  ;;  %v3310_v2 = vld [vmem:[%s5804_s10 + $0x150] sm:$0xf] }
 0x19b   :  { %3938 = vpow2.f32 %v1380_v24  ;;  %v3853_v24 = vld [vmem:[%s5804_s10 + $0x164] sm:$0xf0]  ;;  %v3881_v16 = vld [vmem:[%s5804_s10 + $0x24c] sm:$0xf]  ;;  %v3179_v18 = vor.u32 %v3817_v11, %v3176_v13  ;;  %v3278_v13 = vld [vmem:[%s5804_s10 + $0x110] sm:$0xf] }
 0x19c   :  { %v1377_v31 = vpop.f32.mrf.mxu3  ;;  %v3303_v32 = vor.u32 %v3853_v24, %v3302_v23  ;;  %2302 = vmatpush.bf16.msra.mxu3 %v3591_v21  ;;  %v3174_v60 = vld [vmem:[%s5804_s10 + $0x48] sm:$0xf]  ;;  %v3432_v17 = vld [vmem:[%s5804_s10 + $0x268] sm:$0xf0] }
 0x19d   :  { %v3560_v31 = vld [vmem:[%s5804_s10 + $0x368] sm:$0xf0]  ;;  %2289 = vmatpush.bf16.msra.mxu2 %v3335_v20  ;;  %v3821_v7 = vld [vmem:[%s5804_s10 + $0x64] sm:$0xf0]  ;;  %v3435_v19 = vor.u32 %v3881_v16, %v3432_v17  ;;  %v3846_v16 = vld [vmem:[%s5804_s10 + $0x12c] sm:$0xf0] }
 0x19e   :  { %v3563_v38 = vor.u32 %v3913_v30, %v3560_v31  ;;  %v3142_v20 = vld [vmem:[%s5804_s10 + $0x8] sm:$0xf]  ;;  %v3400_v30 = vld [vmem:[%s5804_s10 + $0x228] sm:$0xf0] }
 0x19f   :  { %v3813_v21 = vld [vmem:[%s5804_s10 + $0x24] sm:$0xf0]  ;;  %v3403_v31 = vor.u32 %v3873_v29, %v3400_v30 }
 0x1a0   :  { %2303 = vmatpush.bf16.msra.mxu3 %v3559_v33  ;;  %v3143_v23 = vor.u32 %v3813_v21, %v3142_v20  ;;  %v3877_v24 = vld [vmem:[%s5804_s10 + $0x224] sm:$0xf0]  ;;  %v3910_v20 = vld [vmem:[%s5804_s10 + $0x32c] sm:$0xf0]  ;;  %v3842_v21 = vld [vmem:[%s5804_s10 + $0x114] sm:$0xf] }
 0x1a1   :  { %v3939_v46 = vpop.eup %3938  ;;  %2290 = vmatpush.bf16.msra.mxu2 %v3303_v32  ;;  %v1390_v32 = vld [vmem:[%s5808_s9] sm:$0x3] }
 0x1a2   :  { %v1383_v51 = vmul.f32 %v3939_v46, %v1382_v15  ;;  %v3528_v15 = vld [vmem:[%s5804_s10 + $0x328] sm:$0xf0]  ;;  %v3494_v46 = vld [vmem:[%s5804_s10 + $0x2c8] sm:$0xf]  ;;  %v1392_v33 = vperm.slane %v1390_v32, 0 }
 0x1a3   :  { %v3531_v47 = vor.u32 %v3905_v14, %v3528_v15  ;;  %v3495_v55 = vor.u32 %v3901_v48, %v3494_v46  ;;  %v3934_v14 = vld [vmem:[%s5804_s10 + $0x3ec] sm:$0xf0]  ;;  %v3866_v15 = vld [vmem:[%s5804_s10 + $0x1d4] sm:$0xf]  ;;  %v3375_v48 = vor.u32 %v3870_v42, %v3374_v41 }
 0x1a4   :  { %v1384_v59 = vadd.f32 %v1383_v51, %v5025_v43  ;;  %v3929_v43 = vld [vmem:[%s5804_s10 + $0x3cc] sm:$0xf]  ;;  %2304 = vmatpush.bf16.msra.mxu3 %v3527_v35  ;;  %v3631_v49 = vor.u32 %v3934_v14, %v3630_v6  ;;  %v3214_v41 = vld [vmem:[%s5804_s10 + $0x90] sm:$0xf] }
 0x1a5   :  { %v3627_v12 = vor.u32 %v3929_v43, %v3624_v3  ;;  %v3897_v51 = vld [vmem:[%s5804_s10 + $0x2cc] sm:$0xf]  ;;  %2291 = vmatpush.bf16.msra.mxu2 %v3271_v39  ;;  %v3207_v43 = vor.u32 %v3829_v58, %v3206_v57  ;;  %v3463_v3 = vor.u32 %v3893_v61, %v3462_v53  ;;  %v3376_v39 = vld [vmem:[%s5804_s10 + $0x1f0] sm:$0xf0]  ;;  %v3830_v42 = vld [vmem:[%s5804_s10 + $0xac] sm:$0xf0] }
 0x1a6   :  { %v1385_v4 = vpack.c.bf16 %v1384_v59, %v1384_v59  ;;  %v3499_v59 = vor.u32 %v3897_v51, %v3496_v52  ;;  %v3862_v51 = vld [vmem:[%s5804_s10 + $0x1ac] sm:$0xf0]  ;;  %v3379_v52 = vor.u32 %v3866_v15, %v3376_v39  ;;  %v3858_v57 = vld [vmem:[%s5804_s10 + $0x194] sm:$0xf] }
 0x1a7   :  { %v3344_v58 = vld [vmem:[%s5804_s10 + $0x1b0] sm:$0xf0]  ;;  %v3470_v15 = vld [vmem:[%s5804_s10 + $0x290] sm:$0xf] }
 0x1a8   :  { %3130 = vmatmul.msk.bf16.vlgmr.msrb.gmra.mxu0 %vm1416_vm0, %v1385_v4  ;;  %3131 = vmatmul.msk.bf16.vlgmr.msrb.gmra.mxu1 %vm1416_vm0, %v1385_v4  ;;  %v3211_v4 = vor.u32 %v3825_v62, %v3208_v63  ;;  %v3922_v53 = vld [vmem:[%s5804_s10 + $0x394] sm:$0xf]  ;;  %v3343_v63 = vor.u32 %v3862_v51, %v3342_v50  ;;  %v3894_v39 = vld [vmem:[%s5804_s10 + $0x2ac] sm:$0xf0] }
 0x1a9   :  { %2314 = vmatpush.bf16.msrb.mxu0 %v3371_v8  ;;  %2327 = vmatpush.bf16.msrb.mxu1 %v3627_v12  ;;  %v3175_v8 = vor.u32 %v3821_v7, %v3174_v60  ;;  %v3431_v12 = vor.u32 %v3885_v10, %v3430_v9  ;;  %v3918_v60 = vld [vmem:[%s5804_s10 + $0x36c] sm:$0xf0]  ;;  %v3850_v7 = vld [vmem:[%s5804_s10 + $0x154] sm:$0xf] }
 0x1aa   :  { %2292 = vmatpush.bf16.msra.mxu2 %v3239_v54  ;;  %2305 = vmatpush.bf16.msra.mxu3 %v3495_v55  ;;  %v3635_v54 = vor.u32 %v3930_v44, %v3632_v45  ;;  %v3598_v55 = vld [vmem:[%s5804_s10 + $0x390] sm:$0xf]  ;;  %v3914_v9 = vld [vmem:[%s5804_s10 + $0x354] sm:$0xf] }
 0x1ab   :  { %v3568_v10 = vld [vmem:[%s5804_s10 + $0x370] sm:$0xf0]  ;;  %v3182_v50 = vld [vmem:[%s5804_s10 + $0x50] sm:$0xf] }
 0x1ac   :  { %v3890_v44 = vld [vmem:[%s5804_s10 + $0x294] sm:$0xf]  ;;  %v3822_v51 = vld [vmem:[%s5804_s10 + $0x6c] sm:$0xf0] }
 0x1ad   :  { %2315 = vmatpush.bf16.msrb.mxu0 %v3339_v22  ;;  %2328 = vmatpush.bf16.msrb.mxu1 %v3595_v26  ;;  %v3398_v22 = vld [vmem:[%s5804_s10 + $0x208] sm:$0xf]  ;;  %v3144_v26 = vld [vmem:[%s5804_s10 + $0x28] sm:$0xf0]  ;;  %v3472_v45 = vld [vmem:[%s5804_s10 + $0x2b0] sm:$0xf0] }
 0x1ae   :  { %2293 = vmatpush.bf16.msra.mxu2 %v3207_v43  ;;  %2306 = vmatpush.bf16.msra.mxu3 %v3463_v3  ;;  %v3399_v27 = vor.u32 %v3877_v24, %v3398_v22  ;;  %v3147_v28 = vor.u32 %v3809_v25, %v3144_v26  ;;  %v3854_v43 = vld [vmem:[%s5804_s10 + $0x16c] sm:$0xf0]  ;;  %v3347_v3 = vor.u32 %v3858_v57, %v3344_v58  ;;  %v3280_v22 = vld [vmem:[%s5804_s10 + $0x130] sm:$0xf0] }
 0x1af   :  { %v3311_v11 = vor.u32 %v3854_v43, %v3310_v2  ;;  %v3536_v24 = vld [vmem:[%s5804_s10 + $0x330] sm:$0xf0]  ;;  %v3279_v25 = vor.u32 %v3846_v16, %v3278_v13  ;;  %v3283_v29 = vor.u32 %v3842_v21, %v3280_v22  ;;  %v3406_v2 = vld [vmem:[%s5804_s10 + $0x210] sm:$0xf]  ;;  %v3867_v13 = vld [vmem:[%s5804_s10 + $0x1dc] sm:$0xf] }
 0x1b0   :  { %v3818_v57 = vld [vmem:[%s5804_s10 + $0x54] sm:$0xf]  ;;  %v3878_v43 = vld [vmem:[%s5804_s10 + $0x22c] sm:$0xf0] }
 0x1b1   :  { %2316 = vmatpush.bf16.msrb.mxu0 %v3307_v34  ;;  %2329 = vmatpush.bf16.msrb.mxu1 %v3563_v38  ;;  %v1393_v34 = vperm.slane %v1390_v32, 1  ;;  %v3902_v32 = vld [vmem:[%s5804_s10 + $0x2ec] sm:$0xf0]  ;;  %v3184_v58 = vld [vmem:[%s5804_s10 + $0x70] sm:$0xf0] }
 0x1b2   :  { %2294 = vmatpush.bf16.msra.mxu2 %v3175_v8  ;;  %2307 = vmatpush.bf16.msra.mxu3 %v3431_v12  ;;  %v3312_v8 = vld [vmem:[%s5804_s10 + $0x170] sm:$0xf0] }
 0x1b3   :  { %v3315_v17 = vor.u32 %v3850_v7, %v3312_v8  ;;  %v3874_v7 = vld [vmem:[%s5804_s10 + $0x214] sm:$0xf] }
 0x1b4   :  { %v3408_v8 = vld [vmem:[%s5804_s10 + $0x230] sm:$0xf0] }
 0x1b5   :  { %2317 = vmatpush.bf16.msrb.mxu0 %v3275_v40  ;;  %2330 = vmatpush.bf16.msrb.mxu1 %v3531_v47  ;;  %v3411_v22 = vor.u32 %v3874_v7, %v3408_v8 }
 0x1b6   :  { %2295 = vmatpush.bf16.msra.mxu2 %v3143_v23  ;;  %2308 = vmatpush.bf16.msra.mxu3 %v3399_v27  ;;  %v3906_v23 = vld [vmem:[%s5804_s10 + $0x314] sm:$0xf]  ;;  %v3246_v27 = vld [vmem:[%s5804_s10 + $0xd0] sm:$0xf] }
 0x1b7   :  { %v3539_v30 = vor.u32 %v3906_v23, %v3536_v24 }
 0x1b9   :  { %2318 = vmatpush.bf16.msrb.mxu0 %v3243_v56  ;;  %2331 = vmatpush.bf16.msrb.mxu1 %v3499_v59  ;;  %v3926_v56 = vld [vmem:[%s5804_s10 + $0x3ac] sm:$0xf0]  ;;  %v3600_v59 = vld [vmem:[%s5804_s10 + $0x3b0] sm:$0xf0] }
 0x1ba   :  { %v3599_v0 = vor.u32 %v3926_v56, %v3598_v55  ;;  %v3438_v55 = vld [vmem:[%s5804_s10 + $0x250] sm:$0xf] }
 0x1bb   :  { %v3886_v56 = vld [vmem:[%s5804_s10 + $0x26c] sm:$0xf0] }
 0x1bd   :  { %2319 = vmatpush.bf16.msrb.mxu0 %v3211_v4  ;;  %2332 = vmatpush.bf16.msrb.mxu1 %v3467_v5  ;;  %v3603_v4 = vor.u32 %v3922_v53, %v3600_v59  ;;  %v3566_v5 = vld [vmem:[%s5804_s10 + $0x350] sm:$0xf]  ;;  %v3882_v53 = vld [vmem:[%s5804_s10 + $0x254] sm:$0xf] }
 0x1be   :  { %v3567_v12 = vor.u32 %v3918_v60, %v3566_v5  ;;  %v3440_v59 = vld [vmem:[%s5804_s10 + $0x270] sm:$0xf0] }
 0x1bf   :  { %v3810_v5 = vld [vmem:[%s5804_s10 + $0x14] sm:$0xf] }
 0x1c0   :  { %v3152_v60 = vld [vmem:[%s5804_s10 + $0x30] sm:$0xf0] }
 0x1c1   :  { %2320 = vmatpush.bf16.msrb.mxu0 %v3179_v18  ;;  %2333 = vmatpush.bf16.msrb.mxu1 %v3435_v19  ;;  %v3571_v18 = vor.u32 %v3914_v9, %v3568_v10  ;;  %v3534_v19 = vld [vmem:[%s5804_s10 + $0x310] sm:$0xf]  ;;  %v3382_v9 = vld [vmem:[%s5804_s10 + $0x1d8] sm:$0xf]  ;;  %v3155_v21 = vor.u32 %v3810_v5, %v3152_v60  ;;  %v3899_v5 = vld [vmem:[%s5804_s10 + $0x2dc] sm:$0xf] }
 0x1c2   :  { %v3535_v26 = vor.u32 %v3910_v20, %v3534_v19  ;;  %v3871_v10 = vld [vmem:[%s5804_s10 + $0x1f4] sm:$0xf0]  ;;  %v3931_v19 = vld [vmem:[%s5804_s10 + $0x3dc] sm:$0xf] }
 0x1c3   :  { %v3640_v20 = vld [vmem:[%s5804_s10 + $0x3f8] sm:$0xf0]  ;;  %v3383_v23 = vor.u32 %v3871_v10, %v3382_v9  ;;  %v3222_v9 = vld [vmem:[%s5804_s10 + $0x98] sm:$0xf] }
 0x1c4   :  { %v3512_v60 = vld [vmem:[%s5804_s10 + $0x2f8] sm:$0xf0]  ;;  %v3831_v10 = vld [vmem:[%s5804_s10 + $0xb4] sm:$0xf0] }
 0x1c5   :  { %2321 = vmatpush.bf16.msrb.mxu0 %v3147_v28  ;;  %2334 = vmatpush.bf16.msrb.mxu1 %v3403_v31  ;;  %v3838_v28 = vld [vmem:[%s5804_s10 + $0xec] sm:$0xf0] }
 0x1c6   :  { %v3502_v31 = vld [vmem:[%s5804_s10 + $0x2d0] sm:$0xf] }
 0x225   :  { %v1429_v1 = vpop.f32.mrf.mxu0  ;;  %v1442_v36 = vpop.f32.mrf.mxu1 }
 0x226   :  { %v1430_v37 = vadd.f32 %v1429_v1, %v1392_v33  ;;  %v1443_v38 = vadd.f32 %v1442_v36, %v1393_v34  ;;  %v3834_v33 = vld [vmem:[%s5804_s10 + $0xd4] sm:$0xf] }
 0x227   :  { %v3248_v34 = vld [vmem:[%s5804_s10 + $0xf0] sm:$0xf0] }
 0x228   :  { %v1446_v35 = vmax.f32 %v1430_v37, 0.0  ;;  %v1447_v40 = vmax.f32 %v1443_v38, 0.0  ;;  %v3898_v1 = vld [vmem:[%s5804_s10 + $0x2d4] sm:$0xf]  ;;  %v3247_v37 = vor.u32 %v3838_v28, %v3246_v27  ;;  %v3503_v38 = vor.u32 %v3902_v32, %v3502_v31  ;;  %v3859_v31 = vld [vmem:[%s5804_s10 + $0x19c] sm:$0xf] }
 0x229   :  { %v3504_v36 = vld [vmem:[%s5804_s10 + $0x2f0] sm:$0xf0]  ;;  %v3251_v6 = vor.u32 %v3834_v33, %v3248_v34  ;;  %v3643_v28 = vor.u32 %v3931_v19, %v3640_v20  ;;  %v3352_v32 = vld [vmem:[%s5804_s10 + $0x1b8] sm:$0xf0] }
 0x22a   :  { %v5391_v46 = vpack.c.bf16 %v1446_v35, %v1446_v35  ;;  %v5393_v47 = vpack.c.bf16 %v1447_v40, %v1447_v40  ;;  %v3507_v14 = vor.u32 %v3898_v1, %v3504_v36  ;;  %v3826_v35 = vld [vmem:[%s5804_s10 + $0x94] sm:$0xf]  ;;  %v3923_v33 = vld [vmem:[%s5804_s10 + $0x39c] sm:$0xf] }
 0x22b   :  { %v3216_v40 = vld [vmem:[%s5804_s10 + $0xb0] sm:$0xf0]  ;;  %v3608_v34 = vld [vmem:[%s5804_s10 + $0x3b8] sm:$0xf0] }
 0x22c   :  { %2244 = vmatmul.bf16.vlgmr.msrb.gmra.mxu2 %v5391_v46  ;;  %2257 = vmatmul.bf16.vlgmr.msrb.gmra.mxu3 %v5393_v47  ;;  %v3891_v19 = vld [vmem:[%s5804_s10 + $0x29c] sm:$0xf] }
 0x22d   :  { %2270 = vmatmul.bf16.vlgmr.msra.gmra.mxu0 %v5391_v46  ;;  %2283 = vmatmul.bf16.vlgmr.msra.gmra.mxu1 %v5393_v47  ;;  %v1431_v61 = vpop.f32.mrf.mxu0  ;;  %v1444_v62 = vpop.f32.mrf.mxu1  ;;  %v3480_v20 = vld [vmem:[%s5804_s10 + $0x2b8] sm:$0xf0] }
 0x22e   :  { %2340 = vmatpush.bf16.msrb.mxu2 %v3375_v48  ;;  %2353 = vmatpush.bf16.msrb.mxu3 %v3631_v49  ;;  %v3215_v48 = vor.u32 %v3830_v42, %v3214_v41  ;;  %v3471_v49 = vor.u32 %v3894_v39, %v3470_v15  ;;  %v3150_v61 = vld [vmem:[%s5804_s10 + $0x10] sm:$0xf]  ;;  %v3183_v62 = vor.u32 %v3822_v51, %v3182_v50  ;;  %v3851_v15 = vld [vmem:[%s5804_s10 + $0x15c] sm:$0xf] }
 0x22f   :  { %2366 = vmatpush.bf16.msra.mxu0 %v3379_v52  ;;  %2379 = vmatpush.bf16.msra.mxu1 %v3635_v54  ;;  %v3219_v52 = vor.u32 %v3826_v35, %v3216_v40  ;;  %v3475_v54 = vor.u32 %v3890_v44, %v3472_v45  ;;  %v3355_v41 = vor.u32 %v3859_v31, %v3352_v32  ;;  %v3320_v39 = vld [vmem:[%s5804_s10 + $0x178] sm:$0xf0] }
 0x230   :  { %v3611_v42 = vor.u32 %v3923_v33, %v3608_v34  ;;  %v3915_v35 = vld [vmem:[%s5804_s10 + $0x35c] sm:$0xf]  ;;  %v3323_v50 = vor.u32 %v3851_v15, %v3320_v39 }
 0x231   :  { %v3576_v40 = vld [vmem:[%s5804_s10 + $0x378] sm:$0xf0] }
 0x232   :  { %2341 = vmatpush.bf16.msrb.mxu2 %v3343_v63  ;;  %2354 = vmatpush.bf16.msrb.mxu3 %v3599_v0  ;;  %v3439_v63 = vor.u32 %v3886_v56, %v3438_v55  ;;  %v3814_v0 = vld [vmem:[%s5804_s10 + $0x2c] sm:$0xf0]  ;;  %v3579_v51 = vor.u32 %v3915_v35, %v3576_v40  ;;  %v3843_v55 = vld [vmem:[%s5804_s10 + $0x11c] sm:$0xf] }
 0x233   :  { %2367 = vmatpush.bf16.msra.mxu0 %v3347_v3  ;;  %2380 = vmatpush.bf16.msra.mxu1 %v3603_v4  ;;  %v3187_v3 = vor.u32 %v3818_v57, %v3184_v58  ;;  %v3443_v4 = vor.u32 %v3882_v53, %v3440_v59  ;;  %v3151_v16 = vor.u32 %v3814_v0, %v3150_v61  ;;  %v3288_v56 = vld [vmem:[%s5804_s10 + $0x138] sm:$0xf0]  ;;  %v3254_v61 = vld [vmem:[%s5804_s10 + $0xd8] sm:$0xf] }
 0x234   :  { %v3907_v57 = vld [vmem:[%s5804_s10 + $0x31c] sm:$0xf] }
 0x235   :  { %v3544_v58 = vld [vmem:[%s5804_s10 + $0x338] sm:$0xf0] }
 0x236   :  { %2342 = vmatpush.bf16.msrb.mxu2 %v3311_v11  ;;  %2355 = vmatpush.bf16.msrb.mxu3 %v3567_v12  ;;  %v3638_v11 = vld [vmem:[%s5804_s10 + $0x3d8] sm:$0xf]  ;;  %v3547_v0 = vor.u32 %v3907_v57, %v3544_v58  ;;  %v3883_v31 = vld [vmem:[%s5804_s10 + $0x25c] sm:$0xf] }
 0x237   :  { %2368 = vmatpush.bf16.msra.mxu0 %v3315_v17  ;;  %2381 = vmatpush.bf16.msra.mxu1 %v3571_v18  ;;  %v3935_v12 = vld [vmem:[%s5804_s10 + $0x3f4] sm:$0xf0]  ;;  %v3407_v17 = vor.u32 %v3878_v43, %v3406_v2  ;;  %v3384_v18 = vld [vmem:[%s5804_s10 + $0x1f8] sm:$0xf0] }
 0x238   :  { %v3639_v24 = vor.u32 %v3935_v12, %v3638_v11  ;;  %v3387_v27 = vor.u32 %v3867_v13, %v3384_v18  ;;  %v3510_v2 = vld [vmem:[%s5804_s10 + $0x2d8] sm:$0xf]  ;;  %v3515_v12 = vor.u32 %v3899_v5, %v3512_v60  ;;  %v3224_v18 = vld [vmem:[%s5804_s10 + $0xb8] sm:$0xf0] }
 0x239   :  { %v3903_v43 = vld [vmem:[%s5804_s10 + $0x2f4] sm:$0xf0]  ;;  %v3448_v32 = vld [vmem:[%s5804_s10 + $0x278] sm:$0xf0] }
 0x23a   :  { %2343 = vmatpush.bf16.msrb.mxu2 %v3279_v25  ;;  %2356 = vmatpush.bf16.msrb.mxu3 %v3535_v26  ;;  %v3350_v25 = vld [vmem:[%s5804_s10 + $0x198] sm:$0xf]  ;;  %v3511_v8 = vor.u32 %v3903_v43, %v3510_v2  ;;  %v3875_v15 = vld [vmem:[%s5804_s10 + $0x21c] sm:$0xf] }
 0x23b   :  { %2369 = vmatpush.bf16.msra.mxu0 %v3283_v29  ;;  %2382 = vmatpush.bf16.msra.mxu1 %v3539_v30  ;;  %v3863_v26 = vld [vmem:[%s5804_s10 + $0x1b4] sm:$0xf0]  ;;  %v3416_v39 = vld [vmem:[%s5804_s10 + $0x238] sm:$0xf0] }
 0x23c   :  { %2296 = vmatmul.bf16.vlgmr.msra.gmra.mxu2 %v5391_v46  ;;  %2309 = vmatmul.bf16.vlgmr.msra.gmra.mxu3 %v5393_v47  ;;  %v3606_v29 = vld [vmem:[%s5804_s10 + $0x398] sm:$0xf]  ;;  %v3351_v1 = vor.u32 %v3863_v26, %v3350_v25  ;;  %v3483_v26 = vor.u32 %v3891_v19, %v3480_v20 }
 0x23d   :  { %2322 = vmatmul.bf16.vlgmr.msrb.gmra.mxu0 %v5391_v46  ;;  %2335 = vmatmul.bf16.vlgmr.msrb.gmra.mxu1 %v5393_v47  ;;  %v3927_v30 = vld [vmem:[%s5804_s10 + $0x3b4] sm:$0xf0] }
 0x23e   :  { %2344 = vmatpush.bf16.msrb.mxu2 %v3247_v37  ;;  %2357 = vmatpush.bf16.msrb.mxu3 %v3503_v38  ;;  %v3607_v36 = vor.u32 %v3927_v30, %v3606_v29  ;;  %v3318_v37 = vld [vmem:[%s5804_s10 + $0x158] sm:$0xf]  ;;  %v3819_v29 = vld [vmem:[%s5804_s10 + $0x5c] sm:$0xf] }
 0x23f   :  { %2370 = vmatpush.bf16.msra.mxu0 %v3251_v6  ;;  %2383 = vmatpush.bf16.msra.mxu1 %v3507_v14  ;;  %v3855_v38 = vld [vmem:[%s5804_s10 + $0x174] sm:$0xf0]  ;;  %v3192_v30 = vld [vmem:[%s5804_s10 + $0x78] sm:$0xf0] }
 0x240   :  { %v3574_v6 = vld [vmem:[%s5804_s10 + $0x358] sm:$0xf]  ;;  %v3319_v44 = vor.u32 %v3855_v38, %v3318_v37  ;;  %v3195_v37 = vor.u32 %v3819_v29, %v3192_v30  ;;  %v3451_v38 = vor.u32 %v3883_v31, %v3448_v32 }
 0x241   :  { %v3919_v14 = vld [vmem:[%s5804_s10 + $0x374] sm:$0xf0] }
 0x242   :  { %2345 = vmatpush.bf16.msrb.mxu2 %v3215_v48  ;;  %2358 = vmatpush.bf16.msrb.mxu3 %v3471_v49  ;;  %v3575_v45 = vor.u32 %v3919_v14, %v3574_v6  ;;  %v3286_v48 = vld [vmem:[%s5804_s10 + $0x118] sm:$0xf]  ;;  %v3811_v6 = vld [vmem:[%s5804_s10 + $0x1c] sm:$0xf] }
 0x243   :  { %2371 = vmatpush.bf16.msra.mxu0 %v3219_v52  ;;  %2384 = vmatpush.bf16.msra.mxu1 %v3475_v54  ;;  %v3847_v49 = vld [vmem:[%s5804_s10 + $0x134] sm:$0xf0]  ;;  %v3160_v14 = vld [vmem:[%s5804_s10 + $0x38] sm:$0xf0] }
 0x244   :  { %v3542_v52 = vld [vmem:[%s5804_s10 + $0x318] sm:$0xf]  ;;  %v3287_v53 = vor.u32 %v3847_v49, %v3286_v48  ;;  %v5774_v48 = vld [vmem:[%s5809_s11] sm:$0xff] }
 0x245   :  { %v3911_v54 = vld [vmem:[%s5804_s10 + $0x334] sm:$0xf0]  ;;  %v1581_v49 = vperm.slane %v5774_v48, 1  ;;  %v1583_v2 = vperm.slane %v5774_v48, 3  ;;  %v1582_v5 = vperm.slane %v5774_v48, 2  ;;  %v1585_v20 = vperm.slane %v5774_v48, 5 }
 0x246   :  { %2346 = vmatpush.bf16.msrb.mxu2 %v3183_v62  ;;  %2359 = vmatpush.bf16.msrb.mxu3 %v3439_v63  ;;  %v3543_v59 = vor.u32 %v3911_v54, %v3542_v52  ;;  %v3839_v62 = vld [vmem:[%s5804_s10 + $0xf4] sm:$0xf0]  ;;  %v3291_v63 = vor.u32 %v3843_v55, %v3288_v56  ;;  %v1580_v54 = vperm.slane %v5774_v48, 0 }
 0x247   :  { %2372 = vmatpush.bf16.msra.mxu0 %v3187_v3  ;;  %2385 = vmatpush.bf16.msra.mxu1 %v3443_v4  ;;  %v3835_v3 = vld [vmem:[%s5804_s10 + $0xdc] sm:$0xf]  ;;  %v3255_v7 = vor.u32 %v3839_v62, %v3254_v61  ;;  %v3478_v13 = vld [vmem:[%s5804_s10 + $0x298] sm:$0xf] }
 0x248   :  { %v3256_v4 = vld [vmem:[%s5804_s10 + $0xf8] sm:$0xf0] }
 0x249   :  { %v3259_v11 = vor.u32 %v3835_v3, %v3256_v4 }
 0x24a   :  { %2347 = vmatpush.bf16.msrb.mxu2 %v3151_v16  ;;  %2360 = vmatpush.bf16.msrb.mxu3 %v3407_v17  ;;  %v3895_v16 = vld [vmem:[%s5804_s10 + $0x2b4] sm:$0xf0]  ;;  %v3827_v17 = vld [vmem:[%s5804_s10 + $0x9c] sm:$0xf] }
 0x24b   :  { %2373 = vmatpush.bf16.msra.mxu0 %v3155_v21  ;;  %2386 = vmatpush.bf16.msra.mxu1 %v3411_v22  ;;  %v3223_v21 = vor.u32 %v3831_v10, %v3222_v9  ;;  %v3479_v22 = vor.u32 %v3895_v16, %v3478_v13  ;;  %v3227_v25 = vor.u32 %v3827_v17, %v3224_v18 }
 0x24d   :  { %2348 = vmatmul.bf16.vlgmr.msrb.gmra.mxu2 %v5391_v46  ;;  %2361 = vmatmul.bf16.vlgmr.msrb.gmra.mxu3 %v5393_v47 }
 0x24e   :  { %2392 = vmatpush.bf16.msra.mxu2 %v3383_v23  ;;  %2405 = vmatpush.bf16.msra.mxu3 %v3639_v24  ;;  %v3190_v23 = vld [vmem:[%s5804_s10 + $0x58] sm:$0xf] }
 0x24f   :  { %2418 = vmatpush.bf16.msrb.mxu0 %v3387_v27  ;;  %2431 = vmatpush.bf16.msrb.mxu1 %v3643_v28  ;;  %v3823_v24 = vld [vmem:[%s5804_s10 + $0x74] sm:$0xf0] }
 0x250   :  { %2374 = vmatmul.bf16.vlgmr.msra.gmra.mxu0 %v5391_v46  ;;  %2387 = vmatmul.bf16.vlgmr.msra.gmra.mxu1 %v5393_v47  ;;  %v3446_v27 = vld [vmem:[%s5804_s10 + $0x258] sm:$0xf]  ;;  %v3191_v33 = vor.u32 %v3823_v24, %v3190_v23  ;;  %v1584_v24 = vperm.slane %v5774_v48, 4 }
 0x251   :  { %v3887_v28 = vld [vmem:[%s5804_s10 + $0x274] sm:$0xf0] }
 0x252   :  { %2393 = vmatpush.bf16.msra.mxu2 %v3351_v1  ;;  %2406 = vmatpush.bf16.msra.mxu3 %v3607_v36  ;;  %v3447_v34 = vor.u32 %v3887_v28, %v3446_v27  ;;  %v3158_v1 = vld [vmem:[%s5804_s10 + $0x18] sm:$0xf] }
 0x253   :  { %2419 = vmatpush.bf16.msrb.mxu0 %v3355_v41  ;;  %2432 = vmatpush.bf16.msrb.mxu1 %v3611_v42  ;;  %v3815_v36 = vld [vmem:[%s5804_s10 + $0x34] sm:$0xf0] }
 0x254   :  { %v3414_v41 = vld [vmem:[%s5804_s10 + $0x218] sm:$0xf]  ;;  %v3159_v35 = vor.u32 %v3815_v36, %v3158_v1 }
 0x255   :  { %v3879_v42 = vld [vmem:[%s5804_s10 + $0x234] sm:$0xf0] }
 0x256   :  { %2394 = vmatpush.bf16.msra.mxu2 %v3319_v44  ;;  %2407 = vmatpush.bf16.msra.mxu3 %v3575_v45  ;;  %v3415_v40 = vor.u32 %v3879_v42, %v3414_v41  ;;  %v3163_v44 = vor.u32 %v3811_v6, %v3160_v14  ;;  %v3419_v45 = vor.u32 %v3875_v15, %v3416_v39  ;;  %v1586_v6 = vperm.slane %v5774_v48, 6 }
 0x257   :  { %2420 = vmatpush.bf16.msrb.mxu0 %v3323_v50  ;;  %2433 = vmatpush.bf16.msrb.mxu1 %v3579_v51 }
 0x25a   :  { %2395 = vmatpush.bf16.msra.mxu2 %v3287_v53  ;;  %2408 = vmatpush.bf16.msra.mxu3 %v3543_v59 }
 0x25b   :  { %2421 = vmatpush.bf16.msrb.mxu0 %v3291_v63  ;;  %2434 = vmatpush.bf16.msrb.mxu1 %v3547_v0 }
 0x25e   :  { %2396 = vmatpush.bf16.msra.mxu2 %v3255_v7  ;;  %2409 = vmatpush.bf16.msra.mxu3 %v3511_v8 }
 0x25f   :  { %2422 = vmatpush.bf16.msrb.mxu0 %v3259_v11  ;;  %2435 = vmatpush.bf16.msrb.mxu1 %v3515_v12 }
 0x262   :  { %2397 = vmatpush.bf16.msra.mxu2 %v3223_v21  ;;  %2410 = vmatpush.bf16.msra.mxu3 %v3479_v22 }
 0x263   :  { %2423 = vmatpush.bf16.msrb.mxu0 %v3227_v25  ;;  %2436 = vmatpush.bf16.msrb.mxu1 %v3483_v26 }
 0x266   :  { %2398 = vmatpush.bf16.msra.mxu2 %v3191_v33  ;;  %2411 = vmatpush.bf16.msra.mxu3 %v3447_v34 }
 0x267   :  { %2424 = vmatpush.bf16.msrb.mxu0 %v3195_v37  ;;  %2437 = vmatpush.bf16.msrb.mxu1 %v3451_v38  ;;  %v1587_v37 = vperm.slane %v5774_v48, 7 }
 0x26a   :  { %2399 = vmatpush.bf16.msra.mxu2 %v3159_v35  ;;  %2412 = vmatpush.bf16.msra.mxu3 %v3415_v40 }
 0x26b   :  { %2425 = vmatpush.bf16.msrb.mxu0 %v3163_v44  ;;  %2438 = vmatpush.bf16.msrb.mxu1 %v3419_v45 }
 0x26d   :  { %2400 = vmatmul.bf16.vlgmr.msra.gmra.mxu2 %v5391_v46  ;;  %2413 = vmatmul.bf16.vlgmr.msra.gmra.mxu3 %v5393_v47 }
 0x26e   :  { %2426 = vmatmul.bf16.vlgmr.msrb.gmra.mxu0 %v5391_v46  ;;  %2439 = vmatmul.bf16.vlgmr.msrb.gmra.mxu1 %v5393_v47 }
 0x2aa   :  { %v2271_v50 = vpop.f32.mrf.mxu0  ;;  %v2284_v51 = vpop.f32.mrf.mxu1 }
 0x2ab   :  { %v2272_v52 = vadd.f32 %v2271_v50, %v1581_v49 }
 0x2ad   :  { %v2285_v57 = vadd.f32 %v2284_v51, %v2272_v52 }
 0x2af   :  { %v2245_v55 = vpop.f32.mrf.mxu2  ;;  %v2258_v56 = vpop.f32.mrf.mxu3  ;;  %v2445_v47 = vmax.f32 %v2285_v57, 0.0 }
 0x2b0   :  { %v2246_v58 = vadd.f32 %v2245_v55, %v1580_v54 }
 0x2b2   :  { %v2259_v53 = vadd.f32 %v2258_v56, %v2246_v58  ;;  %v2273_v46 = vpop.f32.mrf.mxu0  ;;  %v2286_v59 = vpop.f32.mrf.mxu1 }
 0x2b4   :  { %v2444_v61 = vmax.f32 %v2259_v53, 0.0 }
 0x2b6   :  { %v2454_v62 = vpack.c.bf16 %v2445_v47, %v2444_v61 }
 0x2b7   :  { %v2247_v63 = vpop.f32.mrf.mxu2  ;;  %v2260_v0 = vpop.f32.mrf.mxu3 }
 0x2b8   :  { %2458 = vst [vmem:[%s5810_s14] sm:$0xff] %v2454_v62 }
 0x2ba   :  { %v2323_v43 = vpop.f32.mrf.mxu0  ;;  %v2336_v3 = vpop.f32.mrf.mxu1 }
 0x2bb   :  { %v2324_v4 = vadd.f32 %v2323_v43, %v1583_v2 }
 0x2bd   :  { %v2337_v8 = vadd.f32 %v2336_v3, %v2324_v4 }
 0x2bf   :  { %v2297_v60 = vpop.f32.mrf.mxu2  ;;  %v2310_v7 = vpop.f32.mrf.mxu3  ;;  %v2447_v13 = vmax.f32 %v2337_v8, 0.0 }
 0x2c0   :  { %v2298_v9 = vadd.f32 %v2297_v60, %v1582_v5 }
 0x2c2   :  { %v2311_v10 = vadd.f32 %v2310_v7, %v2298_v9  ;;  %v2325_v11 = vpop.f32.mrf.mxu0  ;;  %v2338_v12 = vpop.f32.mrf.mxu1 }
 0x2c4   :  { %v2446_v16 = vmax.f32 %v2311_v10, 0.0 }
 0x2c6   :  { %v2455_v17 = vpack.c.bf16 %v2447_v13, %v2446_v16 }
 0x2c7   :  { %v2299_v18 = vpop.f32.mrf.mxu2  ;;  %v2312_v19 = vpop.f32.mrf.mxu3 }
 0x2c8   :  { %2459 = vst [vmem:[%s5810_s14 + $0x8] sm:$0xff] %v2455_v17 }
 0x2cd   :  { %v2375_v21 = vpop.f32.mrf.mxu0  ;;  %v2388_v22 = vpop.f32.mrf.mxu1 }
 0x2ce   :  { %v2376_v23 = vadd.f32 %v2375_v21, %v1585_v20 }
 0x2d0   :  { %v2349_v25 = vpop.f32.mrf.mxu2  ;;  %v2362_v26 = vpop.f32.mrf.mxu3  ;;  %v2389_v27 = vadd.f32 %v2388_v22, %v2376_v23 }
 0x2d1   :  { %v2350_v28 = vadd.f32 %v2349_v25, %v1584_v24 }
 0x2d2   :  { %v2449_v32 = vmax.f32 %v2389_v27, 0.0 }
 0x2d3   :  { %v2363_v29 = vadd.f32 %v2362_v26, %v2350_v28 }
 0x2d5   :  { %v2377_v30 = vpop.f32.mrf.mxu0  ;;  %v2390_v31 = vpop.f32.mrf.mxu1  ;;  %v2448_v33 = vmax.f32 %v2363_v29, 0.0 }
 0x2d7   :  { %v2456_v34 = vpack.c.bf16 %v2449_v32, %v2448_v33 }
 0x2d8   :  { %v2351_v1 = vpop.f32.mrf.mxu2  ;;  %v2364_v36 = vpop.f32.mrf.mxu3 }
 0x2d9   :  { %2460 = vst [vmem:[%s5810_s14 + $0x10] sm:$0xff] %v2456_v34 }
 0x2eb   :  { %v2427_v38 = vpop.f32.mrf.mxu0  ;;  %v2440_v41 = vpop.f32.mrf.mxu1 }
 0x2ec   :  { %v2428_v42 = vadd.f32 %v2427_v38, %v1587_v37 }
 0x2ee   :  { %v2441_v39 = vadd.f32 %v2440_v41, %v2428_v42 }
 0x2f0   :  { %v2401_v14 = vpop.f32.mrf.mxu2  ;;  %v2414_v15 = vpop.f32.mrf.mxu3  ;;  %v2451_v49 = vmax.f32 %v2441_v39, 0.0 }
 0x2f1   :  { %v2402_v35 = vadd.f32 %v2401_v14, %v1586_v6 }
 0x2f3   :  { %v2415_v40 = vadd.f32 %v2414_v15, %v2402_v35  ;;  %v2429_v44 = vpop.f32.mrf.mxu0  ;;  %v2442_v45 = vpop.f32.mrf.mxu1 }
 0x2f5   :  { %v2450_v50 = vmax.f32 %v2415_v40, 0.0 }
 0x2f7   :  { %v2457_v51 = vpack.c.bf16 %v2451_v49, %v2450_v50 }
 0x2f8   :  { %v2403_v52 = vpop.f32.mrf.mxu2  ;;  %v2416_v54 = vpop.f32.mrf.mxu3 }
 0x2f9   :  { %2461 = vst [vmem:[%s5810_s14 + $0x18] sm:$0xff] %v2457_v51 }

// kernel: beta_vae64_forward.17
= control target key start
LH: loop header
LB: loop body
LE: loop exit
PB: predicated region body
PF: predicated region fallthrough
CT: control target
= control target key end

     0   :  { %vm555_vm0 = vcmask 523264   ;;  %s1794_s1 = inlined_call_operand.vmem [shape: bf16[576,128], index: 1, kind: input, shape index: {}]   ;;  %s1795_s2 = inlined_call_operand.vmem [shape: f32[1,128], index: 2, kind: input, shape index: {}]   ;;  %s1796_s0 = inlined_call_operand.vmem [shape: bf16[128,576], index: 0, kind: input, shape index: {}]   ;;  %s1797_s3 = inlined_call_operand.vmem [shape: bf16[128,128], index: 3, kind: output, shape index: {}]  }
   0x1   :  { %v1236_v0 = vld [vmem:[%s1794_s1 + $0x38] sm:$0xff]  ;;  %v1235_v1 = vld [vmem:[%s1794_s1 + $0x30] sm:$0xff]  ;;  %v1234_v2 = vld [vmem:[%s1794_s1 + $0x28] sm:$0xff] }
   0x2   :  { %1312 = vmatpush.bf16.msra.mxu1 %v1236_v0  ;;  %1313 = vmatpush.bf16.msra.mxu2 %v1236_v0  ;;  %v1233_v3 = vld [vmem:[%s1794_s1 + $0x20] sm:$0xff]  ;;  %v1232_v4 = vld [vmem:[%s1794_s1 + $0x18] sm:$0xff]  ;;  %v1231_v5 = vld [vmem:[%s1794_s1 + $0x10] sm:$0xff] }
   0x3   :  { %1314 = vmatpush.bf16.msra.mxu3 %v1236_v0  ;;  %580 = vmatpush.bf16.msra.mxu0 %v1236_v0  ;;  %v1230_v6 = vld [vmem:[%s1794_s1 + $0x8] sm:$0xff]  ;;  %v1229_v7 = vld [vmem:[%s1794_s1] sm:$0xff]  ;;  %v919_v8 = vld [vmem:[%s1796_s0 + $0x50] sm:$0xf] }
   0x4   :  { %v1201_v9 = vld [vmem:[%s1796_s0 + $0x60] sm:$0xf0]  ;;  %v959_v10 = vld [vmem:[%s1796_s0 + $0xa0] sm:$0xf]  ;;  %v1211_v11 = vld [vmem:[%s1796_s0 + $0xb0] sm:$0xf0] }
   0x5   :  { %v999_v12 = vld [vmem:[%s1796_s0 + $0xf0] sm:$0xf]  ;;  %v1221_v13 = vld [vmem:[%s1796_s0 + $0x100] sm:$0xf0]  ;;  %v879_v14 = vld [vmem:[%s1796_s0] sm:$0xf]  ;;  %v920_v18 = vor.u32 %v1201_v9, %v919_v8  ;;  %v960_v19 = vor.u32 %v1211_v11, %v959_v10 }
   0x6   :  { %1315 = vmatpush.bf16.msra.mxu1 %v1235_v1  ;;  %1316 = vmatpush.bf16.msra.mxu2 %v1235_v1  ;;  %v1191_v15 = vld [vmem:[%s1796_s0 + $0x10] sm:$0xf0]  ;;  %v1252_v16 = vld [vmem:[%s1794_s1 + $0xb8] sm:$0xff]  ;;  %v1000_v20 = vor.u32 %v1221_v13, %v999_v12  ;;  %v1250_v28 = vld [vmem:[%s1794_s1 + $0xa8] sm:$0xff] }
   0x7   :  { %1317 = vmatpush.bf16.msra.mxu3 %v1235_v1  ;;  %581 = vmatpush.bf16.msra.mxu0 %v1235_v1  ;;  %v1244_v17 = vld [vmem:[%s1794_s1 + $0x78] sm:$0xff]  ;;  %v880_v21 = vor.u32 %v1191_v15, %v879_v14  ;;  %v1251_v24 = vld [vmem:[%s1794_s1 + $0xb0] sm:$0xff]  ;;  %v1242_v29 = vld [vmem:[%s1794_s1 + $0x68] sm:$0xff] }
   0x8   :  { %v1260_v22 = vld [vmem:[%s1794_s1 + $0xf8] sm:$0xff]  ;;  %v1243_v25 = vld [vmem:[%s1794_s1 + $0x70] sm:$0xff]  ;;  %v1258_v30 = vld [vmem:[%s1794_s1 + $0xe8] sm:$0xff] }
   0x9   :  { %v1264_v23 = vld [vmem:[%s1794_s1 + $0x118] sm:$0xff]  ;;  %v1259_v26 = vld [vmem:[%s1794_s1 + $0xf0] sm:$0xff]  ;;  %v1262_v31 = vld [vmem:[%s1794_s1 + $0x108] sm:$0xff] }
   0xa   :  { %1318 = vmatpush.bf16.msra.mxu1 %v1234_v2  ;;  %1319 = vmatpush.bf16.msra.mxu2 %v1234_v2  ;;  %v1263_v27 = vld [vmem:[%s1794_s1 + $0x110] sm:$0xff]  ;;  %v1249_v32 = vld [vmem:[%s1794_s1 + $0xa0] sm:$0xff]  ;;  %v939_v35 = vld [vmem:[%s1796_s0 + $0x78] sm:$0xf] }
   0xb   :  { %1320 = vmatpush.bf16.msra.mxu3 %v1234_v2  ;;  %582 = vmatpush.bf16.msra.mxu0 %v1234_v2  ;;  %v1241_v33 = vld [vmem:[%s1794_s1 + $0x60] sm:$0xff]  ;;  %v1206_v36 = vld [vmem:[%s1796_s0 + $0x88] sm:$0xf0]  ;;  %v979_v37 = vld [vmem:[%s1796_s0 + $0xc8] sm:$0xf] }
   0xc   :  { %v1257_v34 = vld [vmem:[%s1794_s1 + $0xe0] sm:$0xff]  ;;  %v1216_v38 = vld [vmem:[%s1796_s0 + $0xd8] sm:$0xf0]  ;;  %v1019_v39 = vld [vmem:[%s1796_s0 + $0x118] sm:$0xf]  ;;  %v940_v46 = vor.u32 %v1206_v36, %v939_v35 }
   0xd   :  { %v1226_v40 = vld [vmem:[%s1796_s0 + $0x128] sm:$0xf0]  ;;  %v899_v41 = vld [vmem:[%s1796_s0 + $0x28] sm:$0xf]  ;;  %v1196_v42 = vld [vmem:[%s1796_s0 + $0x38] sm:$0xf0]  ;;  %v980_v47 = vor.u32 %v1216_v38, %v979_v37 }
   0xe   :  { %1321 = vmatpush.bf16.msra.mxu1 %v1233_v3  ;;  %1322 = vmatpush.bf16.msra.mxu2 %v1233_v3  ;;  %v1261_v43 = vld [vmem:[%s1794_s1 + $0x100] sm:$0xff]  ;;  %v1248_v44 = vld [vmem:[%s1794_s1 + $0x98] sm:$0xff]  ;;  %v1020_v48 = vor.u32 %v1226_v40, %v1019_v39  ;;  %v900_v49 = vor.u32 %v1196_v42, %v899_v41  ;;  %v1247_v51 = vld [vmem:[%s1794_s1 + $0x90] sm:$0xff] }
   0xf   :  { %1323 = vmatpush.bf16.msra.mxu3 %v1233_v3  ;;  %583 = vmatpush.bf16.msra.mxu0 %v1233_v3  ;;  %v1240_v45 = vld [vmem:[%s1794_s1 + $0x58] sm:$0xff]  ;;  %v1239_v52 = vld [vmem:[%s1794_s1 + $0x50] sm:$0xff]  ;;  %v1246_v54 = vld [vmem:[%s1794_s1 + $0x88] sm:$0xff] }
  0x10   :  { %v1256_v50 = vld [vmem:[%s1794_s1 + $0xd8] sm:$0xff]  ;;  %v1255_v53 = vld [vmem:[%s1794_s1 + $0xd0] sm:$0xff]  ;;  %v1238_v55 = vld [vmem:[%s1794_s1 + $0x48] sm:$0xff] }
  0x11   :  { %v1254_v56 = vld [vmem:[%s1794_s1 + $0xc8] sm:$0xff]  ;;  %v1245_v57 = vld [vmem:[%s1794_s1 + $0x80] sm:$0xff]  ;;  %v881_v61 = vld [vmem:[%s1796_s0 + $0x14] sm:$0xf0] }
  0x12   :  { %1324 = vmatpush.bf16.msra.mxu1 %v1232_v4  ;;  %1325 = vmatpush.bf16.msra.mxu2 %v1232_v4  ;;  %v1237_v58 = vld [vmem:[%s1794_s1 + $0x40] sm:$0xff]  ;;  %v887_v62 = vld [vmem:[%s1796_s0 + $0x8] sm:$0xf]  ;;  %v1192_v63 = vld [vmem:[%s1796_s0 + $0x18] sm:$0xf0] }
  0x13   :  { %1326 = vmatpush.bf16.msra.mxu3 %v1232_v4  ;;  %584 = vmatpush.bf16.msra.mxu0 %v1232_v4  ;;  %v1253_v59 = vld [vmem:[%s1794_s1 + $0xc0] sm:$0xff]  ;;  %v1190_v0 = vld [vmem:[%s1796_s0 + $0xc] sm:$0xf]  ;;  %v895_v2 = vld [vmem:[%s1796_s0 + $0x10] sm:$0xf] }
  0x14   :  { %v1189_v60 = vld [vmem:[%s1796_s0 + $0x4] sm:$0xf]  ;;  %v889_v1 = vld [vmem:[%s1796_s0 + $0x1c] sm:$0xf0]  ;;  %v1194_v8 = vld [vmem:[%s1796_s0 + $0x2c] sm:$0xf] }
  0x15   :  { %v1193_v3 = vld [vmem:[%s1796_s0 + $0x20] sm:$0xf0]  ;;  %v884_v4 = vor.u32 %v1189_v60, %v881_v61  ;;  %v901_v9 = vld [vmem:[%s1796_s0 + $0x3c] sm:$0xf0]  ;;  %v907_v10 = vld [vmem:[%s1796_s0 + $0x30] sm:$0xf] }
  0x16   :  { %1327 = vmatpush.bf16.msra.mxu1 %v1231_v5  ;;  %1328 = vmatpush.bf16.msra.mxu2 %v1231_v5  ;;  %v1197_v11 = vld [vmem:[%s1796_s0 + $0x40] sm:$0xf0]  ;;  %v1195_v12 = vld [vmem:[%s1796_s0 + $0x34] sm:$0xf]  ;;  %v909_v13 = vld [vmem:[%s1796_s0 + $0x44] sm:$0xf0] }
  0x17   :  { %1329 = vmatpush.bf16.msra.mxu3 %v1231_v5  ;;  %585 = vmatpush.bf16.msra.mxu0 %v1231_v5  ;;  %v888_v5 = vor.u32 %v1192_v63, %v887_v62  ;;  %v915_v14 = vld [vmem:[%s1796_s0 + $0x38] sm:$0xf]  ;;  %v1198_v15 = vld [vmem:[%s1796_s0 + $0x48] sm:$0xf0]  ;;  %v1207_v35 = vld [vmem:[%s1796_s0 + $0x90] sm:$0xf0] }
  0x18   :  { %v1205_v36 = vld [vmem:[%s1796_s0 + $0x84] sm:$0xf]  ;;  %v949_v37 = vld [vmem:[%s1796_s0 + $0x94] sm:$0xf0]  ;;  %v955_v38 = vld [vmem:[%s1796_s0 + $0x88] sm:$0xf] }
  0x19   :  { %v1208_v39 = vld [vmem:[%s1796_s0 + $0x98] sm:$0xf0]  ;;  %v952_v42 = vor.u32 %v1205_v36, %v949_v37  ;;  %v1215_v60 = vld [vmem:[%s1796_s0 + $0xd4] sm:$0xf]  ;;  %v989_v61 = vld [vmem:[%s1796_s0 + $0xe4] sm:$0xf0] }
  0x1a   :  { %1330 = vmatpush.bf16.msra.mxu1 %v1230_v6  ;;  %1331 = vmatpush.bf16.msra.mxu2 %v1230_v6  ;;  %v995_v62 = vld [vmem:[%s1796_s0 + $0xd8] sm:$0xf]  ;;  %v1218_v63 = vld [vmem:[%s1796_s0 + $0xe8] sm:$0xf0] }
  0x1b   :  { %1332 = vmatpush.bf16.msra.mxu3 %v1230_v6  ;;  %586 = vmatpush.bf16.msra.mxu0 %v1230_v6  ;;  %v892_v6 = vor.u32 %v1190_v0, %v889_v1 }
  0x1e   :  { %1333 = vmatpush.bf16.msra.mxu1 %v1229_v7  ;;  %1334 = vmatpush.bf16.msra.mxu2 %v1229_v7 }
  0x1f   :  { %1335 = vmatpush.bf16.msra.mxu3 %v1229_v7  ;;  %587 = vmatpush.bf16.msra.mxu0 %v1229_v7  ;;  %v896_v7 = vor.u32 %v1193_v3, %v895_v2  ;;  %v992_v2 = vor.u32 %v1215_v60, %v989_v61  ;;  %v996_v3 = vor.u32 %v1218_v63, %v995_v62 }
  0x21   :  { %598 = vmatmul.bf16.vlgmr.msra.gmra.mxu1 %v920_v18  ;;  %608 = vmatmul.bf16.vlgmr.msra.gmra.mxu2 %v960_v19  ;;  %v912_v18 = vor.u32 %v1195_v12, %v909_v13  ;;  %v916_v19 = vor.u32 %v1198_v15, %v915_v14 }
  0x22   :  { %678 = vmatpush.bf16.msrb.mxu2 %v1252_v16  ;;  %629 = vmatpush.bf16.msrb.mxu1 %v1244_v17  ;;  %v904_v16 = vor.u32 %v1194_v8, %v901_v9  ;;  %v908_v17 = vor.u32 %v1197_v11, %v907_v10  ;;  %v1220_v8 = vld [vmem:[%s1796_s0 + $0xfc] sm:$0xf]  ;;  %v1009_v9 = vld [vmem:[%s1796_s0 + $0x10c] sm:$0xf0]  ;;  %v1015_v10 = vld [vmem:[%s1796_s0 + $0x100] sm:$0xf] }
  0x23   :  { %618 = vmatmul.bf16.vlgmr.msra.gmra.mxu3 %v1000_v20  ;;  %588 = vmatmul.bf16.vlgmr.msra.gmra.mxu0 %v880_v21  ;;  %v1199_v20 = vld [vmem:[%s1796_s0 + $0x54] sm:$0xf]  ;;  %v921_v21 = vld [vmem:[%s1796_s0 + $0x64] sm:$0xf0]  ;;  %v1012_v15 = vor.u32 %v1220_v8, %v1009_v9 }
  0x24   :  { %727 = vmatpush.bf16.msrb.mxu3 %v1260_v22  ;;  %780 = vmatpush.bf16.msrb.mxu0 %v1264_v23  ;;  %v927_v22 = vld [vmem:[%s1796_s0 + $0x58] sm:$0xf]  ;;  %v1202_v23 = vld [vmem:[%s1796_s0 + $0x68] sm:$0xf0]  ;;  %v1223_v11 = vld [vmem:[%s1796_s0 + $0x110] sm:$0xf0] }
  0x26   :  { %679 = vmatpush.bf16.msrb.mxu2 %v1251_v24  ;;  %630 = vmatpush.bf16.msrb.mxu1 %v1243_v25  ;;  %v1200_v24 = vld [vmem:[%s1796_s0 + $0x5c] sm:$0xf]  ;;  %v929_v25 = vld [vmem:[%s1796_s0 + $0x6c] sm:$0xf0] }
  0x28   :  { %728 = vmatpush.bf16.msrb.mxu3 %v1259_v26  ;;  %781 = vmatpush.bf16.msrb.mxu0 %v1263_v27  ;;  %v935_v26 = vld [vmem:[%s1796_s0 + $0x60] sm:$0xf]  ;;  %v1203_v27 = vld [vmem:[%s1796_s0 + $0x70] sm:$0xf0] }
  0x2a   :  { %680 = vmatpush.bf16.msrb.mxu2 %v1250_v28  ;;  %631 = vmatpush.bf16.msrb.mxu1 %v1242_v29  ;;  %v924_v28 = vor.u32 %v1199_v20, %v921_v21  ;;  %v928_v29 = vor.u32 %v1202_v23, %v927_v22 }
  0x2c   :  { %729 = vmatpush.bf16.msrb.mxu3 %v1258_v30  ;;  %782 = vmatpush.bf16.msrb.mxu0 %v1262_v31  ;;  %v932_v30 = vor.u32 %v1200_v24, %v929_v25  ;;  %v936_v31 = vor.u32 %v1203_v27, %v935_v26  ;;  %v1224_v25 = vld [vmem:[%s1796_s0 + $0x11c] sm:$0xf]  ;;  %v1021_v26 = vld [vmem:[%s1796_s0 + $0x12c] sm:$0xf0]  ;;  %v1027_v27 = vld [vmem:[%s1796_s0 + $0x120] sm:$0xf] }
  0x2d   :  { %v1024_v36 = vor.u32 %v1224_v25, %v1021_v26 }
  0x2e   :  { %681 = vmatpush.bf16.msrb.mxu2 %v1249_v32  ;;  %632 = vmatpush.bf16.msrb.mxu1 %v1241_v33  ;;  %v1204_v32 = vld [vmem:[%s1796_s0 + $0x7c] sm:$0xf]  ;;  %v941_v33 = vld [vmem:[%s1796_s0 + $0x8c] sm:$0xf0] }
  0x2f   :  { %v944_v40 = vor.u32 %v1204_v32, %v941_v33  ;;  %v1228_v32 = vld [vmem:[%s1796_s0 + $0x138] sm:$0xf0] }
  0x30   :  { %730 = vmatpush.bf16.msrb.mxu3 %v1257_v34  ;;  %783 = vmatpush.bf16.msrb.mxu0 %v1261_v43  ;;  %v947_v34 = vld [vmem:[%s1796_s0 + $0x80] sm:$0xf]  ;;  %v956_v43 = vor.u32 %v1208_v39, %v955_v38 }
  0x31   :  { %603 = vmatmul.bf16.gmra.mxu1 %v940_v46  ;;  %613 = vmatmul.bf16.gmra.mxu2 %v980_v47  ;;  %v948_v41 = vor.u32 %v1207_v35, %v947_v34  ;;  %v967_v46 = vld [vmem:[%s1796_s0 + $0xa8] sm:$0xf]  ;;  %v1212_v47 = vld [vmem:[%s1796_s0 + $0xb8] sm:$0xf0] }
  0x32   :  { %682 = vmatpush.bf16.msrb.mxu2 %v1248_v44  ;;  %633 = vmatpush.bf16.msrb.mxu1 %v1240_v45  ;;  %v1209_v44 = vld [vmem:[%s1796_s0 + $0xa4] sm:$0xf]  ;;  %v961_v45 = vld [vmem:[%s1796_s0 + $0xb4] sm:$0xf0] }
  0x33   :  { %623 = vmatmul.bf16.gmra.mxu3 %v1020_v48  ;;  %593 = vmatmul.bf16.gmra.mxu0 %v900_v49  ;;  %v1210_v48 = vld [vmem:[%s1796_s0 + $0xac] sm:$0xf]  ;;  %v969_v49 = vld [vmem:[%s1796_s0 + $0xbc] sm:$0xf0] }
  0x34   :  { %731 = vmatpush.bf16.msrb.mxu3 %v1256_v50  ;;  %v975_v50 = vld [vmem:[%s1796_s0 + $0xb0] sm:$0xf] }
  0x36   :  { %683 = vmatpush.bf16.msrb.mxu2 %v1247_v51  ;;  %634 = vmatpush.bf16.msrb.mxu1 %v1239_v52  ;;  %v1213_v51 = vld [vmem:[%s1796_s0 + $0xc0] sm:$0xf0]  ;;  %v964_v52 = vor.u32 %v1209_v44, %v961_v45 }
  0x38   :  { %732 = vmatpush.bf16.msrb.mxu3 %v1255_v53  ;;  %v968_v53 = vor.u32 %v1212_v47, %v967_v46 }
  0x3a   :  { %684 = vmatpush.bf16.msrb.mxu2 %v1246_v54  ;;  %635 = vmatpush.bf16.msrb.mxu1 %v1238_v55  ;;  %v972_v54 = vor.u32 %v1210_v48, %v969_v49  ;;  %v976_v55 = vor.u32 %v1213_v51, %v975_v50 }
  0x3c   :  { %733 = vmatpush.bf16.msrb.mxu3 %v1254_v56  ;;  %v1214_v56 = vld [vmem:[%s1796_s0 + $0xcc] sm:$0xf] }
  0x3e   :  { %685 = vmatpush.bf16.msrb.mxu2 %v1245_v57  ;;  %636 = vmatpush.bf16.msrb.mxu1 %v1237_v58  ;;  %v981_v57 = vld [vmem:[%s1796_s0 + $0xdc] sm:$0xf0]  ;;  %v987_v58 = vld [vmem:[%s1796_s0 + $0xd0] sm:$0xf] }
  0x3f   :  { %v984_v0 = vor.u32 %v1214_v56, %v981_v57 }
  0x40   :  { %734 = vmatpush.bf16.msrb.mxu3 %v1253_v59  ;;  %v1217_v59 = vld [vmem:[%s1796_s0 + $0xe0] sm:$0xf0] }
  0x41   :  { %637 = vmatmul.bf16.vlgmr.msrb.gmra.mxu1 %v884_v4  ;;  %686 = vmatmul.bf16.vlgmr.msrb.gmra.mxu2 %v888_v5  ;;  %v988_v1 = vor.u32 %v1217_v59, %v987_v58  ;;  %v1219_v4 = vld [vmem:[%s1796_s0 + $0xf4] sm:$0xf]  ;;  %v1001_v5 = vld [vmem:[%s1796_s0 + $0x104] sm:$0xf0] }
  0x42   :  { %v1004_v12 = vor.u32 %v1219_v4, %v1001_v5 }
  0x43   :  { %735 = vmatmul.bf16.vlgmr.msrb.gmra.mxu3 %v892_v6  ;;  %1181 = vmatmul.msk.bf16.vlgmr.msrb.gmra.mxu0 %vm555_vm0, %v896_v7  ;;  %v1007_v6 = vld [vmem:[%s1796_s0 + $0xf8] sm:$0xf]  ;;  %v1222_v7 = vld [vmem:[%s1796_s0 + $0x108] sm:$0xf0] }
  0x44   :  { %v1008_v13 = vor.u32 %v1222_v7, %v1007_v6 }
  0x51   :  { %642 = vmatmul.bf16.gmra.mxu1 %v904_v16  ;;  %691 = vmatmul.bf16.gmra.mxu2 %v908_v17  ;;  %v1016_v16 = vor.u32 %v1223_v11, %v1015_v10 }
  0x53   :  { %740 = vmatmul.bf16.gmra.mxu3 %v912_v18  ;;  %1182 = vmatmul.msk.bf16.gmra.mxu0 %vm555_vm0, %v916_v19  ;;  %v1693_v18 = vld [vmem:[%s1795_s2] ss:$0 sm:$0xff] }
  0x61   :  { %647 = vmatmul.bf16.gmra.mxu1 %v924_v28  ;;  %696 = vmatmul.bf16.gmra.mxu2 %v928_v29  ;;  %v1227_v28 = vld [vmem:[%s1796_s0 + $0x130] sm:$0xf0]  ;;  %v1225_v29 = vld [vmem:[%s1796_s0 + $0x124] sm:$0xf] }
  0x62   :  { %v1028_v37 = vor.u32 %v1227_v28, %v1027_v27 }
  0x63   :  { %745 = vmatmul.bf16.gmra.mxu3 %v932_v30  ;;  %1183 = vmatmul.msk.bf16.gmra.mxu0 %vm555_vm0, %v936_v31  ;;  %v1029_v30 = vld [vmem:[%s1796_s0 + $0x134] sm:$0xf0]  ;;  %v1035_v31 = vld [vmem:[%s1796_s0 + $0x128] sm:$0xf] }
  0x71   :  { %652 = vmatmul.bf16.gmra.mxu1 %v944_v40  ;;  %701 = vmatmul.bf16.gmra.mxu2 %v948_v41  ;;  %v1032_v40 = vor.u32 %v1225_v29, %v1029_v30  ;;  %v1036_v41 = vor.u32 %v1228_v32, %v1035_v31 }
  0x73   :  { %750 = vmatmul.bf16.gmra.mxu3 %v952_v42  ;;  %1184 = vmatmul.msk.bf16.gmra.mxu0 %vm555_vm0, %v956_v43 }
  0x81   :  { %657 = vmatmul.bf16.gmra.mxu1 %v964_v52  ;;  %706 = vmatmul.bf16.gmra.mxu2 %v968_v53 }
  0x83   :  { %755 = vmatmul.bf16.gmra.mxu3 %v972_v54  ;;  %1185 = vmatmul.msk.bf16.gmra.mxu0 %vm555_vm0, %v976_v55 }
  0x91   :  { %662 = vmatmul.bf16.gmra.mxu1 %v984_v0  ;;  %711 = vmatmul.bf16.gmra.mxu2 %v988_v1 }
  0x93   :  { %760 = vmatmul.bf16.gmra.mxu3 %v992_v2  ;;  %1186 = vmatmul.msk.bf16.gmra.mxu0 %vm555_vm0, %v996_v3 }
  0x9e   :  { %v1687_v14 = vpop.f32.mrf.mxu1 }
  0xa0   :  { %v589_v17 = vpop.f32.mrf.mxu0 }
  0xa1   :  { %667 = vmatmul.bf16.gmra.mxu1 %v1004_v12  ;;  %716 = vmatmul.bf16.gmra.mxu2 %v1008_v13  ;;  %v590_v55 = vadd.f32 %v1693_v18, %v589_v17 }
  0xa3   :  { %765 = vmatmul.bf16.gmra.mxu3 %v1012_v15  ;;  %1187 = vmatmul.msk.bf16.gmra.mxu0 %vm555_vm0, %v1016_v16 }
  0xa4   :  { %v609_v19 = vpop.f32.mrf.mxu2 }
  0xa5   :  { %v1696_v20 = vadd.f32 %v1693_v18, %v609_v19 }
  0xa6   :  { %v619_v21 = vpop.f32.mrf.mxu3  ;;  %v1701_v23 = vpop.f32.mrf.mxu1 }
  0xa7   :  { %v1699_v22 = vadd.f32 %v1693_v18, %v619_v21 }
  0xa8   :  { %v591_v24 = vpop.f32.mrf.mxu0 }
  0xa9   :  { %v592_v62 = vadd.f32 %v1693_v18, %v591_v24 }
  0xac   :  { %v611_v33 = vpop.f32.mrf.mxu2 }
  0xad   :  { %v1728_v34 = vadd.f32 %v1693_v18, %v611_v33 }
  0xae   :  { %v621_v35 = vpop.f32.mrf.mxu3  ;;  %v1733_v39 = vpop.f32.mrf.mxu1 }
  0xaf   :  { %v1731_v38 = vadd.f32 %v1693_v18, %v621_v35 }
  0xb0   :  { %v594_v42 = vpop.f32.mrf.mxu0 }
  0xb1   :  { %672 = vmatmul.bf16.gmra.mxu1 %v1024_v36  ;;  %721 = vmatmul.bf16.gmra.mxu2 %v1028_v37  ;;  %v595_v9 = vadd.f32 %v1693_v18, %v594_v42  ;;  %v600_v36 = vadd.f32 %v1693_v18, %v1687_v14 }
  0xb3   :  { %770 = vmatmul.bf16.gmra.mxu3 %v1032_v40  ;;  %1188 = vmatmul.msk.bf16.gmra.mxu0 %vm555_vm0, %v1036_v41 }
  0xb4   :  { %v614_v43 = vpop.f32.mrf.mxu2 }
  0xb5   :  { %v1737_v44 = vadd.f32 %v1693_v18, %v614_v43 }
  0xb6   :  { %v624_v45 = vpop.f32.mrf.mxu3  ;;  %v1742_v47 = vpop.f32.mrf.mxu1 }
  0xb7   :  { %v1740_v46 = vadd.f32 %v1693_v18, %v624_v45 }
  0xb8   :  { %v596_v48 = vpop.f32.mrf.mxu0 }
  0xb9   :  { %v597_v24 = vadd.f32 %v1693_v18, %v596_v48 }
  0xbc   :  { %v616_v49 = vpop.f32.mrf.mxu2 }
  0xbd   :  { %v1745_v50 = vadd.f32 %v1693_v18, %v616_v49 }
  0xbe   :  { %v626_v51 = vpop.f32.mrf.mxu3  ;;  %v638_v53 = vpop.f32.mrf.mxu1 }
  0xbf   :  { %v1748_v52 = vadd.f32 %v1693_v18, %v626_v51  ;;  %v639_v57 = vadd.f32 %v638_v53, %v590_v55  ;;  %v602_v53 = vadd.f32 %v1693_v18, %v1701_v23 }
  0xc0   :  { %v785_v54 = vpop.f32.mrf.mxu0 }
  0xc4   :  { %v687_v56 = vpop.f32.mrf.mxu2 }
  0xc5   :  { %v688_v60 = vadd.f32 %v687_v56, %v639_v57 }
  0xc6   :  { %v736_v58 = vpop.f32.mrf.mxu3  ;;  %v640_v59 = vpop.f32.mrf.mxu1 }
  0xc7   :  { %v737_v63 = vadd.f32 %v736_v58, %v688_v60  ;;  %v641_v0 = vadd.f32 %v640_v59, %v592_v62 }
  0xc8   :  { %v787_v61 = vpop.f32.mrf.mxu0 }
  0xc9   :  { %v786_v5 = vadd.f32 %v785_v54, %v737_v63  ;;  %v605_v63 = vadd.f32 %v1693_v18, %v1733_v39 }
  0xcb   :  { %v825_v10 = vmax.f32 %v786_v5, 0.0 }
  0xcc   :  { %v689_v1 = vpop.f32.mrf.mxu2 }
  0xcd   :  { %v690_v2 = vadd.f32 %v689_v1, %v641_v0 }
  0xce   :  { %v738_v3 = vpop.f32.mrf.mxu3  ;;  %v643_v4 = vpop.f32.mrf.mxu1 }
  0xcf   :  { %v739_v6 = vadd.f32 %v738_v3, %v690_v2  ;;  %v644_v15 = vadd.f32 %v643_v4, %v595_v9 }
  0xd0   :  { %v790_v7 = vpop.f32.mrf.mxu0 }
  0xd1   :  { %v788_v8 = vadd.f32 %v787_v61, %v739_v6 }
  0xd3   :  { %v826_v11 = vmax.f32 %v788_v8, 0.0  ;;  %v607_v8 = vadd.f32 %v1693_v18, %v1742_v47 }
  0xd4   :  { %v692_v12 = vpop.f32.mrf.mxu2 }
  0xd5   :  { %v1268_v13 = vpack.c.bf16 %v826_v11, %v825_v10  ;;  %v693_v19 = vadd.f32 %v692_v12, %v644_v15 }
  0xd6   :  { %v741_v16 = vpop.f32.mrf.mxu3  ;;  %v645_v17 = vpop.f32.mrf.mxu1 }
  0xd7   :  { %1269 = vst [vmem:[%s1797_s3] sm:$0xff] %v1268_v13   ;;  %v742_v25 = vadd.f32 %v741_v16, %v693_v19  ;;  %v646_v26 = vadd.f32 %v645_v17, %v597_v24 }
  0xd8   :  { %v792_v21 = vpop.f32.mrf.mxu0 }
  0xd9   :  { %v791_v31 = vadd.f32 %v790_v7, %v742_v25 }
  0xdb   :  { %v827_v37 = vmax.f32 %v791_v31, 0.0 }
  0xdc   :  { %v694_v27 = vpop.f32.mrf.mxu2 }
  0xdd   :  { %v695_v28 = vadd.f32 %v694_v27, %v646_v26 }
  0xde   :  { %v743_v29 = vpop.f32.mrf.mxu3  ;;  %v648_v30 = vpop.f32.mrf.mxu1 }
  0xdf   :  { %v744_v32 = vadd.f32 %v743_v29, %v695_v28  ;;  %v649_v43 = vadd.f32 %v648_v30, %v600_v36 }
  0xe0   :  { %v795_v33 = vpop.f32.mrf.mxu0 }
  0xe1   :  { %v793_v35 = vadd.f32 %v792_v21, %v744_v32 }
  0xe3   :  { %v828_v40 = vmax.f32 %v793_v35, 0.0 }
  0xe4   :  { %v697_v41 = vpop.f32.mrf.mxu2 }
  0xe5   :  { %v1273_v42 = vpack.c.bf16 %v828_v40, %v827_v37  ;;  %v698_v49 = vadd.f32 %v697_v41, %v649_v43 }
  0xe6   :  { %v746_v45 = vpop.f32.mrf.mxu3  ;;  %v650_v48 = vpop.f32.mrf.mxu1 }
  0xe7   :  { %1305 = vst [vmem:[%s1797_s3 + $0x8] sm:$0xff] %v1273_v42   ;;  %v747_v54 = vadd.f32 %v746_v45, %v698_v49  ;;  %v651_v55 = vadd.f32 %v650_v48, %v602_v53 }
  0xe8   :  { %v797_v51 = vpop.f32.mrf.mxu0 }
  0xe9   :  { %v796_v59 = vadd.f32 %v795_v33, %v747_v54 }
  0xeb   :  { %v829_v0 = vmax.f32 %v796_v59, 0.0 }
  0xec   :  { %v699_v56 = vpop.f32.mrf.mxu2 }
  0xed   :  { %v700_v14 = vadd.f32 %v699_v56, %v651_v55 }
  0xee   :  { %v748_v57 = vpop.f32.mrf.mxu3  ;;  %v653_v58 = vpop.f32.mrf.mxu1 }
  0xef   :  { %v749_v60 = vadd.f32 %v748_v57, %v700_v14  ;;  %v654_v4 = vadd.f32 %v653_v58, %v605_v63 }
  0xf0   :  { %v800_v61 = vpop.f32.mrf.mxu0 }
  0xf1   :  { %v798_v62 = vadd.f32 %v797_v51, %v749_v60 }
  0xf3   :  { %v830_v1 = vmax.f32 %v798_v62, 0.0 }
  0xf4   :  { %v702_v2 = vpop.f32.mrf.mxu2 }
  0xf5   :  { %v1278_v3 = vpack.c.bf16 %v830_v1, %v829_v0  ;;  %v703_v6 = vadd.f32 %v702_v2, %v654_v4 }
  0xf6   :  { %v751_v5 = vpop.f32.mrf.mxu3  ;;  %v655_v23 = vpop.f32.mrf.mxu1 }
  0xf7   :  { %1306 = vst [vmem:[%s1797_s3 + $0x10] sm:$0xff] %v1278_v3   ;;  %v752_v9 = vadd.f32 %v751_v5, %v703_v6  ;;  %v656_v10 = vadd.f32 %v655_v23, %v607_v8 }
  0xf8   :  { %v802_v7 = vpop.f32.mrf.mxu0 }
  0xf9   :  { %v801_v15 = vadd.f32 %v800_v61, %v752_v9 }
  0xfb   :  { %v831_v21 = vmax.f32 %v801_v15, 0.0 }
  0xfc   :  { %v704_v11 = vpop.f32.mrf.mxu2 }
  0xfd   :  { %v705_v39 = vadd.f32 %v704_v11, %v656_v10 }
  0xfe   :  { %v753_v12 = vpop.f32.mrf.mxu3  ;;  %v658_v13 = vpop.f32.mrf.mxu1 }
  0xff   :  { %v754_v16 = vadd.f32 %v753_v12, %v705_v39  ;;  %v659_v27 = vadd.f32 %v658_v13, %v1696_v20 }
 0x100   :  { %v805_v17 = vpop.f32.mrf.mxu0 }
 0x101   :  { %v803_v19 = vadd.f32 %v802_v7, %v754_v16 }
 0x103   :  { %v832_v24 = vmax.f32 %v803_v19, 0.0 }
 0x104   :  { %v707_v25 = vpop.f32.mrf.mxu2 }
 0x105   :  { %v1283_v26 = vpack.c.bf16 %v832_v24, %v831_v21  ;;  %v708_v18 = vadd.f32 %v707_v25, %v659_v27 }
 0x106   :  { %v756_v28 = vpop.f32.mrf.mxu3  ;;  %v660_v29 = vpop.f32.mrf.mxu1 }
 0x107   :  { %1307 = vst [vmem:[%s1797_s3 + $0x18] sm:$0xff] %v1283_v26   ;;  %v757_v30 = vadd.f32 %v756_v28, %v708_v18  ;;  %v661_v31 = vadd.f32 %v660_v29, %v1728_v34 }
 0x108   :  { %v807_v47 = vpop.f32.mrf.mxu0 }
 0x109   :  { %v806_v37 = vadd.f32 %v805_v17, %v757_v30 }
 0x10b   :  { %v833_v20 = vmax.f32 %v806_v37, 0.0 }
 0x10c   :  { %v709_v32 = vpop.f32.mrf.mxu2 }
 0x10d   :  { %v710_v33 = vadd.f32 %v709_v32, %v661_v31 }
 0x10e   :  { %v758_v35 = vpop.f32.mrf.mxu3  ;;  %v663_v36 = vpop.f32.mrf.mxu1 }
 0x10f   :  { %v759_v40 = vadd.f32 %v758_v35, %v710_v33  ;;  %v664_v49 = vadd.f32 %v663_v36, %v1737_v44 }
 0x110   :  { %v810_v41 = vpop.f32.mrf.mxu0 }
 0x111   :  { %v808_v42 = vadd.f32 %v807_v47, %v759_v40 }
 0x113   :  { %v834_v43 = vmax.f32 %v808_v42, 0.0 }
 0x114   :  { %v712_v45 = vpop.f32.mrf.mxu2 }
 0x115   :  { %v1288_v48 = vpack.c.bf16 %v834_v43, %v833_v20  ;;  %v713_v34 = vadd.f32 %v712_v45, %v664_v49 }
 0x116   :  { %v761_v51 = vpop.f32.mrf.mxu3  ;;  %v665_v53 = vpop.f32.mrf.mxu1 }
 0x117   :  { %1308 = vst [vmem:[%s1797_s3 + $0x20] sm:$0xff] %v1288_v48   ;;  %v762_v55 = vadd.f32 %v761_v51, %v713_v34  ;;  %v666_v56 = vadd.f32 %v665_v53, %v1745_v50 }
 0x118   :  { %v812_v54 = vpop.f32.mrf.mxu0 }
 0x119   :  { %v811_v60 = vadd.f32 %v810_v41, %v762_v55 }
 0x11b   :  { %v835_v44 = vmax.f32 %v811_v60, 0.0 }
 0x11c   :  { %v714_v14 = vpop.f32.mrf.mxu2 }
 0x11d   :  { %v715_v57 = vadd.f32 %v714_v14, %v666_v56 }
 0x11e   :  { %v763_v58 = vpop.f32.mrf.mxu3  ;;  %v668_v59 = vpop.f32.mrf.mxu1 }
 0x11f   :  { %v764_v61 = vadd.f32 %v763_v58, %v715_v57  ;;  %v669_v3 = vadd.f32 %v668_v59, %v1699_v22 }
 0x120   :  { %v815_v63 = vpop.f32.mrf.mxu0 }
 0x121   :  { %v813_v62 = vadd.f32 %v812_v54, %v764_v61 }
 0x123   :  { %v836_v0 = vmax.f32 %v813_v62, 0.0 }
 0x124   :  { %v717_v1 = vpop.f32.mrf.mxu2 }
 0x125   :  { %v1293_v2 = vpack.c.bf16 %v836_v0, %v835_v44  ;;  %v718_v50 = vadd.f32 %v717_v1, %v669_v3 }
 0x126   :  { %v766_v4 = vpop.f32.mrf.mxu3  ;;  %v670_v5 = vpop.f32.mrf.mxu1 }
 0x127   :  { %1309 = vst [vmem:[%s1797_s3 + $0x28] sm:$0xff] %v1293_v2   ;;  %v767_v23 = vadd.f32 %v766_v4, %v718_v50  ;;  %v671_v6 = vadd.f32 %v670_v5, %v1731_v38 }
 0x128   :  { %v817_v7 = vpop.f32.mrf.mxu0 }
 0x129   :  { %v816_v39 = vadd.f32 %v815_v63, %v767_v23 }
 0x12b   :  { %v837_v15 = vmax.f32 %v816_v39, 0.0 }
 0x12c   :  { %v719_v8 = vpop.f32.mrf.mxu2 }
 0x12d   :  { %v720_v9 = vadd.f32 %v719_v8, %v671_v6 }
 0x12e   :  { %v768_v10 = vpop.f32.mrf.mxu3  ;;  %v673_v11 = vpop.f32.mrf.mxu1 }
 0x12f   :  { %v769_v12 = vadd.f32 %v768_v10, %v720_v9  ;;  %v674_v19 = vadd.f32 %v673_v11, %v1740_v46 }
 0x130   :  { %v820_v24 = vpop.f32.mrf.mxu0 }
 0x131   :  { %v818_v13 = vadd.f32 %v817_v7, %v769_v12 }
 0x133   :  { %v838_v22 = vmax.f32 %v818_v13, 0.0 }
 0x134   :  { %v722_v16 = vpop.f32.mrf.mxu2 }
 0x135   :  { %v1298_v17 = vpack.c.bf16 %v838_v22, %v837_v15  ;;  %v723_v38 = vadd.f32 %v722_v16, %v674_v19 }
 0x136   :  { %v771_v21 = vpop.f32.mrf.mxu3  ;;  %v675_v25 = vpop.f32.mrf.mxu1 }
 0x137   :  { %1310 = vst [vmem:[%s1797_s3 + $0x30] sm:$0xff] %v1298_v17   ;;  %v772_v26 = vadd.f32 %v771_v21, %v723_v38  ;;  %v676_v27 = vadd.f32 %v675_v25, %v1748_v52 }
 0x138   :  { %v822_v31 = vpop.f32.mrf.mxu0 }
 0x139   :  { %v821_v47 = vadd.f32 %v820_v24, %v772_v26 }
 0x13b   :  { %v839_v33 = vmax.f32 %v821_v47, 0.0 }
 0x13c   :  { %v724_v28 = vpop.f32.mrf.mxu2 }
 0x13d   :  { %v725_v29 = vadd.f32 %v724_v28, %v676_v27 }
 0x13e   :  { %v773_v18 = vpop.f32.mrf.mxu3 }
 0x13f   :  { %v774_v30 = vadd.f32 %v773_v18, %v725_v29 }
 0x141   :  { %v823_v32 = vadd.f32 %v822_v31, %v774_v30 }
 0x143   :  { %v840_v46 = vmax.f32 %v823_v32, 0.0 }
 0x145   :  { %v1303_v35 = vpack.c.bf16 %v840_v46, %v839_v33 }
 0x147   :  { %1311 = vst [vmem:[%s1797_s3 + $0x38] sm:$0xff] %v1303_v35  }

// kernel: beta_vae64_forward.18
= control target key start
LH: loop header
LB: loop body
LE: loop exit
PB: predicated region body
PF: predicated region fallthrough
CT: control target
= control target key end

     0   :  { %s1606_s12 = smov 0   ;;  %s1898_s0 = inlined_call_operand.vmem [shape: bf16[512,288], index: 0, kind: input, shape index: {}]   ;;  %s1899_s1 = inlined_call_operand.vmem [shape: bf16[288,128], index: 1, kind: input, shape index: {}]   ;;  %s1900_s2 = inlined_call_operand.vmem [shape: f32[1,128], index: 2, kind: input, shape index: {}]   ;;  %s1901_s3 = inlined_call_operand.vmem [shape: bf16[512,128], index: 3, kind: output, shape index: {}]  }
   0x1 LB: > { %s1098_s13 = sadd.s32 4294967295, %s1584_s12   ;;  %p1102_p0 = scmp.ge.s32.totalorder %s1584_s12, 1  ;;  %s1584_s12 = sphi %s1606_s12, %s13_s12  }
   0x2   : > { %p139_p1 = scmp.lt.s32.totalorder %s1584_s12, 3 }
   0x4   : > { %p140_p2 = pnand %p1102_p0, %p139_p1 }
   0x5   : > { %s1103_s20 = sshll.u32 (!%p140_p2), %s1098_s13, 5 }
   0x6   : > { %143 = sbr.rel (%p140_p2) target bundleno = 376 (0x178), region = 32  ;;  %p165_p3 = scmp.lt.s32.totalorder (!%p140_p2), %s1103_s20, 63 }
   0xb   : > { %v1444_v0 = vld [vmem:[%s1899_s1 + $0x38] sm:$0xff]  ;;  %v1620_v1 = vld [vmem:[%s1899_s1 + $0x88] sm:$0xff]  ;;  %v1443_v3 = vld [vmem:[%s1899_s1 + $0x30] sm:$0xff]  ;;  %s1903_s20 = smov (!%p165_p3, %s1103_s20), 63  ;;  %vm630_vm0 = vcmask 261120  }
   0xc   : > { %v1625_v2 = vld [vmem:[%s1899_s1 + $0x78] sm:$0xff]  ;;  %679 = vmatpush.bf16.msra.mxu0 %v1444_v0  ;;  %1550 = vmatpush.bf16.msra.mxu3 %v1444_v0  ;;  %v1635_v4 = vld [vmem:[%s1899_s1 + $0x80] sm:$0xff]  ;;  %v1451_v5 = vld [vmem:[%s1899_s1 + $0x70] sm:$0xff]  ;;  %s1568_s27 = smul.u32 12, %s1903_s20  ;;  %s1106_s6 = sshll.u32 %s1903_s20, 2 }
   0xd   : > { %863 = vmatpush.bf16.msra.mxu2 %v1620_v1  ;;  %768 = vmatpush.bf16.msra.mxu1 %v1625_v2  ;;  %v1442_v6 = vld [vmem:[%s1899_s1 + $0x28] sm:$0xff]  ;;  %v1441_v11 = vld [vmem:[%s1899_s1 + $0x20] sm:$0xff]  ;;  %v1440_v13 = vld [vmem:[%s1899_s1 + $0x18] sm:$0xff]  ;;  %s1797_s9 = scalar_lea.vmem %s1901_s3, %s1106_s6 }
   0xe   : > { %s1650_s5 = scalar_lea.vmem %s1898_s0, %s1568_s27  ;;  %v1450_v7 = vld [vmem:[%s1899_s1 + $0x68] sm:$0xff]  ;;  %v1449_v12 = vld [vmem:[%s1899_s1 + $0x60] sm:$0xff]  ;;  %v1448_v14 = vld [vmem:[%s1899_s1 + $0x58] sm:$0xff] }
   0xf   : > { %v1117_v8 = vld [vmem:[%s1650_s5 + $0x8] sm:$0xf]  ;;  %v1391_v9 = vld [vmem:[%s1650_s5 + $0x10] sm:$0xf0]  ;;  %v1129_v17 = vld [vmem:[%s1650_s5 + $0x20] sm:$0xf] }
  0x10   : > { %680 = vmatpush.bf16.msra.mxu0 %v1443_v3  ;;  %1551 = vmatpush.bf16.msra.mxu3 %v1443_v3  ;;  %v1118_v10 = vor.u32 %v1391_v9, %v1117_v8  ;;  %v1439_v15 = vld [vmem:[%s1899_s1 + $0x10] sm:$0xff]  ;;  %v1394_v18 = vld [vmem:[%s1650_s5 + $0x28] sm:$0xf0]  ;;  %v1437_v22 = vld [vmem:[%s1899_s1] sm:$0xff] }
  0x11   : > { %864 = vmatpush.bf16.msra.mxu2 %v1635_v4  ;;  %769 = vmatpush.bf16.msra.mxu1 %v1451_v5  ;;  %v1447_v16 = vld [vmem:[%s1899_s1 + $0x50] sm:$0xff]  ;;  %v1438_v19 = vld [vmem:[%s1899_s1 + $0x8] sm:$0xff]  ;;  %v1130_v20 = vor.u32 %v1394_v18, %v1129_v17  ;;  %v1109_v23 = vld [vmem:[%s1650_s5] sm:$0xf] }
  0x12   : > { %v1446_v21 = vld [vmem:[%s1899_s1 + $0x48] sm:$0xff]  ;;  %v1253_v25 = vld [vmem:[%s1650_s5 + $0x120] sm:$0xf]  ;;  %v1389_v28 = vld [vmem:[%s1650_s5 + $0x4] sm:$0xf] }
  0x13   : > { %v1390_v24 = vld [vmem:[%s1650_s5 + $0x8] sm:$0xf0]  ;;  %v1445_v27 = vld [vmem:[%s1899_s1 + $0x40] sm:$0xff]  ;;  %v1111_v29 = vld [vmem:[%s1650_s5 + $0xc] sm:$0xf0] }
  0x14   : > { %681 = vmatpush.bf16.msra.mxu0 %v1442_v6  ;;  %1552 = vmatpush.bf16.msra.mxu3 %v1442_v6  ;;  %v1426_v26 = vld [vmem:[%s1650_s5 + $0x128] sm:$0xf0]  ;;  %v1110_v30 = vor.u32 %v1390_v24, %v1109_v23  ;;  %v1114_v32 = vor.u32 %v1389_v28, %v1111_v29  ;;  %v1141_v33 = vld [vmem:[%s1650_s5 + $0x38] sm:$0xf]  ;;  %v1397_v34 = vld [vmem:[%s1650_s5 + $0x40] sm:$0xf0] }
  0x15   : > { %1371 = vmatmul.msk.bf16.vlgmr.msra.gmra.mxu2 %vm630_vm0, %v1118_v10  ;;  %770 = vmatpush.bf16.msra.mxu1 %v1450_v7  ;;  %v1254_v31 = vor.u32 %v1426_v26, %v1253_v25  ;;  %v1142_v35 = vor.u32 %v1397_v34, %v1141_v33  ;;  %v1121_v36 = vld [vmem:[%s1650_s5 + $0x18] sm:$0xf]  ;;  %v1393_v37 = vld [vmem:[%s1650_s5 + $0x20] sm:$0xf0]  ;;  %v1392_v40 = vld [vmem:[%s1650_s5 + $0x1c] sm:$0xf] }
  0x16   : > { %v1265_v38 = vld [vmem:[%s1650_s5 + $0x138] sm:$0xf]  ;;  %v1429_v39 = vld [vmem:[%s1650_s5 + $0x140] sm:$0xf0]  ;;  %v1123_v41 = vld [vmem:[%s1650_s5 + $0x24] sm:$0xf0]  ;;  %v1122_v42 = vor.u32 %v1393_v37, %v1121_v36 }
  0x17   : > { %v1266_v43 = vor.u32 %v1429_v39, %v1265_v38  ;;  %v1126_v44 = vor.u32 %v1392_v40, %v1123_v41  ;;  %v1153_v45 = vld [vmem:[%s1650_s5 + $0x50] sm:$0xf]  ;;  %v1400_v46 = vld [vmem:[%s1650_s5 + $0x58] sm:$0xf0]  ;;  %v1395_v52 = vld [vmem:[%s1650_s5 + $0x34] sm:$0xf] }
  0x18   : > { %682 = vmatpush.bf16.msra.mxu0 %v1441_v11  ;;  %1553 = vmatpush.bf16.msra.mxu3 %v1441_v11  ;;  %v1154_v47 = vor.u32 %v1400_v46, %v1153_v45  ;;  %v1133_v48 = vld [vmem:[%s1650_s5 + $0x30] sm:$0xf]  ;;  %v1396_v49 = vld [vmem:[%s1650_s5 + $0x38] sm:$0xf0]  ;;  %v1135_v53 = vld [vmem:[%s1650_s5 + $0x3c] sm:$0xf0] }
  0x19   : > { %771 = vmatpush.bf16.msra.mxu1 %v1449_v12  ;;  %v1277_v50 = vld [vmem:[%s1650_s5 + $0x150] sm:$0xf]  ;;  %v1432_v51 = vld [vmem:[%s1650_s5 + $0x158] sm:$0xf0]  ;;  %v1134_v54 = vor.u32 %v1396_v49, %v1133_v48  ;;  %v1138_v56 = vor.u32 %v1395_v52, %v1135_v53  ;;  %v1165_v57 = vld [vmem:[%s1650_s5 + $0x68] sm:$0xf] }
  0x1a   : > { %v1278_v55 = vor.u32 %v1432_v51, %v1277_v50  ;;  %v1403_v58 = vld [vmem:[%s1650_s5 + $0x70] sm:$0xf0]  ;;  %v1145_v60 = vld [vmem:[%s1650_s5 + $0x48] sm:$0xf]  ;;  %v1398_v0 = vld [vmem:[%s1650_s5 + $0x4c] sm:$0xf] }
  0x1b   : > { %v1166_v59 = vor.u32 %v1403_v58, %v1165_v57  ;;  %v1399_v61 = vld [vmem:[%s1650_s5 + $0x50] sm:$0xf0]  ;;  %v1289_v62 = vld [vmem:[%s1650_s5 + $0x168] sm:$0xf]  ;;  %v1406_v6 = vld [vmem:[%s1650_s5 + $0x88] sm:$0xf0] }
  0x1c   : > { %683 = vmatpush.bf16.msra.mxu0 %v1440_v13  ;;  %1554 = vmatpush.bf16.msra.mxu3 %v1440_v13  ;;  %v1435_v63 = vld [vmem:[%s1650_s5 + $0x170] sm:$0xf0]  ;;  %v1157_v8 = vld [vmem:[%s1650_s5 + $0x60] sm:$0xf]  ;;  %v1402_v9 = vld [vmem:[%s1650_s5 + $0x68] sm:$0xf0] }
  0x1d   : > { %772 = vmatpush.bf16.msra.mxu1 %v1448_v14  ;;  %v1290_v3 = vor.u32 %v1435_v63, %v1289_v62  ;;  %v1425_v10 = vld [vmem:[%s1650_s5 + $0x124] sm:$0xf]  ;;  %v1255_v11 = vld [vmem:[%s1650_s5 + $0x12c] sm:$0xf0]  ;;  %v1189_v17 = vld [vmem:[%s1650_s5 + $0x98] sm:$0xf] }
  0x1e   : > { %v1159_v13 = vld [vmem:[%s1650_s5 + $0x6c] sm:$0xf0]  ;;  %v1409_v18 = vld [vmem:[%s1650_s5 + $0xa0] sm:$0xf0]  ;;  %v1267_v23 = vld [vmem:[%s1650_s5 + $0x144] sm:$0xf0] }
  0x1f   : > { %v1404_v24 = vld [vmem:[%s1650_s5 + $0x7c] sm:$0xf]  ;;  %v1171_v25 = vld [vmem:[%s1650_s5 + $0x84] sm:$0xf0]  ;;  %v1201_v29 = vld [vmem:[%s1650_s5 + $0xb0] sm:$0xf] }
  0x20   : > { %684 = vmatpush.bf16.msra.mxu0 %v1439_v15  ;;  %1555 = vmatpush.bf16.msra.mxu3 %v1439_v15  ;;  %v1258_v15 = vor.u32 %v1425_v10, %v1255_v11  ;;  %v1174_v28 = vor.u32 %v1404_v24, %v1171_v25  ;;  %v1408_v33 = vld [vmem:[%s1650_s5 + $0x98] sm:$0xf0]  ;;  %v1431_v34 = vld [vmem:[%s1650_s5 + $0x154] sm:$0xf]  ;;  %v1183_v37 = vld [vmem:[%s1650_s5 + $0x9c] sm:$0xf0] }
  0x21   : > { %773 = vmatpush.bf16.msra.mxu1 %v1447_v16  ;;  %v1407_v36 = vld [vmem:[%s1650_s5 + $0x94] sm:$0xf]  ;;  %v1213_v41 = vld [vmem:[%s1650_s5 + $0xc8] sm:$0xf]  ;;  %v1434_v46 = vld [vmem:[%s1650_s5 + $0x16c] sm:$0xf] }
  0x22   : > { %v1186_v40 = vor.u32 %v1407_v36, %v1183_v37  ;;  %v1411_v45 = vld [vmem:[%s1650_s5 + $0xb0] sm:$0xf0]  ;;  %v1410_v48 = vld [vmem:[%s1650_s5 + $0xac] sm:$0xf]  ;;  %v1195_v49 = vld [vmem:[%s1650_s5 + $0xb4] sm:$0xf0] }
  0x23   : > { %v1198_v53 = vor.u32 %v1410_v48, %v1195_v49  ;;  %v1205_v58 = vld [vmem:[%s1650_s5 + $0xc0] sm:$0xf]  ;;  %v1413_v62 = vld [vmem:[%s1650_s5 + $0xc4] sm:$0xf]  ;;  %v1207_v63 = vld [vmem:[%s1650_s5 + $0xcc] sm:$0xf0] }
  0x24   : > { %685 = vmatpush.bf16.msra.mxu0 %v1438_v19  ;;  %1556 = vmatpush.bf16.msra.mxu3 %v1438_v19  ;;  %v1190_v19 = vor.u32 %v1409_v18, %v1189_v17  ;;  %v1421_v10 = vld [vmem:[%s1650_s5 + $0x100] sm:$0xf0]  ;;  %v1416_v24 = vld [vmem:[%s1650_s5 + $0xdc] sm:$0xf]  ;;  %v1219_v25 = vld [vmem:[%s1650_s5 + $0xe4] sm:$0xf0] }
  0x25   : > { %1372 = vmatmul.msk.bf16.gmra.mxu2 %vm630_vm0, %v1130_v20  ;;  %774 = vmatpush.bf16.msra.mxu1 %v1446_v21  ;;  %v1169_v20 = vld [vmem:[%s1650_s5 + $0x78] sm:$0xf]  ;;  %v1229_v48 = vld [vmem:[%s1650_s5 + $0xf0] sm:$0xf]  ;;  %v1420_v49 = vld [vmem:[%s1650_s5 + $0xf8] sm:$0xf0] }
  0x28   : > { %686 = vmatpush.bf16.msra.mxu0 %v1437_v22  ;;  %1557 = vmatpush.bf16.msra.mxu3 %v1437_v22  ;;  %v1428_v22 = vld [vmem:[%s1650_s5 + $0x13c] sm:$0xf] }
  0x29   : > { %775 = vmatpush.bf16.msra.mxu1 %v1445_v27 }
  0x2b   : > { %687 = vmatmul.bf16.vlgmr.msra.gmra.mxu0 %v1110_v30  ;;  %747 = vmatmul.bf16.vlgmr.msra.gmra.mxu3 %v1254_v31  ;;  %v1412_v30 = vld [vmem:[%s1650_s5 + $0xb8] sm:$0xf0] }
  0x2c   : > { %1558 = vmatpush.bf16.msrb.mxu3 %v1625_v2  ;;  %776 = vmatmul.bf16.vlgmr.msra.gmra.mxu1 %v1114_v32  ;;  %v1146_v2 = vor.u32 %v1399_v61, %v1145_v60  ;;  %v1202_v31 = vor.u32 %v1412_v30, %v1201_v29  ;;  %v1181_v32 = vld [vmem:[%s1650_s5 + $0x90] sm:$0xf]  ;;  %v1285_v60 = vld [vmem:[%s1650_s5 + $0x158] sm:$0xf]  ;;  %v1433_v61 = vld [vmem:[%s1650_s5 + $0x160] sm:$0xf0] }
  0x2d   : > { %v1182_v38 = vor.u32 %v1408_v33, %v1181_v32  ;;  %v1222_v33 = vor.u32 %v1416_v24, %v1219_v25 }
  0x30   : > { %1559 = vmatpush.bf16.msrb.mxu3 %v1451_v5  ;;  %v1177_v5 = vld [vmem:[%s1650_s5 + $0x80] sm:$0xf] }
  0x34   : > { %1560 = vmatpush.bf16.msrb.mxu3 %v1450_v7  ;;  %v1178_v7 = vor.u32 %v1406_v6, %v1177_v5  ;;  %v1210_v5 = vor.u32 %v1413_v62, %v1207_v63 }
  0x35   : > { %1373 = vmatmul.msk.bf16.gmra.mxu2 %vm630_vm0, %v1142_v35  ;;  %v1279_v35 = vld [vmem:[%s1650_s5 + $0x15c] sm:$0xf0] }
  0x36   : > { %v1282_v39 = vor.u32 %v1431_v34, %v1279_v35 }
  0x38   : > { %1561 = vmatpush.bf16.msrb.mxu3 %v1449_v12  ;;  %v1401_v12 = vld [vmem:[%s1650_s5 + $0x64] sm:$0xf] }
  0x3b   : > { %692 = vmatmul.bf16.gmra.mxu0 %v1122_v42  ;;  %752 = vmatmul.bf16.gmra.mxu3 %v1266_v43  ;;  %v1415_v42 = vld [vmem:[%s1650_s5 + $0xd0] sm:$0xf0] }
  0x3c   : > { %1562 = vmatpush.bf16.msrb.mxu3 %v1448_v14  ;;  %781 = vmatmul.bf16.gmra.mxu1 %v1126_v44  ;;  %v1158_v14 = vor.u32 %v1402_v9, %v1157_v8  ;;  %v1214_v43 = vor.u32 %v1415_v42, %v1213_v41  ;;  %v1193_v44 = vld [vmem:[%s1650_s5 + $0xa8] sm:$0xf]  ;;  %v1237_v9 = vld [vmem:[%s1650_s5 + $0xf8] sm:$0xf] }
  0x3d   : > { %v1194_v50 = vor.u32 %v1411_v45, %v1193_v44 }
  0x40   : > { %1563 = vmatpush.bf16.msrb.mxu3 %v1447_v16  ;;  %v1162_v16 = vor.u32 %v1401_v12, %v1159_v13 }
  0x44   : > { %1564 = vmatpush.bf16.msrb.mxu3 %v1446_v21  ;;  %v1405_v21 = vld [vmem:[%s1650_s5 + $0x80] sm:$0xf0] }
  0x45   : > { %1374 = vmatmul.msk.bf16.gmra.mxu2 %vm630_vm0, %v1154_v47  ;;  %v1170_v26 = vor.u32 %v1405_v21, %v1169_v20  ;;  %v1291_v47 = vld [vmem:[%s1650_s5 + $0x174] sm:$0xf0]  ;;  %v1417_v20 = vld [vmem:[%s1650_s5 + $0xe0] sm:$0xf0]  ;;  %v1297_v21 = vld [vmem:[%s1650_s5 + $0x170] sm:$0xf] }
  0x46   : > { %v1294_v51 = vor.u32 %v1434_v46, %v1291_v47 }
  0x48   : > { %1565 = vmatpush.bf16.msrb.mxu3 %v1445_v27  ;;  %v1270_v27 = vor.u32 %v1428_v22, %v1267_v23  ;;  %v1436_v22 = vld [vmem:[%s1650_s5 + $0x178] sm:$0xf0] }
  0x49   : > { %v1298_v30 = vor.u32 %v1436_v22, %v1297_v21 }
  0x4b   : > { %697 = vmatmul.bf16.gmra.mxu0 %v1134_v54  ;;  %757 = vmatmul.bf16.gmra.mxu3 %v1278_v55  ;;  %v1225_v54 = vld [vmem:[%s1650_s5 + $0xe0] sm:$0xf]  ;;  %v1418_v55 = vld [vmem:[%s1650_s5 + $0xe8] sm:$0xf0] }
  0x4c   : > { %1566 = vmatpush.bf16.msra.mxu3 %v1620_v1  ;;  %786 = vmatmul.bf16.gmra.mxu1 %v1138_v56  ;;  %v1147_v1 = vld [vmem:[%s1650_s5 + $0x54] sm:$0xf0]  ;;  %v1226_v57 = vor.u32 %v1418_v55, %v1225_v54 }
  0x50   : > { %1567 = vmatpush.bf16.msra.mxu3 %v1635_v4  ;;  %v1150_v4 = vor.u32 %v1398_v0, %v1147_v1  ;;  %v1775_v0 = vld [vmem:[%s1900_s2] ss:$0 sm:$0xff] }
  0x55   : > { %1375 = vmatmul.msk.bf16.gmra.mxu2 %vm630_vm0, %v1166_v59  ;;  %v1414_v59 = vld [vmem:[%s1650_s5 + $0xc8] sm:$0xf0] }
  0x56   : > { %v1206_v1 = vor.u32 %v1414_v59, %v1205_v58 }
  0x5b   : > { %702 = vmatmul.bf16.gmra.mxu0 %v1146_v2  ;;  %762 = vmatmul.bf16.gmra.mxu3 %v1290_v3  ;;  %v1286_v2 = vor.u32 %v1433_v61, %v1285_v60 }
  0x5c   : > { %791 = vmatmul.bf16.gmra.mxu1 %v1150_v4 }
  0x65   : > { %1376 = vmatmul.msk.bf16.gmra.mxu2 %vm630_vm0, %v1178_v7 }
  0x6b   : > { %707 = vmatmul.bf16.gmra.mxu0 %v1158_v14  ;;  %836 = vmatmul.bf16.vlgmr.msrb.gmra.mxu3 %v1258_v15 }
  0x6c   : > { %796 = vmatmul.bf16.gmra.mxu1 %v1162_v16  ;;  %v1238_v16 = vor.u32 %v1421_v10, %v1237_v9 }
  0x75   : > { %1377 = vmatmul.msk.bf16.gmra.mxu2 %vm630_vm0, %v1190_v19  ;;  %v1217_v19 = vld [vmem:[%s1650_s5 + $0xd8] sm:$0xf] }
  0x76   : > { %v1218_v29 = vor.u32 %v1417_v20, %v1217_v19 }
  0x7b   : > { %712 = vmatmul.bf16.gmra.mxu0 %v1170_v26  ;;  %841 = vmatmul.bf16.gmra.mxu3 %v1270_v27 }
  0x7c   : > { %801 = vmatmul.bf16.gmra.mxu1 %v1174_v28 }
  0x85   : > { %1378 = vmatmul.msk.bf16.gmra.mxu2 %vm630_vm0, %v1202_v31 }
  0x8b   : > { %717 = vmatmul.bf16.gmra.mxu0 %v1182_v38  ;;  %846 = vmatmul.bf16.gmra.mxu3 %v1282_v39  ;;  %v1249_v38 = vld [vmem:[%s1650_s5 + $0x110] sm:$0xf]  ;;  %v1424_v39 = vld [vmem:[%s1650_s5 + $0x118] sm:$0xf0] }
  0x8c   : > { %806 = vmatmul.bf16.gmra.mxu1 %v1186_v40  ;;  %v1250_v45 = vor.u32 %v1424_v39, %v1249_v38 }
  0x95   : > { %1379 = vmatmul.msk.bf16.gmra.mxu2 %vm630_vm0, %v1214_v43 }
  0x98   : > { %v866_v52 = vpop.f32.mrf.mxu2 }
  0x9b   : > { %722 = vmatmul.bf16.gmra.mxu0 %v1194_v50  ;;  %851 = vmatmul.bf16.gmra.mxu3 %v1294_v51  ;;  %v1419_v51 = vld [vmem:[%s1650_s5 + $0xf4] sm:$0xf] }
  0x9c   : > { %811 = vmatmul.bf16.gmra.mxu1 %v1198_v53 }
  0xa0   : > { %v868_v56 = vpop.f32.mrf.mxu2 }
  0xa5   : > { %1380 = vmatmul.msk.bf16.gmra.mxu2 %vm630_vm0, %v1226_v57 }
  0xa8   : > { %v871_v3 = vpop.f32.mrf.mxu2  ;;  %v688_v4 = vpop.f32.mrf.mxu0 }
  0xa9   : > { %v777_v6 = vpop.f32.mrf.mxu1  ;;  %v689_v7 = vadd.f32 %v1775_v0, %v688_v4 }
  0xab   : > { %727 = vmatmul.bf16.gmra.mxu0 %v1206_v1  ;;  %1385 = vmatmul.msk.bf16.vlgmr.msra.gmra.mxu3 %vm630_vm0, %v1286_v2  ;;  %v778_v11 = vadd.f32 %v777_v6, %v689_v7  ;;  %v1261_v1 = vld [vmem:[%s1650_s5 + $0x128] sm:$0xf]  ;;  %v1427_v2 = vld [vmem:[%s1650_s5 + $0x130] sm:$0xf0] }
  0xac   : > { %816 = vmatmul.bf16.gmra.mxu1 %v1210_v5  ;;  %v1262_v9 = vor.u32 %v1427_v2, %v1261_v1 }
  0xad   : > { %v867_v17 = vadd.f32 %v866_v52, %v778_v11  ;;  %v1231_v52 = vld [vmem:[%s1650_s5 + $0xfc] sm:$0xf0] }
  0xae   : > { %v1779_v8 = vpop.f32.mrf.mxu3  ;;  %v1234_v59 = vor.u32 %v1419_v51, %v1231_v52 }
  0xaf   : > { %v946_v27 = vmax.f32 %v867_v17, 0.0 }
  0xb0   : > { %v873_v12 = vpop.f32.mrf.mxu2  ;;  %v690_v13 = vpop.f32.mrf.mxu0 }
  0xb1   : > { %v691_v14 = vadd.f32 %v1775_v0, %v690_v13  ;;  %v779_v15 = vpop.f32.mrf.mxu1  ;;  %v1423_v13 = vld [vmem:[%s1650_s5 + $0x110] sm:$0xf0] }
  0xb3   : > { %v780_v18 = vadd.f32 %v779_v15, %v691_v14  ;;  %v1422_v15 = vld [vmem:[%s1650_s5 + $0x10c] sm:$0xf] }
  0xb5   : > { %v869_v23 = vadd.f32 %v868_v56, %v780_v18  ;;  %1381 = vmatmul.msk.bf16.gmra.mxu2 %vm630_vm0, %v1238_v16  ;;  %v1230_v56 = vor.u32 %v1420_v49, %v1229_v48  ;;  %v1243_v16 = vld [vmem:[%s1650_s5 + $0x114] sm:$0xf0]  ;;  %v749_v49 = vadd.f32 %v1775_v0, %v1779_v8 }
  0xb6   : > { %v1792_v26 = vpop.f32.mrf.mxu3 }
  0xb7   : > { %v947_v28 = vmax.f32 %v869_v23, 0.0  ;;  %v1246_v23 = vor.u32 %v1422_v15, %v1243_v16 }
  0xb8   : > { %v876_v31 = vpop.f32.mrf.mxu2  ;;  %v693_v32 = vpop.f32.mrf.mxu0 }
  0xb9   : > { %v1458_v34 = vpack.c.bf16 %v947_v28, %v946_v27  ;;  %v782_v35 = vpop.f32.mrf.mxu1  ;;  %v694_v36 = vadd.f32 %v1775_v0, %v693_v32 }
  0xbb   : > { %1459 = vst [vmem:[%s1797_s9] sm:$0xff] %v1458_v34   ;;  %732 = vmatmul.bf16.gmra.mxu0 %v1218_v29  ;;  %1386 = vmatmul.msk.bf16.gmra.mxu3 %vm630_vm0, %v1298_v30  ;;  %v783_v40 = vadd.f32 %v782_v35, %v694_v36  ;;  %v1273_v29 = vld [vmem:[%s1650_s5 + $0x140] sm:$0xf]  ;;  %v1430_v30 = vld [vmem:[%s1650_s5 + $0x148] sm:$0xf0] }
  0xbc   : > { %821 = vmatmul.bf16.gmra.mxu1 %v1222_v33  ;;  %v1274_v36 = vor.u32 %v1430_v30, %v1273_v29 }
  0xbd   : > { %v872_v46 = vadd.f32 %v871_v3, %v783_v40 }
  0xbe   : > { %v1802_v37 = vpop.f32.mrf.mxu3 }
  0xbf   : > { %v948_v54 = vmax.f32 %v872_v46, 0.0 }
  0xc0   : > { %v878_v41 = vpop.f32.mrf.mxu2  ;;  %v695_v42 = vpop.f32.mrf.mxu0 }
  0xc1   : > { %v696_v43 = vadd.f32 %v1775_v0, %v695_v42  ;;  %v784_v44 = vpop.f32.mrf.mxu1 }
  0xc3   : > { %v785_v47 = vadd.f32 %v784_v44, %v696_v43 }
  0xc5   : > { %v874_v50 = vadd.f32 %v873_v12, %v785_v47  ;;  %1382 = vmatmul.msk.bf16.gmra.mxu2 %vm630_vm0, %v1250_v45  ;;  %v1241_v12 = vld [vmem:[%s1650_s5 + $0x108] sm:$0xf] }
  0xc6   : > { %v1812_v53 = vpop.f32.mrf.mxu3  ;;  %v1242_v20 = vor.u32 %v1423_v13, %v1241_v12 }
  0xc7   : > { %v949_v55 = vmax.f32 %v874_v50, 0.0 }
  0xc8   : > { %v881_v57 = vpop.f32.mrf.mxu2  ;;  %v698_v58 = vpop.f32.mrf.mxu0 }
  0xc9   : > { %v1463_v60 = vpack.c.bf16 %v949_v55, %v948_v54  ;;  %v787_v61 = vpop.f32.mrf.mxu1  ;;  %v699_v62 = vadd.f32 %v1775_v0, %v698_v58 }
  0xcb   : > { %1535 = vst [vmem:[%s1797_s9 + $0x8] sm:$0xff] %v1463_v60   ;;  %737 = vmatmul.bf16.gmra.mxu0 %v1230_v56  ;;  %v788_v3 = vadd.f32 %v787_v61, %v699_v62  ;;  %v751_v60 = vadd.f32 %v1775_v0, %v1792_v26 }
  0xcc   : > { %826 = vmatmul.bf16.gmra.mxu1 %v1234_v59 }
  0xcd   : > { %v877_v10 = vadd.f32 %v876_v31, %v788_v3 }
  0xce   : > { %v1816_v63 = vpop.f32.mrf.mxu3 }
  0xcf   : > { %v950_v18 = vmax.f32 %v877_v10, 0.0 }
  0xd0   : > { %v883_v4 = vpop.f32.mrf.mxu2  ;;  %v700_v5 = vpop.f32.mrf.mxu0 }
  0xd1   : > { %v701_v6 = vadd.f32 %v1775_v0, %v700_v5  ;;  %v789_v7 = vpop.f32.mrf.mxu1 }
  0xd3   : > { %v790_v11 = vadd.f32 %v789_v7, %v701_v6 }
  0xd5   : > { %v879_v14 = vadd.f32 %v878_v41, %v790_v11  ;;  %1383 = vmatmul.msk.bf16.gmra.mxu2 %vm630_vm0, %v1262_v9  ;;  %v754_v9 = vadd.f32 %v1775_v0, %v1802_v37 }
  0xd6   : > { %v1826_v17 = vpop.f32.mrf.mxu3 }
  0xd7   : > { %v951_v19 = vmax.f32 %v879_v14, 0.0 }
  0xd8   : > { %v886_v21 = vpop.f32.mrf.mxu2  ;;  %v703_v22 = vpop.f32.mrf.mxu0 }
  0xd9   : > { %v1468_v24 = vpack.c.bf16 %v951_v19, %v950_v18  ;;  %v792_v25 = vpop.f32.mrf.mxu1  ;;  %v704_v27 = vadd.f32 %v1775_v0, %v703_v22  ;;  %v756_v19 = vadd.f32 %v1775_v0, %v1812_v53 }
  0xdb   : > { %1536 = vst [vmem:[%s1797_s9 + $0x10] sm:$0xff] %v1468_v24   ;;  %742 = vmatmul.bf16.gmra.mxu0 %v1242_v20  ;;  %v793_v31 = vadd.f32 %v792_v25, %v704_v27 }
  0xdc   : > { %831 = vmatmul.bf16.gmra.mxu1 %v1246_v23 }
  0xdd   : > { %v882_v38 = vadd.f32 %v881_v57, %v793_v31 }
  0xde   : > { %v1830_v28 = vpop.f32.mrf.mxu3 }
  0xdf   : > { %v952_v42 = vmax.f32 %v882_v38, 0.0 }
  0xe0   : > { %v888_v32 = vpop.f32.mrf.mxu2  ;;  %v705_v33 = vpop.f32.mrf.mxu0 }
  0xe1   : > { %v706_v34 = vadd.f32 %v1775_v0, %v705_v33  ;;  %v794_v35 = vpop.f32.mrf.mxu1 }
  0xe3   : > { %v795_v39 = vadd.f32 %v794_v35, %v706_v34 }
  0xe5   : > { %v884_v40 = vadd.f32 %v883_v4, %v795_v39  ;;  %1384 = vmatmul.msk.bf16.gmra.mxu2 %vm630_vm0, %v1274_v36 }
  0xe6   : > { %v1836_v41 = vpop.f32.mrf.mxu3 }
  0xe7   : > { %v953_v43 = vmax.f32 %v884_v40, 0.0 }
  0xe8   : > { %v891_v44 = vpop.f32.mrf.mxu2  ;;  %v708_v45 = vpop.f32.mrf.mxu0 }
  0xe9   : > { %v1473_v46 = vpack.c.bf16 %v953_v43, %v952_v42  ;;  %v797_v47 = vpop.f32.mrf.mxu1  ;;  %v709_v48 = vadd.f32 %v1775_v0, %v708_v45 }
  0xeb   : > { %1537 = vst [vmem:[%s1797_s9 + $0x18] sm:$0xff] %v1473_v46   ;;  %v798_v51 = vadd.f32 %v797_v47, %v709_v48 }
  0xed   : > { %v887_v58 = vadd.f32 %v886_v21, %v798_v51 }
  0xee   : > { %v837_v50 = vpop.f32.mrf.mxu3 }
  0xef   : > { %v1842_v52 = vadd.f32 %v837_v50, %v749_v49  ;;  %v954_v1 = vmax.f32 %v887_v58, 0.0 }
  0xf0   : > { %v893_v54 = vpop.f32.mrf.mxu2  ;;  %v710_v55 = vpop.f32.mrf.mxu0 }
  0xf1   : > { %v711_v56 = vadd.f32 %v1775_v0, %v710_v55  ;;  %v799_v57 = vpop.f32.mrf.mxu1 }
  0xf3   : > { %v800_v59 = vadd.f32 %v799_v57, %v711_v56 }
  0xf5   : > { %v889_v61 = vadd.f32 %v888_v32, %v800_v59 }
  0xf6   : > { %v839_v62 = vpop.f32.mrf.mxu3 }
  0xf7   : > { %v955_v2 = vmax.f32 %v889_v61, 0.0  ;;  %v1847_v8 = vadd.f32 %v839_v62, %v751_v60 }
  0xf8   : > { %v896_v3 = vpop.f32.mrf.mxu2  ;;  %v713_v4 = vpop.f32.mrf.mxu0 }
  0xf9   : > { %v1478_v5 = vpack.c.bf16 %v955_v2, %v954_v1  ;;  %v802_v6 = vpop.f32.mrf.mxu1  ;;  %v714_v7 = vadd.f32 %v1775_v0, %v713_v4 }
  0xfb   : > { %1538 = vst [vmem:[%s1797_s9 + $0x20] sm:$0xff] %v1478_v5   ;;  %v803_v11 = vadd.f32 %v802_v6, %v714_v7 }
  0xfd   : > { %v892_v16 = vadd.f32 %v891_v44, %v803_v11  ;;  %v759_v11 = vadd.f32 %v1775_v0, %v1816_v63 }
  0xfe   : > { %v842_v10 = vpop.f32.mrf.mxu3 }
  0xff   : > { %v1853_v12 = vadd.f32 %v842_v10, %v754_v9  ;;  %v956_v22 = vmax.f32 %v892_v16, 0.0 }
 0x100   : > { %v898_v26 = vpop.f32.mrf.mxu2  ;;  %v715_v13 = vpop.f32.mrf.mxu0 }
 0x101   : > { %v716_v14 = vadd.f32 %v1775_v0, %v715_v13  ;;  %v804_v15 = vpop.f32.mrf.mxu1 }
 0x103   : > { %v805_v18 = vadd.f32 %v804_v15, %v716_v14  ;;  %v761_v14 = vadd.f32 %v1775_v0, %v1826_v17 }
 0x105   : > { %v894_v20 = vadd.f32 %v893_v54, %v805_v18 }
 0x106   : > { %v844_v21 = vpop.f32.mrf.mxu3 }
 0x107   : > { %v957_v23 = vmax.f32 %v894_v20, 0.0  ;;  %v1858_v37 = vadd.f32 %v844_v21, %v756_v19 }
 0x108   : > { %v901_v24 = vpop.f32.mrf.mxu2  ;;  %v718_v25 = vpop.f32.mrf.mxu0 }
 0x109   : > { %v1483_v27 = vpack.c.bf16 %v957_v23, %v956_v22  ;;  %v807_v29 = vpop.f32.mrf.mxu1  ;;  %v719_v30 = vadd.f32 %v1775_v0, %v718_v25 }
 0x10b   : > { %1539 = vst [vmem:[%s1797_s9 + $0x28] sm:$0xff] %v1483_v27   ;;  %v808_v32 = vadd.f32 %v807_v29, %v719_v30 }
 0x10d   : > { %v897_v36 = vadd.f32 %v896_v3, %v808_v32 }
 0x10e   : > { %v847_v31 = vpop.f32.mrf.mxu3 }
 0x10f   : > { %v958_v42 = vmax.f32 %v897_v36, 0.0  ;;  %v848_v15 = vadd.f32 %v847_v31, %v759_v11 }
 0x110   : > { %v903_v33 = vpop.f32.mrf.mxu2  ;;  %v720_v34 = vpop.f32.mrf.mxu0 }
 0x111   : > { %v721_v53 = vadd.f32 %v1775_v0, %v720_v34  ;;  %v809_v35 = vpop.f32.mrf.mxu1 }
 0x113   : > { %v810_v38 = vadd.f32 %v809_v35, %v721_v53 }
 0x115   : > { %v899_v39 = vadd.f32 %v898_v26, %v810_v38  ;;  %v764_v38 = vadd.f32 %v1775_v0, %v1830_v28 }
 0x116   : > { %v849_v40 = vpop.f32.mrf.mxu3 }
 0x117   : > { %v959_v43 = vmax.f32 %v899_v39, 0.0  ;;  %v850_v19 = vadd.f32 %v849_v40, %v761_v14 }
 0x118   : > { %v906_v44 = vpop.f32.mrf.mxu2  ;;  %v723_v45 = vpop.f32.mrf.mxu0 }
 0x119   : > { %v1488_v46 = vpack.c.bf16 %v959_v43, %v958_v42  ;;  %v812_v47 = vpop.f32.mrf.mxu1  ;;  %v724_v48 = vadd.f32 %v1775_v0, %v723_v45  ;;  %v766_v42 = vadd.f32 %v1775_v0, %v1836_v41 }
 0x11b   : > { %1540 = vst [vmem:[%s1797_s9 + $0x30] sm:$0xff] %v1488_v46   ;;  %v813_v50 = vadd.f32 %v812_v47, %v724_v48 }
 0x11d   : > { %v902_v57 = vadd.f32 %v901_v24, %v813_v50 }
 0x11e   : > { %v852_v49 = vpop.f32.mrf.mxu3 }
 0x11f   : > { %v960_v61 = vmax.f32 %v902_v57, 0.0  ;;  %v853_v43 = vadd.f32 %v852_v49, %v764_v38 }
 0x120   : > { %v908_v51 = vpop.f32.mrf.mxu2  ;;  %v725_v54 = vpop.f32.mrf.mxu0 }
 0x121   : > { %v726_v55 = vadd.f32 %v1775_v0, %v725_v54  ;;  %v814_v56 = vpop.f32.mrf.mxu1 }
 0x123   : > { %v815_v58 = vadd.f32 %v814_v56, %v726_v55 }
 0x125   : > { %v904_v59 = vadd.f32 %v903_v33, %v815_v58 }
 0x126   : > { %v854_v60 = vpop.f32.mrf.mxu3 }
 0x127   : > { %v961_v62 = vmax.f32 %v904_v59, 0.0  ;;  %v855_v46 = vadd.f32 %v854_v60, %v766_v42 }
 0x128   : > { %v911_v1 = vpop.f32.mrf.mxu2  ;;  %v728_v2 = vpop.f32.mrf.mxu0 }
 0x129   : > { %v1493_v3 = vpack.c.bf16 %v961_v62, %v960_v61  ;;  %v817_v4 = vpop.f32.mrf.mxu1  ;;  %v729_v5 = vadd.f32 %v1775_v0, %v728_v2 }
 0x12b   : > { %1541 = vst [vmem:[%s1797_s9 + $0x38] sm:$0xff] %v1493_v3   ;;  %v818_v7 = vadd.f32 %v817_v4, %v729_v5 }
 0x12d   : > { %v907_v16 = vadd.f32 %v906_v44, %v818_v7 }
 0x12e   : > { %v936_v6 = vpop.f32.mrf.mxu3 }
 0x12f   : > { %v937_v20 = vadd.f32 %v936_v6, %v848_v15  ;;  %v962_v23 = vmax.f32 %v907_v16, 0.0 }
 0x130   : > { %v913_v9 = vpop.f32.mrf.mxu2  ;;  %v730_v10 = vpop.f32.mrf.mxu0 }
 0x131   : > { %v731_v26 = vadd.f32 %v1775_v0, %v730_v10  ;;  %v819_v13 = vpop.f32.mrf.mxu1  ;;  %v974_v29 = vmax.f32 %v937_v20, 0.0 }
 0x133   : > { %v820_v18 = vadd.f32 %v819_v13, %v731_v26 }
 0x135   : > { %v909_v21 = vadd.f32 %v908_v51, %v820_v18 }
 0x136   : > { %v938_v22 = vpop.f32.mrf.mxu3 }
 0x137   : > { %v963_v24 = vmax.f32 %v909_v21, 0.0  ;;  %v939_v25 = vadd.f32 %v938_v22, %v850_v19 }
 0x138   : > { %v916_v27 = vpop.f32.mrf.mxu2  ;;  %v733_v63 = vpop.f32.mrf.mxu0 }
 0x139   : > { %v1498_v30 = vpack.c.bf16 %v963_v24, %v962_v23  ;;  %v975_v32 = vmax.f32 %v939_v25, 0.0  ;;  %v822_v33 = vpop.f32.mrf.mxu1  ;;  %v734_v31 = vadd.f32 %v1775_v0, %v733_v63 }
 0x13b   : > { %1542 = vst [vmem:[%s1797_s9 + $0x40] sm:$0xff] %v1498_v30   ;;  %v1528_v17 = vpack.c.bf16 %v975_v32, %v974_v29  ;;  %v823_v53 = vadd.f32 %v822_v33, %v734_v31 }
 0x13d   : > { %1548 = vst [vmem:[%s1797_s9 + $0x70] sm:$0xff] %v1528_v17   ;;  %v912_v44 = vadd.f32 %v911_v1, %v823_v53 }
 0x13e   : > { %v941_v34 = vpop.f32.mrf.mxu3 }
 0x13f   : > { %v942_v47 = vadd.f32 %v941_v34, %v853_v43  ;;  %v964_v51 = vmax.f32 %v912_v44, 0.0 }
 0x140   : > { %v918_v35 = vpop.f32.mrf.mxu2  ;;  %v735_v36 = vpop.f32.mrf.mxu0 }
 0x141   : > { %v736_v39 = vadd.f32 %v1775_v0, %v735_v36  ;;  %v824_v40 = vpop.f32.mrf.mxu1  ;;  %v976_v57 = vmax.f32 %v942_v47, 0.0 }
 0x143   : > { %v825_v45 = vadd.f32 %v824_v40, %v736_v39 }
 0x145   : > { %v914_v48 = vadd.f32 %v913_v9, %v825_v45 }
 0x146   : > { %v943_v50 = vpop.f32.mrf.mxu3 }
 0x147   : > { %v965_v54 = vmax.f32 %v914_v48, 0.0  ;;  %v944_v55 = vadd.f32 %v943_v50, %v855_v46 }
 0x148   : > { %v921_v56 = vpop.f32.mrf.mxu2  ;;  %v738_v28 = vpop.f32.mrf.mxu0 }
 0x149   : > { %v1503_v58 = vpack.c.bf16 %v965_v54, %v964_v51  ;;  %v977_v59 = vmax.f32 %v944_v55, 0.0  ;;  %v827_v61 = vpop.f32.mrf.mxu1  ;;  %v739_v49 = vadd.f32 %v1775_v0, %v738_v28 }
 0x14b   : > { %1543 = vst [vmem:[%s1797_s9 + $0x48] sm:$0xff] %v1503_v58   ;;  %v1533_v41 = vpack.c.bf16 %v977_v59, %v976_v57  ;;  %v828_v60 = vadd.f32 %v827_v61, %v739_v49 }
 0x14d   : > { %1549 = vst [vmem:[%s1797_s9 + $0x78] sm:$0xff] %v1533_v41   ;;  %v917_v4 = vadd.f32 %v916_v27, %v828_v60 }
 0x14f   : > { %v966_v7 = vmax.f32 %v917_v4, 0.0 }
 0x150   : > { %v923_v62 = vpop.f32.mrf.mxu2  ;;  %v740_v1 = vpop.f32.mrf.mxu0 }
 0x151   : > { %v741_v2 = vadd.f32 %v1775_v0, %v740_v1  ;;  %v829_v3 = vpop.f32.mrf.mxu1 }
 0x153   : > { %v830_v5 = vadd.f32 %v829_v3, %v741_v2 }
 0x155   : > { %v919_v6 = vadd.f32 %v918_v35, %v830_v5 }
 0x157   : > { %v967_v9 = vmax.f32 %v919_v6, 0.0 }
 0x158   : > { %v926_v10 = vpop.f32.mrf.mxu2  ;;  %v743_v11 = vpop.f32.mrf.mxu0 }
 0x159   : > { %v1508_v26 = vpack.c.bf16 %v967_v9, %v966_v7  ;;  %v832_v13 = vpop.f32.mrf.mxu1  ;;  %v744_v14 = vadd.f32 %v1775_v0, %v743_v11  ;;  %v927_v15 = vadd.f32 %v926_v10, %v1842_v52 }
 0x15b   : > { %1544 = vst [vmem:[%s1797_s9 + $0x50] sm:$0xff] %v1508_v26   ;;  %v833_v16 = vadd.f32 %v832_v13, %v744_v14  ;;  %v970_v23 = vmax.f32 %v927_v15, 0.0 }
 0x15d   : > { %v922_v24 = vadd.f32 %v921_v56, %v833_v16 }
 0x15f   : > { %v968_v30 = vmax.f32 %v922_v24, 0.0 }
 0x160   : > { %v928_v18 = vpop.f32.mrf.mxu2  ;;  %v745_v19 = vpop.f32.mrf.mxu0 }
 0x161   : > { %v929_v20 = vadd.f32 %v928_v18, %v1847_v8  ;;  %v746_v21 = vadd.f32 %v1775_v0, %v745_v19  ;;  %v834_v22 = vpop.f32.mrf.mxu1 }
 0x163   : > { %v971_v25 = vmax.f32 %v929_v20, 0.0  ;;  %v835_v27 = vadd.f32 %v834_v22, %v746_v21 }
 0x165   : > { %v1518_v63 = vpack.c.bf16 %v971_v25, %v970_v23  ;;  %v924_v29 = vadd.f32 %v923_v62, %v835_v27 }
 0x167   : > { %1546 = vst [vmem:[%s1797_s9 + $0x60] sm:$0xff] %v1518_v63   ;;  %v969_v32 = vmax.f32 %v924_v29, 0.0 }
 0x168   : > { %v931_v52 = vpop.f32.mrf.mxu2 }
 0x169   : > { %v1513_v33 = vpack.c.bf16 %v969_v32, %v968_v30  ;;  %v932_v17 = vadd.f32 %v931_v52, %v1853_v12 }
 0x16b   : > { %1545 = vst [vmem:[%s1797_s9 + $0x58] sm:$0xff] %v1513_v33   ;;  %v972_v0 = vmax.f32 %v932_v17, 0.0 }
 0x170   : > { %v933_v31 = vpop.f32.mrf.mxu2 }
 0x171   : > { %v934_v8 = vadd.f32 %v933_v31, %v1858_v37 }
 0x173   : > { %v973_v34 = vmax.f32 %v934_v8, 0.0 }
 0x175   : > { %v1523_v53 = vpack.c.bf16 %v973_v34, %v972_v0 }
 0x177   : > { %1547 = vst [vmem:[%s1797_s9 + $0x68] sm:$0xff] %v1523_v53  }
 0x178 PF: > { %s13_s12 = sadd.s32 1, %s1584_s12  }
 0x179   : > { %p10_p4 = scmp.ge.s32.totalorder %s13_s12, 4  }
 0x17b   :  { %12 = sbr.rel (!%p10_p4) target bundleno = 1 (0x1), region = 62 }

// kernel: beta_vae64_forward.19
= control target key start
LH: loop header
LB: loop body
LE: loop exit
PB: predicated region body
PF: predicated region fallthrough
CT: control target
= control target key end

     0   :  { %s3098_s12 = smov 0   ;;  %s3839_s0 = inlined_call_operand.vmem [shape: bf16[2048,288], index: 0, kind: input, shape index: {}]   ;;  %s3840_s1 = inlined_call_operand.vmem [shape: bf16[288,4], index: 1, kind: input, shape index: {}]   ;;  %s3841_s2 = inlined_call_operand.vmem [shape: f32[1,4], index: 2, kind: input, shape index: {}]   ;;  %s3842_s3 = inlined_call_operand.vmem [shape: f32[2048,4], index: 3, kind: output, shape index: {}]  }
   0x1 LB: > { %s2171_s13 = sadd.s32 4294967295, %s3076_s12   ;;  %p2175_p0 = scmp.ge.s32.totalorder %s3076_s12, 1  ;;  %s3076_s12 = sphi %s3098_s12, %s13_s12  }
   0x2   : > { %p139_p1 = scmp.lt.s32.totalorder %s3076_s12, 5 }
   0x4   : > { %p140_p2 = pnand %p2175_p0, %p139_p1 }
   0x5   : > { %s2176_s20 = sshll.u32 (!%p140_p2), %s2171_s13, 6 }
   0x6   : > { %143 = sbr.rel (%p140_p2) target bundleno = 591 (0x24f), region = 32  ;;  %p165_p3 = scmp.lt.s32.totalorder (!%p140_p2), %s2176_s20, 255 }
   0xb   : > { %v2773_v0 = vld [vmem:[%s3840_s1 + $0x38] sm:$0xff]  ;;  %v3112_v1 = vld [vmem:[%s3840_s1 + $0x88] sm:$0xff]  ;;  %v2772_v3 = vld [vmem:[%s3840_s1 + $0x30] sm:$0xff]  ;;  %s3844_s20 = smov (!%p165_p3, %s2176_s20), 255  ;;  %vm934_vm0 = vcmask 261120   ;;  %vm2050_vm1 = vcmask 31744  }
   0xc   : > { %v3117_v2 = vld [vmem:[%s3840_s1 + $0x78] sm:$0xff]  ;;  %1031 = vmatpush.bf16.msra.mxu0 %v2773_v0  ;;  %2784 = vmatpush.bf16.msra.mxu3 %v2773_v0  ;;  %v3127_v4 = vld [vmem:[%s3840_s1 + $0x80] sm:$0xff]  ;;  %v2780_v5 = vld [vmem:[%s3840_s1 + $0x70] sm:$0xff]  ;;  %s2802_s27 = smul.u32 12, %s3844_s20  ;;  %s2179_s6 = sshll.u32 %s3844_s20, 3 }
   0xd   : > { %1375 = vmatpush.bf16.msra.mxu2 %v3112_v1  ;;  %1200 = vmatpush.bf16.msra.mxu1 %v3117_v2  ;;  %v2771_v6 = vld [vmem:[%s3840_s1 + $0x28] sm:$0xff]  ;;  %v2770_v11 = vld [vmem:[%s3840_s1 + $0x20] sm:$0xff]  ;;  %v2769_v13 = vld [vmem:[%s3840_s1 + $0x18] sm:$0xff]  ;;  %s3305_s20 = scalar_lea.vmem %s3842_s3, %s2179_s6 }
   0xe   : > { %s3142_s5 = scalar_lea.vmem %s3839_s0, %s2802_s27  ;;  %v2779_v7 = vld [vmem:[%s3840_s1 + $0x68] sm:$0xff]  ;;  %v2778_v12 = vld [vmem:[%s3840_s1 + $0x60] sm:$0xff]  ;;  %v2777_v14 = vld [vmem:[%s3840_s1 + $0x58] sm:$0xff] }
   0xf   : > { %v2190_v8 = vld [vmem:[%s3142_s5 + $0x8] sm:$0xf]  ;;  %v2672_v9 = vld [vmem:[%s3142_s5 + $0x10] sm:$0xf0]  ;;  %v2202_v17 = vld [vmem:[%s3142_s5 + $0x20] sm:$0xf] }
  0x10   : > { %1032 = vmatpush.bf16.msra.mxu0 %v2772_v3  ;;  %2785 = vmatpush.bf16.msra.mxu3 %v2772_v3  ;;  %v2191_v10 = vor.u32 %v2672_v9, %v2190_v8  ;;  %v2768_v15 = vld [vmem:[%s3840_s1 + $0x10] sm:$0xff]  ;;  %v2675_v18 = vld [vmem:[%s3142_s5 + $0x28] sm:$0xf0]  ;;  %v2766_v22 = vld [vmem:[%s3840_s1] sm:$0xff] }
  0x11   : > { %1376 = vmatpush.bf16.msra.mxu2 %v3127_v4  ;;  %1201 = vmatpush.bf16.msra.mxu1 %v2780_v5  ;;  %v2776_v16 = vld [vmem:[%s3840_s1 + $0x50] sm:$0xff]  ;;  %v2767_v19 = vld [vmem:[%s3840_s1 + $0x8] sm:$0xff]  ;;  %v2203_v20 = vor.u32 %v2675_v18, %v2202_v17  ;;  %v2182_v23 = vld [vmem:[%s3142_s5] sm:$0xf] }
  0x12   : > { %v2775_v21 = vld [vmem:[%s3840_s1 + $0x48] sm:$0xff]  ;;  %v2470_v25 = vld [vmem:[%s3142_s5 + $0x240] sm:$0xf]  ;;  %v2670_v28 = vld [vmem:[%s3142_s5 + $0x4] sm:$0xf] }
  0x13   : > { %v2671_v24 = vld [vmem:[%s3142_s5 + $0x8] sm:$0xf0]  ;;  %v2774_v27 = vld [vmem:[%s3840_s1 + $0x40] sm:$0xff]  ;;  %v2184_v29 = vld [vmem:[%s3142_s5 + $0xc] sm:$0xf0] }
  0x14   : > { %1033 = vmatpush.bf16.msra.mxu0 %v2771_v6  ;;  %2786 = vmatpush.bf16.msra.mxu3 %v2771_v6  ;;  %v2743_v26 = vld [vmem:[%s3142_s5 + $0x248] sm:$0xf0]  ;;  %v2183_v30 = vor.u32 %v2671_v24, %v2182_v23  ;;  %v2187_v32 = vor.u32 %v2670_v28, %v2184_v29  ;;  %v2214_v33 = vld [vmem:[%s3142_s5 + $0x38] sm:$0xf]  ;;  %v2678_v34 = vld [vmem:[%s3142_s5 + $0x40] sm:$0xf0] }
  0x15   : > { %2636 = vmatmul.msk.bf16.vlgmr.msra.gmra.mxu2 %vm934_vm0, %v2191_v10  ;;  %1202 = vmatpush.bf16.msra.mxu1 %v2779_v7  ;;  %v2471_v31 = vor.u32 %v2743_v26, %v2470_v25  ;;  %v2215_v35 = vor.u32 %v2678_v34, %v2214_v33  ;;  %v2194_v36 = vld [vmem:[%s3142_s5 + $0x18] sm:$0xf]  ;;  %v2674_v37 = vld [vmem:[%s3142_s5 + $0x20] sm:$0xf0]  ;;  %v2673_v40 = vld [vmem:[%s3142_s5 + $0x1c] sm:$0xf] }
  0x16   : > { %v2482_v38 = vld [vmem:[%s3142_s5 + $0x258] sm:$0xf]  ;;  %v2746_v39 = vld [vmem:[%s3142_s5 + $0x260] sm:$0xf0]  ;;  %v2196_v41 = vld [vmem:[%s3142_s5 + $0x24] sm:$0xf0]  ;;  %v2195_v42 = vor.u32 %v2674_v37, %v2194_v36 }
  0x17   : > { %v2483_v43 = vor.u32 %v2746_v39, %v2482_v38  ;;  %v2199_v44 = vor.u32 %v2673_v40, %v2196_v41  ;;  %v2226_v45 = vld [vmem:[%s3142_s5 + $0x50] sm:$0xf]  ;;  %v2681_v46 = vld [vmem:[%s3142_s5 + $0x58] sm:$0xf0]  ;;  %v2676_v52 = vld [vmem:[%s3142_s5 + $0x34] sm:$0xf] }
  0x18   : > { %1034 = vmatpush.bf16.msra.mxu0 %v2770_v11  ;;  %2787 = vmatpush.bf16.msra.mxu3 %v2770_v11  ;;  %v2227_v47 = vor.u32 %v2681_v46, %v2226_v45  ;;  %v2206_v48 = vld [vmem:[%s3142_s5 + $0x30] sm:$0xf]  ;;  %v2677_v49 = vld [vmem:[%s3142_s5 + $0x38] sm:$0xf0]  ;;  %v2208_v53 = vld [vmem:[%s3142_s5 + $0x3c] sm:$0xf0] }
  0x19   : > { %1203 = vmatpush.bf16.msra.mxu1 %v2778_v12  ;;  %v2494_v50 = vld [vmem:[%s3142_s5 + $0x270] sm:$0xf]  ;;  %v2749_v51 = vld [vmem:[%s3142_s5 + $0x278] sm:$0xf0]  ;;  %v2207_v54 = vor.u32 %v2677_v49, %v2206_v48  ;;  %v2211_v56 = vor.u32 %v2676_v52, %v2208_v53  ;;  %v2238_v57 = vld [vmem:[%s3142_s5 + $0x68] sm:$0xf] }
  0x1a   : > { %v2495_v55 = vor.u32 %v2749_v51, %v2494_v50  ;;  %v2684_v58 = vld [vmem:[%s3142_s5 + $0x70] sm:$0xf0]  ;;  %v2218_v60 = vld [vmem:[%s3142_s5 + $0x48] sm:$0xf]  ;;  %v2679_v0 = vld [vmem:[%s3142_s5 + $0x4c] sm:$0xf] }
  0x1b   : > { %v2239_v59 = vor.u32 %v2684_v58, %v2238_v57  ;;  %v2680_v61 = vld [vmem:[%s3142_s5 + $0x50] sm:$0xf0]  ;;  %v2506_v62 = vld [vmem:[%s3142_s5 + $0x288] sm:$0xf]  ;;  %v2687_v6 = vld [vmem:[%s3142_s5 + $0x88] sm:$0xf0] }
  0x1c   : > { %1035 = vmatpush.bf16.msra.mxu0 %v2769_v13  ;;  %2788 = vmatpush.bf16.msra.mxu3 %v2769_v13  ;;  %v2752_v63 = vld [vmem:[%s3142_s5 + $0x290] sm:$0xf0]  ;;  %v2230_v8 = vld [vmem:[%s3142_s5 + $0x60] sm:$0xf]  ;;  %v2683_v9 = vld [vmem:[%s3142_s5 + $0x68] sm:$0xf0] }
  0x1d   : > { %1204 = vmatpush.bf16.msra.mxu1 %v2777_v14  ;;  %v2507_v3 = vor.u32 %v2752_v63, %v2506_v62  ;;  %v2518_v10 = vld [vmem:[%s3142_s5 + $0x2a0] sm:$0xf]  ;;  %v2755_v11 = vld [vmem:[%s3142_s5 + $0x2a8] sm:$0xf0]  ;;  %v2232_v13 = vld [vmem:[%s3142_s5 + $0x6c] sm:$0xf0] }
  0x1e   : > { %v2262_v17 = vld [vmem:[%s3142_s5 + $0x98] sm:$0xf]  ;;  %v2690_v18 = vld [vmem:[%s3142_s5 + $0xa0] sm:$0xf0]  ;;  %v2685_v24 = vld [vmem:[%s3142_s5 + $0x7c] sm:$0xf] }
  0x1f   : > { %v2758_v23 = vld [vmem:[%s3142_s5 + $0x2c0] sm:$0xf0]  ;;  %v2244_v25 = vld [vmem:[%s3142_s5 + $0x84] sm:$0xf0]  ;;  %v2274_v29 = vld [vmem:[%s3142_s5 + $0xb0] sm:$0xf] }
  0x20   : > { %1036 = vmatpush.bf16.msra.mxu0 %v2768_v15  ;;  %2789 = vmatpush.bf16.msra.mxu3 %v2768_v15  ;;  %v2519_v15 = vor.u32 %v2755_v11, %v2518_v10  ;;  %v2247_v28 = vor.u32 %v2685_v24, %v2244_v25  ;;  %v2689_v33 = vld [vmem:[%s3142_s5 + $0x98] sm:$0xf0]  ;;  %v2542_v34 = vld [vmem:[%s3142_s5 + $0x2d0] sm:$0xf]  ;;  %v2688_v36 = vld [vmem:[%s3142_s5 + $0x94] sm:$0xf] }
  0x21   : > { %1205 = vmatpush.bf16.msra.mxu1 %v2776_v16  ;;  %v2256_v37 = vld [vmem:[%s3142_s5 + $0x9c] sm:$0xf0]  ;;  %v2286_v41 = vld [vmem:[%s3142_s5 + $0xc8] sm:$0xf]  ;;  %v2692_v45 = vld [vmem:[%s3142_s5 + $0xb0] sm:$0xf0] }
  0x22   : > { %v2259_v40 = vor.u32 %v2688_v36, %v2256_v37  ;;  %v2554_v46 = vld [vmem:[%s3142_s5 + $0x2e8] sm:$0xf]  ;;  %v2691_v48 = vld [vmem:[%s3142_s5 + $0xac] sm:$0xf]  ;;  %v2268_v49 = vld [vmem:[%s3142_s5 + $0xb4] sm:$0xf0] }
  0x23   : > { %v2271_v53 = vor.u32 %v2691_v48, %v2268_v49  ;;  %v2278_v58 = vld [vmem:[%s3142_s5 + $0xc0] sm:$0xf]  ;;  %v2694_v63 = vld [vmem:[%s3142_s5 + $0xc4] sm:$0xf]  ;;  %v2310_v11 = vld [vmem:[%s3142_s5 + $0xf8] sm:$0xf] }
  0x24   : > { %1037 = vmatpush.bf16.msra.mxu0 %v2767_v19  ;;  %2790 = vmatpush.bf16.msra.mxu3 %v2767_v19  ;;  %v2263_v19 = vor.u32 %v2690_v18, %v2262_v17  ;;  %v3265_v62 = vld [vmem:[%s3841_s2] ss:$0 sm:$0xff]  ;;  %v2745_v24 = vld [vmem:[%s3142_s5 + $0x25c] sm:$0xf]  ;;  %v2484_v25 = vld [vmem:[%s3142_s5 + $0x264] sm:$0xf0] }
  0x25   : > { %2637 = vmatmul.msk.bf16.gmra.mxu2 %vm934_vm0, %v2203_v20  ;;  %1206 = vmatpush.bf16.msra.mxu1 %v2775_v21  ;;  %v2242_v20 = vld [vmem:[%s3142_s5 + $0x78] sm:$0xf] }
  0x28   : > { %1038 = vmatpush.bf16.msra.mxu0 %v2766_v22  ;;  %2791 = vmatpush.bf16.msra.mxu3 %v2766_v22  ;;  %v2530_v22 = vld [vmem:[%s3142_s5 + $0x2b8] sm:$0xf] }
  0x29   : > { %1207 = vmatpush.bf16.msra.mxu1 %v2774_v27 }
  0x2b   : > { %1039 = vmatmul.bf16.vlgmr.msra.gmra.mxu0 %v2183_v30  ;;  %1159 = vmatmul.bf16.vlgmr.msra.gmra.mxu3 %v2471_v31  ;;  %v2693_v30 = vld [vmem:[%s3142_s5 + $0xb8] sm:$0xf0] }
  0x2c   : > { %2792 = vmatpush.bf16.msrb.mxu3 %v3117_v2  ;;  %1208 = vmatmul.bf16.vlgmr.msra.gmra.mxu1 %v2187_v32  ;;  %v2219_v2 = vor.u32 %v2680_v61, %v2218_v60  ;;  %v2275_v31 = vor.u32 %v2693_v30, %v2274_v29  ;;  %v2254_v32 = vld [vmem:[%s3142_s5 + $0x90] sm:$0xf]  ;;  %v2742_v60 = vld [vmem:[%s3142_s5 + $0x244] sm:$0xf] }
  0x2d   : > { %v2255_v38 = vor.u32 %v2689_v33, %v2254_v32  ;;  %v2472_v61 = vld [vmem:[%s3142_s5 + $0x24c] sm:$0xf0]  ;;  %v2487_v32 = vor.u32 %v2745_v24, %v2484_v25  ;;  %v2334_v24 = vld [vmem:[%s3142_s5 + $0x128] sm:$0xf]  ;;  %v2708_v25 = vld [vmem:[%s3142_s5 + $0x130] sm:$0xf0] }
  0x30   : > { %2793 = vmatpush.bf16.msrb.mxu3 %v2780_v5  ;;  %v2250_v5 = vld [vmem:[%s3142_s5 + $0x80] sm:$0xf] }
  0x34   : > { %2794 = vmatpush.bf16.msrb.mxu3 %v2779_v7  ;;  %v2251_v7 = vor.u32 %v2687_v6, %v2250_v5 }
  0x35   : > { %2638 = vmatmul.msk.bf16.gmra.mxu2 %vm934_vm0, %v2215_v35  ;;  %v2761_v35 = vld [vmem:[%s3142_s5 + $0x2d8] sm:$0xf0] }
  0x36   : > { %v2543_v39 = vor.u32 %v2761_v35, %v2542_v34 }
  0x38   : > { %2795 = vmatpush.bf16.msrb.mxu3 %v2778_v12  ;;  %v2682_v12 = vld [vmem:[%s3142_s5 + $0x64] sm:$0xf] }
  0x3b   : > { %1044 = vmatmul.bf16.gmra.mxu0 %v2195_v42  ;;  %1164 = vmatmul.bf16.gmra.mxu3 %v2483_v43  ;;  %v2696_v42 = vld [vmem:[%s3142_s5 + $0xd0] sm:$0xf0] }
  0x3c   : > { %2796 = vmatpush.bf16.msrb.mxu3 %v2777_v14  ;;  %1213 = vmatmul.bf16.gmra.mxu1 %v2199_v44  ;;  %v2231_v14 = vor.u32 %v2683_v9, %v2230_v8  ;;  %v2287_v43 = vor.u32 %v2696_v42, %v2286_v41  ;;  %v2266_v44 = vld [vmem:[%s3142_s5 + $0xa8] sm:$0xf] }
  0x3d   : > { %v2267_v50 = vor.u32 %v2692_v45, %v2266_v44  ;;  %v2322_v45 = vld [vmem:[%s3142_s5 + $0x110] sm:$0xf] }
  0x40   : > { %2797 = vmatpush.bf16.msrb.mxu3 %v2776_v16  ;;  %v2235_v16 = vor.u32 %v2682_v12, %v2232_v13  ;;  %v2702_v12 = vld [vmem:[%s3142_s5 + $0x100] sm:$0xf0] }
  0x44   : > { %2798 = vmatpush.bf16.msrb.mxu3 %v2775_v21  ;;  %v2686_v21 = vld [vmem:[%s3142_s5 + $0x80] sm:$0xf0] }
  0x45   : > { %2639 = vmatmul.msk.bf16.gmra.mxu2 %vm934_vm0, %v2227_v47  ;;  %v2243_v26 = vor.u32 %v2686_v21, %v2242_v20  ;;  %v2764_v47 = vld [vmem:[%s3142_s5 + $0x2f0] sm:$0xf0] }
  0x46   : > { %v2555_v51 = vor.u32 %v2764_v47, %v2554_v46  ;;  %v2705_v46 = vld [vmem:[%s3142_s5 + $0x118] sm:$0xf0] }
  0x48   : > { %2799 = vmatpush.bf16.msrb.mxu3 %v2774_v27  ;;  %v2531_v27 = vor.u32 %v2758_v23, %v2530_v22  ;;  %v2290_v22 = vld [vmem:[%s3142_s5 + $0xd8] sm:$0xf]  ;;  %v2698_v23 = vld [vmem:[%s3142_s5 + $0xe0] sm:$0xf0] }
  0x4b   : > { %1049 = vmatmul.bf16.gmra.mxu0 %v2207_v54  ;;  %1169 = vmatmul.bf16.gmra.mxu3 %v2495_v55  ;;  %v2298_v54 = vld [vmem:[%s3142_s5 + $0xe0] sm:$0xf]  ;;  %v2699_v55 = vld [vmem:[%s3142_s5 + $0xe8] sm:$0xf0] }
  0x4c   : > { %2800 = vmatpush.bf16.msra.mxu3 %v3112_v1  ;;  %1218 = vmatmul.bf16.gmra.mxu1 %v2211_v56  ;;  %v2220_v1 = vld [vmem:[%s3142_s5 + $0x54] sm:$0xf0]  ;;  %v2299_v57 = vor.u32 %v2699_v55, %v2298_v54 }
  0x50   : > { %2801 = vmatpush.bf16.msra.mxu3 %v3127_v4  ;;  %v2223_v4 = vor.u32 %v2679_v0, %v2220_v1  ;;  %v2280_v0 = vld [vmem:[%s3142_s5 + $0xcc] sm:$0xf0] }
  0x51   : > { %v2283_v5 = vor.u32 %v2694_v63, %v2280_v0  ;;  %v2496_v63 = vld [vmem:[%s3142_s5 + $0x27c] sm:$0xf0] }
  0x55   : > { %2640 = vmatmul.msk.bf16.gmra.mxu2 %vm934_vm0, %v2239_v59  ;;  %v2695_v59 = vld [vmem:[%s3142_s5 + $0xc8] sm:$0xf0] }
  0x56   : > { %v2279_v1 = vor.u32 %v2695_v59, %v2278_v58  ;;  %v2701_v58 = vld [vmem:[%s3142_s5 + $0xf8] sm:$0xf0] }
  0x5b   : > { %1054 = vmatmul.bf16.gmra.mxu0 %v2219_v2  ;;  %1174 = vmatmul.bf16.gmra.mxu3 %v2507_v3  ;;  %v2475_v2 = vor.u32 %v2742_v60, %v2472_v61  ;;  %v2748_v61 = vld [vmem:[%s3142_s5 + $0x274] sm:$0xf] }
  0x5c   : > { %1223 = vmatmul.bf16.gmra.mxu1 %v2223_v4 }
  0x65   : > { %2641 = vmatmul.msk.bf16.gmra.mxu2 %vm934_vm0, %v2251_v7 }
  0x6b   : > { %1059 = vmatmul.bf16.gmra.mxu0 %v2231_v14  ;;  %1179 = vmatmul.bf16.gmra.mxu3 %v2519_v15 }
  0x6c   : > { %1228 = vmatmul.bf16.gmra.mxu1 %v2235_v16 }
  0x75   : > { %2642 = vmatmul.msk.bf16.gmra.mxu2 %vm934_vm0, %v2263_v19  ;;  %v2311_v19 = vor.u32 %v2702_v12, %v2310_v11 }
  0x7b   : > { %1064 = vmatmul.bf16.gmra.mxu0 %v2243_v26  ;;  %1184 = vmatmul.bf16.gmra.mxu3 %v2531_v27  ;;  %v2697_v27 = vld [vmem:[%s3142_s5 + $0xdc] sm:$0xf] }
  0x7c   : > { %1233 = vmatmul.bf16.gmra.mxu1 %v2247_v28  ;;  %v2292_v28 = vld [vmem:[%s3142_s5 + $0xe4] sm:$0xf0] }
  0x7d   : > { %v2295_v35 = vor.u32 %v2697_v27, %v2292_v28 }
  0x85   : > { %2643 = vmatmul.msk.bf16.gmra.mxu2 %vm934_vm0, %v2275_v31  ;;  %v2291_v31 = vor.u32 %v2698_v23, %v2290_v22 }
  0x8b   : > { %1069 = vmatmul.bf16.gmra.mxu0 %v2255_v38  ;;  %1189 = vmatmul.bf16.gmra.mxu3 %v2543_v39 }
  0x8c   : > { %1238 = vmatmul.bf16.gmra.mxu1 %v2259_v40 }
  0x95   : > { %2644 = vmatmul.msk.bf16.gmra.mxu2 %vm934_vm0, %v2287_v43 }
  0x98   : > { %v1378_v52 = vpop.f32.mrf.mxu2 }
  0x9b   : > { %1074 = vmatmul.bf16.gmra.mxu0 %v2267_v50  ;;  %1194 = vmatmul.bf16.gmra.mxu3 %v2555_v51 }
  0x9c   : > { %1243 = vmatmul.bf16.gmra.mxu1 %v2271_v53  ;;  %v2323_v53 = vor.u32 %v2705_v46, %v2322_v45 }
  0xa0   : > { %v1380_v56 = vpop.f32.mrf.mxu2 }
  0xa5   : > { %2645 = vmatmul.msk.bf16.gmra.mxu2 %vm934_vm0, %v2299_v57  ;;  %v2302_v57 = vld [vmem:[%s3142_s5 + $0xf0] sm:$0xf] }
  0xa8   : > { %v1383_v3 = vpop.f32.mrf.mxu2  ;;  %v1040_v4 = vpop.f32.mrf.mxu0 }
  0xa9   : > { %v1041_v6 = vadd.f32 %v3265_v62, %v1040_v4  ;;  %v1209_v7 = vpop.f32.mrf.mxu1 }
  0xab   : > { %v1210_v8 = vadd.f32 %v1209_v7, %v1041_v6  ;;  %1079 = vmatmul.bf16.gmra.mxu0 %v2279_v1  ;;  %1328 = vmatmul.bf16.vlgmr.msrb.gmra.mxu3 %v2475_v2  ;;  %v2700_v2 = vld [vmem:[%s3142_s5 + $0xf4] sm:$0xf]  ;;  %v2303_v7 = vor.u32 %v2701_v58, %v2302_v57 }
  0xac   : > { %1248 = vmatmul.bf16.gmra.mxu1 %v2283_v5 }
  0xad   : > { %v1379_v9 = vadd.f32 %v1378_v52, %v1210_v8  ;;  %v2499_v8 = vor.u32 %v2748_v61, %v2496_v63 }
  0xae   : > { %v3270_v10 = vpop.f32.mrf.mxu3 }
  0xaf   : > { %v1538_v13 = vmax.f32 %v1379_v9, -30.0 }
  0xb0   : > { %v1385_v14 = vpop.f32.mrf.mxu2  ;;  %v1042_v15 = vpop.f32.mrf.mxu0 }
  0xb1   : > { %v1602_v16 = vsub.f32 0.0, %v1538_v13  ;;  %v1043_v17 = vadd.f32 %v3265_v62, %v1042_v15  ;;  %v1211_v18 = vpop.f32.mrf.mxu1 }
  0xb3   : > { %v1666_v20 = vmul.f32 1.442695, %v1602_v16  ;;  %v1212_v21 = vadd.f32 %v1211_v18, %v1043_v17 }
  0xb5   : > { %2812 = vpow2.f32 %v1666_v20  ;;  %v1381_v26 = vadd.f32 %v1380_v56, %v1212_v21  ;;  %2646 = vmatmul.msk.bf16.gmra.mxu2 %vm934_vm0, %v2311_v19 }
  0xb6   : > { %v3282_v29 = vpop.f32.mrf.mxu3 }
  0xb7   : > { %v1539_v30 = vmax.f32 %v1381_v26, -30.0 }
  0xb8   : > { %v3284_v33 = vpop.f32.mrf.mxu2  ;;  %v1045_v34 = vpop.f32.mrf.mxu0 }
  0xb9   : > { %v1603_v36 = vsub.f32 0.0, %v1539_v30  ;;  %v1046_v37 = vadd.f32 %v3265_v62, %v1045_v34  ;;  %v1214_v38 = vpop.f32.mrf.mxu1  ;;  %v2335_v34 = vor.u32 %v2708_v25, %v2334_v24  ;;  %v2754_v25 = vld [vmem:[%s3142_s5 + $0x2a4] sm:$0xf] }
  0xbb   : > { %v2813_v39 = vpop.eup %2812  ;;  %v1668_v40 = vmul.f32 1.442695, %v1603_v36  ;;  %v1215_v41 = vadd.f32 %v1214_v38, %v1046_v37  ;;  %1084 = vmatmul.bf16.gmra.mxu0 %v2291_v31  ;;  %1333 = vmatmul.bf16.gmra.mxu3 %v2487_v32  ;;  %v2314_v38 = vld [vmem:[%s3142_s5 + $0x108] sm:$0xf] }
  0xbc   : > { %v1794_v42 = vadd.f32 1.0, %v2813_v39  ;;  %1253 = vmatmul.bf16.gmra.mxu1 %v2295_v35  ;;  %v2704_v39 = vld [vmem:[%s3142_s5 + $0x110] sm:$0xf0] }
  0xbd   : > { %2814 = vpow2.f32 %v1668_v40  ;;  %v1384_v43 = vadd.f32 %v1383_v3, %v1215_v41  ;;  %v2304_v3 = vld [vmem:[%s3142_s5 + $0xfc] sm:$0xf0] }
  0xbe   : > { %2816 = vrcp.f32 %v1794_v42  ;;  %v3287_v44 = vpop.f32.mrf.mxu3  ;;  %v2307_v12 = vor.u32 %v2700_v2, %v2304_v3  ;;  %v2751_v42 = vld [vmem:[%s3142_s5 + $0x28c] sm:$0xf] }
  0xbf   : > { %v1540_v47 = vmax.f32 %v1384_v43, -30.0  ;;  %v2508_v43 = vld [vmem:[%s3142_s5 + $0x294] sm:$0xf0] }
  0xc0   : > { %v3291_v48 = vpop.f32.mrf.mxu2  ;;  %v1047_v49 = vpop.f32.mrf.mxu0 }
  0xc1   : > { %v1604_v50 = vsub.f32 0.0, %v1540_v47  ;;  %v1048_v51 = vadd.f32 %v3265_v62, %v1047_v49  ;;  %v1216_v52 = vpop.f32.mrf.mxu1  ;;  %v2703_v47 = vld [vmem:[%s3142_s5 + $0x10c] sm:$0xf]  ;;  %v2316_v49 = vld [vmem:[%s3142_s5 + $0x114] sm:$0xf0] }
  0xc2   : > { %v2319_v57 = vor.u32 %v2703_v47, %v2316_v49 }
  0xc3   : > { %v2815_v54 = vpop.eup %2814  ;;  %v1670_v55 = vmul.f32 1.442695, %v1604_v50  ;;  %v1217_v56 = vadd.f32 %v1216_v52, %v1048_v51 }
  0xc4   : > { %v2817_v59 = vpop.eup %2816  ;;  %v1795_v60 = vadd.f32 1.0, %v2815_v54  ;;  %v2511_v54 = vor.u32 %v2751_v42, %v2508_v43 }
  0xc5   : > { %v1922_v0 = vmax.f32 %v2817_v59, 0.0  ;;  %2818 = vpow2.f32 %v1670_v55  ;;  %v1386_v1 = vadd.f32 %v1385_v14, %v1217_v56  ;;  %2647 = vmatmul.msk.bf16.gmra.mxu2 %vm934_vm0, %v2323_v53  ;;  %v2315_v53 = vor.u32 %v2704_v39, %v2314_v38 }
  0xc6   : > { %2820 = vrcp.f32 %v1795_v60  ;;  %v3307_v4 = vpop.f32.mrf.mxu3 }
  0xc7   : > { %v1986_v5 = vmin.f32 %v1922_v0, 1.0  ;;  %v1541_v6 = vmax.f32 %v1386_v1, -30.0 }
  0xc8   : > { %v3309_v9 = vpop.f32.mrf.mxu2  ;;  %v1050_v11 = vpop.f32.mrf.mxu0 }
  0xc9   : > { %2051 = vst.msk [vmem:[%s3305_s20] sm:$0xff] %vm2050_vm1, %v1986_v5  ;;  %v1605_v13 = vsub.f32 0.0, %v1541_v6  ;;  %v1051_v14 = vadd.f32 %v3265_v62, %v1050_v11  ;;  %v1219_v15 = vpop.f32.mrf.mxu1  ;;  %v2346_v6 = vld [vmem:[%s3142_s5 + $0x140] sm:$0xf] }
  0xcb   : > { %v2819_v16 = vpop.eup %2818  ;;  %v1672_v17 = vmul.f32 1.442695, %v1605_v13  ;;  %v1220_v18 = vadd.f32 %v1219_v15, %v1051_v14  ;;  %1089 = vmatmul.bf16.gmra.mxu0 %v2303_v7  ;;  %1338 = vmatmul.bf16.gmra.mxu3 %v2499_v8  ;;  %v2711_v7 = vld [vmem:[%s3142_s5 + $0x148] sm:$0xf0] }
  0xcc   : > { %v2821_v19 = vpop.eup %2820  ;;  %v1796_v20 = vadd.f32 1.0, %v2819_v16  ;;  %1258 = vmatmul.bf16.gmra.mxu1 %v2307_v12  ;;  %v2347_v16 = vor.u32 %v2711_v7, %v2346_v6  ;;  %v2710_v6 = vld [vmem:[%s3142_s5 + $0x140] sm:$0xf0] }
  0xcd   : > { %v1923_v21 = vmax.f32 %v2821_v19, 0.0  ;;  %2822 = vpow2.f32 %v1672_v17  ;;  %v1389_v22 = vadd.f32 %v3284_v33, %v1220_v18 }
  0xce   : > { %2824 = vrcp.f32 %v1796_v20  ;;  %v3315_v23 = vpop.f32.mrf.mxu3  ;;  %v2326_v20 = vld [vmem:[%s3142_s5 + $0x120] sm:$0xf] }
  0xcf   : > { %v1987_v26 = vmin.f32 %v1923_v21, 1.0  ;;  %v1542_v27 = vmax.f32 %v1389_v22, -30.0  ;;  %v2707_v21 = vld [vmem:[%s3142_s5 + $0x128] sm:$0xf0] }
  0xd0   : > { %v3319_v28 = vpop.f32.mrf.mxu2  ;;  %v1052_v30 = vpop.f32.mrf.mxu0 }
  0xd1   : > { %2052 = vst.msk [vmem:[%s3305_s20 + $0x8] sm:$0xff] %vm2050_vm1, %v1987_v26  ;;  %v1606_v31 = vsub.f32 0.0, %v1542_v27  ;;  %v1053_v32 = vadd.f32 %v3265_v62, %v1052_v30  ;;  %v1221_v33 = vpop.f32.mrf.mxu1  ;;  %v2520_v26 = vld [vmem:[%s3142_s5 + $0x2ac] sm:$0xf0] }
  0xd3   : > { %v2823_v35 = vpop.eup %2822  ;;  %v1674_v36 = vmul.f32 1.442695, %v1606_v31  ;;  %v1222_v37 = vadd.f32 %v1221_v33, %v1053_v32  ;;  %v2706_v31 = vld [vmem:[%s3142_s5 + $0x124] sm:$0xf]  ;;  %v2328_v32 = vld [vmem:[%s3142_s5 + $0x12c] sm:$0xf0] }
  0xd4   : > { %v2825_v40 = vpop.eup %2824  ;;  %v1797_v41 = vadd.f32 1.0, %v2823_v35 }
  0xd5   : > { %v1924_v45 = vmax.f32 %v2825_v40, 0.0  ;;  %2826 = vpow2.f32 %v1674_v36  ;;  %v1391_v46 = vadd.f32 %v3291_v48, %v1222_v37  ;;  %2648 = vmatmul.msk.bf16.gmra.mxu2 %vm934_vm0, %v2335_v34  ;;  %v2327_v36 = vor.u32 %v2707_v21, %v2326_v20 }
  0xd6   : > { %2828 = vrcp.f32 %v1797_v41  ;;  %v3332_v50 = vpop.f32.mrf.mxu3  ;;  %v2523_v37 = vor.u32 %v2754_v25, %v2520_v26  ;;  %v2331_v40 = vor.u32 %v2706_v31, %v2328_v32 }
  0xd7   : > { %v1988_v51 = vmin.f32 %v1924_v45, 1.0  ;;  %v1543_v52 = vmax.f32 %v1391_v46, -30.0 }
  0xd8   : > { %v3334_v55 = vpop.f32.mrf.mxu2  ;;  %v1055_v56 = vpop.f32.mrf.mxu0 }
  0xd9   : > { %2053 = vst.msk [vmem:[%s3305_s20 + $0x10] sm:$0xff] %vm2050_vm1, %v1988_v51  ;;  %v1607_v58 = vsub.f32 0.0, %v1543_v52  ;;  %v1056_v48 = vadd.f32 %v3265_v62, %v1055_v56  ;;  %v1224_v59 = vpop.f32.mrf.mxu1  ;;  %v2714_v56 = vld [vmem:[%s3142_s5 + $0x160] sm:$0xf0] }
  0xdb   : > { %v2827_v60 = vpop.eup %2826  ;;  %v1676_v61 = vmul.f32 1.442695, %v1607_v58  ;;  %v1225_v63 = vadd.f32 %v1224_v59, %v1056_v48  ;;  %1094 = vmatmul.bf16.gmra.mxu0 %v2315_v53  ;;  %1343 = vmatmul.bf16.gmra.mxu3 %v2511_v54  ;;  %v2358_v54 = vld [vmem:[%s3142_s5 + $0x158] sm:$0xf] }
  0xdc   : > { %v2829_v0 = vpop.eup %2828  ;;  %v1798_v1 = vadd.f32 1.0, %v2827_v60  ;;  %1263 = vmatmul.bf16.gmra.mxu1 %v2319_v57 }
  0xdd   : > { %v1925_v2 = vmax.f32 %v2829_v0, 0.0  ;;  %2830 = vpow2.f32 %v1676_v61  ;;  %v1394_v3 = vadd.f32 %v3309_v9, %v1225_v63  ;;  %v2359_v63 = vor.u32 %v2714_v56, %v2358_v54  ;;  %v2350_v56 = vld [vmem:[%s3142_s5 + $0x150] sm:$0xf] }
  0xde   : > { %2832 = vrcp.f32 %v1798_v1  ;;  %v3340_v5 = vpop.f32.mrf.mxu3 }
  0xdf   : > { %v1989_v8 = vmin.f32 %v1925_v2, 1.0  ;;  %v1544_v11 = vmax.f32 %v1394_v3, -30.0  ;;  %v2338_v3 = vld [vmem:[%s3142_s5 + $0x138] sm:$0xf] }
  0xe0   : > { %v3344_v12 = vpop.f32.mrf.mxu2  ;;  %v1057_v13 = vpop.f32.mrf.mxu0  ;;  %v2339_v20 = vor.u32 %v2710_v6, %v2338_v3 }
  0xe1   : > { %2054 = vst.msk [vmem:[%s3305_s20 + $0x18] sm:$0xff] %vm2050_vm1, %v1989_v8  ;;  %v1608_v14 = vsub.f32 0.0, %v1544_v11  ;;  %v1058_v15 = vadd.f32 %v3265_v62, %v1057_v13  ;;  %v1226_v9 = vpop.f32.mrf.mxu1  ;;  %v2757_v11 = vld [vmem:[%s3142_s5 + $0x2bc] sm:$0xf]  ;;  %v2532_v13 = vld [vmem:[%s3142_s5 + $0x2c4] sm:$0xf0] }
  0xe2   : > { %v2535_v21 = vor.u32 %v2757_v11, %v2532_v13 }
  0xe3   : > { %v2831_v17 = vpop.eup %2830  ;;  %v1678_v18 = vmul.f32 1.442695, %v1608_v14  ;;  %v1227_v19 = vadd.f32 %v1226_v9, %v1058_v15  ;;  %v2709_v9 = vld [vmem:[%s3142_s5 + $0x13c] sm:$0xf] }
  0xe4   : > { %v2833_v22 = vpop.eup %2832  ;;  %v1799_v24 = vadd.f32 1.0, %v2831_v17 }
  0xe5   : > { %v1926_v27 = vmax.f32 %v2833_v22, 0.0  ;;  %2834 = vpow2.f32 %v1678_v18  ;;  %v1396_v30 = vadd.f32 %v3319_v28, %v1227_v19  ;;  %2649 = vmatmul.msk.bf16.gmra.mxu2 %vm934_vm0, %v2347_v16  ;;  %v2340_v16 = vld [vmem:[%s3142_s5 + $0x144] sm:$0xf0] }
  0xe6   : > { %2836 = vrcp.f32 %v1799_v24  ;;  %v3357_v33 = vpop.f32.mrf.mxu3  ;;  %v2343_v25 = vor.u32 %v2709_v9, %v2340_v16 }
  0xe7   : > { %v1990_v34 = vmin.f32 %v1926_v27, 1.0  ;;  %v1545_v35 = vmax.f32 %v1396_v30, -30.0 }
  0xe8   : > { %v3359_v38 = vpop.f32.mrf.mxu2  ;;  %v1060_v39 = vpop.f32.mrf.mxu0 }
  0xe9   : > { %2055 = vst.msk [vmem:[%s3305_s20 + $0x20] sm:$0xff] %vm2050_vm1, %v1990_v34  ;;  %v1609_v41 = vsub.f32 0.0, %v1545_v35  ;;  %v1061_v28 = vadd.f32 %v3265_v62, %v1060_v39  ;;  %v1229_v42 = vpop.f32.mrf.mxu1 }
  0xeb   : > { %v2835_v43 = vpop.eup %2834  ;;  %v1680_v45 = vmul.f32 1.442695, %v1609_v41  ;;  %v1230_v46 = vadd.f32 %v1229_v42, %v1061_v28  ;;  %1099 = vmatmul.bf16.gmra.mxu0 %v2327_v36  ;;  %1348 = vmatmul.bf16.gmra.mxu3 %v2523_v37  ;;  %v2717_v41 = vld [vmem:[%s3142_s5 + $0x178] sm:$0xf0] }
  0xec   : > { %v2837_v47 = vpop.eup %2836  ;;  %v1800_v49 = vadd.f32 1.0, %v2835_v43  ;;  %1268 = vmatmul.bf16.gmra.mxu1 %v2331_v40  ;;  %v2370_v40 = vld [vmem:[%s3142_s5 + $0x170] sm:$0xf] }
  0xed   : > { %v1927_v51 = vmax.f32 %v2837_v47, 0.0  ;;  %2838 = vpow2.f32 %v1680_v45  ;;  %v1399_v52 = vadd.f32 %v3334_v55, %v1230_v46 }
  0xee   : > { %2840 = vrcp.f32 %v1800_v49  ;;  %v3365_v53 = vpop.f32.mrf.mxu3  ;;  %v2371_v49 = vor.u32 %v2717_v41, %v2370_v40 }
  0xef   : > { %v1991_v57 = vmin.f32 %v1927_v51, 1.0  ;;  %v1546_v58 = vmax.f32 %v1399_v52, -30.0 }
  0xf0   : > { %v3369_v48 = vpop.f32.mrf.mxu2  ;;  %v1062_v59 = vpop.f32.mrf.mxu0 }
  0xf1   : > { %2056 = vst.msk [vmem:[%s3305_s20 + $0x28] sm:$0xff] %vm2050_vm1, %v1991_v57  ;;  %v1610_v60 = vsub.f32 0.0, %v1546_v58  ;;  %v1063_v61 = vadd.f32 %v3265_v62, %v1062_v59  ;;  %v1231_v55 = vpop.f32.mrf.mxu1  ;;  %v2713_v57 = vld [vmem:[%s3142_s5 + $0x158] sm:$0xf0] }
  0xf3   : > { %v2839_v0 = vpop.eup %2838  ;;  %v1682_v1 = vmul.f32 1.442695, %v1610_v60  ;;  %v1232_v2 = vadd.f32 %v1231_v55, %v1063_v61  ;;  %v2760_v60 = vld [vmem:[%s3142_s5 + $0x2d4] sm:$0xf]  ;;  %v2544_v61 = vld [vmem:[%s3142_s5 + $0x2dc] sm:$0xf0] }
  0xf4   : > { %v2841_v7 = vpop.eup %2840  ;;  %v1801_v8 = vadd.f32 1.0, %v2839_v0  ;;  %v2712_v0 = vld [vmem:[%s3142_s5 + $0x154] sm:$0xf] }
  0xf5   : > { %v1928_v14 = vmax.f32 %v2841_v7, 0.0  ;;  %2842 = vpow2.f32 %v1682_v1  ;;  %v1401_v15 = vadd.f32 %v3344_v12, %v1232_v2  ;;  %2650 = vmatmul.msk.bf16.gmra.mxu2 %vm934_vm0, %v2359_v63  ;;  %v2352_v1 = vld [vmem:[%s3142_s5 + $0x15c] sm:$0xf0]  ;;  %v2351_v7 = vor.u32 %v2713_v57, %v2350_v56  ;;  %v2364_v56 = vld [vmem:[%s3142_s5 + $0x174] sm:$0xf0] }
  0xf6   : > { %2844 = vrcp.f32 %v1801_v8  ;;  %v3382_v17 = vpop.f32.mrf.mxu3  ;;  %v2547_v8 = vor.u32 %v2760_v60, %v2544_v61 }
  0xf7   : > { %v1992_v18 = vmin.f32 %v1928_v14, 1.0  ;;  %v1547_v19 = vmax.f32 %v1401_v15, -30.0  ;;  %v2355_v14 = vor.u32 %v2712_v0, %v2352_v1 }
  0xf8   : > { %v3384_v22 = vpop.f32.mrf.mxu2  ;;  %v1065_v24 = vpop.f32.mrf.mxu0 }
  0xf9   : > { %2057 = vst.msk [vmem:[%s3305_s20 + $0x30] sm:$0xff] %vm2050_vm1, %v1992_v18  ;;  %v1611_v26 = vsub.f32 0.0, %v1547_v19  ;;  %v1066_v12 = vadd.f32 %v3265_v62, %v1065_v24  ;;  %v1234_v27 = vpop.f32.mrf.mxu1 }
  0xfb   : > { %v2843_v30 = vpop.eup %2842  ;;  %v1684_v31 = vmul.f32 1.442695, %v1611_v26  ;;  %v1235_v32 = vadd.f32 %v1234_v27, %v1066_v12  ;;  %1104 = vmatmul.bf16.gmra.mxu0 %v2339_v20  ;;  %1353 = vmatmul.bf16.gmra.mxu3 %v2535_v21  ;;  %v2382_v12 = vld [vmem:[%s3142_s5 + $0x188] sm:$0xf]  ;;  %v2720_v27 = vld [vmem:[%s3142_s5 + $0x190] sm:$0xf0] }
  0xfc   : > { %v2845_v34 = vpop.eup %2844  ;;  %v1802_v35 = vadd.f32 1.0, %v2843_v30  ;;  %1273 = vmatmul.bf16.gmra.mxu1 %v2343_v25 }
  0xfd   : > { %v1929_v36 = vmax.f32 %v2845_v34, 0.0  ;;  %2846 = vpow2.f32 %v1684_v31  ;;  %v1404_v37 = vadd.f32 %v3359_v38, %v1235_v32 }
  0xfe   : > { %2848 = vrcp.f32 %v1802_v35  ;;  %v3390_v39 = vpop.f32.mrf.mxu3 }
  0xff   : > { %v1993_v28 = vmin.f32 %v1929_v36, 1.0  ;;  %v1548_v42 = vmax.f32 %v1404_v37, -30.0  ;;  %v2383_v37 = vor.u32 %v2720_v27, %v2382_v12 }
 0x100   : > { %v3394_v43 = vpop.f32.mrf.mxu2  ;;  %v1067_v45 = vpop.f32.mrf.mxu0 }
 0x101   : > { %2058 = vst.msk [vmem:[%s3305_s20 + $0x38] sm:$0xff] %vm2050_vm1, %v1993_v28  ;;  %v1612_v46 = vsub.f32 0.0, %v1548_v42  ;;  %v1068_v47 = vadd.f32 %v3265_v62, %v1067_v45  ;;  %v1236_v38 = vpop.f32.mrf.mxu1  ;;  %v2362_v42 = vld [vmem:[%s3142_s5 + $0x168] sm:$0xf]  ;;  %v2716_v45 = vld [vmem:[%s3142_s5 + $0x170] sm:$0xf0] }
 0x102   : > { %v2363_v60 = vor.u32 %v2716_v45, %v2362_v42  ;;  %v2718_v45 = vld [vmem:[%s3142_s5 + $0x184] sm:$0xf] }
 0x103   : > { %v2847_v51 = vpop.eup %2846  ;;  %v1686_v52 = vmul.f32 1.442695, %v1612_v46  ;;  %v1237_v54 = vadd.f32 %v1236_v38, %v1068_v47  ;;  %v2763_v38 = vld [vmem:[%s3142_s5 + $0x2ec] sm:$0xf] }
 0x104   : > { %v2849_v58 = vpop.eup %2848  ;;  %v1803_v59 = vadd.f32 1.0, %v2847_v51 }
 0x105   : > { %v1930_v55 = vmax.f32 %v2849_v58, 0.0  ;;  %2850 = vpow2.f32 %v1686_v52  ;;  %v1406_v63 = vadd.f32 %v3369_v48, %v1237_v54  ;;  %2651 = vmatmul.msk.bf16.gmra.mxu2 %vm934_vm0, %v2371_v49  ;;  %v2556_v49 = vld [vmem:[%s3142_s5 + $0x2f4] sm:$0xf0]  ;;  %v2715_v54 = vld [vmem:[%s3142_s5 + $0x16c] sm:$0xf] }
 0x106   : > { %2852 = vrcp.f32 %v1803_v59  ;;  %v3407_v2 = vpop.f32.mrf.mxu3  ;;  %v2559_v61 = vor.u32 %v2763_v38, %v2556_v49  ;;  %v2367_v0 = vor.u32 %v2715_v54, %v2364_v56 }
 0x107   : > { %v1994_v3 = vmin.f32 %v1930_v55, 1.0  ;;  %v1549_v6 = vmax.f32 %v1406_v63, -30.0 }
 0x108   : > { %v3409_v11 = vpop.f32.mrf.mxu2  ;;  %v1070_v13 = vpop.f32.mrf.mxu0 }
 0x109   : > { %2059 = vst.msk [vmem:[%s3305_s20 + $0x40] sm:$0xff] %vm2050_vm1, %v1994_v3  ;;  %v1613_v15 = vsub.f32 0.0, %v1549_v6  ;;  %v1071_v48 = vadd.f32 %v3265_v62, %v1070_v13  ;;  %v1239_v9 = vpop.f32.mrf.mxu1 }
 0x10b   : > { %v2851_v16 = vpop.eup %2850  ;;  %v1688_v18 = vmul.f32 1.442695, %v1613_v15  ;;  %v1240_v19 = vadd.f32 %v1239_v9, %v1071_v48  ;;  %1109 = vmatmul.bf16.gmra.mxu0 %v2351_v7  ;;  %1358 = vmatmul.bf16.gmra.mxu3 %v2547_v8 }
 0x10c   : > { %v2853_v20 = vpop.eup %2852  ;;  %v1804_v21 = vadd.f32 1.0, %v2851_v16  ;;  %1278 = vmatmul.bf16.gmra.mxu1 %v2355_v14  ;;  %v2394_v16 = vld [vmem:[%s3142_s5 + $0x1a0] sm:$0xf] }
 0x10d   : > { %v1931_v24 = vmax.f32 %v2853_v20, 0.0  ;;  %2854 = vpow2.f32 %v1688_v18  ;;  %v1409_v25 = vadd.f32 %v3384_v22, %v1240_v19  ;;  %v2723_v18 = vld [vmem:[%s3142_s5 + $0x1a8] sm:$0xf0] }
 0x10e   : > { %2856 = vrcp.f32 %v1804_v21  ;;  %v3415_v26 = vpop.f32.mrf.mxu3  ;;  %v2395_v27 = vor.u32 %v2723_v18, %v2394_v16 }
 0x10f   : > { %v1995_v30 = vmin.f32 %v1931_v24, 1.0  ;;  %v1550_v31 = vmax.f32 %v1409_v25, -30.0 }
 0x110   : > { %v3419_v32 = vpop.f32.mrf.mxu2  ;;  %v1072_v34 = vpop.f32.mrf.mxu0 }
 0x111   : > { %2060 = vst.msk [vmem:[%s3305_s20 + $0x48] sm:$0xff] %vm2050_vm1, %v1995_v30  ;;  %v1614_v35 = vsub.f32 0.0, %v1550_v31  ;;  %v1073_v36 = vadd.f32 %v3265_v62, %v1072_v34  ;;  %v1241_v22 = vpop.f32.mrf.mxu1 }
 0x113   : > { %v2855_v40 = vpop.eup %2854  ;;  %v1690_v41 = vmul.f32 1.442695, %v1614_v35  ;;  %v1242_v28 = vadd.f32 %v1241_v22, %v1073_v36  ;;  %v2374_v35 = vld [vmem:[%s3142_s5 + $0x180] sm:$0xf]  ;;  %v2719_v36 = vld [vmem:[%s3142_s5 + $0x188] sm:$0xf0] }
 0x114   : > { %v2857_v46 = vpop.eup %2856  ;;  %v1805_v47 = vadd.f32 1.0, %v2855_v40  ;;  %v2502_v40 = vld [vmem:[%s3142_s5 + $0x278] sm:$0xf] }
 0x115   : > { %v1932_v51 = vmax.f32 %v2857_v46, 0.0  ;;  %2858 = vpow2.f32 %v1690_v41  ;;  %v1411_v52 = vadd.f32 %v3394_v43, %v1242_v28  ;;  %2652 = vmatmul.msk.bf16.gmra.mxu2 %vm934_vm0, %v2383_v37  ;;  %v2750_v41 = vld [vmem:[%s3142_s5 + $0x280] sm:$0xf0]  ;;  %v2376_v46 = vld [vmem:[%s3142_s5 + $0x18c] sm:$0xf0] }
 0x116   : > { %2860 = vrcp.f32 %v1805_v47  ;;  %v3432_v57 = vpop.f32.mrf.mxu3 }
 0x117   : > { %v1996_v58 = vmin.f32 %v1932_v51, 1.0  ;;  %v1551_v59 = vmax.f32 %v1411_v52, -30.0  ;;  %v2375_v51 = vor.u32 %v2719_v36, %v2374_v35  ;;  %v2503_v52 = vor.u32 %v2750_v41, %v2502_v40  ;;  %v2514_v35 = vld [vmem:[%s3142_s5 + $0x290] sm:$0xf]  ;;  %v2753_v36 = vld [vmem:[%s3142_s5 + $0x298] sm:$0xf0] }
 0x118   : > { %v3434_v55 = vpop.f32.mrf.mxu2  ;;  %v1075_v63 = vpop.f32.mrf.mxu0  ;;  %v2721_v41 = vld [vmem:[%s3142_s5 + $0x19c] sm:$0xf] }
 0x119   : > { %2061 = vst.msk [vmem:[%s3305_s20 + $0x50] sm:$0xff] %vm2050_vm1, %v1996_v58  ;;  %v1615_v1 = vsub.f32 0.0, %v1551_v59  ;;  %v1076_v43 = vadd.f32 %v3265_v62, %v1075_v63  ;;  %v1244_v3 = vpop.f32.mrf.mxu1  ;;  %v2379_v58 = vor.u32 %v2718_v45, %v2376_v46 }
 0x11b   : > { %v2859_v6 = vpop.eup %2858  ;;  %v1692_v7 = vmul.f32 1.442695, %v1615_v1  ;;  %v1245_v8 = vadd.f32 %v1244_v3, %v1076_v43  ;;  %1114 = vmatmul.bf16.gmra.mxu0 %v2363_v60  ;;  %1363 = vmatmul.bf16.gmra.mxu3 %v2559_v61  ;;  %v1161_v3 = vadd.f32 %v3265_v62, %v3270_v10 }
 0x11c   : > { %v2861_v13 = vpop.eup %2860  ;;  %v1806_v14 = vadd.f32 1.0, %v2859_v6  ;;  %1283 = vmatmul.bf16.gmra.mxu1 %v2367_v0 }
 0x11d   : > { %v1933_v15 = vmax.f32 %v2861_v13, 0.0  ;;  %2862 = vpow2.f32 %v1692_v7  ;;  %v1414_v48 = vadd.f32 %v3409_v11, %v1245_v8  ;;  %v2406_v13 = vld [vmem:[%s3142_s5 + $0x1b8] sm:$0xf] }
 0x11e   : > { %2864 = vrcp.f32 %v1806_v14  ;;  %v3440_v9 = vpop.f32.mrf.mxu3  ;;  %v2726_v14 = vld [vmem:[%s3142_s5 + $0x1c0] sm:$0xf0] }
 0x11f   : > { %v1997_v19 = vmin.f32 %v1933_v15, 1.0  ;;  %v1552_v20 = vmax.f32 %v1414_v48, -30.0 }
 0x120   : > { %v3444_v21 = vpop.f32.mrf.mxu2  ;;  %v1077_v24 = vpop.f32.mrf.mxu0 }
 0x121   : > { %2062 = vst.msk [vmem:[%s3305_s20 + $0x58] sm:$0xff] %vm2050_vm1, %v1997_v19  ;;  %v1616_v25 = vsub.f32 0.0, %v1552_v20  ;;  %v1078_v12 = vadd.f32 %v3265_v62, %v1077_v24  ;;  %v1246_v11 = vpop.f32.mrf.mxu1  ;;  %v2407_v24 = vor.u32 %v2726_v14, %v2406_v13 }
 0x123   : > { %v2863_v30 = vpop.eup %2862  ;;  %v1694_v31 = vmul.f32 1.442695, %v1616_v25  ;;  %v1247_v34 = vadd.f32 %v1246_v11, %v1078_v12 }
 0x124   : > { %v2865_v22 = vpop.eup %2864  ;;  %v1807_v37 = vadd.f32 1.0, %v2863_v30  ;;  %v2722_v30 = vld [vmem:[%s3142_s5 + $0x1a0] sm:$0xf0] }
 0x125   : > { %v1934_v28 = vmax.f32 %v2865_v22, 0.0  ;;  %2866 = vpow2.f32 %v1694_v31  ;;  %v1416_v42 = vadd.f32 %v3419_v32, %v1247_v34  ;;  %2653 = vmatmul.msk.bf16.gmra.mxu2 %vm934_vm0, %v2395_v27  ;;  %v2386_v27 = vld [vmem:[%s3142_s5 + $0x198] sm:$0xf]  ;;  %v1163_v22 = vadd.f32 %v3265_v62, %v3282_v29 }
 0x126   : > { %2868 = vrcp.f32 %v1807_v37  ;;  %v3457_v47 = vpop.f32.mrf.mxu3  ;;  %v2387_v45 = vor.u32 %v2722_v30, %v2386_v27 }
 0x127   : > { %v1998_v38 = vmin.f32 %v1934_v28, 1.0  ;;  %v1553_v49 = vmax.f32 %v1416_v42, -30.0  ;;  %v2388_v28 = vld [vmem:[%s3142_s5 + $0x1a4] sm:$0xf0] }
 0x128   : > { %v3459_v54 = vpop.f32.mrf.mxu2  ;;  %v1080_v56 = vpop.f32.mrf.mxu0 }
 0x129   : > { %2063 = vst.msk [vmem:[%s3305_s20 + $0x60] sm:$0xff] %vm2050_vm1, %v1998_v38  ;;  %v1617_v59 = vsub.f32 0.0, %v1553_v49  ;;  %v1081_v32 = vadd.f32 %v3265_v62, %v1080_v56  ;;  %v1249_v60 = vpop.f32.mrf.mxu1  ;;  %v2391_v56 = vor.u32 %v2721_v41, %v2388_v28 }
 0x12b   : > { %v2867_v61 = vpop.eup %2866  ;;  %v1696_v63 = vmul.f32 1.442695, %v1617_v59  ;;  %v1250_v0 = vadd.f32 %v1249_v60, %v1081_v32  ;;  %1119 = vmatmul.bf16.gmra.mxu0 %v2375_v51  ;;  %2662 = vmatmul.msk.bf16.vlgmr.msra.gmra.mxu3 %vm934_vm0, %v2503_v52  ;;  %v2515_v51 = vor.u32 %v2753_v36, %v2514_v35  ;;  %v1168_v35 = vadd.f32 %v3265_v62, %v3307_v4 }
 0x12c   : > { %v2869_v1 = vpop.eup %2868  ;;  %v1808_v43 = vadd.f32 1.0, %v2867_v61  ;;  %1288 = vmatmul.bf16.gmra.mxu1 %v2379_v58 }
 0x12d   : > { %v1935_v6 = vmax.f32 %v2869_v1, 0.0  ;;  %2870 = vpow2.f32 %v1696_v63  ;;  %v1419_v7 = vadd.f32 %v3434_v55, %v1250_v0  ;;  %v1166_v1 = vadd.f32 %v3265_v62, %v3287_v44 }
 0x12e   : > { %2872 = vrcp.f32 %v1808_v43  ;;  %v1329_v8 = vpop.f32.mrf.mxu3 }
 0x12f   : > { %v1999_v15 = vmin.f32 %v1935_v6, 1.0  ;;  %v1554_v48 = vmax.f32 %v1419_v7, -30.0  ;;  %v3470_v16 = vadd.f32 %v1329_v8, %v1161_v3  ;;  %v2418_v7 = vld [vmem:[%s3142_s5 + $0x1d0] sm:$0xf]  ;;  %v2729_v8 = vld [vmem:[%s3142_s5 + $0x1d8] sm:$0xf0] }
 0x130   : > { %v3472_v18 = vpop.f32.mrf.mxu2  ;;  %v1082_v19 = vpop.f32.mrf.mxu0 }
 0x131   : > { %2064 = vst.msk [vmem:[%s3305_s20 + $0x68] sm:$0xff] %vm2050_vm1, %v1999_v15  ;;  %v1618_v10 = vsub.f32 0.0, %v1554_v48  ;;  %v1083_v55 = vadd.f32 %v3265_v62, %v1082_v19  ;;  %v1251_v20 = vpop.f32.mrf.mxu1 }
 0x133   : > { %v2871_v25 = vpop.eup %2870  ;;  %v1698_v12 = vmul.f32 1.442695, %v1618_v10  ;;  %v1252_v11 = vadd.f32 %v1251_v20, %v1083_v55  ;;  %v2419_v55 = vor.u32 %v2729_v8, %v2418_v7 }
 0x134   : > { %v2873_v31 = vpop.eup %2872  ;;  %v1809_v34 = vadd.f32 1.0, %v2871_v25 }
 0x135   : > { %v1936_v37 = vmax.f32 %v2873_v31, 0.0  ;;  %2874 = vpow2.f32 %v1698_v12  ;;  %v1421_v40 = vadd.f32 %v3444_v21, %v1252_v11  ;;  %2654 = vmatmul.msk.bf16.gmra.mxu2 %vm934_vm0, %v2407_v24  ;;  %v2398_v12 = vld [vmem:[%s3142_s5 + $0x1b0] sm:$0xf]  ;;  %v2725_v11 = vld [vmem:[%s3142_s5 + $0x1b8] sm:$0xf0] }
 0x136   : > { %2876 = vrcp.f32 %v1809_v34  ;;  %v1331_v42 = vpop.f32.mrf.mxu3  ;;  %v2526_v31 = vld [vmem:[%s3142_s5 + $0x2a8] sm:$0xf]  ;;  %v2756_v34 = vld [vmem:[%s3142_s5 + $0x2b0] sm:$0xf0]  ;;  %v2399_v28 = vor.u32 %v2725_v11, %v2398_v12 }
 0x137   : > { %v2000_v46 = vmin.f32 %v1936_v37, 1.0  ;;  %v1555_v38 = vmax.f32 %v1421_v40, -30.0  ;;  %v3487_v49 = vadd.f32 %v1331_v42, %v1163_v22  ;;  %v2724_v37 = vld [vmem:[%s3142_s5 + $0x1b4] sm:$0xf]  ;;  %v2400_v40 = vld [vmem:[%s3142_s5 + $0x1bc] sm:$0xf0] }
 0x138   : > { %v3489_v52 = vpop.f32.mrf.mxu2  ;;  %v1085_v29 = vpop.f32.mrf.mxu0  ;;  %v2403_v4 = vor.u32 %v2724_v37, %v2400_v40 }
 0x139   : > { %2065 = vst.msk [vmem:[%s3305_s20 + $0x70] sm:$0xff] %vm2050_vm1, %v2000_v46  ;;  %v1619_v58 = vsub.f32 0.0, %v1555_v38  ;;  %v1086_v21 = vadd.f32 %v3265_v62, %v1085_v29  ;;  %v1254_v59 = vpop.f32.mrf.mxu1  ;;  %v2527_v38 = vor.u32 %v2756_v34, %v2526_v31 }
 0x13b   : > { %v2875_v32 = vpop.eup %2874  ;;  %v1700_v60 = vmul.f32 1.442695, %v1619_v58  ;;  %v1255_v61 = vadd.f32 %v1254_v59, %v1086_v21  ;;  %1124 = vmatmul.bf16.gmra.mxu0 %v2387_v45  ;;  %2663 = vmatmul.msk.bf16.gmra.mxu3 %vm934_vm0, %v2515_v51 }
 0x13c   : > { %v2877_v63 = vpop.eup %2876  ;;  %v1810_v0 = vadd.f32 1.0, %v2875_v32  ;;  %1293 = vmatmul.bf16.gmra.mxu1 %v2391_v56 }
 0x13d   : > { %v1937_v43 = vmax.f32 %v2877_v63, 0.0  ;;  %2878 = vpow2.f32 %v1700_v60  ;;  %v1424_v3 = vadd.f32 %v3459_v54, %v1255_v61 }
 0x13e   : > { %2880 = vrcp.f32 %v1810_v0  ;;  %v1334_v6 = vpop.f32.mrf.mxu3 }
 0x13f   : > { %v2001_v13 = vmin.f32 %v1937_v43, 1.0  ;;  %v1556_v14 = vmax.f32 %v1424_v3, -30.0  ;;  %v3500_v15 = vadd.f32 %v1334_v6, %v1166_v1  ;;  %v2430_v3 = vld [vmem:[%s3142_s5 + $0x1e8] sm:$0xf]  ;;  %v2732_v6 = vld [vmem:[%s3142_s5 + $0x1f0] sm:$0xf0] }
 0x140   : > { %v3502_v48 = vpop.f32.mrf.mxu2  ;;  %v1087_v19 = vpop.f32.mrf.mxu0 }
 0x141   : > { %2066 = vst.msk [vmem:[%s3305_s20 + $0x78] sm:$0xff] %vm2050_vm1, %v2001_v13  ;;  %v1620_v44 = vsub.f32 0.0, %v1556_v14  ;;  %v1088_v54 = vadd.f32 %v3265_v62, %v1087_v19  ;;  %v1256_v10 = vpop.f32.mrf.mxu1 }
 0x143   : > { %v2879_v20 = vpop.eup %2878  ;;  %v1702_v24 = vmul.f32 1.442695, %v1620_v44  ;;  %v1257_v25 = vadd.f32 %v1256_v10, %v1088_v54  ;;  %v2431_v54 = vor.u32 %v2732_v6, %v2430_v3 }
 0x144   : > { %v2881_v27 = vpop.eup %2880  ;;  %v1811_v30 = vadd.f32 1.0, %v2879_v20 }
 0x145   : > { %v1938_v36 = vmax.f32 %v2881_v27, 0.0  ;;  %2882 = vpow2.f32 %v1702_v24  ;;  %v1426_v22 = vadd.f32 %v3472_v18, %v1257_v25  ;;  %2655 = vmatmul.msk.bf16.gmra.mxu2 %vm934_vm0, %v2419_v55  ;;  %v3526_v18 = vld [vmem:[%s3841_s2] ss:$0 sm:$0xff]  ;;  %v2410_v24 = vld [vmem:[%s3142_s5 + $0x1c8] sm:$0xf] }
 0x146   : > { %2884 = vrcp.f32 %v1811_v30  ;;  %v1336_v41 = vpop.f32.mrf.mxu3  ;;  %v1171_v63 = vadd.f32 %v3526_v18, %v3315_v23  ;;  %v2728_v25 = vld [vmem:[%s3142_s5 + $0x1d0] sm:$0xf0]  ;;  %v2538_v27 = vld [vmem:[%s3142_s5 + $0x2c0] sm:$0xf]  ;;  %v2759_v30 = vld [vmem:[%s3142_s5 + $0x2c8] sm:$0xf0]  ;;  %v1173_v31 = vadd.f32 %v3526_v18, %v3332_v50 }
 0x147   : > { %v2002_v42 = vmin.f32 %v1938_v36, 1.0  ;;  %v1557_v45 = vmax.f32 %v1426_v22, -30.0  ;;  %v3517_v46 = vadd.f32 %v1336_v41, %v1168_v35  ;;  %v2727_v36 = vld [vmem:[%s3142_s5 + $0x1cc] sm:$0xf]  ;;  %v2412_v22 = vld [vmem:[%s3142_s5 + $0x1d4] sm:$0xf0]  ;;  %v2411_v40 = vor.u32 %v2728_v25, %v2410_v24 }
 0x148   : > { %v3519_v51 = vpop.f32.mrf.mxu2  ;;  %v1090_v62 = vpop.f32.mrf.mxu0 }
 0x149   : > { %2067 = vst.msk [vmem:[%s3305_s20 + $0x80] sm:$0xff] %vm2050_vm1, %v2002_v42  ;;  %v1621_v29 = vsub.f32 0.0, %v1557_v45  ;;  %v1091_v56 = vadd.f32 %v3526_v18, %v1090_v62  ;;  %v1259_v58 = vpop.f32.mrf.mxu1  ;;  %v2539_v45 = vor.u32 %v2759_v30, %v2538_v27  ;;  %v2415_v62 = vor.u32 %v2727_v36, %v2412_v22 }
 0x14a   : > { %v1178_v27 = vadd.f32 %v3526_v18, %v3357_v33 }
 0x14b   : > { %v2883_v21 = vpop.eup %2882  ;;  %v1704_v59 = vmul.f32 1.442695, %v1621_v29  ;;  %v1260_v32 = vadd.f32 %v1259_v58, %v1091_v56  ;;  %1129 = vmatmul.bf16.gmra.mxu0 %v2399_v28  ;;  %2664 = vmatmul.msk.bf16.gmra.mxu3 %vm934_vm0, %v2527_v38 }
 0x14c   : > { %v2885_v60 = vpop.eup %2884  ;;  %v1812_v61 = vadd.f32 1.0, %v2883_v21  ;;  %1298 = vmatmul.bf16.gmra.mxu1 %v2403_v4 }
 0x14d   : > { %v1939_v0 = vmax.f32 %v2885_v60, 0.0  ;;  %2886 = vpow2.f32 %v1704_v59  ;;  %v1429_v1 = vadd.f32 %v3489_v52, %v1260_v32  ;;  %v1176_v60 = vadd.f32 %v3526_v18, %v3340_v5 }
 0x14e   : > { %2888 = vrcp.f32 %v1812_v61  ;;  %v1339_v43 = vpop.f32.mrf.mxu3 }
 0x14f   : > { %v2003_v7 = vmin.f32 %v1939_v0, 1.0  ;;  %v1558_v8 = vmax.f32 %v1429_v1, -30.0  ;;  %v3535_v13 = vadd.f32 %v1339_v43, %v1171_v63  ;;  %v2442_v1 = vld [vmem:[%s3142_s5 + $0x200] sm:$0xf]  ;;  %v2735_v43 = vld [vmem:[%s3142_s5 + $0x208] sm:$0xf0] }
 0x150   : > { %v3537_v14 = vpop.f32.mrf.mxu2  ;;  %v1092_v19 = vpop.f32.mrf.mxu0 }
 0x151   : > { %2068 = vst.msk [vmem:[%s3305_s20 + $0x88] sm:$0xff] %vm2050_vm1, %v2003_v7  ;;  %v1622_v23 = vsub.f32 0.0, %v1558_v8  ;;  %v1093_v52 = vadd.f32 %v3526_v18, %v1092_v19  ;;  %v1261_v44 = vpop.f32.mrf.mxu1 }
 0x153   : > { %v2887_v10 = vpop.eup %2886  ;;  %v1706_v55 = vmul.f32 1.442695, %v1622_v23  ;;  %v1262_v20 = vadd.f32 %v1261_v44, %v1093_v52  ;;  %v2443_v52 = vor.u32 %v2735_v43, %v2442_v1 }
 0x154   : > { %v2889_v12 = vpop.eup %2888  ;;  %v1813_v11 = vadd.f32 1.0, %v2887_v10 }
 0x155   : > { %v1940_v34 = vmax.f32 %v2889_v12, 0.0  ;;  %2890 = vpow2.f32 %v1706_v55  ;;  %v1431_v35 = vadd.f32 %v3502_v48, %v1262_v20  ;;  %2656 = vmatmul.msk.bf16.gmra.mxu2 %vm934_vm0, %v2431_v54  ;;  %v2422_v55 = vld [vmem:[%s3142_s5 + $0x1e0] sm:$0xf]  ;;  %v2731_v20 = vld [vmem:[%s3142_s5 + $0x1e8] sm:$0xf0] }
 0x156   : > { %2892 = vrcp.f32 %v1813_v11  ;;  %v1341_v37 = vpop.f32.mrf.mxu3  ;;  %v2550_v12 = vld [vmem:[%s3142_s5 + $0x2d8] sm:$0xf]  ;;  %v2762_v11 = vld [vmem:[%s3142_s5 + $0x2e0] sm:$0xf0]  ;;  %v2423_v22 = vor.u32 %v2731_v20, %v2422_v55 }
 0x157   : > { %v2004_v41 = vmin.f32 %v1940_v34, 1.0  ;;  %v1559_v28 = vmax.f32 %v1431_v35, -30.0  ;;  %v3552_v42 = vadd.f32 %v1341_v37, %v1173_v31  ;;  %v2730_v34 = vld [vmem:[%s3142_s5 + $0x1e4] sm:$0xf]  ;;  %v2424_v35 = vld [vmem:[%s3142_s5 + $0x1ec] sm:$0xf0] }
 0x158   : > { %v3554_v38 = vpop.f32.mrf.mxu2  ;;  %v1095_v50 = vpop.f32.mrf.mxu0 }
 0x159   : > { %2069 = vst.msk [vmem:[%s3305_s20 + $0x90] sm:$0xff] %vm2050_vm1, %v2004_v41  ;;  %v1623_v4 = vsub.f32 0.0, %v1559_v28  ;;  %v1096_v48 = vadd.f32 %v3526_v18, %v1095_v50  ;;  %v1264_v29 = vpop.f32.mrf.mxu1  ;;  %v2551_v28 = vor.u32 %v2762_v11, %v2550_v12  ;;  %v2427_v50 = vor.u32 %v2730_v34, %v2424_v35 }
 0x15a   : > { %v1183_v12 = vadd.f32 %v3526_v18, %v3382_v17 }
 0x15b   : > { %v2891_v56 = vpop.eup %2890  ;;  %v1708_v58 = vmul.f32 1.442695, %v1623_v4  ;;  %v1265_v21 = vadd.f32 %v1264_v29, %v1096_v48  ;;  %1134 = vmatmul.bf16.gmra.mxu0 %v2411_v40  ;;  %2665 = vmatmul.msk.bf16.gmra.mxu3 %vm934_vm0, %v2539_v45 }
 0x15c   : > { %v2893_v59 = vpop.eup %2892  ;;  %v1814_v32 = vadd.f32 1.0, %v2891_v56  ;;  %1303 = vmatmul.bf16.gmra.mxu1 %v2415_v62 }
 0x15d   : > { %v1941_v61 = vmax.f32 %v2893_v59, 0.0  ;;  %2894 = vpow2.f32 %v1708_v58  ;;  %v1434_v63 = vadd.f32 %v3519_v51, %v1265_v21  ;;  %v1181_v59 = vadd.f32 %v3526_v18, %v3365_v53 }
 0x15e   : > { %2896 = vrcp.f32 %v1814_v32  ;;  %v1344_v0 = vpop.f32.mrf.mxu3 }
 0x15f   : > { %v2005_v3 = vmin.f32 %v1941_v61, 1.0  ;;  %v1560_v6 = vmax.f32 %v1434_v63, -30.0  ;;  %v3565_v7 = vadd.f32 %v1344_v0, %v1176_v60  ;;  %v2454_v63 = vld [vmem:[%s3142_s5 + $0x218] sm:$0xf]  ;;  %v2738_v0 = vld [vmem:[%s3142_s5 + $0x220] sm:$0xf0] }
 0x160   : > { %v3567_v8 = vpop.f32.mrf.mxu2  ;;  %v1097_v19 = vpop.f32.mrf.mxu0 }
 0x161   : > { %2070 = vst.msk [vmem:[%s3305_s20 + $0x98] sm:$0xff] %vm2050_vm1, %v2005_v3  ;;  %v1624_v5 = vsub.f32 0.0, %v1560_v6  ;;  %v1098_v51 = vadd.f32 %v3526_v18, %v1097_v19  ;;  %v1266_v23 = vpop.f32.mrf.mxu1 }
 0x163   : > { %v2895_v44 = vpop.eup %2894  ;;  %v1710_v54 = vmul.f32 1.442695, %v1624_v5  ;;  %v1267_v10 = vadd.f32 %v1266_v23, %v1098_v51  ;;  %v2455_v51 = vor.u32 %v2738_v0, %v2454_v63 }
 0x164   : > { %v2897_v24 = vpop.eup %2896  ;;  %v1815_v25 = vadd.f32 1.0, %v2895_v44 }
 0x165   : > { %v1942_v30 = vmax.f32 %v2897_v24, 0.0  ;;  %2898 = vpow2.f32 %v1710_v54  ;;  %v1436_v31 = vadd.f32 %v3537_v14, %v1267_v10  ;;  %2657 = vmatmul.msk.bf16.gmra.mxu2 %vm934_vm0, %v2443_v52  ;;  %v2434_v54 = vld [vmem:[%s3142_s5 + $0x1f8] sm:$0xf]  ;;  %v2734_v10 = vld [vmem:[%s3142_s5 + $0x200] sm:$0xf0] }
 0x166   : > { %2900 = vrcp.f32 %v1815_v25  ;;  %v1346_v36 = vpop.f32.mrf.mxu3  ;;  %v2562_v24 = vld [vmem:[%s3142_s5 + $0x2f0] sm:$0xf]  ;;  %v2765_v25 = vld [vmem:[%s3142_s5 + $0x2f8] sm:$0xf0]  ;;  %v2435_v35 = vor.u32 %v2734_v10, %v2434_v54 }
 0x167   : > { %v2006_v37 = vmin.f32 %v1942_v30, 1.0  ;;  %v1561_v40 = vmax.f32 %v1436_v31, -30.0  ;;  %v3582_v41 = vadd.f32 %v1346_v36, %v1178_v27  ;;  %v2733_v30 = vld [vmem:[%s3142_s5 + $0x1fc] sm:$0xf]  ;;  %v2436_v31 = vld [vmem:[%s3142_s5 + $0x204] sm:$0xf0] }
 0x168   : > { %v3584_v45 = vpop.f32.mrf.mxu2  ;;  %v1100_v33 = vpop.f32.mrf.mxu0  ;;  %v2446_v54 = vld [vmem:[%s3142_s5 + $0x210] sm:$0xf]  ;;  %v2737_v10 = vld [vmem:[%s3142_s5 + $0x218] sm:$0xf0] }
 0x169   : > { %2071 = vst.msk [vmem:[%s3305_s20 + $0xa0] sm:$0xff] %vm2050_vm1, %v2006_v37  ;;  %v1625_v62 = vsub.f32 0.0, %v1561_v40  ;;  %v1101_v14 = vadd.f32 %v3526_v18, %v1100_v33  ;;  %v1269_v4 = vpop.f32.mrf.mxu1  ;;  %v2563_v40 = vor.u32 %v2765_v25, %v2562_v24  ;;  %v2439_v33 = vor.u32 %v2733_v30, %v2436_v31  ;;  %v2736_v25 = vld [vmem:[%s3142_s5 + $0x214] sm:$0xf] }
 0x16b   : > { %v2899_v48 = vpop.eup %2898  ;;  %v1712_v29 = vmul.f32 1.442695, %v1625_v62  ;;  %v1270_v56 = vadd.f32 %v1269_v4, %v1101_v14  ;;  %1139 = vmatmul.bf16.gmra.mxu0 %v2423_v22  ;;  %2666 = vmatmul.msk.bf16.gmra.mxu3 %vm934_vm0, %v2551_v28 }
 0x16c   : > { %v2901_v58 = vpop.eup %2900  ;;  %v1816_v21 = vadd.f32 1.0, %v2899_v48  ;;  %1308 = vmatmul.bf16.gmra.mxu1 %v2427_v50 }
 0x16d   : > { %v1943_v32 = vmax.f32 %v2901_v58, 0.0  ;;  %2902 = vpow2.f32 %v1712_v29  ;;  %v1439_v60 = vadd.f32 %v3554_v38, %v1270_v56  ;;  %v1186_v58 = vadd.f32 %v3526_v18, %v3390_v39 }
 0x16e   : > { %2904 = vrcp.f32 %v1816_v21  ;;  %v1349_v61 = vpop.f32.mrf.mxu3 }
 0x16f   : > { %v2007_v1 = vmin.f32 %v1943_v32, 1.0  ;;  %v1562_v43 = vmax.f32 %v1439_v60, -30.0  ;;  %v3595_v3 = vadd.f32 %v1349_v61, %v1181_v59  ;;  %v2466_v60 = vld [vmem:[%s3142_s5 + $0x230] sm:$0xf]  ;;  %v2741_v61 = vld [vmem:[%s3142_s5 + $0x238] sm:$0xf0] }
 0x170   : > { %v3597_v6 = vpop.f32.mrf.mxu2  ;;  %v1102_v19 = vpop.f32.mrf.mxu0 }
 0x171   : > { %2072 = vst.msk [vmem:[%s3305_s20 + $0xa8] sm:$0xff] %vm2050_vm1, %v2007_v1  ;;  %v1626_v53 = vsub.f32 0.0, %v1562_v43  ;;  %v1103_v38 = vadd.f32 %v3526_v18, %v1102_v19  ;;  %v1271_v5 = vpop.f32.mrf.mxu1 }
 0x173   : > { %v2903_v23 = vpop.eup %2902  ;;  %v1714_v52 = vmul.f32 1.442695, %v1626_v53  ;;  %v1272_v44 = vadd.f32 %v1271_v5, %v1103_v38  ;;  %v2467_v38 = vor.u32 %v2741_v61, %v2466_v60 }
 0x174   : > { %v2905_v55 = vpop.eup %2904  ;;  %v1817_v20 = vadd.f32 1.0, %v2903_v23 }
 0x175   : > { %v1944_v11 = vmax.f32 %v2905_v55, 0.0  ;;  %2906 = vpow2.f32 %v1714_v52  ;;  %v1441_v27 = vadd.f32 %v3567_v8, %v1272_v44  ;;  %2658 = vmatmul.msk.bf16.gmra.mxu2 %vm934_vm0, %v2455_v51  ;;  %v1188_v55 = vadd.f32 %v3526_v18, %v3407_v2 }
 0x176   : > { %2908 = vrcp.f32 %v1817_v20  ;;  %v1351_v34 = vpop.f32.mrf.mxu3 }
 0x177   : > { %v2008_v36 = vmin.f32 %v1944_v11, 1.0  ;;  %v1563_v22 = vmax.f32 %v1441_v27, -30.0  ;;  %v3612_v37 = vadd.f32 %v1351_v34, %v1183_v12  ;;  %v2448_v12 = vld [vmem:[%s3142_s5 + $0x21c] sm:$0xf0]  ;;  %v2447_v34 = vor.u32 %v2737_v10, %v2446_v54  ;;  %v2739_v54 = vld [vmem:[%s3142_s5 + $0x22c] sm:$0xf] }
 0x178   : > { %v3614_v28 = vpop.f32.mrf.mxu2  ;;  %v1105_v17 = vpop.f32.mrf.mxu0  ;;  %v2451_v2 = vor.u32 %v2736_v25, %v2448_v12  ;;  %v2460_v10 = vld [vmem:[%s3142_s5 + $0x234] sm:$0xf0] }
 0x179   : > { %2073 = vst.msk [vmem:[%s3305_s20 + $0xb0] sm:$0xff] %vm2050_vm1, %v2008_v36  ;;  %v1627_v50 = vsub.f32 0.0, %v1563_v22  ;;  %v1106_v8 = vadd.f32 %v3526_v18, %v1105_v17  ;;  %v1274_v62 = vpop.f32.mrf.mxu1 }
 0x17b   : > { %v2907_v14 = vpop.eup %2906  ;;  %v1716_v4 = vmul.f32 1.442695, %v1627_v50  ;;  %v1275_v48 = vadd.f32 %v1274_v62, %v1106_v8  ;;  %1144 = vmatmul.bf16.gmra.mxu0 %v2435_v35  ;;  %2667 = vmatmul.msk.bf16.gmra.mxu3 %vm934_vm0, %v2563_v40 }
 0x17c   : > { %v2909_v29 = vpop.eup %2908  ;;  %v1818_v56 = vadd.f32 1.0, %v2907_v14  ;;  %1313 = vmatmul.bf16.gmra.mxu1 %v2439_v33  ;;  %v1191_v14 = vadd.f32 %v3526_v18, %v3415_v26 }
 0x17d   : > { %v1945_v21 = vmax.f32 %v2909_v29, 0.0  ;;  %2910 = vpow2.f32 %v1716_v4  ;;  %v1444_v59 = vadd.f32 %v3584_v45, %v1275_v48 }
 0x17e   : > { %2912 = vrcp.f32 %v1818_v56  ;;  %v1354_v32 = vpop.f32.mrf.mxu3  ;;  %v2478_v56 = vld [vmem:[%s3142_s5 + $0x248] sm:$0xf] }
 0x17f   : > { %v2009_v63 = vmin.f32 %v1945_v21, 1.0  ;;  %v1564_v0 = vmax.f32 %v1444_v59, -30.0  ;;  %v3625_v1 = vadd.f32 %v1354_v32, %v1186_v58  ;;  %v2744_v58 = vld [vmem:[%s3142_s5 + $0x250] sm:$0xf0] }
 0x180   : > { %v3627_v43 = vpop.f32.mrf.mxu2  ;;  %v1107_v19 = vpop.f32.mrf.mxu0 }
 0x181   : > { %2074 = vst.msk [vmem:[%s3305_s20 + $0xb8] sm:$0xff] %vm2050_vm1, %v2009_v63  ;;  %v1628_v39 = vsub.f32 0.0, %v1564_v0  ;;  %v1108_v53 = vadd.f32 %v3526_v18, %v1107_v19  ;;  %v1276_v45 = vpop.f32.mrf.mxu1  ;;  %v2479_v0 = vor.u32 %v2744_v58, %v2478_v56 }
 0x183   : > { %v2911_v5 = vpop.eup %2910  ;;  %v1718_v51 = vmul.f32 1.442695, %v1628_v39  ;;  %v1277_v23 = vadd.f32 %v1276_v45, %v1108_v53 }
 0x184   : > { %v2913_v52 = vpop.eup %2912  ;;  %v1819_v44 = vadd.f32 1.0, %v2911_v5  ;;  %v2458_v5 = vld [vmem:[%s3142_s5 + $0x228] sm:$0xf] }
 0x185   : > { %v1946_v20 = vmax.f32 %v2913_v52, 0.0  ;;  %2914 = vpow2.f32 %v1718_v51  ;;  %v1446_v24 = vadd.f32 %v3597_v6, %v1277_v23  ;;  %2659 = vmatmul.msk.bf16.gmra.mxu2 %vm934_vm0, %v2467_v38  ;;  %v2740_v51 = vld [vmem:[%s3142_s5 + $0x230] sm:$0xf0]  ;;  %v1193_v23 = vadd.f32 %v3526_v18, %v3432_v57 }
 0x186   : > { %2916 = vrcp.f32 %v1819_v44  ;;  %v1356_v11 = vpop.f32.mrf.mxu3  ;;  %v2459_v12 = vor.u32 %v2740_v51, %v2458_v5 }
 0x187   : > { %v2010_v27 = vmin.f32 %v1946_v20, 1.0  ;;  %v1565_v30 = vmax.f32 %v1446_v24, -30.0  ;;  %v3640_v31 = vadd.f32 %v1356_v11, %v1188_v55 }
 0x188   : > { %v3642_v35 = vpop.f32.mrf.mxu2  ;;  %v1110_v36 = vpop.f32.mrf.mxu0 }
 0x189   : > { %2075 = vst.msk [vmem:[%s3305_s20 + $0xc0] sm:$0xff] %vm2050_vm1, %v2010_v27  ;;  %v1629_v22 = vsub.f32 0.0, %v1565_v30  ;;  %v1111_v6 = vadd.f32 %v3526_v18, %v1110_v36  ;;  %v1279_v40 = vpop.f32.mrf.mxu1  ;;  %v2463_v30 = vor.u32 %v2739_v54, %v2460_v10 }
 0x18b   : > { %v2915_v17 = vpop.eup %2914  ;;  %v1720_v33 = vmul.f32 1.442695, %v1629_v22  ;;  %v1280_v50 = vadd.f32 %v1279_v40, %v1111_v6  ;;  %1149 = vmatmul.bf16.gmra.mxu0 %v2447_v34 }
 0x18c   : > { %v2917_v8 = vpop.eup %2916  ;;  %v1820_v62 = vadd.f32 1.0, %v2915_v17  ;;  %1318 = vmatmul.bf16.gmra.mxu1 %v2451_v2  ;;  %v1196_v17 = vadd.f32 %v3526_v18, %v3440_v9 }
 0x18d   : > { %v1947_v4 = vmax.f32 %v2917_v8, 0.0  ;;  %2918 = vpow2.f32 %v1720_v33  ;;  %v1449_v48 = vadd.f32 %v3614_v28, %v1280_v50 }
 0x18e   : > { %2920 = vrcp.f32 %v1820_v62  ;;  %v1359_v29 = vpop.f32.mrf.mxu3  ;;  %v2490_v62 = vld [vmem:[%s3142_s5 + $0x260] sm:$0xf] }
 0x18f   : > { %v2011_v21 = vmin.f32 %v1947_v4, 1.0  ;;  %v1566_v59 = vmax.f32 %v1449_v48, -30.0  ;;  %v3652_v32 = vadd.f32 %v1359_v29, %v1191_v14  ;;  %v2747_v14 = vld [vmem:[%s3142_s5 + $0x268] sm:$0xf0] }
 0x190   : > { %v3654_v60 = vpop.f32.mrf.mxu2  ;;  %v1112_v61 = vpop.f32.mrf.mxu0 }
 0x191   : > { %2076 = vst.msk [vmem:[%s3305_s20 + $0xc8] sm:$0xff] %vm2050_vm1, %v2011_v21  ;;  %v1630_v26 = vsub.f32 0.0, %v1566_v59  ;;  %v1113_v63 = vadd.f32 %v3526_v18, %v1112_v61  ;;  %v1281_v28 = vpop.f32.mrf.mxu1  ;;  %v2491_v61 = vor.u32 %v2747_v14, %v2490_v62 }
 0x193   : > { %v2919_v19 = vpop.eup %2918  ;;  %v1722_v39 = vmul.f32 1.442695, %v1630_v26  ;;  %v1282_v53 = vadd.f32 %v1281_v28, %v1113_v63 }
 0x194   : > { %v2921_v45 = vpop.eup %2920  ;;  %v1821_v38 = vadd.f32 1.0, %v2919_v19  ;;  %v1198_v19 = vadd.f32 %v3526_v18, %v3457_v47 }
 0x195   : > { %v1948_v52 = vmax.f32 %v2921_v45, 0.0  ;;  %2922 = vpow2.f32 %v1722_v39  ;;  %v1451_v44 = vadd.f32 %v3627_v43, %v1282_v53  ;;  %2660 = vmatmul.msk.bf16.gmra.mxu2 %vm934_vm0, %v2479_v0 }
 0x196   : > { %2924 = vrcp.f32 %v1821_v38  ;;  %v1361_v55 = vpop.f32.mrf.mxu3 }
 0x197   : > { %v2012_v20 = vmin.f32 %v1948_v52, 1.0  ;;  %v1567_v24 = vmax.f32 %v1451_v44, -30.0  ;;  %v3667_v25 = vadd.f32 %v1361_v55, %v1193_v23 }
 0x198   : > { %v1458_v11 = vpop.f32.mrf.mxu2  ;;  %v1115_v27 = vpop.f32.mrf.mxu0 }
 0x199   : > { %2077 = vst.msk [vmem:[%s3305_s20 + $0xd0] sm:$0xff] %vm2050_vm1, %v2012_v20  ;;  %v1631_v57 = vsub.f32 0.0, %v1567_v24  ;;  %v1116_v43 = vadd.f32 %v3526_v18, %v1115_v27  ;;  %v1284_v34 = vpop.f32.mrf.mxu1 }
 0x19b   : > { %v2923_v36 = vpop.eup %2922  ;;  %v1724_v2 = vmul.f32 1.442695, %v1631_v57  ;;  %v1285_v22 = vadd.f32 %v1284_v34, %v1116_v43  ;;  %1154 = vmatmul.bf16.gmra.mxu0 %v2459_v12 }
 0x19c   : > { %v2925_v6 = vpop.eup %2924  ;;  %v1822_v40 = vadd.f32 1.0, %v2923_v36  ;;  %1323 = vmatmul.bf16.gmra.mxu1 %v2463_v30 }
 0x19d   : > { %v1949_v33 = vmax.f32 %v2925_v6, 0.0  ;;  %2926 = vpow2.f32 %v1724_v2  ;;  %v1454_v50 = vadd.f32 %v3642_v35, %v1285_v22 }
 0x19e   : > { %2928 = vrcp.f32 %v1822_v40  ;;  %v1364_v8 = vpop.f32.mrf.mxu3 }
 0x19f   : > { %v2013_v4 = vmin.f32 %v1949_v33, 1.0  ;;  %v1568_v48 = vmax.f32 %v1454_v50, -30.0  ;;  %v3677_v29 = vadd.f32 %v1364_v8, %v1196_v17 }
 0x1a0   : > { %v1460_v56 = vpop.f32.mrf.mxu2  ;;  %v1117_v58 = vpop.f32.mrf.mxu0 }
 0x1a1   : > { %2078 = vst.msk [vmem:[%s3305_s20 + $0xd8] sm:$0xff] %vm2050_vm1, %v2013_v4  ;;  %v1632_v21 = vsub.f32 0.0, %v1568_v48  ;;  %v1118_v59 = vadd.f32 %v3526_v18, %v1117_v58  ;;  %v1286_v9 = vpop.f32.mrf.mxu1 }
 0x1a3   : > { %v2927_v26 = vpop.eup %2926  ;;  %v1726_v63 = vmul.f32 1.442695, %v1632_v21  ;;  %v1287_v35 = vadd.f32 %v1286_v9, %v1118_v59 }
 0x1a4   : > { %v2929_v28 = vpop.eup %2928  ;;  %v1823_v0 = vadd.f32 1.0, %v2927_v26 }
 0x1a5   : > { %v1950_v39 = vmax.f32 %v2929_v28, 0.0  ;;  %2930 = vpow2.f32 %v1726_v63  ;;  %v1456_v53 = vadd.f32 %v3654_v60, %v1287_v35  ;;  %2661 = vmatmul.msk.bf16.gmra.mxu2 %vm934_vm0, %v2491_v61 }
 0x1a6   : > { %2932 = vrcp.f32 %v1823_v0  ;;  %v1366_v45 = vpop.f32.mrf.mxu3 }
 0x1a7   : > { %v2014_v38 = vmin.f32 %v1950_v39, 1.0  ;;  %v1569_v5 = vmax.f32 %v1456_v53, -30.0  ;;  %v3686_v51 = vadd.f32 %v1366_v45, %v1198_v19 }
 0x1a8   : > { %v1463_v23 = vpop.f32.mrf.mxu2  ;;  %v1120_v52 = vpop.f32.mrf.mxu0 }
 0x1a9   : > { %2079 = vst.msk [vmem:[%s3305_s20 + $0xe0] sm:$0xff] %vm2050_vm1, %v2014_v38  ;;  %v1633_v44 = vsub.f32 0.0, %v1569_v5  ;;  %v1121_v54 = vadd.f32 %v3526_v18, %v1120_v52  ;;  %v1289_v47 = vpop.f32.mrf.mxu1 }
 0x1ab   : > { %v2931_v10 = vpop.eup %2930  ;;  %v1728_v55 = vmul.f32 1.442695, %v1633_v44  ;;  %v1290_v60 = vadd.f32 %v1289_v47, %v1121_v54 }
 0x1ac   : > { %v2933_v20 = vpop.eup %2932  ;;  %v1824_v24 = vadd.f32 1.0, %v2931_v10 }
 0x1ad   : > { %v1951_v12 = vmax.f32 %v2933_v20, 0.0  ;;  %2934 = vpow2.f32 %v1728_v55  ;;  %v1459_v27 = vadd.f32 %v1458_v11, %v1290_v60 }
 0x1ae   : > { %2936 = vrcp.f32 %v1824_v24  ;;  %v1508_v30 = vpop.f32.mrf.mxu3 }
 0x1af   : > { %v2015_v57 = vmin.f32 %v1951_v12, 1.0  ;;  %v1570_v43 = vmax.f32 %v1459_v27, -30.0  ;;  %v1509_v34 = vadd.f32 %v1508_v30, %v3535_v13 }
 0x1b0   : > { %v3692_v36 = vpop.f32.mrf.mxu2  ;;  %v1122_v2 = vpop.f32.mrf.mxu0 }
 0x1b1   : > { %2080 = vst.msk [vmem:[%s3305_s20 + $0xe8] sm:$0xff] %vm2050_vm1, %v2015_v57  ;;  %v1634_v22 = vsub.f32 0.0, %v1570_v43  ;;  %v1590_v6 = vmax.f32 %v1509_v34, -30.0  ;;  %v1123_v40 = vadd.f32 %v3526_v18, %v1122_v2  ;;  %v1291_v17 = vpop.f32.mrf.mxu1 }
 0x1b3   : > { %v2935_v33 = vpop.eup %2934  ;;  %v1730_v50 = vmul.f32 1.442695, %v1634_v22  ;;  %v1654_v8 = vsub.f32 0.0, %v1590_v6  ;;  %v1292_v11 = vadd.f32 %v1291_v17, %v1123_v40 }
 0x1b4   : > { %v2937_v62 = vpop.eup %2936  ;;  %v1825_v14 = vadd.f32 1.0, %v2935_v33 }
 0x1b5   : > { %v1952_v4 = vmax.f32 %v2937_v62, 0.0  ;;  %2938 = vpow2.f32 %v1730_v50  ;;  %v1770_v13 = vmul.f32 1.442695, %v1654_v8  ;;  %v1461_v48 = vadd.f32 %v1460_v56, %v1292_v11 }
 0x1b6   : > { %2940 = vrcp.f32 %v1825_v14  ;;  %v1510_v58 = vpop.f32.mrf.mxu3 }
 0x1b7   : > { %v2016_v21 = vmin.f32 %v1952_v4, 1.0  ;;  %2942 = vpow2.f32 %v1770_v13  ;;  %v1571_v59 = vmax.f32 %v1461_v48, -30.0  ;;  %v1511_v9 = vadd.f32 %v1510_v58, %v3552_v42 }
 0x1b8   : > { %v3698_v61 = vpop.f32.mrf.mxu2  ;;  %v1125_v26 = vpop.f32.mrf.mxu0 }
 0x1b9   : > { %2081 = vst.msk [vmem:[%s3305_s20 + $0xf0] sm:$0xff] %vm2050_vm1, %v2016_v21  ;;  %v1635_v63 = vsub.f32 0.0, %v1571_v59  ;;  %v1591_v35 = vmax.f32 %v1511_v9, -30.0  ;;  %v1126_v28 = vadd.f32 %v3526_v18, %v1125_v26  ;;  %v1294_v0 = vpop.f32.mrf.mxu1 }
 0x1bb   : > { %v2939_v19 = vpop.eup %2938  ;;  %v1732_v39 = vmul.f32 1.442695, %v1635_v63  ;;  %v1655_v56 = vsub.f32 0.0, %v1591_v35  ;;  %v1295_v53 = vadd.f32 %v1294_v0, %v1126_v28 }
 0x1bc   : > { %v2941_v45 = vpop.eup %2940  ;;  %v1826_v38 = vadd.f32 1.0, %v2939_v19 }
 0x1bd   : > { %v2943_v5 = vpop.eup %2942  ;;  %v1953_v52 = vmax.f32 %v2941_v45, 0.0  ;;  %2944 = vpow2.f32 %v1732_v39  ;;  %v1772_v42 = vmul.f32 1.442695, %v1655_v56  ;;  %v1464_v44 = vadd.f32 %v1463_v23, %v1295_v53 }
 0x1be   : > { %2946 = vrcp.f32 %v1826_v38  ;;  %v1846_v54 = vadd.f32 1.0, %v2943_v5  ;;  %v1513_v47 = vpop.f32.mrf.mxu3 }
 0x1bf   : > { %v2017_v10 = vmin.f32 %v1953_v52, 1.0  ;;  %2948 = vpow2.f32 %v1772_v42  ;;  %v1572_v55 = vmax.f32 %v1464_v44, -30.0  ;;  %v1514_v60 = vadd.f32 %v1513_v47, %v3565_v7 }
 0x1c0   : > { %2950 = vrcp.f32 %v1846_v54  ;;  %v3704_v20 = vpop.f32.mrf.mxu2  ;;  %v1127_v24 = vpop.f32.mrf.mxu0 }
 0x1c1   : > { %2082 = vst.msk [vmem:[%s3305_s20 + $0xf8] sm:$0xff] %vm2050_vm1, %v2017_v10  ;;  %v1636_v12 = vsub.f32 0.0, %v1572_v55  ;;  %v1592_v27 = vmax.f32 %v1514_v60, -30.0  ;;  %v1128_v30 = vadd.f32 %v3526_v18, %v1127_v24  ;;  %v1296_v57 = vpop.f32.mrf.mxu1 }
 0x1c3   : > { %v2945_v23 = vpop.eup %2944  ;;  %v1734_v43 = vmul.f32 1.442695, %v1636_v12  ;;  %v1656_v34 = vsub.f32 0.0, %v1592_v27  ;;  %v1297_v2 = vadd.f32 %v1296_v57, %v1128_v30 }
 0x1c4   : > { %v2947_v22 = vpop.eup %2946  ;;  %v1827_v6 = vadd.f32 1.0, %v2945_v23 }
 0x1c5   : > { %v2949_v40 = vpop.eup %2948  ;;  %v1954_v17 = vmax.f32 %v2947_v22, 0.0  ;;  %2952 = vpow2.f32 %v1734_v43  ;;  %v1774_v7 = vmul.f32 1.442695, %v1656_v34  ;;  %v1466_v33 = vadd.f32 %v3692_v36, %v1297_v2 }
 0x1c6   : > { %v2951_v50 = vpop.eup %2950  ;;  %2954 = vrcp.f32 %v1827_v6  ;;  %v1847_v8 = vadd.f32 1.0, %v2949_v40  ;;  %v1515_v11 = vpop.f32.mrf.mxu3 }
 0x1c7   : > { %v2018_v62 = vmin.f32 %v1954_v17, 1.0  ;;  %v1974_v14 = vmax.f32 %v2951_v50, 0.0  ;;  %2956 = vpow2.f32 %v1774_v7  ;;  %v1573_v4 = vmax.f32 %v1466_v33, -30.0 }
 0x1c8   : > { %2958 = vrcp.f32 %v1847_v8  ;;  %v1516_v13 = vadd.f32 %v1515_v11, %v3582_v41  ;;  %v3711_v48 = vpop.f32.mrf.mxu2  ;;  %v1130_v58 = vpop.f32.mrf.mxu0 }
 0x1c9   : > { %2083 = vst.msk [vmem:[%s3305_s20 + $0x100] sm:$0xff] %vm2050_vm1, %v2018_v62  ;;  %v2038_v21 = vmin.f32 %v1974_v14, 1.0  ;;  %v1637_v59 = vsub.f32 0.0, %v1573_v4  ;;  %v1131_v36 = vadd.f32 %v3526_v18, %v1130_v58  ;;  %v1299_v9 = vpop.f32.mrf.mxu1 }
 0x1ca   : > { %v1593_v26 = vmax.f32 %v1516_v13, -30.0 }
 0x1cb   : > { %v2953_v63 = vpop.eup %2952  ;;  %2103 = vst.msk [vmem:[%s3305_s20 + $0x1a0] sm:$0xff] %vm2050_vm1, %v2038_v21  ;;  %v1736_v35 = vmul.f32 1.442695, %v1637_v59  ;;  %v1300_v28 = vadd.f32 %v1299_v9, %v1131_v36 }
 0x1cc   : > { %v2955_v0 = vpop.eup %2954  ;;  %v1828_v19 = vadd.f32 1.0, %v2953_v63  ;;  %v1657_v39 = vsub.f32 0.0, %v1593_v26 }
 0x1cd   : > { %v2957_v41 = vpop.eup %2956  ;;  %v1955_v56 = vmax.f32 %v2955_v0, 0.0  ;;  %2960 = vpow2.f32 %v1736_v35  ;;  %v1469_v53 = vadd.f32 %v3698_v61, %v1300_v28 }
 0x1ce   : > { %v2959_v45 = vpop.eup %2958  ;;  %2962 = vrcp.f32 %v1828_v19  ;;  %v1848_v38 = vadd.f32 1.0, %v2957_v41  ;;  %v1776_v5 = vmul.f32 1.442695, %v1657_v39  ;;  %v1518_v52 = vpop.f32.mrf.mxu3 }
 0x1cf   : > { %v2019_v42 = vmin.f32 %v1955_v56, 1.0  ;;  %v1975_v44 = vmax.f32 %v2959_v45, 0.0  ;;  %v1574_v54 = vmax.f32 %v1469_v53, -30.0  ;;  %v1519_v47 = vadd.f32 %v1518_v52, %v3595_v3 }
 0x1d0   : > { %2964 = vrcp.f32 %v1848_v38  ;;  %v3720_v10 = vpop.f32.mrf.mxu2  ;;  %v1132_v55 = vpop.f32.mrf.mxu0 }
 0x1d1   : > { %2084 = vst.msk [vmem:[%s3305_s20 + $0x108] sm:$0xff] %vm2050_vm1, %v2019_v42  ;;  %v2039_v60 = vmin.f32 %v1975_v44, 1.0  ;;  %2966 = vpow2.f32 %v1776_v5  ;;  %v1638_v61 = vsub.f32 0.0, %v1574_v54  ;;  %v1594_v24 = vmax.f32 %v1519_v47, -30.0  ;;  %v1301_v12 = vpop.f32.mrf.mxu1 }
 0x1d2   : > { %v1133_v27 = vadd.f32 %v3526_v18, %v1132_v55 }
 0x1d3   : > { %v2961_v30 = vpop.eup %2960  ;;  %2104 = vst.msk [vmem:[%s3305_s20 + $0x1a8] sm:$0xff] %vm2050_vm1, %v2039_v60  ;;  %v1738_v57 = vmul.f32 1.442695, %v1638_v61  ;;  %v1658_v23 = vsub.f32 0.0, %v1594_v24 }
 0x1d4   : > { %v2963_v43 = vpop.eup %2962  ;;  %v1829_v3 = vadd.f32 1.0, %v2961_v30  ;;  %v1302_v34 = vadd.f32 %v1301_v12, %v1133_v27 }
 0x1d5   : > { %v1956_v2 = vmax.f32 %v2963_v43, 0.0  ;;  %2968 = vpow2.f32 %v1738_v57  ;;  %v1778_v22 = vmul.f32 1.442695, %v1658_v23 }
 0x1d6   : > { %v2965_v6 = vpop.eup %2964  ;;  %2970 = vrcp.f32 %v1829_v3  ;;  %v1471_v40 = vadd.f32 %v3704_v20, %v1302_v34  ;;  %v1520_v17 = vpop.f32.mrf.mxu3 }
 0x1d7   : > { %v2967_v7 = vpop.eup %2966  ;;  %v2020_v33 = vmin.f32 %v1956_v2, 1.0  ;;  %v1976_v50 = vmax.f32 %v2965_v6, 0.0  ;;  %2972 = vpow2.f32 %v1778_v22  ;;  %v1521_v8 = vadd.f32 %v1520_v17, %v3612_v37 }
 0x1d8   : > { %v1849_v11 = vadd.f32 1.0, %v2967_v7  ;;  %v1575_v62 = vmax.f32 %v1471_v40, -30.0  ;;  %v3729_v14 = vpop.f32.mrf.mxu2  ;;  %v1135_v4 = vpop.f32.mrf.mxu0 }
 0x1d9   : > { %2085 = vst.msk [vmem:[%s3305_s20 + $0x110] sm:$0xff] %vm2050_vm1, %v2020_v33  ;;  %v2040_v13 = vmin.f32 %v1976_v50, 1.0  ;;  %v1595_v58 = vmax.f32 %v1521_v8, -30.0  ;;  %v1136_v21 = vadd.f32 %v3526_v18, %v1135_v4  ;;  %v1304_v20 = vpop.f32.mrf.mxu1 }
 0x1da   : > { %2974 = vrcp.f32 %v1849_v11  ;;  %v1639_v59 = vsub.f32 0.0, %v1575_v62 }
 0x1db   : > { %v2969_v36 = vpop.eup %2968  ;;  %2105 = vst.msk [vmem:[%s3305_s20 + $0x1b0] sm:$0xff] %vm2050_vm1, %v2040_v13  ;;  %v1659_v9 = vsub.f32 0.0, %v1595_v58  ;;  %v1305_v26 = vadd.f32 %v1304_v20, %v1136_v21 }
 0x1dc   : > { %v2971_v37 = vpop.eup %2970  ;;  %v1830_v63 = vadd.f32 1.0, %v2969_v36  ;;  %v1740_v35 = vmul.f32 1.442695, %v1639_v59 }
 0x1dd   : > { %v2973_v28 = vpop.eup %2972  ;;  %v1957_v0 = vmax.f32 %v2971_v37, 0.0  ;;  %v1780_v19 = vmul.f32 1.442695, %v1659_v9  ;;  %v1474_v39 = vadd.f32 %v3711_v48, %v1305_v26 }
 0x1de   : > { %2976 = vrcp.f32 %v1830_v63  ;;  %v1850_v41 = vadd.f32 1.0, %v2973_v28  ;;  %v1523_v56 = vpop.f32.mrf.mxu3 }
 0x1df   : > { %v2021_v53 = vmin.f32 %v1957_v0, 1.0  ;;  %2978 = vpow2.f32 %v1740_v35  ;;  %v1576_v45 = vmax.f32 %v1474_v39, -30.0  ;;  %v1524_v38 = vadd.f32 %v1523_v56, %v3625_v1 }
 0x1e0   : > { %v2975_v5 = vpop.eup %2974  ;;  %2980 = vrcp.f32 %v1850_v41  ;;  %v3738_v52 = vpop.f32.mrf.mxu2 }
 0x1e1   : > { %v1137_v42 = vpop.f32.mrf.mxu0  ;;  %2086 = vst.msk [vmem:[%s3305_s20 + $0x118] sm:$0xff] %vm2050_vm1, %v2021_v53  ;;  %v1977_v44 = vmax.f32 %v2975_v5, 0.0  ;;  %2982 = vpow2.f32 %v1780_v19  ;;  %v1640_v54 = vsub.f32 0.0, %v1576_v45  ;;  %v1596_v48 = vmax.f32 %v1524_v38, -30.0  ;;  %v1306_v47 = vpop.f32.mrf.mxu1 }
 0x1e2   : > { %v1138_v55 = vadd.f32 %v3526_v18, %v1137_v42 }
 0x1e3   : > { %v2041_v60 = vmin.f32 %v1977_v44, 1.0  ;;  %v1742_v61 = vmul.f32 1.442695, %v1640_v54  ;;  %v1660_v24 = vsub.f32 0.0, %v1596_v48 }
 0x1e4   : > { %v2977_v12 = vpop.eup %2976  ;;  %v1307_v1 = vadd.f32 %v1306_v47, %v1138_v55 }
 0x1e5   : > { %v2979_v27 = vpop.eup %2978  ;;  %2106 = vst.msk [vmem:[%s3305_s20 + $0x1b8] sm:$0xff] %vm2050_vm1, %v2041_v60  ;;  %v1958_v30 = vmax.f32 %v2977_v12, 0.0  ;;  %2984 = vpow2.f32 %v1742_v61  ;;  %v1782_v57 = vmul.f32 1.442695, %v1660_v24 }
 0x1e6   : > { %v2981_v23 = vpop.eup %2980  ;;  %v1831_v43 = vadd.f32 1.0, %v2979_v27  ;;  %v1476_v3 = vadd.f32 %v3720_v10, %v1307_v1  ;;  %v1525_v34 = vpop.f32.mrf.mxu3  ;;  %v3754_v10 = vld [vmem:[%s3841_s2] ss:$0 sm:$0xff] }
 0x1e7   : > { %v2983_v2 = vpop.eup %2982  ;;  %v2022_v22 = vmin.f32 %v1958_v30, 1.0  ;;  %v1978_v18 = vmax.f32 %v2981_v23, 0.0  ;;  %2986 = vpow2.f32 %v1782_v57  ;;  %v1526_v6 = vadd.f32 %v1525_v34, %v3640_v31 }
 0x1e8   : > { %2988 = vrcp.f32 %v1831_v43  ;;  %v1851_v40 = vadd.f32 1.0, %v2983_v2  ;;  %v1577_v17 = vmax.f32 %v1476_v3, -30.0  ;;  %v3747_v7 = vpop.f32.mrf.mxu2 }
 0x1e9   : > { %v1140_v33 = vpop.f32.mrf.mxu0  ;;  %2087 = vst.msk [vmem:[%s3305_s20 + $0x120] sm:$0xff] %vm2050_vm1, %v2022_v22  ;;  %v2042_v50 = vmin.f32 %v1978_v18, 1.0  ;;  %v1597_v8 = vmax.f32 %v1526_v6, -30.0  ;;  %v1309_v62 = vpop.f32.mrf.mxu1 }
 0x1ea   : > { %v1141_v11 = vadd.f32 %v3754_v10, %v1140_v33  ;;  %2990 = vrcp.f32 %v1851_v40  ;;  %v1641_v31 = vsub.f32 0.0, %v1577_v17 }
 0x1eb   : > { %v2985_v4 = vpop.eup %2984  ;;  %2107 = vst.msk [vmem:[%s3305_s20 + $0x1c0] sm:$0xff] %vm2050_vm1, %v2042_v50  ;;  %v1661_v13 = vsub.f32 0.0, %v1597_v8 }
 0x1ec   : > { %v1310_v58 = vadd.f32 %v1309_v62, %v1141_v11  ;;  %v1832_v21 = vadd.f32 1.0, %v2985_v4  ;;  %v1744_v20 = vmul.f32 1.442695, %v1641_v31 }
 0x1ed   : > { %v2987_v59 = vpop.eup %2986  ;;  %v1784_v36 = vmul.f32 1.442695, %v1661_v13 }
 0x1ee   : > { %v1479_v9 = vadd.f32 %v3729_v14, %v1310_v58  ;;  %v2989_v26 = vpop.eup %2988  ;;  %2992 = vrcp.f32 %v1832_v21  ;;  %v1852_v37 = vadd.f32 1.0, %v2987_v59  ;;  %v1528_v63 = vpop.f32.mrf.mxu3 }
 0x1ef   : > { %v1959_v35 = vmax.f32 %v2989_v26, 0.0  ;;  %2994 = vpow2.f32 %v1744_v20  ;;  %v1529_v0 = vadd.f32 %v1528_v63, %v3652_v32 }
 0x1f0   : > { %v1578_v28 = vmax.f32 %v1479_v9, -30.0  ;;  %v2991_v19 = vpop.eup %2990  ;;  %2996 = vrcp.f32 %v1852_v37  ;;  %v3761_v39 = vpop.f32.mrf.mxu2 }
 0x1f1   : > { %v1142_v41 = vpop.f32.mrf.mxu0  ;;  %v2023_v56 = vmin.f32 %v1959_v35, 1.0  ;;  %v1979_v53 = vmax.f32 %v2991_v19, 0.0  ;;  %2998 = vpow2.f32 %v1784_v36  ;;  %v1311_v45 = vpop.f32.mrf.mxu1  ;;  %v1598_v38 = vmax.f32 %v1529_v0, -30.0 }
 0x1f2   : > { %v1642_v14 = vsub.f32 0.0, %v1578_v28  ;;  %v1143_v5 = vadd.f32 %v3754_v10, %v1142_v41 }
 0x1f3   : > { %2088 = vst.msk [vmem:[%s3305_s20 + $0x128] sm:$0xff] %vm2050_vm1, %v2023_v56  ;;  %v2043_v42 = vmin.f32 %v1979_v53, 1.0  ;;  %v1662_v32 = vsub.f32 0.0, %v1598_v38 }
 0x1f4   : > { %v1746_v44 = vmul.f32 1.442695, %v1642_v14  ;;  %v2993_v54 = vpop.eup %2992  ;;  %v1312_v48 = vadd.f32 %v1311_v45, %v1143_v5 }
 0x1f5   : > { %v2995_v47 = vpop.eup %2994  ;;  %2108 = vst.msk [vmem:[%s3305_s20 + $0x1c8] sm:$0xff] %vm2050_vm1, %v2043_v42  ;;  %v1960_v55 = vmax.f32 %v2993_v54, 0.0  ;;  %v1786_v24 = vmul.f32 1.442695, %v1662_v32 }
 0x1f6   : > { %3000 = vpow2.f32 %v1746_v44  ;;  %v2997_v60 = vpop.eup %2996  ;;  %v1833_v61 = vadd.f32 1.0, %v2995_v47  ;;  %v1481_v12 = vadd.f32 %v3738_v52, %v1312_v48  ;;  %v1530_v1 = vpop.f32.mrf.mxu3 }
 0x1f7   : > { %v2999_v27 = vpop.eup %2998  ;;  %v2024_v30 = vmin.f32 %v1960_v55, 1.0  ;;  %v1980_v57 = vmax.f32 %v2997_v60, 0.0  ;;  %v1531_v23 = vadd.f32 %v1530_v1, %v3667_v25 }
 0x1f8   : > { %3002 = vrcp.f32 %v1833_v61  ;;  %v1853_v43 = vadd.f32 1.0, %v2999_v27  ;;  %v1579_v3 = vmax.f32 %v1481_v12, -30.0  ;;  %v3770_v34 = vpop.f32.mrf.mxu2 }
 0x1f9   : > { %v1145_v2 = vpop.f32.mrf.mxu0  ;;  %2089 = vst.msk [vmem:[%s3305_s20 + $0x130] sm:$0xff] %vm2050_vm1, %v2024_v30  ;;  %v2044_v22 = vmin.f32 %v1980_v57, 1.0  ;;  %3004 = vpow2.f32 %v1786_v24  ;;  %v1599_v18 = vmax.f32 %v1531_v23, -30.0  ;;  %v1314_v6 = vpop.f32.mrf.mxu1 }
 0x1fa   : > { %v1146_v52 = vadd.f32 %v3754_v10, %v1145_v2  ;;  %3006 = vrcp.f32 %v1853_v43  ;;  %v1643_v40 = vsub.f32 0.0, %v1579_v3 }
 0x1fb   : > { %2109 = vst.msk [vmem:[%s3305_s20 + $0x1d0] sm:$0xff] %vm2050_vm1, %v2044_v22  ;;  %v1663_v25 = vsub.f32 0.0, %v1599_v18 }
 0x1fc   : > { %v3001_v17 = vpop.eup %3000  ;;  %v1315_v33 = vadd.f32 %v1314_v6, %v1146_v52  ;;  %v1748_v8 = vmul.f32 1.442695, %v1643_v40 }
 0x1fd   : > { %v1834_v50 = vadd.f32 1.0, %v3001_v17  ;;  %v1788_v11 = vmul.f32 1.442695, %v1663_v25 }
 0x1fe   : > { %v1484_v62 = vadd.f32 %v3747_v7, %v1315_v33  ;;  %v3003_v31 = vpop.eup %3002  ;;  %v1533_v4 = vpop.f32.mrf.mxu3 }
 0x1ff   : > { %3008 = vrcp.f32 %v1834_v50  ;;  %v3005_v13 = vpop.eup %3004  ;;  %v1961_v58 = vmax.f32 %v3003_v31, 0.0  ;;  %v1534_v20 = vadd.f32 %v1533_v4, %v3677_v29 }
 0x200   : > { %3010 = vpow2.f32 %v1748_v8  ;;  %v1580_v21 = vmax.f32 %v1484_v62, -30.0  ;;  %v3007_v59 = vpop.eup %3006  ;;  %v1854_v36 = vadd.f32 1.0, %v3005_v13  ;;  %v3779_v9 = vpop.f32.mrf.mxu2 }
 0x201   : > { %3012 = vpow2.f32 %v1788_v11  ;;  %v1147_v26 = vpop.f32.mrf.mxu0  ;;  %v2025_v37 = vmin.f32 %v1961_v58, 1.0  ;;  %v1981_v63 = vmax.f32 %v3007_v59, 0.0  ;;  %v1600_v35 = vmax.f32 %v1534_v20, -30.0  ;;  %v1316_v28 = vpop.f32.mrf.mxu1 }
 0x202   : > { %v1644_v7 = vsub.f32 0.0, %v1580_v21  ;;  %3014 = vrcp.f32 %v1854_v36  ;;  %v1148_v0 = vadd.f32 %v3754_v10, %v1147_v26 }
 0x203   : > { %2090 = vst.msk [vmem:[%s3305_s20 + $0x138] sm:$0xff] %vm2050_vm1, %v2025_v37  ;;  %v2045_v19 = vmin.f32 %v1981_v63, 1.0  ;;  %v1664_v29 = vsub.f32 0.0, %v1600_v35 }
 0x204   : > { %v1750_v41 = vmul.f32 1.442695, %v1644_v7  ;;  %v1317_v53 = vadd.f32 %v1316_v28, %v1148_v0 }
 0x205   : > { %v3009_v56 = vpop.eup %3008  ;;  %2110 = vst.msk [vmem:[%s3305_s20 + $0x1d8] sm:$0xff] %vm2050_vm1, %v2045_v19  ;;  %v1790_v38 = vmul.f32 1.442695, %v1664_v29 }
 0x206   : > { %v3011_v14 = vpop.eup %3010  ;;  %v1962_v45 = vmax.f32 %v3009_v56, 0.0  ;;  %3016 = vpow2.f32 %v1750_v41  ;;  %v1486_v44 = vadd.f32 %v3761_v39, %v1317_v53  ;;  %v1535_v54 = vpop.f32.mrf.mxu3 }
 0x207   : > { %v3013_v5 = vpop.eup %3012  ;;  %v1835_v42 = vadd.f32 1.0, %v3011_v14  ;;  %3018 = vpow2.f32 %v1790_v38  ;;  %v1536_v47 = vadd.f32 %v1535_v54, %v3686_v51 }
 0x208   : > { %v2026_v32 = vmin.f32 %v1962_v45, 1.0  ;;  %v1855_v48 = vadd.f32 1.0, %v3013_v5  ;;  %v3015_v55 = vpop.eup %3014  ;;  %v1581_v60 = vmax.f32 %v1486_v44, -30.0  ;;  %v3788_v61 = vpop.f32.mrf.mxu2 }
 0x209   : > { %3020 = vrcp.f32 %v1835_v42  ;;  %v1150_v24 = vpop.f32.mrf.mxu0  ;;  %v1982_v12 = vmax.f32 %v3015_v55, 0.0  ;;  %v1601_v1 = vmax.f32 %v1536_v47, -30.0  ;;  %v1319_v27 = vpop.f32.mrf.mxu1 }
 0x20a   : > { %2091 = vst.msk [vmem:[%s3305_s20 + $0x140] sm:$0xff] %vm2050_vm1, %v2026_v32  ;;  %3022 = vrcp.f32 %v1855_v48  ;;  %v1151_v39 = vadd.f32 %v3754_v10, %v1150_v24  ;;  %v1645_v30 = vsub.f32 0.0, %v1581_v60 }
 0x20b   : > { %v2046_v23 = vmin.f32 %v1982_v12, 1.0  ;;  %v1665_v43 = vsub.f32 0.0, %v1601_v1 }
 0x20c   : > { %v3017_v57 = vpop.eup %3016  ;;  %v1320_v51 = vadd.f32 %v1319_v27, %v1151_v39  ;;  %v1752_v2 = vmul.f32 1.442695, %v1645_v30 }
 0x20d   : > { %v1836_v3 = vadd.f32 1.0, %v3017_v57  ;;  %v3019_v22 = vpop.eup %3018  ;;  %2111 = vst.msk [vmem:[%s3305_s20 + $0x1e0] sm:$0xff] %vm2050_vm1, %v2046_v23  ;;  %v1792_v18 = vmul.f32 1.442695, %v1665_v43 }
 0x20e   : > { %v1489_v52 = vadd.f32 %v3770_v34, %v1320_v51  ;;  %v1856_v40 = vadd.f32 1.0, %v3019_v22 }
 0x20f   : > { %v3021_v6 = vpop.eup %3020  ;;  %3024 = vrcp.f32 %v1836_v3 }
 0x210   : > { %v3023_v17 = vpop.eup %3022  ;;  %v1963_v25 = vmax.f32 %v3021_v6, 0.0  ;;  %3026 = vpow2.f32 %v1752_v2  ;;  %v1582_v33 = vmax.f32 %v1489_v52, -30.0  ;;  %v3796_v8 = vpop.f32.mrf.mxu2 }
 0x211   : > { %v1983_v50 = vmax.f32 %v3023_v17, 0.0  ;;  %3028 = vrcp.f32 %v1856_v40  ;;  %v1152_v11 = vpop.f32.mrf.mxu0  ;;  %v1321_v34 = vpop.f32.mrf.mxu1 }
 0x212   : > { %v2027_v62 = vmin.f32 %v1963_v25, 1.0  ;;  %3030 = vpow2.f32 %v1792_v18  ;;  %v1646_v31 = vsub.f32 0.0, %v1582_v33  ;;  %v1153_v4 = vadd.f32 %v3754_v10, %v1152_v11 }
 0x213   : > { %v2047_v13 = vmin.f32 %v1983_v50, 1.0 }
 0x214   : > { %2092 = vst.msk [vmem:[%s3305_s20 + $0x148] sm:$0xff] %vm2050_vm1, %v2027_v62  ;;  %v1754_v58 = vmul.f32 1.442695, %v1646_v31  ;;  %v1322_v21 = vadd.f32 %v1321_v34, %v1153_v4 }
 0x215   : > { %v3025_v20 = vpop.eup %3024  ;;  %2112 = vst.msk [vmem:[%s3305_s20 + $0x1e8] sm:$0xff] %vm2050_vm1, %v2047_v13 }
 0x216   : > { %v3027_v59 = vpop.eup %3026  ;;  %v1964_v36 = vmax.f32 %v3025_v20, 0.0  ;;  %3032 = vpow2.f32 %v1754_v58  ;;  %v1491_v26 = vadd.f32 %v3779_v9, %v1322_v21 }
 0x217   : > { %v3029_v37 = vpop.eup %3028  ;;  %v1837_v63 = vadd.f32 1.0, %v3027_v59 }
 0x218   : > { %v3031_v7 = vpop.eup %3030  ;;  %v2028_v35 = vmin.f32 %v1964_v36, 1.0  ;;  %v1984_v28 = vmax.f32 %v3029_v37, 0.0  ;;  %v1583_v0 = vmax.f32 %v1491_v26, -30.0  ;;  %v1498_v41 = vpop.f32.mrf.mxu2 }
 0x219   : > { %3034 = vrcp.f32 %v1837_v63  ;;  %v1857_v19 = vadd.f32 1.0, %v3031_v7  ;;  %v1155_v29 = vpop.f32.mrf.mxu0  ;;  %v1499_v14 = vadd.f32 %v1498_v41, %v3470_v16  ;;  %v1324_v9 = vpop.f32.mrf.mxu1 }
 0x21a   : > { %2093 = vst.msk [vmem:[%s3305_s20 + $0x150] sm:$0xff] %vm2050_vm1, %v2028_v35  ;;  %v2048_v56 = vmin.f32 %v1984_v28, 1.0  ;;  %v1647_v53 = vsub.f32 0.0, %v1583_v0  ;;  %v1156_v45 = vadd.f32 %v3754_v10, %v1155_v29 }
 0x21b   : > { %3036 = vrcp.f32 %v1857_v19  ;;  %v1586_v42 = vmax.f32 %v1499_v14, -30.0 }
 0x21c   : > { %v3033_v38 = vpop.eup %3032  ;;  %2113 = vst.msk [vmem:[%s3305_s20 + $0x1f0] sm:$0xff] %vm2050_vm1, %v2048_v56  ;;  %v1756_v5 = vmul.f32 1.442695, %v1647_v53  ;;  %v1325_v44 = vadd.f32 %v1324_v9, %v1156_v45 }
 0x21d   : > { %v1838_v54 = vadd.f32 1.0, %v3033_v38  ;;  %v1650_v32 = vsub.f32 0.0, %v1586_v42 }
 0x21e   : > { %3038 = vpow2.f32 %v1756_v5  ;;  %v1494_v48 = vadd.f32 %v3788_v61, %v1325_v44 }
 0x21f   : > { %v3035_v47 = vpop.eup %3034  ;;  %3040 = vrcp.f32 %v1838_v54  ;;  %v1762_v16 = vmul.f32 1.442695, %v1650_v32 }
 0x220   : > { %v1965_v55 = vmax.f32 %v3035_v47, 0.0  ;;  %v1584_v60 = vmax.f32 %v1494_v48, -30.0  ;;  %v1500_v12 = vpop.f32.mrf.mxu2 }
 0x221   : > { %v3037_v24 = vpop.eup %3036  ;;  %v1157_v1 = vpop.f32.mrf.mxu0  ;;  %3042 = vpow2.f32 %v1762_v16  ;;  %v1501_v23 = vadd.f32 %v1500_v12, %v3487_v49 }
 0x222   : > { %v2029_v39 = vmin.f32 %v1965_v55, 1.0  ;;  %v1985_v27 = vmax.f32 %v3037_v24, 0.0  ;;  %v1648_v30 = vsub.f32 0.0, %v1584_v60  ;;  %v1326_v57 = vpop.f32.mrf.mxu1  ;;  %v1158_v43 = vadd.f32 %v3754_v10, %v1157_v1 }
 0x223   : > { %v1587_v18 = vmax.f32 %v1501_v23, -30.0 }
 0x224   : > { %v3039_v61 = vpop.eup %3038  ;;  %2094 = vst.msk [vmem:[%s3305_s20 + $0x158] sm:$0xff] %vm2050_vm1, %v2029_v39  ;;  %v2049_v51 = vmin.f32 %v1985_v27, 1.0  ;;  %v1758_v3 = vmul.f32 1.442695, %v1648_v30  ;;  %v1327_v52 = vadd.f32 %v1326_v57, %v1158_v43 }
 0x225   : > { %v3041_v2 = vpop.eup %3040  ;;  %v1839_v22 = vadd.f32 1.0, %v3039_v61  ;;  %v1651_v40 = vsub.f32 0.0, %v1587_v18 }
 0x226   : > { %2114 = vst.msk [vmem:[%s3305_s20 + $0x1f8] sm:$0xff] %vm2050_vm1, %v2049_v51  ;;  %v1966_v6 = vmax.f32 %v3041_v2, 0.0  ;;  %3044 = vpow2.f32 %v1758_v3  ;;  %v1496_v49 = vadd.f32 %v3796_v8, %v1327_v52 }
 0x227   : > { %3046 = vrcp.f32 %v1839_v22  ;;  %v3043_v17 = vpop.eup %3042  ;;  %v1764_v33 = vmul.f32 1.442695, %v1651_v40 }
 0x228   : > { %v2030_v10 = vmin.f32 %v1966_v6, 1.0  ;;  %v1842_v25 = vadd.f32 1.0, %v3043_v17  ;;  %v1585_v50 = vmax.f32 %v1496_v49, -30.0  ;;  %v1503_v11 = vpop.f32.mrf.mxu2 }
 0x229   : > { %v1504_v62 = vadd.f32 %v1503_v11, %v3500_v15 }
 0x22a   : > { %2095 = vst.msk [vmem:[%s3305_s20 + $0x160] sm:$0xff] %vm2050_vm1, %v2030_v10  ;;  %3048 = vrcp.f32 %v1842_v25  ;;  %v1649_v31 = vsub.f32 0.0, %v1585_v50 }
 0x22b   : > { %3050 = vpow2.f32 %v1764_v33  ;;  %v1588_v34 = vmax.f32 %v1504_v62, -30.0 }
 0x22c   : > { %v3045_v4 = vpop.eup %3044  ;;  %v1760_v21 = vmul.f32 1.442695, %v1649_v31 }
 0x22d   : > { %v3047_v13 = vpop.eup %3046  ;;  %v1840_v58 = vadd.f32 1.0, %v3045_v4  ;;  %v1652_v20 = vsub.f32 0.0, %v1588_v34 }
 0x22e   : > { %v1967_v8 = vmax.f32 %v3047_v13, 0.0 }
 0x22f   : > { %3052 = vrcp.f32 %v1840_v58  ;;  %v1766_v36 = vmul.f32 1.442695, %v1652_v20 }
 0x230   : > { %v2031_v59 = vmin.f32 %v1967_v8, 1.0  ;;  %3054 = vpow2.f32 %v1760_v21  ;;  %v3049_v26 = vpop.eup %3048  ;;  %v1505_v37 = vpop.f32.mrf.mxu2 }
 0x231   : > { %v3051_v63 = vpop.eup %3050  ;;  %v1970_v15 = vmax.f32 %v3049_v26, 0.0  ;;  %3056 = vpow2.f32 %v1766_v36  ;;  %v1506_v7 = vadd.f32 %v1505_v37, %v3517_v46 }
 0x232   : > { %2096 = vst.msk [vmem:[%s3305_s20 + $0x168] sm:$0xff] %vm2050_vm1, %v2031_v59  ;;  %v1843_v35 = vadd.f32 1.0, %v3051_v63 }
 0x233   : > { %v2034_v28 = vmin.f32 %v1970_v15, 1.0  ;;  %v1589_v0 = vmax.f32 %v1506_v7, -30.0 }
 0x234   : > { %3058 = vrcp.f32 %v1843_v35 }
 0x235   : > { %v3053_v19 = vpop.eup %3052  ;;  %2099 = vst.msk [vmem:[%s3305_s20 + $0x180] sm:$0xff] %vm2050_vm1, %v2034_v28  ;;  %v1653_v56 = vsub.f32 0.0, %v1589_v0 }
 0x236   : > { %v3055_v41 = vpop.eup %3054  ;;  %v1968_v29 = vmax.f32 %v3053_v19, 0.0 }
 0x237   : > { %v1841_v53 = vadd.f32 1.0, %v3055_v41  ;;  %v3057_v14 = vpop.eup %3056  ;;  %v1768_v9 = vmul.f32 1.442695, %v1653_v56 }
 0x238   : > { %v2032_v45 = vmin.f32 %v1968_v29, 1.0  ;;  %v1844_v38 = vadd.f32 1.0, %v3057_v14 }
 0x239   : > { %3060 = vrcp.f32 %v1841_v53 }
 0x23a   : > { %2097 = vst.msk [vmem:[%s3305_s20 + $0x170] sm:$0xff] %vm2050_vm1, %v2032_v45  ;;  %3062 = vpow2.f32 %v1768_v9  ;;  %v3059_v46 = vpop.eup %3058 }
 0x23b   : > { %3064 = vrcp.f32 %v1844_v38  ;;  %v1971_v5 = vmax.f32 %v3059_v46, 0.0 }
 0x23d   : > { %v2035_v42 = vmin.f32 %v1971_v5, 1.0 }
 0x23f   : > { %v3061_v44 = vpop.eup %3060  ;;  %2100 = vst.msk [vmem:[%s3305_s20 + $0x188] sm:$0xff] %vm2050_vm1, %v2035_v42 }
 0x240   : > { %v3063_v54 = vpop.eup %3062  ;;  %v1969_v32 = vmax.f32 %v3061_v44, 0.0 }
 0x241   : > { %v3065_v48 = vpop.eup %3064  ;;  %v1845_v47 = vadd.f32 1.0, %v3063_v54 }
 0x242   : > { %v2033_v55 = vmin.f32 %v1969_v32, 1.0  ;;  %v1972_v16 = vmax.f32 %v3065_v48, 0.0 }
 0x243   : > { %3066 = vrcp.f32 %v1845_v47 }
 0x244   : > { %2098 = vst.msk [vmem:[%s3305_s20 + $0x178] sm:$0xff] %vm2050_vm1, %v2033_v55  ;;  %v2036_v60 = vmin.f32 %v1972_v16, 1.0 }
 0x246   : > { %2101 = vst.msk [vmem:[%s3305_s20 + $0x190] sm:$0xff] %vm2050_vm1, %v2036_v60 }
 0x249   : > { %v3067_v24 = vpop.eup %3066 }
 0x24a   : > { %v1973_v12 = vmax.f32 %v3067_v24, 0.0 }
 0x24c   : > { %v2037_v1 = vmin.f32 %v1973_v12, 1.0 }
 0x24e   : > { %2102 = vst.msk [vmem:[%s3305_s20 + $0x198] sm:$0xff] %vm2050_vm1, %v2037_v1 }
 0x24f PF: > { %s13_s12 = sadd.s32 1, %s3076_s12  }
 0x250   : > { %p10_p4 = scmp.ge.s32.totalorder %s13_s12, 6  }
 0x252   :  { %12 = sbr.rel (!%p10_p4) target bundleno = 1 (0x1), region = 62 }

</bundles_post_ra>
